<compile_context>
chip_gen: v7x
topology: tpu7x:2x2x1
jax: 0.10.0
libtpu: 0.0.40
codegen_flags: <defaults>
</compile_context>

<pallas_src>
import math

import numpy as np
import jax
import jax.numpy as jnp
from jax.experimental import pallas as pl
from jax.experimental.pallas import tpu as pltpu

_BN_EPS = 1e-5


# ----------------------------------------------------------------------------
# Trace-time helpers (numpy -> compile-time constants)
# ----------------------------------------------------------------------------
def _conv_select(l_in, ksize, stride, pad):
    """0/1 selection matrices: (S[k] @ x)[l] = x[l*stride - pad + k] (0 if OOB)."""
    l_out = (l_in + 2 * pad - ksize) // stride + 1
    sel = np.zeros((ksize, l_out, l_in), np.float32)
    for k in range(ksize):
        for l in range(l_out):
            i = l * stride - pad + k
            if 0 <= i < l_in:
                sel[k, l, i] = 1.0
    return sel


def _is_identity(a):
    return a.shape[0] == a.shape[1] and np.array_equal(a, np.eye(a.shape[0], dtype=a.dtype))


# ----------------------------------------------------------------------------
# Parameters (deterministic, mirroring the module's __init__)
# ----------------------------------------------------------------------------
def _bn_params(c):
    return {"gamma": jnp.ones((c,), jnp.float32),
            "beta": jnp.zeros((c,), jnp.float32),
            "mean": jnp.zeros((c,), jnp.float32),
            "var": jnp.ones((c,), jnp.float32)}


def _conv_w(key, cout, cin, k):
    std = math.sqrt(2.0 / (k * cout))
    return jax.random.normal(key, (cout, cin, k), jnp.float32) * std


def init_params(key):
    """Raw PyTorch-layout parameters (Conv1d weight (C_out, C_in, K), BN dicts)."""
    keys = iter(jax.random.split(key, 64))
    p = {"conv1": _conv_w(next(keys), 64, 1, 7), "bn1": _bn_params(64)}

    def make_block(inplanes, planes, stride):
        blk = {"conv1": _conv_w(next(keys), planes, inplanes, 3), "bn1": _bn_params(planes),
               "conv2": _conv_w(next(keys), planes, planes, 3), "bn2": _bn_params(planes)}
        if stride != 1 or inplanes != planes:
            blk["down_w"] = _conv_w(next(keys), planes, inplanes, 1)
            blk["down_bn"] = _bn_params(planes)
        return blk

    inplanes = 64
    for name, planes, stride, nblocks in (("layer1", 64, 1, 2),
                                          ("layer2", 128, 2, 2),
                                          ("layer3", 256, 2, 2)):
        blocks = [make_block(inplanes, planes, stride)]
        inplanes = planes
        for _ in range(1, nblocks):
            blocks.append(make_block(inplanes, planes, 1))
        p[name] = blocks
    return p


def _fold_bn(w_torch, bn):
    """Conv (C_out,C_in,K) + inference BN  ->  per-tap (K,C_in,C_out) weight + (1,C_out) bias."""
    scale = bn["gamma"] / jnp.sqrt(bn["var"] + _BN_EPS)          # (C_out,)
    w = jnp.transpose(w_torch, (2, 1, 0)) * scale                # (K, C_in, C_out)
    b = (bn["beta"] - bn["mean"] * scale).reshape(1, -1)
    return w.astype(jnp.float32), b.astype(jnp.float32)


def prepare_params(params):
    """One-time BN folding / weight re-layout (done once, outside the forward jit)."""
    prep = {"blocks": []}
    prep["stem_w"], prep["stem_b"] = _fold_bn(params["conv1"], params["bn1"])  # (7,1,64),(1,64)
    for name in ("layer1", "layer2", "layer3"):
        for bp in params[name]:
            blk = {}
            if "down_w" in bp:
                blk["wd"], blk["bd"] = _fold_bn(bp["down_w"], bp["down_bn"])
            blk["w1"], blk["b1"] = _fold_bn(bp["conv1"], bp["bn1"])
            blk["w2"], blk["b2"] = _fold_bn(bp["conv2"], bp["bn2"])
            prep["blocks"].append(blk)
    return prep


# ----------------------------------------------------------------------------
# Fully fused forward pass (one pallas_call)
# ----------------------------------------------------------------------------
def resnet_forward(prep, x):
    """x: (B, L) float32  ->  (B, 256) float32."""
    B, L = x.shape
    x = x.astype(jnp.float32)

    # ---- static length plan -------------------------------------------------
    L0 = (L + 2 - 7) // 2 + 1        # stem conv   (k=7, s=2, p=1)
    L1 = (L0 + 2 - 2) // 2 + 1       # maxpool     (k=2, s=2, p=1)
    L2 = (L1 + 2 - 3) // 2 + 1       # layer2 s=2
    L3 = (L2 + 2 - 3) // 2 + 1       # layer3 s=2

    # Selection ("shift/subsample") matrices, built once at trace time.
    sel_np = [
        _conv_select(L0, 2, 2, 1),   # 0: maxpool windows
        _conv_select(L1, 3, 1, 1),   # 1: layer1 convs          (stride 1 @ L1)
        _conv_select(L1, 3, 2, 1),   # 2: layer2 conv1 / downsample (stride 2)
        _conv_select(L2, 3, 1, 1),   # 3: layer2 conv2 & block2 (stride 1 @ L2)
        _conv_select(L2, 3, 2, 1),   # 4: layer3 conv1 / downsample (stride 2)
        _conv_select(L3, 3, 1, 1),   # 5: layer3 conv2 & block2 (stride 1 @ L3)
    ]
    n_sel = len(sel_np)
    # (selection set for conv1/downsample, selection set for conv2) per block
    block_sel = [(1, 1), (1, 1), (2, 3), (3, 3), (4, 5), (5, 5)]
    ds_flags = ["wd" in blk for blk in prep["blocks"]]

    # Stem tap matrix: xcol[b, l, k] = x[b, 2*l - 1 + k] (zero padded) -- 868 floats.
    xpad = jnp.pad(x, ((0, 0), (1, 1)))
    xcol = jnp.stack([xpad[:, k:k + 2 * L0:2] for k in range(7)], axis=-1)   # (B, L0, 7)

    # Flat, ordered weight/bias argument list.
    w_args = [prep["stem_w"], prep["stem_b"]]
    for blk, ds in zip(prep["blocks"], ds_flags):
        if ds:
            w_args += [blk["wd"], blk["bd"]]
        w_args += [blk["w1"], blk["b1"], blk["w2"], blk["b2"]]

    c_final = prep["blocks"][-1]["w2"].shape[-1]
    sel_args = [jnp.asarray(s) for s in sel_np]

    def kernel(*refs):
        xc_ref = refs[0]
        sel_refs = refs[1:1 + n_sel]
        w_refs = refs[1 + n_sel:-1]
        o_ref = refs[-1]

        def dot(a, b):
            return jnp.dot(a, b, preferred_element_type=jnp.float32)

        def conv_bn(h, si, w_ref, b_ref):
            """sum_k (S_k @ h) @ W_k + b  (identity tap of stride-1 convs is skipped)."""
            acc = None
            for k in range(sel_np[si].shape[0]):
                g = h if _is_identity(sel_np[si][k]) else dot(sel_refs[si][k], h)
                t = dot(g, w_ref[k])
                acc = t if acc is None else acc + t
            return acc + b_ref[...]

        # ---- stem: Conv1d(1,64,k=7,s=2,p=1) + BN + ReLU (7-tap VPU MAC, C_in == 1)
        xc = xc_ref[0]                                    # (L0, 7)
        stem_w_ref, stem_b_ref = w_refs[0], w_refs[1]     # (7,1,64), (1,64)
        acc = None
        for k in range(7):
            t = xc[:, k:k + 1] * stem_w_ref[k]            # (L0,1) * (1,64) -> (L0,64)
            acc = t if acc is None else acc + t
        h = jnp.maximum(acc + stem_b_ref[...], 0.0)       # (L0, 64)

        # ---- MaxPool1d(k=2,s=2,p=1): max of two row selections; h >= 0 post-ReLU,
        #      so the zero rows at the padded boundary behave like -inf padding.
        h = jnp.maximum(dot(sel_refs[0][0], h), dot(sel_refs[0][1], h))     # (L1, 64)

        # ---- residual stages (BasicBlock x 2 per layer) --------------------------
        wi = 2
        for (s1, s2), ds in zip(block_sel, ds_flags):
            if ds:
                wd_ref, bd_ref = w_refs[wi], w_refs[wi + 1]
                wi += 2
                # 1x1 stride-2 downsample == center tap of the stride-2 selection set.
                residual = dot(dot(sel_refs[s1][1], h), wd_ref[0]) + bd_ref[...]
            else:
                residual = h
            w1_ref, b1_ref, w2_ref, b2_ref = w_refs[wi:wi + 4]
            wi += 4
            t = jnp.maximum(conv_bn(h, s1, w1_ref, b1_ref), 0.0)
            u = conv_bn(t, s2, w2_ref, b2_ref)
            h = jnp.maximum(u + residual, 0.0)

        # ---- AdaptiveAvgPool1d(1) -------------------------------------------------
        o_ref[0] = jnp.mean(h, axis=0, keepdims=True)      # (1, c_final)

    const_arrays = sel_args + list(w_args)
    in_specs = [pl.BlockSpec((1, L0, 7), lambda b: (b, 0, 0))]
    for arr in const_arrays:
        in_specs.append(pl.BlockSpec(arr.shape, lambda b, _n=arr.ndim: (0,) * _n))

    out = pl.pallas_call(
        kernel,
        out_shape=jax.ShapeDtypeStruct((B, 1, c_final), jnp.float32),
        grid=(B,),
        in_specs=in_specs,
        out_specs=pl.BlockSpec((1, 1, c_final), lambda b: (b, 0, 0)),
        compiler_params=pltpu.CompilerParams(
            dimension_semantics=("parallel",),
            vmem_limit_bytes=32 * 1024 * 1024,
        ),
    )(xcol, *const_arrays)
    return out.reshape(B, c_final)


if __name__ == "__main__":
    key = jax.random.PRNGKey(0)
    pkey, xkey = jax.random.split(key)
    params = init_params(pkey)
    prep = prepare_params(params)      # BN folded once, outside the forward jit

    B, L = 2, 128
    x = jax.random.normal(xkey, (B, L), jnp.float32)

    fwd = jax.jit(resnet_forward)
    z = fwd(prep, x)
    jax.block_until_ready(z)
    assert z.shape == (B, 256), z.shape
    assert bool(jnp.all(jnp.isfinite(z)))
    print("KERNEL_OK")
</pallas_src>

<mosaic_0001>
module attributes {stable_mosaic.version = 11 : i64} {
  func.func @kernel(%arg0: i32, %arg1: memref<1x62x7xf32, #tpu.memory_space<vmem>>, %arg2: memref<2x32x62xf32, #tpu.memory_space<vmem>>, %arg3: memref<3x32x32xf32, #tpu.memory_space<vmem>>, %arg4: memref<3x16x32xf32, #tpu.memory_space<vmem>>, %arg5: memref<3x16x16xf32, #tpu.memory_space<vmem>>, %arg6: memref<3x8x16xf32, #tpu.memory_space<vmem>>, %arg7: memref<3x8x8xf32, #tpu.memory_space<vmem>>, %arg8: memref<7x1x64xf32, #tpu.memory_space<vmem>>, %arg9: memref<1x64xf32, #tpu.memory_space<vmem>>, %arg10: memref<3x64x64xf32, #tpu.memory_space<vmem>>, %arg11: memref<1x64xf32, #tpu.memory_space<vmem>>, %arg12: memref<3x64x64xf32, #tpu.memory_space<vmem>>, %arg13: memref<1x64xf32, #tpu.memory_space<vmem>>, %arg14: memref<3x64x64xf32, #tpu.memory_space<vmem>>, %arg15: memref<1x64xf32, #tpu.memory_space<vmem>>, %arg16: memref<3x64x64xf32, #tpu.memory_space<vmem>>, %arg17: memref<1x64xf32, #tpu.memory_space<vmem>>, %arg18: memref<1x64x128xf32, #tpu.memory_space<vmem>>, %arg19: memref<1x128xf32, #tpu.memory_space<vmem>>, %arg20: memref<3x64x128xf32, #tpu.memory_space<vmem>>, %arg21: memref<1x128xf32, #tpu.memory_space<vmem>>, %arg22: memref<3x128x128xf32, #tpu.memory_space<vmem>>, %arg23: memref<1x128xf32, #tpu.memory_space<vmem>>, %arg24: memref<3x128x128xf32, #tpu.memory_space<vmem>>, %arg25: memref<1x128xf32, #tpu.memory_space<vmem>>, %arg26: memref<3x128x128xf32, #tpu.memory_space<vmem>>, %arg27: memref<1x128xf32, #tpu.memory_space<vmem>>, %arg28: memref<1x128x256xf32, #tpu.memory_space<vmem>>, %arg29: memref<1x256xf32, #tpu.memory_space<vmem>>, %arg30: memref<3x128x256xf32, #tpu.memory_space<vmem>>, %arg31: memref<1x256xf32, #tpu.memory_space<vmem>>, %arg32: memref<3x256x256xf32, #tpu.memory_space<vmem>>, %arg33: memref<1x256xf32, #tpu.memory_space<vmem>>, %arg34: memref<3x256x256xf32, #tpu.memory_space<vmem>>, %arg35: memref<1x256xf32, #tpu.memory_space<vmem>>, %arg36: memref<3x256x256xf32, #tpu.memory_space<vmem>>, %arg37: memref<1x256xf32, #tpu.memory_space<vmem>>, %arg38: memref<1x1x256xf32, #tpu.memory_space<vmem>>) attributes {dimension_semantics = [#tpu.dimension_semantics<parallel>], iteration_bounds = array<i64: 2>, scalar_prefetch = 0 : i64, scratch_operands = 0 : i64, tpu.core_type = #tpu.core_type<tc>, window_params = [{transform_indices = @transform_0, window_bounds = array<i64: 1, 62, 7>}, {pipeline_mode = #tpu.pipeline_mode<synchronous>, transform_indices = @transform_1, window_bounds = array<i64: 2, 32, 62>}, {pipeline_mode = #tpu.pipeline_mode<synchronous>, transform_indices = @transform_2, window_bounds = array<i64: 3, 32, 32>}, {pipeline_mode = #tpu.pipeline_mode<synchronous>, transform_indices = @transform_3, window_bounds = array<i64: 3, 16, 32>}, {pipeline_mode = #tpu.pipeline_mode<synchronous>, transform_indices = @transform_4, window_bounds = array<i64: 3, 16, 16>}, {pipeline_mode = #tpu.pipeline_mode<synchronous>, transform_indices = @transform_5, window_bounds = array<i64: 3, 8, 16>}, {pipeline_mode = #tpu.pipeline_mode<synchronous>, transform_indices = @transform_6, window_bounds = array<i64: 3, 8, 8>}, {pipeline_mode = #tpu.pipeline_mode<synchronous>, transform_indices = @transform_7, window_bounds = array<i64: 7, 1, 64>}, {pipeline_mode = #tpu.pipeline_mode<synchronous>, transform_indices = @transform_8, window_bounds = array<i64: 1, 64>}, {pipeline_mode = #tpu.pipeline_mode<synchronous>, transform_indices = @transform_9, window_bounds = array<i64: 3, 64, 64>}, {pipeline_mode = #tpu.pipeline_mode<synchronous>, transform_indices = @transform_10, window_bounds = array<i64: 1, 64>}, {pipeline_mode = #tpu.pipeline_mode<synchronous>, transform_indices = @transform_11, window_bounds = array<i64: 3, 64, 64>}, {pipeline_mode = #tpu.pipeline_mode<synchronous>, transform_indices = @transform_12, window_bounds = array<i64: 1, 64>}, {pipeline_mode = #tpu.pipeline_mode<synchronous>, transform_indices = @transform_13, window_bounds = array<i64: 3, 64, 64>}, {pipeline_mode = #tpu.pipeline_mode<synchronous>, transform_indices = @transform_14, window_bounds = array<i64: 1, 64>}, {pipeline_mode = #tpu.pipeline_mode<synchronous>, transform_indices = @transform_15, window_bounds = array<i64: 3, 64, 64>}, {pipeline_mode = #tpu.pipeline_mode<synchronous>, transform_indices = @transform_16, window_bounds = array<i64: 1, 64>}, {pipeline_mode = #tpu.pipeline_mode<synchronous>, transform_indices = @transform_17, window_bounds = array<i64: 1, 64, 128>}, {pipeline_mode = #tpu.pipeline_mode<synchronous>, transform_indices = @transform_18, window_bounds = array<i64: 1, 128>}, {pipeline_mode = #tpu.pipeline_mode<synchronous>, transform_indices = @transform_19, window_bounds = array<i64: 3, 64, 128>}, {pipeline_mode = #tpu.pipeline_mode<synchronous>, transform_indices = @transform_20, window_bounds = array<i64: 1, 128>}, {pipeline_mode = #tpu.pipeline_mode<synchronous>, transform_indices = @transform_21, window_bounds = array<i64: 3, 128, 128>}, {pipeline_mode = #tpu.pipeline_mode<synchronous>, transform_indices = @transform_22, window_bounds = array<i64: 1, 128>}, {pipeline_mode = #tpu.pipeline_mode<synchronous>, transform_indices = @transform_23, window_bounds = array<i64: 3, 128, 128>}, {pipeline_mode = #tpu.pipeline_mode<synchronous>, transform_indices = @transform_24, window_bounds = array<i64: 1, 128>}, {pipeline_mode = #tpu.pipeline_mode<synchronous>, transform_indices = @transform_25, window_bounds = array<i64: 3, 128, 128>}, {pipeline_mode = #tpu.pipeline_mode<synchronous>, transform_indices = @transform_26, window_bounds = array<i64: 1, 128>}, {pipeline_mode = #tpu.pipeline_mode<synchronous>, transform_indices = @transform_27, window_bounds = array<i64: 1, 128, 256>}, {pipeline_mode = #tpu.pipeline_mode<synchronous>, transform_indices = @transform_28, window_bounds = array<i64: 1, 256>}, {pipeline_mode = #tpu.pipeline_mode<synchronous>, transform_indices = @transform_29, window_bounds = array<i64: 3, 128, 256>}, {pipeline_mode = #tpu.pipeline_mode<synchronous>, transform_indices = @transform_30, window_bounds = array<i64: 1, 256>}, {pipeline_mode = #tpu.pipeline_mode<synchronous>, transform_indices = @transform_31, window_bounds = array<i64: 3, 256, 256>}, {pipeline_mode = #tpu.pipeline_mode<synchronous>, transform_indices = @transform_32, window_bounds = array<i64: 1, 256>}, {pipeline_mode = #tpu.pipeline_mode<synchronous>, transform_indices = @transform_33, window_bounds = array<i64: 3, 256, 256>}, {pipeline_mode = #tpu.pipeline_mode<synchronous>, transform_indices = @transform_34, window_bounds = array<i64: 1, 256>}, {pipeline_mode = #tpu.pipeline_mode<synchronous>, transform_indices = @transform_35, window_bounds = array<i64: 3, 256, 256>}, {pipeline_mode = #tpu.pipeline_mode<synchronous>, transform_indices = @transform_36, window_bounds = array<i64: 1, 256>}, {transform_indices = @transform_37, window_bounds = array<i64: 1, 1, 256>}]} {
    %c0 = arith.constant 0 : index
    %c0_0 = arith.constant 0 : index
    %c0_1 = arith.constant 0 : index
    %0 = vector.load %arg1[%c0, %c0_0, %c0_1] : memref<1x62x7xf32, #tpu.memory_space<vmem>>, vector<1x62x7xf32>
    %1 = vector.shape_cast %0 : vector<1x62x7xf32> to vector<62x7xf32>
    %2 = vector.extract_strided_slice %1 {offsets = [0, 0], sizes = [62, 1], strides = [1, 1]} : vector<62x7xf32> to vector<62x1xf32>
    %c0_2 = arith.constant 0 : index
    %c0_3 = arith.constant 0 : index
    %c0_4 = arith.constant 0 : index
    %3 = vector.load %arg8[%c0_2, %c0_3, %c0_4] : memref<7x1x64xf32, #tpu.memory_space<vmem>>, vector<1x1x64xf32>
    %4 = vector.shape_cast %3 : vector<1x1x64xf32> to vector<1x64xf32>
    %5 = vector.broadcast %2 : vector<62x1xf32> to vector<62x64xf32>
    %6 = vector.broadcast %4 : vector<1x64xf32> to vector<62x64xf32>
    %7 = arith.mulf %5, %6 : vector<62x64xf32>
    %8 = vector.extract_strided_slice %1 {offsets = [0, 1], sizes = [62, 1], strides = [1, 1]} : vector<62x7xf32> to vector<62x1xf32>
    %c1 = arith.constant 1 : index
    %c0_5 = arith.constant 0 : index
    %c0_6 = arith.constant 0 : index
    %9 = vector.load %arg8[%c1, %c0_5, %c0_6] : memref<7x1x64xf32, #tpu.memory_space<vmem>>, vector<1x1x64xf32>
    %10 = vector.shape_cast %9 : vector<1x1x64xf32> to vector<1x64xf32>
    %11 = vector.broadcast %8 : vector<62x1xf32> to vector<62x64xf32>
    %12 = vector.broadcast %10 : vector<1x64xf32> to vector<62x64xf32>
    %13 = arith.mulf %11, %12 : vector<62x64xf32>
    %14 = arith.addf %7, %13 : vector<62x64xf32>
    %15 = vector.extract_strided_slice %1 {offsets = [0, 2], sizes = [62, 1], strides = [1, 1]} : vector<62x7xf32> to vector<62x1xf32>
    %c2 = arith.constant 2 : index
    %c0_7 = arith.constant 0 : index
    %c0_8 = arith.constant 0 : index
    %16 = vector.load %arg8[%c2, %c0_7, %c0_8] : memref<7x1x64xf32, #tpu.memory_space<vmem>>, vector<1x1x64xf32>
    %17 = vector.shape_cast %16 : vector<1x1x64xf32> to vector<1x64xf32>
    %18 = vector.broadcast %15 : vector<62x1xf32> to vector<62x64xf32>
    %19 = vector.broadcast %17 : vector<1x64xf32> to vector<62x64xf32>
    %20 = arith.mulf %18, %19 : vector<62x64xf32>
    %21 = arith.addf %14, %20 : vector<62x64xf32>
    %22 = vector.extract_strided_slice %1 {offsets = [0, 3], sizes = [62, 1], strides = [1, 1]} : vector<62x7xf32> to vector<62x1xf32>
    %c3 = arith.constant 3 : index
    %c0_9 = arith.constant 0 : index
    %c0_10 = arith.constant 0 : index
    %23 = vector.load %arg8[%c3, %c0_9, %c0_10] : memref<7x1x64xf32, #tpu.memory_space<vmem>>, vector<1x1x64xf32>
    %24 = vector.shape_cast %23 : vector<1x1x64xf32> to vector<1x64xf32>
    %25 = vector.broadcast %22 : vector<62x1xf32> to vector<62x64xf32>
    %26 = vector.broadcast %24 : vector<1x64xf32> to vector<62x64xf32>
    %27 = arith.mulf %25, %26 : vector<62x64xf32>
    %28 = arith.addf %21, %27 : vector<62x64xf32>
    %29 = vector.extract_strided_slice %1 {offsets = [0, 4], sizes = [62, 1], strides = [1, 1]} : vector<62x7xf32> to vector<62x1xf32>
    %c4 = arith.constant 4 : index
    %c0_11 = arith.constant 0 : index
    %c0_12 = arith.constant 0 : index
    %30 = vector.load %arg8[%c4, %c0_11, %c0_12] : memref<7x1x64xf32, #tpu.memory_space<vmem>>, vector<1x1x64xf32>
    %31 = vector.shape_cast %30 : vector<1x1x64xf32> to vector<1x64xf32>
    %32 = vector.broadcast %29 : vector<62x1xf32> to vector<62x64xf32>
    %33 = vector.broadcast %31 : vector<1x64xf32> to vector<62x64xf32>
    %34 = arith.mulf %32, %33 : vector<62x64xf32>
    %35 = arith.addf %28, %34 : vector<62x64xf32>
    %36 = vector.extract_strided_slice %1 {offsets = [0, 5], sizes = [62, 1], strides = [1, 1]} : vector<62x7xf32> to vector<62x1xf32>
    %c5 = arith.constant 5 : index
    %c0_13 = arith.constant 0 : index
    %c0_14 = arith.constant 0 : index
    %37 = vector.load %arg8[%c5, %c0_13, %c0_14] : memref<7x1x64xf32, #tpu.memory_space<vmem>>, vector<1x1x64xf32>
    %38 = vector.shape_cast %37 : vector<1x1x64xf32> to vector<1x64xf32>
    %39 = vector.broadcast %36 : vector<62x1xf32> to vector<62x64xf32>
    %40 = vector.broadcast %38 : vector<1x64xf32> to vector<62x64xf32>
    %41 = arith.mulf %39, %40 : vector<62x64xf32>
    %42 = arith.addf %35, %41 : vector<62x64xf32>
    %43 = vector.extract_strided_slice %1 {offsets = [0, 6], sizes = [62, 1], strides = [1, 1]} : vector<62x7xf32> to vector<62x1xf32>
    %c6 = arith.constant 6 : index
    %c0_15 = arith.constant 0 : index
    %c0_16 = arith.constant 0 : index
    %44 = vector.load %arg8[%c6, %c0_15, %c0_16] : memref<7x1x64xf32, #tpu.memory_space<vmem>>, vector<1x1x64xf32>
    %45 = vector.shape_cast %44 : vector<1x1x64xf32> to vector<1x64xf32>
    %46 = vector.broadcast %43 : vector<62x1xf32> to vector<62x64xf32>
    %47 = vector.broadcast %45 : vector<1x64xf32> to vector<62x64xf32>
    %48 = arith.mulf %46, %47 : vector<62x64xf32>
    %49 = arith.addf %42, %48 : vector<62x64xf32>
    %c0_17 = arith.constant 0 : index
    %c0_18 = arith.constant 0 : index
    %50 = vector.load %arg9[%c0_17, %c0_18] : memref<1x64xf32, #tpu.memory_space<vmem>>, vector<1x64xf32>
    %51 = vector.broadcast %50 : vector<1x64xf32> to vector<62x64xf32>
    %52 = arith.addf %49, %51 : vector<62x64xf32>
    %cst = arith.constant 0.000000e+00 : f32
    %53 = vector.broadcast %cst : f32 to vector<62x64xf32>
    %54 = arith.maximumf %52, %53 : vector<62x64xf32>
    %c0_19 = arith.constant 0 : index
    %c0_20 = arith.constant 0 : index
    %c0_21 = arith.constant 0 : index
    %55 = vector.load %arg2[%c0_19, %c0_20, %c0_21] : memref<2x32x62xf32, #tpu.memory_space<vmem>>, vector<1x32x62xf32>
    %56 = vector.shape_cast %55 : vector<1x32x62xf32> to vector<32x62xf32>
    %cst_22 = arith.constant dense<0.000000e+00> : vector<32x64xf32>
    %57 = tpu.matmul %56, %54, %cst_22 {dimension_numbers = #tpu.dot_dimension_numbers<[1], [0], [0], [1], [0, 0, 1, 1], [], []>} : vector<32x62xf32>, vector<62x64xf32>, vector<32x64xf32> -> vector<32x64xf32>
    %c1_23 = arith.constant 1 : index
    %c0_24 = arith.constant 0 : index
    %c0_25 = arith.constant 0 : index
    %58 = vector.load %arg2[%c1_23, %c0_24, %c0_25] : memref<2x32x62xf32, #tpu.memory_space<vmem>>, vector<1x32x62xf32>
    %59 = vector.shape_cast %58 : vector<1x32x62xf32> to vector<32x62xf32>
    %cst_26 = arith.constant dense<0.000000e+00> : vector<32x64xf32>
    %60 = tpu.matmul %59, %54, %cst_26 {dimension_numbers = #tpu.dot_dimension_numbers<[1], [0], [0], [1], [0, 0, 1, 1], [], []>} : vector<32x62xf32>, vector<62x64xf32>, vector<32x64xf32> -> vector<32x64xf32>
    %61 = arith.maximumf %57, %60 : vector<32x64xf32>
    %c0_27 = arith.constant 0 : index
    %c0_28 = arith.constant 0 : index
    %c0_29 = arith.constant 0 : index
    %62 = vector.load %arg3[%c0_27, %c0_28, %c0_29] : memref<3x32x32xf32, #tpu.memory_space<vmem>>, vector<1x32x32xf32>
    %63 = vector.shape_cast %62 : vector<1x32x32xf32> to vector<32x32xf32>
    %cst_30 = arith.constant dense<0.000000e+00> : vector<32x64xf32>
    %64 = tpu.matmul %63, %61, %cst_30 {dimension_numbers = #tpu.dot_dimension_numbers<[1], [0], [0], [1], [0, 0, 1, 1], [], []>} : vector<32x32xf32>, vector<32x64xf32>, vector<32x64xf32> -> vector<32x64xf32>
    %c0_31 = arith.constant 0 : index
    %c0_32 = arith.constant 0 : index
    %c0_33 = arith.constant 0 : index
    %65 = vector.load %arg10[%c0_31, %c0_32, %c0_33] : memref<3x64x64xf32, #tpu.memory_space<vmem>>, vector<1x64x64xf32>
    %66 = vector.shape_cast %65 : vector<1x64x64xf32> to vector<64x64xf32>
    %cst_34 = arith.constant dense<0.000000e+00> : vector<32x64xf32>
    %67 = tpu.matmul %64, %66, %cst_34 {dimension_numbers = #tpu.dot_dimension_numbers<[1], [0], [0], [1], [0, 0, 1, 1], [], []>} : vector<32x64xf32>, vector<64x64xf32>, vector<32x64xf32> -> vector<32x64xf32>
    %c1_35 = arith.constant 1 : index
    %c0_36 = arith.constant 0 : index
    %c0_37 = arith.constant 0 : index
    %68 = vector.load %arg10[%c1_35, %c0_36, %c0_37] : memref<3x64x64xf32, #tpu.memory_space<vmem>>, vector<1x64x64xf32>
    %69 = vector.shape_cast %68 : vector<1x64x64xf32> to vector<64x64xf32>
    %cst_38 = arith.constant dense<0.000000e+00> : vector<32x64xf32>
    %70 = tpu.matmul %61, %69, %cst_38 {dimension_numbers = #tpu.dot_dimension_numbers<[1], [0], [0], [1], [0, 0, 1, 1], [], []>} : vector<32x64xf32>, vector<64x64xf32>, vector<32x64xf32> -> vector<32x64xf32>
    %71 = arith.addf %67, %70 : vector<32x64xf32>
    %c2_39 = arith.constant 2 : index
    %c0_40 = arith.constant 0 : index
    %c0_41 = arith.constant 0 : index
    %72 = vector.load %arg3[%c2_39, %c0_40, %c0_41] : memref<3x32x32xf32, #tpu.memory_space<vmem>>, vector<1x32x32xf32>
    %73 = vector.shape_cast %72 : vector<1x32x32xf32> to vector<32x32xf32>
    %cst_42 = arith.constant dense<0.000000e+00> : vector<32x64xf32>
    %74 = tpu.matmul %73, %61, %cst_42 {dimension_numbers = #tpu.dot_dimension_numbers<[1], [0], [0], [1], [0, 0, 1, 1], [], []>} : vector<32x32xf32>, vector<32x64xf32>, vector<32x64xf32> -> vector<32x64xf32>
    %c2_43 = arith.constant 2 : index
    %c0_44 = arith.constant 0 : index
    %c0_45 = arith.constant 0 : index
    %75 = vector.load %arg10[%c2_43, %c0_44, %c0_45] : memref<3x64x64xf32, #tpu.memory_space<vmem>>, vector<1x64x64xf32>
    %76 = vector.shape_cast %75 : vector<1x64x64xf32> to vector<64x64xf32>
    %cst_46 = arith.constant dense<0.000000e+00> : vector<32x64xf32>
    %77 = tpu.matmul %74, %76, %cst_46 {dimension_numbers = #tpu.dot_dimension_numbers<[1], [0], [0], [1], [0, 0, 1, 1], [], []>} : vector<32x64xf32>, vector<64x64xf32>, vector<32x64xf32> -> vector<32x64xf32>
    %78 = arith.addf %71, %77 : vector<32x64xf32>
    %c0_47 = arith.constant 0 : index
    %c0_48 = arith.constant 0 : index
    %79 = vector.load %arg11[%c0_47, %c0_48] : memref<1x64xf32, #tpu.memory_space<vmem>>, vector<1x64xf32>
    %80 = vector.broadcast %79 : vector<1x64xf32> to vector<32x64xf32>
    %81 = arith.addf %78, %80 : vector<32x64xf32>
    %cst_49 = arith.constant 0.000000e+00 : f32
    %82 = vector.broadcast %cst_49 : f32 to vector<32x64xf32>
    %83 = arith.maximumf %81, %82 : vector<32x64xf32>
    %c0_50 = arith.constant 0 : index
    %c0_51 = arith.constant 0 : index
    %c0_52 = arith.constant 0 : index
    %84 = vector.load %arg3[%c0_50, %c0_51, %c0_52] : memref<3x32x32xf32, #tpu.memory_space<vmem>>, vector<1x32x32xf32>
    %85 = vector.shape_cast %84 : vector<1x32x32xf32> to vector<32x32xf32>
    %cst_53 = arith.constant dense<0.000000e+00> : vector<32x64xf32>
    %86 = tpu.matmul %85, %83, %cst_53 {dimension_numbers = #tpu.dot_dimension_numbers<[1], [0], [0], [1], [0, 0, 1, 1], [], []>} : vector<32x32xf32>, vector<32x64xf32>, vector<32x64xf32> -> vector<32x64xf32>
    %c0_54 = arith.constant 0 : index
    %c0_55 = arith.constant 0 : index
    %c0_56 = arith.constant 0 : index
    %87 = vector.load %arg12[%c0_54, %c0_55, %c0_56] : memref<3x64x64xf32, #tpu.memory_space<vmem>>, vector<1x64x64xf32>
    %88 = vector.shape_cast %87 : vector<1x64x64xf32> to vector<64x64xf32>
    %cst_57 = arith.constant dense<0.000000e+00> : vector<32x64xf32>
    %89 = tpu.matmul %86, %88, %cst_57 {dimension_numbers = #tpu.dot_dimension_numbers<[1], [0], [0], [1], [0, 0, 1, 1], [], []>} : vector<32x64xf32>, vector<64x64xf32>, vector<32x64xf32> -> vector<32x64xf32>
    %c1_58 = arith.constant 1 : index
    %c0_59 = arith.constant 0 : index
    %c0_60 = arith.constant 0 : index
    %90 = vector.load %arg12[%c1_58, %c0_59, %c0_60] : memref<3x64x64xf32, #tpu.memory_space<vmem>>, vector<1x64x64xf32>
    %91 = vector.shape_cast %90 : vector<1x64x64xf32> to vector<64x64xf32>
    %cst_61 = arith.constant dense<0.000000e+00> : vector<32x64xf32>
    %92 = tpu.matmul %83, %91, %cst_61 {dimension_numbers = #tpu.dot_dimension_numbers<[1], [0], [0], [1], [0, 0, 1, 1], [], []>} : vector<32x64xf32>, vector<64x64xf32>, vector<32x64xf32> -> vector<32x64xf32>
    %93 = arith.addf %89, %92 : vector<32x64xf32>
    %c2_62 = arith.constant 2 : index
    %c0_63 = arith.constant 0 : index
    %c0_64 = arith.constant 0 : index
    %94 = vector.load %arg3[%c2_62, %c0_63, %c0_64] : memref<3x32x32xf32, #tpu.memory_space<vmem>>, vector<1x32x32xf32>
    %95 = vector.shape_cast %94 : vector<1x32x32xf32> to vector<32x32xf32>
    %cst_65 = arith.constant dense<0.000000e+00> : vector<32x64xf32>
    %96 = tpu.matmul %95, %83, %cst_65 {dimension_numbers = #tpu.dot_dimension_numbers<[1], [0], [0], [1], [0, 0, 1, 1], [], []>} : vector<32x32xf32>, vector<32x64xf32>, vector<32x64xf32> -> vector<32x64xf32>
    %c2_66 = arith.constant 2 : index
    %c0_67 = arith.constant 0 : index
    %c0_68 = arith.constant 0 : index
    %97 = vector.load %arg12[%c2_66, %c0_67, %c0_68] : memref<3x64x64xf32, #tpu.memory_space<vmem>>, vector<1x64x64xf32>
    %98 = vector.shape_cast %97 : vector<1x64x64xf32> to vector<64x64xf32>
    %cst_69 = arith.constant dense<0.000000e+00> : vector<32x64xf32>
    %99 = tpu.matmul %96, %98, %cst_69 {dimension_numbers = #tpu.dot_dimension_numbers<[1], [0], [0], [1], [0, 0, 1, 1], [], []>} : vector<32x64xf32>, vector<64x64xf32>, vector<32x64xf32> -> vector<32x64xf32>
    %100 = arith.addf %93, %99 : vector<32x64xf32>
    %c0_70 = arith.constant 0 : index
    %c0_71 = arith.constant 0 : index
    %101 = vector.load %arg13[%c0_70, %c0_71] : memref<1x64xf32, #tpu.memory_space<vmem>>, vector<1x64xf32>
    %102 = vector.broadcast %101 : vector<1x64xf32> to vector<32x64xf32>
    %103 = arith.addf %100, %102 : vector<32x64xf32>
    %104 = arith.addf %103, %61 : vector<32x64xf32>
    %cst_72 = arith.constant 0.000000e+00 : f32
    %105 = vector.broadcast %cst_72 : f32 to vector<32x64xf32>
    %106 = arith.maximumf %104, %105 : vector<32x64xf32>
    %c0_73 = arith.constant 0 : index
    %c0_74 = arith.constant 0 : index
    %c0_75 = arith.constant 0 : index
    %107 = vector.load %arg3[%c0_73, %c0_74, %c0_75] : memref<3x32x32xf32, #tpu.memory_space<vmem>>, vector<1x32x32xf32>
    %108 = vector.shape_cast %107 : vector<1x32x32xf32> to vector<32x32xf32>
    %cst_76 = arith.constant dense<0.000000e+00> : vector<32x64xf32>
    %109 = tpu.matmul %108, %106, %cst_76 {dimension_numbers = #tpu.dot_dimension_numbers<[1], [0], [0], [1], [0, 0, 1, 1], [], []>} : vector<32x32xf32>, vector<32x64xf32>, vector<32x64xf32> -> vector<32x64xf32>
    %c0_77 = arith.constant 0 : index
    %c0_78 = arith.constant 0 : index
    %c0_79 = arith.constant 0 : index
    %110 = vector.load %arg14[%c0_77, %c0_78, %c0_79] : memref<3x64x64xf32, #tpu.memory_space<vmem>>, vector<1x64x64xf32>
    %111 = vector.shape_cast %110 : vector<1x64x64xf32> to vector<64x64xf32>
    %cst_80 = arith.constant dense<0.000000e+00> : vector<32x64xf32>
    %112 = tpu.matmul %109, %111, %cst_80 {dimension_numbers = #tpu.dot_dimension_numbers<[1], [0], [0], [1], [0, 0, 1, 1], [], []>} : vector<32x64xf32>, vector<64x64xf32>, vector<32x64xf32> -> vector<32x64xf32>
    %c1_81 = arith.constant 1 : index
    %c0_82 = arith.constant 0 : index
    %c0_83 = arith.constant 0 : index
    %113 = vector.load %arg14[%c1_81, %c0_82, %c0_83] : memref<3x64x64xf32, #tpu.memory_space<vmem>>, vector<1x64x64xf32>
    %114 = vector.shape_cast %113 : vector<1x64x64xf32> to vector<64x64xf32>
    %cst_84 = arith.constant dense<0.000000e+00> : vector<32x64xf32>
    %115 = tpu.matmul %106, %114, %cst_84 {dimension_numbers = #tpu.dot_dimension_numbers<[1], [0], [0], [1], [0, 0, 1, 1], [], []>} : vector<32x64xf32>, vector<64x64xf32>, vector<32x64xf32> -> vector<32x64xf32>
    %116 = arith.addf %112, %115 : vector<32x64xf32>
    %c2_85 = arith.constant 2 : index
    %c0_86 = arith.constant 0 : index
    %c0_87 = arith.constant 0 : index
    %117 = vector.load %arg3[%c2_85, %c0_86, %c0_87] : memref<3x32x32xf32, #tpu.memory_space<vmem>>, vector<1x32x32xf32>
    %118 = vector.shape_cast %117 : vector<1x32x32xf32> to vector<32x32xf32>
    %cst_88 = arith.constant dense<0.000000e+00> : vector<32x64xf32>
    %119 = tpu.matmul %118, %106, %cst_88 {dimension_numbers = #tpu.dot_dimension_numbers<[1], [0], [0], [1], [0, 0, 1, 1], [], []>} : vector<32x32xf32>, vector<32x64xf32>, vector<32x64xf32> -> vector<32x64xf32>
    %c2_89 = arith.constant 2 : index
    %c0_90 = arith.constant 0 : index
    %c0_91 = arith.constant 0 : index
    %120 = vector.load %arg14[%c2_89, %c0_90, %c0_91] : memref<3x64x64xf32, #tpu.memory_space<vmem>>, vector<1x64x64xf32>
    %121 = vector.shape_cast %120 : vector<1x64x64xf32> to vector<64x64xf32>
    %cst_92 = arith.constant dense<0.000000e+00> : vector<32x64xf32>
    %122 = tpu.matmul %119, %121, %cst_92 {dimension_numbers = #tpu.dot_dimension_numbers<[1], [0], [0], [1], [0, 0, 1, 1], [], []>} : vector<32x64xf32>, vector<64x64xf32>, vector<32x64xf32> -> vector<32x64xf32>
    %123 = arith.addf %116, %122 : vector<32x64xf32>
    %c0_93 = arith.constant 0 : index
    %c0_94 = arith.constant 0 : index
    %124 = vector.load %arg15[%c0_93, %c0_94] : memref<1x64xf32, #tpu.memory_space<vmem>>, vector<1x64xf32>
    %125 = vector.broadcast %124 : vector<1x64xf32> to vector<32x64xf32>
    %126 = arith.addf %123, %125 : vector<32x64xf32>
    %cst_95 = arith.constant 0.000000e+00 : f32
    %127 = vector.broadcast %cst_95 : f32 to vector<32x64xf32>
    %128 = arith.maximumf %126, %127 : vector<32x64xf32>
    %c0_96 = arith.constant 0 : index
    %c0_97 = arith.constant 0 : index
    %c0_98 = arith.constant 0 : index
    %129 = vector.load %arg3[%c0_96, %c0_97, %c0_98] : memref<3x32x32xf32, #tpu.memory_space<vmem>>, vector<1x32x32xf32>
    %130 = vector.shape_cast %129 : vector<1x32x32xf32> to vector<32x32xf32>
    %cst_99 = arith.constant dense<0.000000e+00> : vector<32x64xf32>
    %131 = tpu.matmul %130, %128, %cst_99 {dimension_numbers = #tpu.dot_dimension_numbers<[1], [0], [0], [1], [0, 0, 1, 1], [], []>} : vector<32x32xf32>, vector<32x64xf32>, vector<32x64xf32> -> vector<32x64xf32>
    %c0_100 = arith.constant 0 : index
    %c0_101 = arith.constant 0 : index
    %c0_102 = arith.constant 0 : index
    %132 = vector.load %arg16[%c0_100, %c0_101, %c0_102] : memref<3x64x64xf32, #tpu.memory_space<vmem>>, vector<1x64x64xf32>
    %133 = vector.shape_cast %132 : vector<1x64x64xf32> to vector<64x64xf32>
    %cst_103 = arith.constant dense<0.000000e+00> : vector<32x64xf32>
    %134 = tpu.matmul %131, %133, %cst_103 {dimension_numbers = #tpu.dot_dimension_numbers<[1], [0], [0], [1], [0, 0, 1, 1], [], []>} : vector<32x64xf32>, vector<64x64xf32>, vector<32x64xf32> -> vector<32x64xf32>
    %c1_104 = arith.constant 1 : index
    %c0_105 = arith.constant 0 : index
    %c0_106 = arith.constant 0 : index
    %135 = vector.load %arg16[%c1_104, %c0_105, %c0_106] : memref<3x64x64xf32, #tpu.memory_space<vmem>>, vector<1x64x64xf32>
    %136 = vector.shape_cast %135 : vector<1x64x64xf32> to vector<64x64xf32>
    %cst_107 = arith.constant dense<0.000000e+00> : vector<32x64xf32>
    %137 = tpu.matmul %128, %136, %cst_107 {dimension_numbers = #tpu.dot_dimension_numbers<[1], [0], [0], [1], [0, 0, 1, 1], [], []>} : vector<32x64xf32>, vector<64x64xf32>, vector<32x64xf32> -> vector<32x64xf32>
    %138 = arith.addf %134, %137 : vector<32x64xf32>
    %c2_108 = arith.constant 2 : index
    %c0_109 = arith.constant 0 : index
    %c0_110 = arith.constant 0 : index
    %139 = vector.load %arg3[%c2_108, %c0_109, %c0_110] : memref<3x32x32xf32, #tpu.memory_space<vmem>>, vector<1x32x32xf32>
    %140 = vector.shape_cast %139 : vector<1x32x32xf32> to vector<32x32xf32>
    %cst_111 = arith.constant dense<0.000000e+00> : vector<32x64xf32>
    %141 = tpu.matmul %140, %128, %cst_111 {dimension_numbers = #tpu.dot_dimension_numbers<[1], [0], [0], [1], [0, 0, 1, 1], [], []>} : vector<32x32xf32>, vector<32x64xf32>, vector<32x64xf32> -> vector<32x64xf32>
    %c2_112 = arith.constant 2 : index
    %c0_113 = arith.constant 0 : index
    %c0_114 = arith.constant 0 : index
    %142 = vector.load %arg16[%c2_112, %c0_113, %c0_114] : memref<3x64x64xf32, #tpu.memory_space<vmem>>, vector<1x64x64xf32>
    %143 = vector.shape_cast %142 : vector<1x64x64xf32> to vector<64x64xf32>
    %cst_115 = arith.constant dense<0.000000e+00> : vector<32x64xf32>
    %144 = tpu.matmul %141, %143, %cst_115 {dimension_numbers = #tpu.dot_dimension_numbers<[1], [0], [0], [1], [0, 0, 1, 1], [], []>} : vector<32x64xf32>, vector<64x64xf32>, vector<32x64xf32> -> vector<32x64xf32>
    %145 = arith.addf %138, %144 : vector<32x64xf32>
    %c0_116 = arith.constant 0 : index
    %c0_117 = arith.constant 0 : index
    %146 = vector.load %arg17[%c0_116, %c0_117] : memref<1x64xf32, #tpu.memory_space<vmem>>, vector<1x64xf32>
    %147 = vector.broadcast %146 : vector<1x64xf32> to vector<32x64xf32>
    %148 = arith.addf %145, %147 : vector<32x64xf32>
    %149 = arith.addf %148, %106 : vector<32x64xf32>
    %cst_118 = arith.constant 0.000000e+00 : f32
    %150 = vector.broadcast %cst_118 : f32 to vector<32x64xf32>
    %151 = arith.maximumf %149, %150 : vector<32x64xf32>
    %c1_119 = arith.constant 1 : index
    %c0_120 = arith.constant 0 : index
    %c0_121 = arith.constant 0 : index
    %152 = vector.load %arg4[%c1_119, %c0_120, %c0_121] : memref<3x16x32xf32, #tpu.memory_space<vmem>>, vector<1x16x32xf32>
    %153 = vector.shape_cast %152 : vector<1x16x32xf32> to vector<16x32xf32>
    %cst_122 = arith.constant dense<0.000000e+00> : vector<16x64xf32>
    %154 = tpu.matmul %153, %151, %cst_122 {dimension_numbers = #tpu.dot_dimension_numbers<[1], [0], [0], [1], [0, 0, 1, 1], [], []>} : vector<16x32xf32>, vector<32x64xf32>, vector<16x64xf32> -> vector<16x64xf32>
    %c0_123 = arith.constant 0 : index
    %c0_124 = arith.constant 0 : index
    %c0_125 = arith.constant 0 : index
    %155 = vector.load %arg18[%c0_123, %c0_124, %c0_125] : memref<1x64x128xf32, #tpu.memory_space<vmem>>, vector<1x64x128xf32>
    %156 = vector.shape_cast %155 : vector<1x64x128xf32> to vector<64x128xf32>
    %cst_126 = arith.constant dense<0.000000e+00> : vector<16x128xf32>
    %157 = tpu.matmul %154, %156, %cst_126 {dimension_numbers = #tpu.dot_dimension_numbers<[1], [0], [0], [1], [0, 0, 1, 1], [], []>} : vector<16x64xf32>, vector<64x128xf32>, vector<16x128xf32> -> vector<16x128xf32>
    %c0_127 = arith.constant 0 : index
    %c0_128 = arith.constant 0 : index
    %158 = vector.load %arg19[%c0_127, %c0_128] : memref<1x128xf32, #tpu.memory_space<vmem>>, vector<1x128xf32>
    %159 = vector.broadcast %158 : vector<1x128xf32> to vector<16x128xf32>
    %160 = arith.addf %157, %159 : vector<16x128xf32>
    %c0_129 = arith.constant 0 : index
    %c0_130 = arith.constant 0 : index
    %c0_131 = arith.constant 0 : index
    %161 = vector.load %arg4[%c0_129, %c0_130, %c0_131] : memref<3x16x32xf32, #tpu.memory_space<vmem>>, vector<1x16x32xf32>
    %162 = vector.shape_cast %161 : vector<1x16x32xf32> to vector<16x32xf32>
    %cst_132 = arith.constant dense<0.000000e+00> : vector<16x64xf32>
    %163 = tpu.matmul %162, %151, %cst_132 {dimension_numbers = #tpu.dot_dimension_numbers<[1], [0], [0], [1], [0, 0, 1, 1], [], []>} : vector<16x32xf32>, vector<32x64xf32>, vector<16x64xf32> -> vector<16x64xf32>
    %c0_133 = arith.constant 0 : index
    %c0_134 = arith.constant 0 : index
    %c0_135 = arith.constant 0 : index
    %164 = vector.load %arg20[%c0_133, %c0_134, %c0_135] : memref<3x64x128xf32, #tpu.memory_space<vmem>>, vector<1x64x128xf32>
    %165 = vector.shape_cast %164 : vector<1x64x128xf32> to vector<64x128xf32>
    %cst_136 = arith.constant dense<0.000000e+00> : vector<16x128xf32>
    %166 = tpu.matmul %163, %165, %cst_136 {dimension_numbers = #tpu.dot_dimension_numbers<[1], [0], [0], [1], [0, 0, 1, 1], [], []>} : vector<16x64xf32>, vector<64x128xf32>, vector<16x128xf32> -> vector<16x128xf32>
    %c1_137 = arith.constant 1 : index
    %c0_138 = arith.constant 0 : index
    %c0_139 = arith.constant 0 : index
    %167 = vector.load %arg4[%c1_137, %c0_138, %c0_139] : memref<3x16x32xf32, #tpu.memory_space<vmem>>, vector<1x16x32xf32>
    %168 = vector.shape_cast %167 : vector<1x16x32xf32> to vector<16x32xf32>
    %cst_140 = arith.constant dense<0.000000e+00> : vector<16x64xf32>
    %169 = tpu.matmul %168, %151, %cst_140 {dimension_numbers = #tpu.dot_dimension_numbers<[1], [0], [0], [1], [0, 0, 1, 1], [], []>} : vector<16x32xf32>, vector<32x64xf32>, vector<16x64xf32> -> vector<16x64xf32>
    %c1_141 = arith.constant 1 : index
    %c0_142 = arith.constant 0 : index
    %c0_143 = arith.constant 0 : index
    %170 = vector.load %arg20[%c1_141, %c0_142, %c0_143] : memref<3x64x128xf32, #tpu.memory_space<vmem>>, vector<1x64x128xf32>
    %171 = vector.shape_cast %170 : vector<1x64x128xf32> to vector<64x128xf32>
    %cst_144 = arith.constant dense<0.000000e+00> : vector<16x128xf32>
    %172 = tpu.matmul %169, %171, %cst_144 {dimension_numbers = #tpu.dot_dimension_numbers<[1], [0], [0], [1], [0, 0, 1, 1], [], []>} : vector<16x64xf32>, vector<64x128xf32>, vector<16x128xf32> -> vector<16x128xf32>
    %173 = arith.addf %166, %172 : vector<16x128xf32>
    %c2_145 = arith.constant 2 : index
    %c0_146 = arith.constant 0 : index
    %c0_147 = arith.constant 0 : index
    %174 = vector.load %arg4[%c2_145, %c0_146, %c0_147] : memref<3x16x32xf32, #tpu.memory_space<vmem>>, vector<1x16x32xf32>
    %175 = vector.shape_cast %174 : vector<1x16x32xf32> to vector<16x32xf32>
    %cst_148 = arith.constant dense<0.000000e+00> : vector<16x64xf32>
    %176 = tpu.matmul %175, %151, %cst_148 {dimension_numbers = #tpu.dot_dimension_numbers<[1], [0], [0], [1], [0, 0, 1, 1], [], []>} : vector<16x32xf32>, vector<32x64xf32>, vector<16x64xf32> -> vector<16x64xf32>
    %c2_149 = arith.constant 2 : index
    %c0_150 = arith.constant 0 : index
    %c0_151 = arith.constant 0 : index
    %177 = vector.load %arg20[%c2_149, %c0_150, %c0_151] : memref<3x64x128xf32, #tpu.memory_space<vmem>>, vector<1x64x128xf32>
    %178 = vector.shape_cast %177 : vector<1x64x128xf32> to vector<64x128xf32>
    %cst_152 = arith.constant dense<0.000000e+00> : vector<16x128xf32>
    %179 = tpu.matmul %176, %178, %cst_152 {dimension_numbers = #tpu.dot_dimension_numbers<[1], [0], [0], [1], [0, 0, 1, 1], [], []>} : vector<16x64xf32>, vector<64x128xf32>, vector<16x128xf32> -> vector<16x128xf32>
    %180 = arith.addf %173, %179 : vector<16x128xf32>
    %c0_153 = arith.constant 0 : index
    %c0_154 = arith.constant 0 : index
    %181 = vector.load %arg21[%c0_153, %c0_154] : memref<1x128xf32, #tpu.memory_space<vmem>>, vector<1x128xf32>
    %182 = vector.broadcast %181 : vector<1x128xf32> to vector<16x128xf32>
    %183 = arith.addf %180, %182 : vector<16x128xf32>
    %cst_155 = arith.constant 0.000000e+00 : f32
    %184 = vector.broadcast %cst_155 : f32 to vector<16x128xf32>
    %185 = arith.maximumf %183, %184 : vector<16x128xf32>
    %c0_156 = arith.constant 0 : index
    %c0_157 = arith.constant 0 : index
    %c0_158 = arith.constant 0 : index
    %186 = vector.load %arg5[%c0_156, %c0_157, %c0_158] : memref<3x16x16xf32, #tpu.memory_space<vmem>>, vector<1x16x16xf32>
    %187 = vector.shape_cast %186 : vector<1x16x16xf32> to vector<16x16xf32>
    %cst_159 = arith.constant dense<0.000000e+00> : vector<16x128xf32>
    %188 = tpu.matmul %187, %185, %cst_159 {dimension_numbers = #tpu.dot_dimension_numbers<[1], [0], [0], [1], [0, 0, 1, 1], [], []>} : vector<16x16xf32>, vector<16x128xf32>, vector<16x128xf32> -> vector<16x128xf32>
    %c0_160 = arith.constant 0 : index
    %c0_161 = arith.constant 0 : index
    %c0_162 = arith.constant 0 : index
    %189 = vector.load %arg22[%c0_160, %c0_161, %c0_162] : memref<3x128x128xf32, #tpu.memory_space<vmem>>, vector<1x128x128xf32>
    %190 = vector.shape_cast %189 : vector<1x128x128xf32> to vector<128x128xf32>
    %cst_163 = arith.constant dense<0.000000e+00> : vector<16x128xf32>
    %191 = tpu.matmul %188, %190, %cst_163 {dimension_numbers = #tpu.dot_dimension_numbers<[1], [0], [0], [1], [0, 0, 1, 1], [], []>} : vector<16x128xf32>, vector<128x128xf32>, vector<16x128xf32> -> vector<16x128xf32>
    %c1_164 = arith.constant 1 : index
    %c0_165 = arith.constant 0 : index
    %c0_166 = arith.constant 0 : index
    %192 = vector.load %arg22[%c1_164, %c0_165, %c0_166] : memref<3x128x128xf32, #tpu.memory_space<vmem>>, vector<1x128x128xf32>
    %193 = vector.shape_cast %192 : vector<1x128x128xf32> to vector<128x128xf32>
    %cst_167 = arith.constant dense<0.000000e+00> : vector<16x128xf32>
    %194 = tpu.matmul %185, %193, %cst_167 {dimension_numbers = #tpu.dot_dimension_numbers<[1], [0], [0], [1], [0, 0, 1, 1], [], []>} : vector<16x128xf32>, vector<128x128xf32>, vector<16x128xf32> -> vector<16x128xf32>
    %195 = arith.addf %191, %194 : vector<16x128xf32>
    %c2_168 = arith.constant 2 : index
    %c0_169 = arith.constant 0 : index
    %c0_170 = arith.constant 0 : index
    %196 = vector.load %arg5[%c2_168, %c0_169, %c0_170] : memref<3x16x16xf32, #tpu.memory_space<vmem>>, vector<1x16x16xf32>
    %197 = vector.shape_cast %196 : vector<1x16x16xf32> to vector<16x16xf32>
    %cst_171 = arith.constant dense<0.000000e+00> : vector<16x128xf32>
    %198 = tpu.matmul %197, %185, %cst_171 {dimension_numbers = #tpu.dot_dimension_numbers<[1], [0], [0], [1], [0, 0, 1, 1], [], []>} : vector<16x16xf32>, vector<16x128xf32>, vector<16x128xf32> -> vector<16x128xf32>
    %c2_172 = arith.constant 2 : index
    %c0_173 = arith.constant 0 : index
    %c0_174 = arith.constant 0 : index
    %199 = vector.load %arg22[%c2_172, %c0_173, %c0_174] : memref<3x128x128xf32, #tpu.memory_space<vmem>>, vector<1x128x128xf32>
    %200 = vector.shape_cast %199 : vector<1x128x128xf32> to vector<128x128xf32>
    %cst_175 = arith.constant dense<0.000000e+00> : vector<16x128xf32>
    %201 = tpu.matmul %198, %200, %cst_175 {dimension_numbers = #tpu.dot_dimension_numbers<[1], [0], [0], [1], [0, 0, 1, 1], [], []>} : vector<16x128xf32>, vector<128x128xf32>, vector<16x128xf32> -> vector<16x128xf32>
    %202 = arith.addf %195, %201 : vector<16x128xf32>
    %c0_176 = arith.constant 0 : index
    %c0_177 = arith.constant 0 : index
    %203 = vector.load %arg23[%c0_176, %c0_177] : memref<1x128xf32, #tpu.memory_space<vmem>>, vector<1x128xf32>
    %204 = vector.broadcast %203 : vector<1x128xf32> to vector<16x128xf32>
    %205 = arith.addf %202, %204 : vector<16x128xf32>
    %206 = arith.addf %205, %160 : vector<16x128xf32>
    %cst_178 = arith.constant 0.000000e+00 : f32
    %207 = vector.broadcast %cst_178 : f32 to vector<16x128xf32>
    %208 = arith.maximumf %206, %207 : vector<16x128xf32>
    %c0_179 = arith.constant 0 : index
    %c0_180 = arith.constant 0 : index
    %c0_181 = arith.constant 0 : index
    %209 = vector.load %arg5[%c0_179, %c0_180, %c0_181] : memref<3x16x16xf32, #tpu.memory_space<vmem>>, vector<1x16x16xf32>
    %210 = vector.shape_cast %209 : vector<1x16x16xf32> to vector<16x16xf32>
    %cst_182 = arith.constant dense<0.000000e+00> : vector<16x128xf32>
    %211 = tpu.matmul %210, %208, %cst_182 {dimension_numbers = #tpu.dot_dimension_numbers<[1], [0], [0], [1], [0, 0, 1, 1], [], []>} : vector<16x16xf32>, vector<16x128xf32>, vector<16x128xf32> -> vector<16x128xf32>
    %c0_183 = arith.constant 0 : index
    %c0_184 = arith.constant 0 : index
    %c0_185 = arith.constant 0 : index
    %212 = vector.load %arg24[%c0_183, %c0_184, %c0_185] : memref<3x128x128xf32, #tpu.memory_space<vmem>>, vector<1x128x128xf32>
    %213 = vector.shape_cast %212 : vector<1x128x128xf32> to vector<128x128xf32>
    %cst_186 = arith.constant dense<0.000000e+00> : vector<16x128xf32>
    %214 = tpu.matmul %211, %213, %cst_186 {dimension_numbers = #tpu.dot_dimension_numbers<[1], [0], [0], [1], [0, 0, 1, 1], [], []>} : vector<16x128xf32>, vector<128x128xf32>, vector<16x128xf32> -> vector<16x128xf32>
    %c1_187 = arith.constant 1 : index
    %c0_188 = arith.constant 0 : index
    %c0_189 = arith.constant 0 : index
    %215 = vector.load %arg24[%c1_187, %c0_188, %c0_189] : memref<3x128x128xf32, #tpu.memory_space<vmem>>, vector<1x128x128xf32>
    %216 = vector.shape_cast %215 : vector<1x128x128xf32> to vector<128x128xf32>
    %cst_190 = arith.constant dense<0.000000e+00> : vector<16x128xf32>
    %217 = tpu.matmul %208, %216, %cst_190 {dimension_numbers = #tpu.dot_dimension_numbers<[1], [0], [0], [1], [0, 0, 1, 1], [], []>} : vector<16x128xf32>, vector<128x128xf32>, vector<16x128xf32> -> vector<16x128xf32>
    %218 = arith.addf %214, %217 : vector<16x128xf32>
    %c2_191 = arith.constant 2 : index
    %c0_192 = arith.constant 0 : index
    %c0_193 = arith.constant 0 : index
    %219 = vector.load %arg5[%c2_191, %c0_192, %c0_193] : memref<3x16x16xf32, #tpu.memory_space<vmem>>, vector<1x16x16xf32>
    %220 = vector.shape_cast %219 : vector<1x16x16xf32> to vector<16x16xf32>
    %cst_194 = arith.constant dense<0.000000e+00> : vector<16x128xf32>
    %221 = tpu.matmul %220, %208, %cst_194 {dimension_numbers = #tpu.dot_dimension_numbers<[1], [0], [0], [1], [0, 0, 1, 1], [], []>} : vector<16x16xf32>, vector<16x128xf32>, vector<16x128xf32> -> vector<16x128xf32>
    %c2_195 = arith.constant 2 : index
    %c0_196 = arith.constant 0 : index
    %c0_197 = arith.constant 0 : index
    %222 = vector.load %arg24[%c2_195, %c0_196, %c0_197] : memref<3x128x128xf32, #tpu.memory_space<vmem>>, vector<1x128x128xf32>
    %223 = vector.shape_cast %222 : vector<1x128x128xf32> to vector<128x128xf32>
    %cst_198 = arith.constant dense<0.000000e+00> : vector<16x128xf32>
    %224 = tpu.matmul %221, %223, %cst_198 {dimension_numbers = #tpu.dot_dimension_numbers<[1], [0], [0], [1], [0, 0, 1, 1], [], []>} : vector<16x128xf32>, vector<128x128xf32>, vector<16x128xf32> -> vector<16x128xf32>
    %225 = arith.addf %218, %224 : vector<16x128xf32>
    %c0_199 = arith.constant 0 : index
    %c0_200 = arith.constant 0 : index
    %226 = vector.load %arg25[%c0_199, %c0_200] : memref<1x128xf32, #tpu.memory_space<vmem>>, vector<1x128xf32>
    %227 = vector.broadcast %226 : vector<1x128xf32> to vector<16x128xf32>
    %228 = arith.addf %225, %227 : vector<16x128xf32>
    %cst_201 = arith.constant 0.000000e+00 : f32
    %229 = vector.broadcast %cst_201 : f32 to vector<16x128xf32>
    %230 = arith.maximumf %228, %229 : vector<16x128xf32>
    %c0_202 = arith.constant 0 : index
    %c0_203 = arith.constant 0 : index
    %c0_204 = arith.constant 0 : index
    %231 = vector.load %arg5[%c0_202, %c0_203, %c0_204] : memref<3x16x16xf32, #tpu.memory_space<vmem>>, vector<1x16x16xf32>
    %232 = vector.shape_cast %231 : vector<1x16x16xf32> to vector<16x16xf32>
    %cst_205 = arith.constant dense<0.000000e+00> : vector<16x128xf32>
    %233 = tpu.matmul %232, %230, %cst_205 {dimension_numbers = #tpu.dot_dimension_numbers<[1], [0], [0], [1], [0, 0, 1, 1], [], []>} : vector<16x16xf32>, vector<16x128xf32>, vector<16x128xf32> -> vector<16x128xf32>
    %c0_206 = arith.constant 0 : index
    %c0_207 = arith.constant 0 : index
    %c0_208 = arith.constant 0 : index
    %234 = vector.load %arg26[%c0_206, %c0_207, %c0_208] : memref<3x128x128xf32, #tpu.memory_space<vmem>>, vector<1x128x128xf32>
    %235 = vector.shape_cast %234 : vector<1x128x128xf32> to vector<128x128xf32>
    %cst_209 = arith.constant dense<0.000000e+00> : vector<16x128xf32>
    %236 = tpu.matmul %233, %235, %cst_209 {dimension_numbers = #tpu.dot_dimension_numbers<[1], [0], [0], [1], [0, 0, 1, 1], [], []>} : vector<16x128xf32>, vector<128x128xf32>, vector<16x128xf32> -> vector<16x128xf32>
    %c1_210 = arith.constant 1 : index
    %c0_211 = arith.constant 0 : index
    %c0_212 = arith.constant 0 : index
    %237 = vector.load %arg26[%c1_210, %c0_211, %c0_212] : memref<3x128x128xf32, #tpu.memory_space<vmem>>, vector<1x128x128xf32>
    %238 = vector.shape_cast %237 : vector<1x128x128xf32> to vector<128x128xf32>
    %cst_213 = arith.constant dense<0.000000e+00> : vector<16x128xf32>
    %239 = tpu.matmul %230, %238, %cst_213 {dimension_numbers = #tpu.dot_dimension_numbers<[1], [0], [0], [1], [0, 0, 1, 1], [], []>} : vector<16x128xf32>, vector<128x128xf32>, vector<16x128xf32> -> vector<16x128xf32>
    %240 = arith.addf %236, %239 : vector<16x128xf32>
    %c2_214 = arith.constant 2 : index
    %c0_215 = arith.constant 0 : index
    %c0_216 = arith.constant 0 : index
    %241 = vector.load %arg5[%c2_214, %c0_215, %c0_216] : memref<3x16x16xf32, #tpu.memory_space<vmem>>, vector<1x16x16xf32>
    %242 = vector.shape_cast %241 : vector<1x16x16xf32> to vector<16x16xf32>
    %cst_217 = arith.constant dense<0.000000e+00> : vector<16x128xf32>
    %243 = tpu.matmul %242, %230, %cst_217 {dimension_numbers = #tpu.dot_dimension_numbers<[1], [0], [0], [1], [0, 0, 1, 1], [], []>} : vector<16x16xf32>, vector<16x128xf32>, vector<16x128xf32> -> vector<16x128xf32>
    %c2_218 = arith.constant 2 : index
    %c0_219 = arith.constant 0 : index
    %c0_220 = arith.constant 0 : index
    %244 = vector.load %arg26[%c2_218, %c0_219, %c0_220] : memref<3x128x128xf32, #tpu.memory_space<vmem>>, vector<1x128x128xf32>
    %245 = vector.shape_cast %244 : vector<1x128x128xf32> to vector<128x128xf32>
    %cst_221 = arith.constant dense<0.000000e+00> : vector<16x128xf32>
    %246 = tpu.matmul %243, %245, %cst_221 {dimension_numbers = #tpu.dot_dimension_numbers<[1], [0], [0], [1], [0, 0, 1, 1], [], []>} : vector<16x128xf32>, vector<128x128xf32>, vector<16x128xf32> -> vector<16x128xf32>
    %247 = arith.addf %240, %246 : vector<16x128xf32>
    %c0_222 = arith.constant 0 : index
    %c0_223 = arith.constant 0 : index
    %248 = vector.load %arg27[%c0_222, %c0_223] : memref<1x128xf32, #tpu.memory_space<vmem>>, vector<1x128xf32>
    %249 = vector.broadcast %248 : vector<1x128xf32> to vector<16x128xf32>
    %250 = arith.addf %247, %249 : vector<16x128xf32>
    %251 = arith.addf %250, %208 : vector<16x128xf32>
    %cst_224 = arith.constant 0.000000e+00 : f32
    %252 = vector.broadcast %cst_224 : f32 to vector<16x128xf32>
    %253 = arith.maximumf %251, %252 : vector<16x128xf32>
    %c1_225 = arith.constant 1 : index
    %c0_226 = arith.constant 0 : index
    %c0_227 = arith.constant 0 : index
    %254 = vector.load %arg6[%c1_225, %c0_226, %c0_227] : memref<3x8x16xf32, #tpu.memory_space<vmem>>, vector<1x8x16xf32>
    %255 = vector.shape_cast %254 : vector<1x8x16xf32> to vector<8x16xf32>
    %cst_228 = arith.constant dense<0.000000e+00> : vector<8x128xf32>
    %256 = tpu.matmul %255, %253, %cst_228 {dimension_numbers = #tpu.dot_dimension_numbers<[1], [0], [0], [1], [0, 0, 1, 1], [], []>} : vector<8x16xf32>, vector<16x128xf32>, vector<8x128xf32> -> vector<8x128xf32>
    %c0_229 = arith.constant 0 : index
    %c0_230 = arith.constant 0 : index
    %c0_231 = arith.constant 0 : index
    %257 = vector.load %arg28[%c0_229, %c0_230, %c0_231] : memref<1x128x256xf32, #tpu.memory_space<vmem>>, vector<1x128x256xf32>
    %258 = vector.shape_cast %257 : vector<1x128x256xf32> to vector<128x256xf32>
    %cst_232 = arith.constant dense<0.000000e+00> : vector<8x256xf32>
    %259 = tpu.matmul %256, %258, %cst_232 {dimension_numbers = #tpu.dot_dimension_numbers<[1], [0], [0], [1], [0, 0, 1, 1], [], []>} : vector<8x128xf32>, vector<128x256xf32>, vector<8x256xf32> -> vector<8x256xf32>
    %c0_233 = arith.constant 0 : index
    %c0_234 = arith.constant 0 : index
    %260 = vector.load %arg29[%c0_233, %c0_234] : memref<1x256xf32, #tpu.memory_space<vmem>>, vector<1x256xf32>
    %261 = vector.broadcast %260 : vector<1x256xf32> to vector<8x256xf32>
    %262 = arith.addf %259, %261 : vector<8x256xf32>
    %c0_235 = arith.constant 0 : index
    %c0_236 = arith.constant 0 : index
    %c0_237 = arith.constant 0 : index
    %263 = vector.load %arg6[%c0_235, %c0_236, %c0_237] : memref<3x8x16xf32, #tpu.memory_space<vmem>>, vector<1x8x16xf32>
    %264 = vector.shape_cast %263 : vector<1x8x16xf32> to vector<8x16xf32>
    %cst_238 = arith.constant dense<0.000000e+00> : vector<8x128xf32>
    %265 = tpu.matmul %264, %253, %cst_238 {dimension_numbers = #tpu.dot_dimension_numbers<[1], [0], [0], [1], [0, 0, 1, 1], [], []>} : vector<8x16xf32>, vector<16x128xf32>, vector<8x128xf32> -> vector<8x128xf32>
    %c0_239 = arith.constant 0 : index
    %c0_240 = arith.constant 0 : index
    %c0_241 = arith.constant 0 : index
    %266 = vector.load %arg30[%c0_239, %c0_240, %c0_241] : memref<3x128x256xf32, #tpu.memory_space<vmem>>, vector<1x128x256xf32>
    %267 = vector.shape_cast %266 : vector<1x128x256xf32> to vector<128x256xf32>
    %cst_242 = arith.constant dense<0.000000e+00> : vector<8x256xf32>
    %268 = tpu.matmul %265, %267, %cst_242 {dimension_numbers = #tpu.dot_dimension_numbers<[1], [0], [0], [1], [0, 0, 1, 1], [], []>} : vector<8x128xf32>, vector<128x256xf32>, vector<8x256xf32> -> vector<8x256xf32>
    %c1_243 = arith.constant 1 : index
    %c0_244 = arith.constant 0 : index
    %c0_245 = arith.constant 0 : index
    %269 = vector.load %arg6[%c1_243, %c0_244, %c0_245] : memref<3x8x16xf32, #tpu.memory_space<vmem>>, vector<1x8x16xf32>
    %270 = vector.shape_cast %269 : vector<1x8x16xf32> to vector<8x16xf32>
    %cst_246 = arith.constant dense<0.000000e+00> : vector<8x128xf32>
    %271 = tpu.matmul %270, %253, %cst_246 {dimension_numbers = #tpu.dot_dimension_numbers<[1], [0], [0], [1], [0, 0, 1, 1], [], []>} : vector<8x16xf32>, vector<16x128xf32>, vector<8x128xf32> -> vector<8x128xf32>
    %c1_247 = arith.constant 1 : index
    %c0_248 = arith.constant 0 : index
    %c0_249 = arith.constant 0 : index
    %272 = vector.load %arg30[%c1_247, %c0_248, %c0_249] : memref<3x128x256xf32, #tpu.memory_space<vmem>>, vector<1x128x256xf32>
    %273 = vector.shape_cast %272 : vector<1x128x256xf32> to vector<128x256xf32>
    %cst_250 = arith.constant dense<0.000000e+00> : vector<8x256xf32>
    %274 = tpu.matmul %271, %273, %cst_250 {dimension_numbers = #tpu.dot_dimension_numbers<[1], [0], [0], [1], [0, 0, 1, 1], [], []>} : vector<8x128xf32>, vector<128x256xf32>, vector<8x256xf32> -> vector<8x256xf32>
    %275 = arith.addf %268, %274 : vector<8x256xf32>
    %c2_251 = arith.constant 2 : index
    %c0_252 = arith.constant 0 : index
    %c0_253 = arith.constant 0 : index
    %276 = vector.load %arg6[%c2_251, %c0_252, %c0_253] : memref<3x8x16xf32, #tpu.memory_space<vmem>>, vector<1x8x16xf32>
    %277 = vector.shape_cast %276 : vector<1x8x16xf32> to vector<8x16xf32>
    %cst_254 = arith.constant dense<0.000000e+00> : vector<8x128xf32>
    %278 = tpu.matmul %277, %253, %cst_254 {dimension_numbers = #tpu.dot_dimension_numbers<[1], [0], [0], [1], [0, 0, 1, 1], [], []>} : vector<8x16xf32>, vector<16x128xf32>, vector<8x128xf32> -> vector<8x128xf32>
    %c2_255 = arith.constant 2 : index
    %c0_256 = arith.constant 0 : index
    %c0_257 = arith.constant 0 : index
    %279 = vector.load %arg30[%c2_255, %c0_256, %c0_257] : memref<3x128x256xf32, #tpu.memory_space<vmem>>, vector<1x128x256xf32>
    %280 = vector.shape_cast %279 : vector<1x128x256xf32> to vector<128x256xf32>
    %cst_258 = arith.constant dense<0.000000e+00> : vector<8x256xf32>
    %281 = tpu.matmul %278, %280, %cst_258 {dimension_numbers = #tpu.dot_dimension_numbers<[1], [0], [0], [1], [0, 0, 1, 1], [], []>} : vector<8x128xf32>, vector<128x256xf32>, vector<8x256xf32> -> vector<8x256xf32>
    %282 = arith.addf %275, %281 : vector<8x256xf32>
    %c0_259 = arith.constant 0 : index
    %c0_260 = arith.constant 0 : index
    %283 = vector.load %arg31[%c0_259, %c0_260] : memref<1x256xf32, #tpu.memory_space<vmem>>, vector<1x256xf32>
    %284 = vector.broadcast %283 : vector<1x256xf32> to vector<8x256xf32>
    %285 = arith.addf %282, %284 : vector<8x256xf32>
    %cst_261 = arith.constant 0.000000e+00 : f32
    %286 = vector.broadcast %cst_261 : f32 to vector<8x256xf32>
    %287 = arith.maximumf %285, %286 : vector<8x256xf32>
    %c0_262 = arith.constant 0 : index
    %c0_263 = arith.constant 0 : index
    %c0_264 = arith.constant 0 : index
    %288 = vector.load %arg7[%c0_262, %c0_263, %c0_264] : memref<3x8x8xf32, #tpu.memory_space<vmem>>, vector<1x8x8xf32>
    %289 = vector.shape_cast %288 : vector<1x8x8xf32> to vector<8x8xf32>
    %cst_265 = arith.constant dense<0.000000e+00> : vector<8x256xf32>
    %290 = tpu.matmul %289, %287, %cst_265 {dimension_numbers = #tpu.dot_dimension_numbers<[1], [0], [0], [1], [0, 0, 1, 1], [], []>} : vector<8x8xf32>, vector<8x256xf32>, vector<8x256xf32> -> vector<8x256xf32>
    %c0_266 = arith.constant 0 : index
    %c0_267 = arith.constant 0 : index
    %c0_268 = arith.constant 0 : index
    %291 = vector.load %arg32[%c0_266, %c0_267, %c0_268] : memref<3x256x256xf32, #tpu.memory_space<vmem>>, vector<1x256x256xf32>
    %292 = vector.shape_cast %291 : vector<1x256x256xf32> to vector<256x256xf32>
    %cst_269 = arith.constant dense<0.000000e+00> : vector<8x256xf32>
    %293 = tpu.matmul %290, %292, %cst_269 {dimension_numbers = #tpu.dot_dimension_numbers<[1], [0], [0], [1], [0, 0, 1, 1], [], []>} : vector<8x256xf32>, vector<256x256xf32>, vector<8x256xf32> -> vector<8x256xf32>
    %c1_270 = arith.constant 1 : index
    %c0_271 = arith.constant 0 : index
    %c0_272 = arith.constant 0 : index
    %294 = vector.load %arg32[%c1_270, %c0_271, %c0_272] : memref<3x256x256xf32, #tpu.memory_space<vmem>>, vector<1x256x256xf32>
    %295 = vector.shape_cast %294 : vector<1x256x256xf32> to vector<256x256xf32>
    %cst_273 = arith.constant dense<0.000000e+00> : vector<8x256xf32>
    %296 = tpu.matmul %287, %295, %cst_273 {dimension_numbers = #tpu.dot_dimension_numbers<[1], [0], [0], [1], [0, 0, 1, 1], [], []>} : vector<8x256xf32>, vector<256x256xf32>, vector<8x256xf32> -> vector<8x256xf32>
    %297 = arith.addf %293, %296 : vector<8x256xf32>
    %c2_274 = arith.constant 2 : index
    %c0_275 = arith.constant 0 : index
    %c0_276 = arith.constant 0 : index
    %298 = vector.load %arg7[%c2_274, %c0_275, %c0_276] : memref<3x8x8xf32, #tpu.memory_space<vmem>>, vector<1x8x8xf32>
    %299 = vector.shape_cast %298 : vector<1x8x8xf32> to vector<8x8xf32>
    %cst_277 = arith.constant dense<0.000000e+00> : vector<8x256xf32>
    %300 = tpu.matmul %299, %287, %cst_277 {dimension_numbers = #tpu.dot_dimension_numbers<[1], [0], [0], [1], [0, 0, 1, 1], [], []>} : vector<8x8xf32>, vector<8x256xf32>, vector<8x256xf32> -> vector<8x256xf32>
    %c2_278 = arith.constant 2 : index
    %c0_279 = arith.constant 0 : index
    %c0_280 = arith.constant 0 : index
    %301 = vector.load %arg32[%c2_278, %c0_279, %c0_280] : memref<3x256x256xf32, #tpu.memory_space<vmem>>, vector<1x256x256xf32>
    %302 = vector.shape_cast %301 : vector<1x256x256xf32> to vector<256x256xf32>
    %cst_281 = arith.constant dense<0.000000e+00> : vector<8x256xf32>
    %303 = tpu.matmul %300, %302, %cst_281 {dimension_numbers = #tpu.dot_dimension_numbers<[1], [0], [0], [1], [0, 0, 1, 1], [], []>} : vector<8x256xf32>, vector<256x256xf32>, vector<8x256xf32> -> vector<8x256xf32>
    %304 = arith.addf %297, %303 : vector<8x256xf32>
    %c0_282 = arith.constant 0 : index
    %c0_283 = arith.constant 0 : index
    %305 = vector.load %arg33[%c0_282, %c0_283] : memref<1x256xf32, #tpu.memory_space<vmem>>, vector<1x256xf32>
    %306 = vector.broadcast %305 : vector<1x256xf32> to vector<8x256xf32>
    %307 = arith.addf %304, %306 : vector<8x256xf32>
    %308 = arith.addf %307, %262 : vector<8x256xf32>
    %cst_284 = arith.constant 0.000000e+00 : f32
    %309 = vector.broadcast %cst_284 : f32 to vector<8x256xf32>
    %310 = arith.maximumf %308, %309 : vector<8x256xf32>
    %c0_285 = arith.constant 0 : index
    %c0_286 = arith.constant 0 : index
    %c0_287 = arith.constant 0 : index
    %311 = vector.load %arg7[%c0_285, %c0_286, %c0_287] : memref<3x8x8xf32, #tpu.memory_space<vmem>>, vector<1x8x8xf32>
    %312 = vector.shape_cast %311 : vector<1x8x8xf32> to vector<8x8xf32>
    %cst_288 = arith.constant dense<0.000000e+00> : vector<8x256xf32>
    %313 = tpu.matmul %312, %310, %cst_288 {dimension_numbers = #tpu.dot_dimension_numbers<[1], [0], [0], [1], [0, 0, 1, 1], [], []>} : vector<8x8xf32>, vector<8x256xf32>, vector<8x256xf32> -> vector<8x256xf32>
    %c0_289 = arith.constant 0 : index
    %c0_290 = arith.constant 0 : index
    %c0_291 = arith.constant 0 : index
    %314 = vector.load %arg34[%c0_289, %c0_290, %c0_291] : memref<3x256x256xf32, #tpu.memory_space<vmem>>, vector<1x256x256xf32>
    %315 = vector.shape_cast %314 : vector<1x256x256xf32> to vector<256x256xf32>
    %cst_292 = arith.constant dense<0.000000e+00> : vector<8x256xf32>
    %316 = tpu.matmul %313, %315, %cst_292 {dimension_numbers = #tpu.dot_dimension_numbers<[1], [0], [0], [1], [0, 0, 1, 1], [], []>} : vector<8x256xf32>, vector<256x256xf32>, vector<8x256xf32> -> vector<8x256xf32>
    %c1_293 = arith.constant 1 : index
    %c0_294 = arith.constant 0 : index
    %c0_295 = arith.constant 0 : index
    %317 = vector.load %arg34[%c1_293, %c0_294, %c0_295] : memref<3x256x256xf32, #tpu.memory_space<vmem>>, vector<1x256x256xf32>
    %318 = vector.shape_cast %317 : vector<1x256x256xf32> to vector<256x256xf32>
    %cst_296 = arith.constant dense<0.000000e+00> : vector<8x256xf32>
    %319 = tpu.matmul %310, %318, %cst_296 {dimension_numbers = #tpu.dot_dimension_numbers<[1], [0], [0], [1], [0, 0, 1, 1], [], []>} : vector<8x256xf32>, vector<256x256xf32>, vector<8x256xf32> -> vector<8x256xf32>
    %320 = arith.addf %316, %319 : vector<8x256xf32>
    %c2_297 = arith.constant 2 : index
    %c0_298 = arith.constant 0 : index
    %c0_299 = arith.constant 0 : index
    %321 = vector.load %arg7[%c2_297, %c0_298, %c0_299] : memref<3x8x8xf32, #tpu.memory_space<vmem>>, vector<1x8x8xf32>
    %322 = vector.shape_cast %321 : vector<1x8x8xf32> to vector<8x8xf32>
    %cst_300 = arith.constant dense<0.000000e+00> : vector<8x256xf32>
    %323 = tpu.matmul %322, %310, %cst_300 {dimension_numbers = #tpu.dot_dimension_numbers<[1], [0], [0], [1], [0, 0, 1, 1], [], []>} : vector<8x8xf32>, vector<8x256xf32>, vector<8x256xf32> -> vector<8x256xf32>
    %c2_301 = arith.constant 2 : index
    %c0_302 = arith.constant 0 : index
    %c0_303 = arith.constant 0 : index
    %324 = vector.load %arg34[%c2_301, %c0_302, %c0_303] : memref<3x256x256xf32, #tpu.memory_space<vmem>>, vector<1x256x256xf32>
    %325 = vector.shape_cast %324 : vector<1x256x256xf32> to vector<256x256xf32>
    %cst_304 = arith.constant dense<0.000000e+00> : vector<8x256xf32>
    %326 = tpu.matmul %323, %325, %cst_304 {dimension_numbers = #tpu.dot_dimension_numbers<[1], [0], [0], [1], [0, 0, 1, 1], [], []>} : vector<8x256xf32>, vector<256x256xf32>, vector<8x256xf32> -> vector<8x256xf32>
    %327 = arith.addf %320, %326 : vector<8x256xf32>
    %c0_305 = arith.constant 0 : index
    %c0_306 = arith.constant 0 : index
    %328 = vector.load %arg35[%c0_305, %c0_306] : memref<1x256xf32, #tpu.memory_space<vmem>>, vector<1x256xf32>
    %329 = vector.broadcast %328 : vector<1x256xf32> to vector<8x256xf32>
    %330 = arith.addf %327, %329 : vector<8x256xf32>
    %cst_307 = arith.constant 0.000000e+00 : f32
    %331 = vector.broadcast %cst_307 : f32 to vector<8x256xf32>
    %332 = arith.maximumf %330, %331 : vector<8x256xf32>
    %c0_308 = arith.constant 0 : index
    %c0_309 = arith.constant 0 : index
    %c0_310 = arith.constant 0 : index
    %333 = vector.load %arg7[%c0_308, %c0_309, %c0_310] : memref<3x8x8xf32, #tpu.memory_space<vmem>>, vector<1x8x8xf32>
    %334 = vector.shape_cast %333 : vector<1x8x8xf32> to vector<8x8xf32>
    %cst_311 = arith.constant dense<0.000000e+00> : vector<8x256xf32>
    %335 = tpu.matmul %334, %332, %cst_311 {dimension_numbers = #tpu.dot_dimension_numbers<[1], [0], [0], [1], [0, 0, 1, 1], [], []>} : vector<8x8xf32>, vector<8x256xf32>, vector<8x256xf32> -> vector<8x256xf32>
    %c0_312 = arith.constant 0 : index
    %c0_313 = arith.constant 0 : index
    %c0_314 = arith.constant 0 : index
    %336 = vector.load %arg36[%c0_312, %c0_313, %c0_314] : memref<3x256x256xf32, #tpu.memory_space<vmem>>, vector<1x256x256xf32>
    %337 = vector.shape_cast %336 : vector<1x256x256xf32> to vector<256x256xf32>
    %cst_315 = arith.constant dense<0.000000e+00> : vector<8x256xf32>
    %338 = tpu.matmul %335, %337, %cst_315 {dimension_numbers = #tpu.dot_dimension_numbers<[1], [0], [0], [1], [0, 0, 1, 1], [], []>} : vector<8x256xf32>, vector<256x256xf32>, vector<8x256xf32> -> vector<8x256xf32>
    %c1_316 = arith.constant 1 : index
    %c0_317 = arith.constant 0 : index
    %c0_318 = arith.constant 0 : index
    %339 = vector.load %arg36[%c1_316, %c0_317, %c0_318] : memref<3x256x256xf32, #tpu.memory_space<vmem>>, vector<1x256x256xf32>
    %340 = vector.shape_cast %339 : vector<1x256x256xf32> to vector<256x256xf32>
    %cst_319 = arith.constant dense<0.000000e+00> : vector<8x256xf32>
    %341 = tpu.matmul %332, %340, %cst_319 {dimension_numbers = #tpu.dot_dimension_numbers<[1], [0], [0], [1], [0, 0, 1, 1], [], []>} : vector<8x256xf32>, vector<256x256xf32>, vector<8x256xf32> -> vector<8x256xf32>
    %342 = arith.addf %338, %341 : vector<8x256xf32>
    %c2_320 = arith.constant 2 : index
    %c0_321 = arith.constant 0 : index
    %c0_322 = arith.constant 0 : index
    %343 = vector.load %arg7[%c2_320, %c0_321, %c0_322] : memref<3x8x8xf32, #tpu.memory_space<vmem>>, vector<1x8x8xf32>
    %344 = vector.shape_cast %343 : vector<1x8x8xf32> to vector<8x8xf32>
    %cst_323 = arith.constant dense<0.000000e+00> : vector<8x256xf32>
    %345 = tpu.matmul %344, %332, %cst_323 {dimension_numbers = #tpu.dot_dimension_numbers<[1], [0], [0], [1], [0, 0, 1, 1], [], []>} : vector<8x8xf32>, vector<8x256xf32>, vector<8x256xf32> -> vector<8x256xf32>
    %c2_324 = arith.constant 2 : index
    %c0_325 = arith.constant 0 : index
    %c0_326 = arith.constant 0 : index
    %346 = vector.load %arg36[%c2_324, %c0_325, %c0_326] : memref<3x256x256xf32, #tpu.memory_space<vmem>>, vector<1x256x256xf32>
    %347 = vector.shape_cast %346 : vector<1x256x256xf32> to vector<256x256xf32>
    %cst_327 = arith.constant dense<0.000000e+00> : vector<8x256xf32>
    %348 = tpu.matmul %345, %347, %cst_327 {dimension_numbers = #tpu.dot_dimension_numbers<[1], [0], [0], [1], [0, 0, 1, 1], [], []>} : vector<8x256xf32>, vector<256x256xf32>, vector<8x256xf32> -> vector<8x256xf32>
    %349 = arith.addf %342, %348 : vector<8x256xf32>
    %c0_328 = arith.constant 0 : index
    %c0_329 = arith.constant 0 : index
    %350 = vector.load %arg37[%c0_328, %c0_329] : memref<1x256xf32, #tpu.memory_space<vmem>>, vector<1x256xf32>
    %351 = vector.broadcast %350 : vector<1x256xf32> to vector<8x256xf32>
    %352 = arith.addf %349, %351 : vector<8x256xf32>
    %353 = arith.addf %352, %310 : vector<8x256xf32>
    %cst_330 = arith.constant 0.000000e+00 : f32
    %354 = vector.broadcast %cst_330 : f32 to vector<8x256xf32>
    %355 = arith.maximumf %353, %354 : vector<8x256xf32>
    %cst_331 = arith.constant dense<0.000000e+00> : vector<256xf32>
    %356 = vector.multi_reduction <add>, %355, %cst_331 [0] : vector<8x256xf32> to vector<256xf32>
    %357 = vector.shape_cast %356 : vector<256xf32> to vector<1x256xf32>
    %cst_332 = arith.constant 8.000000e+00 : f32
    %358 = vector.broadcast %cst_332 : f32 to vector<1x256xf32>
    %359 = arith.divf %357, %358 : vector<1x256xf32>
    %c0_333 = arith.constant 0 : index
    %c0_334 = arith.constant 0 : index
    %c0_335 = arith.constant 0 : index
    %360 = vector.load %arg38[%c0_333, %c0_334, %c0_335] : memref<1x1x256xf32, #tpu.memory_space<vmem>>, vector<1x1x256xf32>
    %361 = vector.shape_cast %360 : vector<1x1x256xf32> to vector<1x256xf32>
    %362 = vector.shape_cast %359 : vector<1x256xf32> to vector<1x1x256xf32>
    tpu.vector_store %arg38[%c0_333, %c0_334, %c0_335], %362 {strides = array<i32>} : memref<1x1x256xf32, #tpu.memory_space<vmem>>, vector<1x1x256xf32>,
    return
  }
  func.func @transform_0(%arg0: i32) -> (i32, i32, i32) {
    %c0_i32 = arith.constant 0 : i32
    %c0_i32_0 = arith.constant 0 : i32
    %c0_i32_1 = arith.constant 0 : i32
    return %arg0, %c0_i32, %c0_i32_0 : i32, i32, i32
  }
  func.func @transform_1(%arg0: i32) -> (i32, i32, i32) {
    %c0_i32 = arith.constant 0 : i32
    %c0_i32_0 = arith.constant 0 : i32
    %c0_i32_1 = arith.constant 0 : i32
    %c0_i32_2 = arith.constant 0 : i32
    return %c0_i32, %c0_i32_0, %c0_i32_1 : i32, i32, i32
  }
  func.func @transform_2(%arg0: i32) -> (i32, i32, i32) {
    %c0_i32 = arith.constant 0 : i32
    %c0_i32_0 = arith.constant 0 : i32
    %c0_i32_1 = arith.constant 0 : i32
    %c0_i32_2 = arith.constant 0 : i32
    return %c0_i32, %c0_i32_0, %c0_i32_1 : i32, i32, i32
  }
  func.func @transform_3(%arg0: i32) -> (i32, i32, i32) {
    %c0_i32 = arith.constant 0 : i32
    %c0_i32_0 = arith.constant 0 : i32
    %c0_i32_1 = arith.constant 0 : i32
    %c0_i32_2 = arith.constant 0 : i32
    return %c0_i32, %c0_i32_0, %c0_i32_1 : i32, i32, i32
  }
  func.func @transform_4(%arg0: i32) -> (i32, i32, i32) {
    %c0_i32 = arith.constant 0 : i32
    %c0_i32_0 = arith.constant 0 : i32
    %c0_i32_1 = arith.constant 0 : i32
    %c0_i32_2 = arith.constant 0 : i32
    return %c0_i32, %c0_i32_0, %c0_i32_1 : i32, i32, i32
  }
  func.func @transform_5(%arg0: i32) -> (i32, i32, i32) {
    %c0_i32 = arith.constant 0 : i32
    %c0_i32_0 = arith.constant 0 : i32
    %c0_i32_1 = arith.constant 0 : i32
    %c0_i32_2 = arith.constant 0 : i32
    return %c0_i32, %c0_i32_0, %c0_i32_1 : i32, i32, i32
  }
  func.func @transform_6(%arg0: i32) -> (i32, i32, i32) {
    %c0_i32 = arith.constant 0 : i32
    %c0_i32_0 = arith.constant 0 : i32
    %c0_i32_1 = arith.constant 0 : i32
    %c0_i32_2 = arith.constant 0 : i32
    return %c0_i32, %c0_i32_0, %c0_i32_1 : i32, i32, i32
  }
  func.func @transform_7(%arg0: i32) -> (i32, i32, i32) {
    %c0_i32 = arith.constant 0 : i32
    %c0_i32_0 = arith.constant 0 : i32
    %c0_i32_1 = arith.constant 0 : i32
    %c0_i32_2 = arith.constant 0 : i32
    return %c0_i32, %c0_i32_0, %c0_i32_1 : i32, i32, i32
  }
  func.func @transform_8(%arg0: i32) -> (i32, i32) {
    %c0_i32 = arith.constant 0 : i32
    %c0_i32_0 = arith.constant 0 : i32
    %c0_i32_1 = arith.constant 0 : i32
    return %c0_i32, %c0_i32_0 : i32, i32
  }
  func.func @transform_9(%arg0: i32) -> (i32, i32, i32) {
    %c0_i32 = arith.constant 0 : i32
    %c0_i32_0 = arith.constant 0 : i32
    %c0_i32_1 = arith.constant 0 : i32
    %c0_i32_2 = arith.constant 0 : i32
    return %c0_i32, %c0_i32_0, %c0_i32_1 : i32, i32, i32
  }
  func.func @transform_10(%arg0: i32) -> (i32, i32) {
    %c0_i32 = arith.constant 0 : i32
    %c0_i32_0 = arith.constant 0 : i32
    %c0_i32_1 = arith.constant 0 : i32
    return %c0_i32, %c0_i32_0 : i32, i32
  }
  func.func @transform_11(%arg0: i32) -> (i32, i32, i32) {
    %c0_i32 = arith.constant 0 : i32
    %c0_i32_0 = arith.constant 0 : i32
    %c0_i32_1 = arith.constant 0 : i32
    %c0_i32_2 = arith.constant 0 : i32
    return %c0_i32, %c0_i32_0, %c0_i32_1 : i32, i32, i32
  }
  func.func @transform_12(%arg0: i32) -> (i32, i32) {
    %c0_i32 = arith.constant 0 : i32
    %c0_i32_0 = arith.constant 0 : i32
    %c0_i32_1 = arith.constant 0 : i32
    return %c0_i32, %c0_i32_0 : i32, i32
  }
  func.func @transform_13(%arg0: i32) -> (i32, i32, i32) {
    %c0_i32 = arith.constant 0 : i32
    %c0_i32_0 = arith.constant 0 : i32
    %c0_i32_1 = arith.constant 0 : i32
    %c0_i32_2 = arith.constant 0 : i32
    return %c0_i32, %c0_i32_0, %c0_i32_1 : i32, i32, i32
  }
  func.func @transform_14(%arg0: i32) -> (i32, i32) {
    %c0_i32 = arith.constant 0 : i32
    %c0_i32_0 = arith.constant 0 : i32
    %c0_i32_1 = arith.constant 0 : i32
    return %c0_i32, %c0_i32_0 : i32, i32
  }
  func.func @transform_15(%arg0: i32) -> (i32, i32, i32) {
    %c0_i32 = arith.constant 0 : i32
    %c0_i32_0 = arith.constant 0 : i32
    %c0_i32_1 = arith.constant 0 : i32
    %c0_i32_2 = arith.constant 0 : i32
    return %c0_i32, %c0_i32_0, %c0_i32_1 : i32, i32, i32
  }
  func.func @transform_16(%arg0: i32) -> (i32, i32) {
    %c0_i32 = arith.constant 0 : i32
    %c0_i32_0 = arith.constant 0 : i32
    %c0_i32_1 = arith.constant 0 : i32
    return %c0_i32, %c0_i32_0 : i32, i32
  }
  func.func @transform_17(%arg0: i32) -> (i32, i32, i32) {
    %c0_i32 = arith.constant 0 : i32
    %c0_i32_0 = arith.constant 0 : i32
    %c0_i32_1 = arith.constant 0 : i32
    %c0_i32_2 = arith.constant 0 : i32
    return %c0_i32, %c0_i32_0, %c0_i32_1 : i32, i32, i32
  }
  func.func @transform_18(%arg0: i32) -> (i32, i32) {
    %c0_i32 = arith.constant 0 : i32
    %c0_i32_0 = arith.constant 0 : i32
    %c0_i32_1 = arith.constant 0 : i32
    return %c0_i32, %c0_i32_0 : i32, i32
  }
  func.func @transform_19(%arg0: i32) -> (i32, i32, i32) {
    %c0_i32 = arith.constant 0 : i32
    %c0_i32_0 = arith.constant 0 : i32
    %c0_i32_1 = arith.constant 0 : i32
    %c0_i32_2 = arith.constant 0 : i32
    return %c0_i32, %c0_i32_0, %c0_i32_1 : i32, i32, i32
  }
  func.func @transform_20(%arg0: i32) -> (i32, i32) {
    %c0_i32 = arith.constant 0 : i32
    %c0_i32_0 = arith.constant 0 : i32
    %c0_i32_1 = arith.constant 0 : i32
    return %c0_i32, %c0_i32_0 : i32, i32
  }
  func.func @transform_21(%arg0: i32) -> (i32, i32, i32) {
    %c0_i32 = arith.constant 0 : i32
    %c0_i32_0 = arith.constant 0 : i32
    %c0_i32_1 = arith.constant 0 : i32
    %c0_i32_2 = arith.constant 0 : i32
    return %c0_i32, %c0_i32_0, %c0_i32_1 : i32, i32, i32
  }
  func.func @transform_22(%arg0: i32) -> (i32, i32) {
    %c0_i32 = arith.constant 0 : i32
    %c0_i32_0 = arith.constant 0 : i32
    %c0_i32_1 = arith.constant 0 : i32
    return %c0_i32, %c0_i32_0 : i32, i32
  }
  func.func @transform_23(%arg0: i32) -> (i32, i32, i32) {
    %c0_i32 = arith.constant 0 : i32
    %c0_i32_0 = arith.constant 0 : i32
    %c0_i32_1 = arith.constant 0 : i32
    %c0_i32_2 = arith.constant 0 : i32
    return %c0_i32, %c0_i32_0, %c0_i32_1 : i32, i32, i32
  }
  func.func @transform_24(%arg0: i32) -> (i32, i32) {
    %c0_i32 = arith.constant 0 : i32
    %c0_i32_0 = arith.constant 0 : i32
    %c0_i32_1 = arith.constant 0 : i32
    return %c0_i32, %c0_i32_0 : i32, i32
  }
  func.func @transform_25(%arg0: i32) -> (i32, i32, i32) {
    %c0_i32 = arith.constant 0 : i32
    %c0_i32_0 = arith.constant 0 : i32
    %c0_i32_1 = arith.constant 0 : i32
    %c0_i32_2 = arith.constant 0 : i32
    return %c0_i32, %c0_i32_0, %c0_i32_1 : i32, i32, i32
  }
  func.func @transform_26(%arg0: i32) -> (i32, i32) {
    %c0_i32 = arith.constant 0 : i32
    %c0_i32_0 = arith.constant 0 : i32
    %c0_i32_1 = arith.constant 0 : i32
    return %c0_i32, %c0_i32_0 : i32, i32
  }
  func.func @transform_27(%arg0: i32) -> (i32, i32, i32) {
    %c0_i32 = arith.constant 0 : i32
    %c0_i32_0 = arith.constant 0 : i32
    %c0_i32_1 = arith.constant 0 : i32
    %c0_i32_2 = arith.constant 0 : i32
    return %c0_i32, %c0_i32_0, %c0_i32_1 : i32, i32, i32
  }
  func.func @transform_28(%arg0: i32) -> (i32, i32) {
    %c0_i32 = arith.constant 0 : i32
    %c0_i32_0 = arith.constant 0 : i32
    %c0_i32_1 = arith.constant 0 : i32
    return %c0_i32, %c0_i32_0 : i32, i32
  }
  func.func @transform_29(%arg0: i32) -> (i32, i32, i32) {
    %c0_i32 = arith.constant 0 : i32
    %c0_i32_0 = arith.constant 0 : i32
    %c0_i32_1 = arith.constant 0 : i32
    %c0_i32_2 = arith.constant 0 : i32
    return %c0_i32, %c0_i32_0, %c0_i32_1 : i32, i32, i32
  }
  func.func @transform_30(%arg0: i32) -> (i32, i32) {
    %c0_i32 = arith.constant 0 : i32
    %c0_i32_0 = arith.constant 0 : i32
    %c0_i32_1 = arith.constant 0 : i32
    return %c0_i32, %c0_i32_0 : i32, i32
  }
  func.func @transform_31(%arg0: i32) -> (i32, i32, i32) {
    %c0_i32 = arith.constant 0 : i32
    %c0_i32_0 = arith.constant 0 : i32
    %c0_i32_1 = arith.constant 0 : i32
    %c0_i32_2 = arith.constant 0 : i32
    return %c0_i32, %c0_i32_0, %c0_i32_1 : i32, i32, i32
  }
  func.func @transform_32(%arg0: i32) -> (i32, i32) {
    %c0_i32 = arith.constant 0 : i32
    %c0_i32_0 = arith.constant 0 : i32
    %c0_i32_1 = arith.constant 0 : i32
    return %c0_i32, %c0_i32_0 : i32, i32
  }
  func.func @transform_33(%arg0: i32) -> (i32, i32, i32) {
    %c0_i32 = arith.constant 0 : i32
    %c0_i32_0 = arith.constant 0 : i32
    %c0_i32_1 = arith.constant 0 : i32
    %c0_i32_2 = arith.constant 0 : i32
    return %c0_i32, %c0_i32_0, %c0_i32_1 : i32, i32, i32
  }
  func.func @transform_34(%arg0: i32) -> (i32, i32) {
    %c0_i32 = arith.constant 0 : i32
    %c0_i32_0 = arith.constant 0 : i32
    %c0_i32_1 = arith.constant 0 : i32
    return %c0_i32, %c0_i32_0 : i32, i32
  }
  func.func @transform_35(%arg0: i32) -> (i32, i32, i32) {
    %c0_i32 = arith.constant 0 : i32
    %c0_i32_0 = arith.constant 0 : i32
    %c0_i32_1 = arith.constant 0 : i32
    %c0_i32_2 = arith.constant 0 : i32
    return %c0_i32, %c0_i32_0, %c0_i32_1 : i32, i32, i32
  }
  func.func @transform_36(%arg0: i32) -> (i32, i32) {
    %c0_i32 = arith.constant 0 : i32
    %c0_i32_0 = arith.constant 0 : i32
    %c0_i32_1 = arith.constant 0 : i32
    return %c0_i32, %c0_i32_0 : i32, i32
  }
  func.func @transform_37(%arg0: i32) -> (i32, i32, i32) {
    %c0_i32 = arith.constant 0 : i32
    %c0_i32_0 = arith.constant 0 : i32
    %c0_i32_1 = arith.constant 0 : i32
    return %arg0, %c0_i32, %c0_i32_0 : i32, i32, i32
  }
}

</mosaic_0001>

<bundles_post_ra>
// kernel: resnet_forward.1
= control target key start
LH: loop header
LB: loop body
LE: loop exit
PB: predicated region body
PF: predicated region fallthrough
CT: control target
= control target key end

     0   :  { %s13485_s6 = smov 1   ;;  %s13486_s10 = smov 2   ;;  %s14915_s0 = inlined_call_operand.smem [shape: u32[38], index: -1, kind: input, shape index: {}] }
   0x1   :  { %s13581_s5 = sld [smem:[%s14915_s0]]   ;;  %s13487_s14 = smov 3  }
   0x2   :  { %s13586_s9 = sld [smem:[%s14915_s0 + %s13485_s6]]   ;;  %s13488_s18 = smov 4  }
   0x3   :  { %s13591_s13 = sld [smem:[%s14915_s0 + %s13486_s10]]   ;;  %s13489_s22 = smov 5  }
   0x4   :  { %s13596_s17 = sld [smem:[%s14915_s0 + %s13487_s14]]   ;;  %s13490_s26 = smov 6  }
   0x5   :  { %s13601_s21 = sld [smem:[%s14915_s0 + %s13488_s18]]   ;;  %s13491_s30 = smov 7  }
   0x6   :  { %s13606_s25 = sld [smem:[%s14915_s0 + %s13489_s22]]   ;;  %s13492_s4 = smov 8  }
   0x7   :  { %14955 = sst [smem:[#allocation72_spill]] %s13581_s5  ;;  %s13493_s10 = smov 9  }
   0x8   :  { %14956 = sst [smem:[#allocation73_spill]] %s13586_s9  ;;  %s13494_s15 = smov 10  }
   0x9   :  { %14957 = sst [smem:[#allocation74_spill]] %s13591_s13  ;;  %s13495_s20 = smov 11  }
   0xa   :  { %s13611_s29 = sld [smem:[%s14915_s0 + %s13490_s26]]   ;;  %s13496_s26 = smov 12  }
   0xb   :  { %14958 = sst [smem:[#allocation75_spill]] %s13601_s21  ;;  %s13497_s1 = smov 13  }
   0xc   :  { %s13616_s3 = sld [smem:[%s14915_s0 + %s13491_s30]]   ;;  %s13498_s7 = smov 14  }
   0xd   :  { %s13621_s8 = sld [smem:[%s14915_s0 + %s13492_s4]]   ;;  %s13500_s22 = smov 16  }
   0xe   :  { %s13626_s14 = sld [smem:[%s14915_s0 + %s13493_s10]]   ;;  %s13501_s28 = smov 17  }
   0xf   :  { %s13631_s19 = sld [smem:[%s14915_s0 + %s13494_s15]]   ;;  %s13499_s15 = smov 15  }
  0x10   :  { %14959 = sst [smem:[#allocation76_spill]] %s13611_s29 }
  0x11   :  { %s13636_s24 = sld [smem:[%s14915_s0 + %s13495_s20]]  }
  0x12   :  { %14960 = sst [smem:[#allocation77_spill]] %s13616_s3 }
  0x13   :  { %14961 = sst [smem:[#allocation78_spill]] %s13621_s8 }
  0x14   :  { %14962 = sst [smem:[#allocation79_spill]] %s13626_s14 }
  0x15   :  { %14963 = sst [smem:[#allocation80_spill]] %s13631_s19 }
  0x16   :  { %s13641_s30 = sld [smem:[%s14915_s0 + %s13496_s26]]  }
  0x17   :  { %s13646_s6 = sld [smem:[%s14915_s0 + %s13497_s1]]  }
  0x18   :  { %s13651_s12 = sld [smem:[%s14915_s0 + %s13498_s7]]   ;;  %s13502_s7 = smov 18  }
  0x19   :  { %s13656_s20 = sld [smem:[%s14915_s0 + %s13499_s15]]   ;;  %s13503_s15 = smov 19  }
  0x1a   :  { %s13661_s27 = sld [smem:[%s14915_s0 + %s13500_s22]]   ;;  %s13504_s22 = smov 20  }
  0x1b   :  { %s13666_s4 = sld [smem:[%s14915_s0 + %s13501_s28]]   ;;  %s13505_s28 = smov 21  }
  0x1c   :  { %14964 = sst [smem:[#allocation81_spill]] %s13641_s30 }
  0x1d   :  { %14965 = sst [smem:[#allocation82_spill]] %s13646_s6 }
  0x1e   :  { %14966 = sst [smem:[#allocation83_spill]] %s13651_s12 }
  0x1f   :  { %s13671_s9 = sld [smem:[%s14915_s0 + %s13502_s7]]   ;;  %s13506_s7 = smov 22  }
  0x20   :  { %14967 = sst [smem:[#allocation84_spill]] %s13661_s27 }
  0x21   :  { %14968 = sst [smem:[#allocation85_spill]] %s13666_s4 }
  0x22   :  { %s13676_s5 = sld [smem:[%s14915_s0 + %s13503_s15]]   ;;  %s13507_s15 = smov 23  }
  0x23   :  { %s13681_s27 = sld [smem:[%s14915_s0 + %s13504_s22]]   ;;  %s13508_s22 = smov 24  }
  0x24   :  { %s13686_s12 = sld [smem:[%s14915_s0 + %s13505_s28]]   ;;  %s13509_s28 = smov 25  }
  0x25   :  { %14969 = sst [smem:[#allocation86_spill]] %s13671_s9 }
  0x26   :  { %s13691_s9 = sld [smem:[%s14915_s0 + %s13506_s7]]   ;;  %s13510_s7 = smov 26  }
  0x27   :  { %s13696_s30 = sld [smem:[%s14915_s0 + %s13507_s15]]   ;;  %s13511_s15 = smov 27  }
  0x28   :  { %14970 = sst [smem:[#allocation87_spill]] %s13676_s5 }
  0x29   :  { %14971 = sst [smem:[#allocation88_spill]] %s13681_s27 }
  0x2a   :  { %14972 = sst [smem:[#allocation89_spill]] %s13686_s12 }
  0x2b   :  { %s13701_s27 = sld [smem:[%s14915_s0 + %s13508_s22]]   ;;  %s13512_s22 = smov 28  }
  0x2c   :  { %14973 = sst [smem:[#allocation90_spill]] %s13691_s9 }
  0x2d   :  { %s13706_s19 = sld [smem:[%s14915_s0 + %s13509_s28]]   ;;  %s13513_s28 = smov 29  }
  0x2e   :  { %s13711_s9 = sld [smem:[%s14915_s0 + %s13510_s7]]   ;;  %s13514_s7 = smov 30  }
  0x2f   :  { %s13716_s8 = sld [smem:[%s14915_s0 + %s13511_s15]]   ;;  %s13515_s15 = smov 31  }
  0x30   :  { %s13726_s29 = sld [smem:[%s14915_s0 + %s13513_s28]]   ;;  %s13517_s28 = smov 33  }
  0x31   :  { %14974 = sst [smem:[#allocation91_spill]] %s13701_s27 }
  0x32   :  { %s13721_s27 = sld [smem:[%s14915_s0 + %s13512_s22]]   ;;  %s13516_s22 = smov 32  }
  0x33   :  { %s13741_s21 = sld [smem:[%s14915_s0 + %s13516_s22]]   ;;  %s13520_s22 = smov 36  }
  0x34   :  { %14975 = sst [smem:[#allocation92_spill]] %s13711_s9 }
  0x35   :  { %14976 = sst [smem:[#allocation93_spill]] %s13716_s8 }
  0x36   :  { %14977 = sst [smem:[#allocation94_spill]] %s13726_s29 }
  0x37   :  { %s13731_s9 = sld [smem:[%s14915_s0 + %s13514_s7]]   ;;  %s13518_s7 = smov 34  }
  0x38   :  { %s13736_s8 = sld [smem:[%s14915_s0 + %s13515_s15]]   ;;  %s13519_s15 = smov 35  }
  0x39   :  { %14980 = sst [smem:[#allocation97_spill]] %s13741_s21 }
  0x3a   :  { %s13746_s29 = sld [smem:[%s14915_s0 + %s13517_s28]]   ;;  %s13521_s28 = smov 37  }
  0x3b   :  { %s13751_s13 = sld [smem:[%s14915_s0 + %s13518_s7]]  }
  0x3c   :  { %s13761_s21 = sld [smem:[%s14915_s0 + %s13520_s22]]  }
  0x3d   :  { %14978 = sst [smem:[#allocation95_spill]] %s13731_s9 }
  0x3e   :  { %14979 = sst [smem:[#allocation96_spill]] %s13736_s8 }
  0x3f   :  { %s13756_s8 = sld [smem:[%s14915_s0 + %s13519_s15]]  }
  0x40   :  { %14981 = sst [smem:[#allocation98_spill]] %s13746_s29 }
  0x41   :  { %14982 = sst [smem:[#allocation99_spill]] %s13751_s13 }
  0x42   :  { %s13766_s29 = sld [smem:[%s14915_s0 + %s13521_s28]]  }
  0x43   :  { %80 = vsyncpa [#allocation3], 0 }
  0x44   :  { %81 = vsyncpa [#allocation5], 0 }
  0x45   :  { %82 = vsyncpa [#allocation8], 0 }
  0x46   :  { %83 = vsyncpa [#allocation11], 0 }
  0x47   :  { %84 = vsyncpa [#allocation14], 0 }
  0x48   :  { %85 = vsyncpa [#allocation17], 0 }
  0x49   :  { %86 = vsyncpa [#allocation20], 0 }
  0x4a   :  { %87 = vsyncpa [#allocation23], 0 }
  0x4b   :  { %88 = vsyncpa [#allocation26], 0 }
  0x4c   :  { %89 = vsyncpa [#allocation29], 0 }
  0x4d   :  { %90 = vsyncpa [#allocation32], 0 }
  0x4e   :  { %91 = vsyncpa [#allocation35], 0 }
  0x4f   :  { %92 = vsyncpa [#allocation38], 0 }
  0x50   :  { %93 = vsyncpa [#allocation41], 0 }
  0x51   :  { %94 = vsyncpa [#allocation44], 0 }
  0x52   :  { %95 = vsyncpa [#allocation47], 0 }
  0x53   :  { %96 = vsyncpa [#allocation50], 0 }
  0x54   :  { %97 = vsyncpa [#allocation53], 0  ;;  %s13768_s0 = smov 0  }
  0x55 LB: > { %s14983_s14 = sld [smem:[#allocation79_spill]]  ;;  %s14984_s13 = sld [smem:[#allocation99_spill]]  ;;  %s13483_s0 = sphi %s13768_s0, %s103_s0  }
  0x56   : > { %s14985_s12 = sld [smem:[#allocation89_spill]]  ;;  %s14986_s9 = sld [smem:[#allocation95_spill]] }
  0x57   : > { %s14987_s6 = sld [smem:[#allocation82_spill]]  ;;  %s14988_s5 = sld [smem:[#allocation87_spill]] }
  0x58   : > { %s14989_s4 = sld [smem:[#allocation85_spill]]  ;;  %s13774_s7 = sadd.s32 4294967295, %s13483_s0  }
  0x59   : > { %s14990_s3 = sld [smem:[#allocation77_spill]]  ;;  %p9088_p0 = scmp.ge.s32.totalorder %s13483_s0, 1 }
  0x5a   : > { %p916_p1 = scmp.lt.s32.totalorder %s13483_s0, 3 }
  0x5c   : > { %p13778_p2 = pnand %p9088_p0, %p916_p1 }
  0x5d   : > { %p12320_p3 = scmp.eq.s32.totalorder (!%p13778_p2), %s13774_s7, 0  ;;  %s13522_s11 = smov (!%p13778_p2), [#allocation4]  }
  0x5e   : > { %920 = sbr.rel (%p13778_p2) target bundleno = 913 (0x391), region = 12  ;;  %s944_s15 = sshll.u32 (!%p13778_p2), %s13522_s11, 4  ;;  %s945_s15 = int_to_ptr.vmem [resolvable:$true] %s944_s15 }
  0x5f   : > { %s13523_s16 = smov (!%p13778_p2), [#allocation7]   ;;  %s12521_s22 = scalar_lea.hbm (!%p13778_p2), %s13596_s17, 768 }
  0x60   : > { %s970_s18 = sshll.u32 (!%p13778_p2), %s13523_s16, 4  ;;  %p12522_p4 = scmp.ne.s32.totalorder (!%p13778_p2), %s13596_s17, %s12521_s22  ;;  %s971_s18 = int_to_ptr.vmem [resolvable:$true] %s970_s18 }
  0x61   : > { %p12527_p7 = scmp.lt.u32.totalorder (!%p13778_p2), %s12521_s22, %s13596_s17 }
  0x62   : > { %p12523_p5 = pnand (!%p13778_p2), %p12522_p4, %p12320_p3 }
  0x64   : > { %p12524_p6 = pneg (!%p13778_p2), %p12523_p5 }
  0x66   : > { %p12529_p8 = pnand %p12527_p7, %p12524_p6 }
  0x68   : > { %12532 = shalt.err (!%p12529_p8)
}
  0x69   : > { %s12533_s23 = scalar_lea.vmem %s945_s15, 768  ;;  %p12540_p12 = scmp.lt.s32.totalorder %s945_s15, %s945_s15 }
  0x6a   : > { %p12534_p9 = scmp.ne.s32.totalorder %s945_s15, %s12533_s23  ;;  %p12541_p13 = scmp.lt.s32.totalorder %s12533_s23, %s12533_s23 }
  0x6c   : > { %p12535_p10 = pnand %p12534_p9, %p12320_p3  ;;  %p12542_p0 = por %p12541_p13, %p12540_p12 }
  0x6e   : > { %p12536_p11 = pneg %p12535_p10 }
  0x70   : > { %p12543_p1 = pnand %p12542_p0, %p12536_p11 }
  0x72   : > { %12546 = shalt.err (!%p12543_p1)
}
  0x73   : > { %s14935_s26 = smov 128   ;;  %s13525_s28 = smov 8  }
  0x74   : > { %12187 = dma.hbm_to_vmem [thread:$0]  (%p12320_p3), %s13596_s17, 768, %s945_s15, [#allocation5], %s14935_s26, %s14935_s26, %s13525_s28  }
  0x75   : > { %s12547_s1 = scalar_lea.hbm %s13606_s25, 384 }
  0x76   : > { %p12548_p4 = scmp.ne.s32.totalorder %s13606_s25, %s12547_s1  ;;  %p12553_p7 = scmp.lt.u32.totalorder %s12547_s1, %s13606_s25 }
  0x78   : > { %p12549_p5 = pnand %p12548_p4, %p12320_p3 }
  0x7a   : > { %p12550_p6 = pneg %p12549_p5 }
  0x7c   : > { %p12555_p8 = pnand %p12553_p7, %p12550_p6 }
  0x7e   : > { %12558 = shalt.err (!%p12555_p8)
}
  0x7f   : > { %s12559_s2 = scalar_lea.vmem %s971_s18, 384  ;;  %p12566_p12 = scmp.lt.s32.totalorder %s971_s18, %s971_s18 }
  0x80   : > { %p12560_p9 = scmp.ne.s32.totalorder %s971_s18, %s12559_s2  ;;  %p12567_p13 = scmp.lt.s32.totalorder %s12559_s2, %s12559_s2 }
  0x82   : > { %p12561_p10 = pnand %p12560_p9, %p12320_p3  ;;  %p12568_p0 = por %p12567_p13, %p12566_p12 }
  0x84   : > { %p12562_p11 = pneg %p12561_p10 }
  0x86   : > { %p12569_p1 = pnand %p12568_p0, %p12562_p11 }
  0x88   : > { %12572 = shalt.err (!%p12569_p1)
}
  0x89   : > { %12191 = dma.hbm_to_vmem [thread:$0]  (%p12320_p3), %s13606_s25, 384, %s971_s18, [#allocation8], %s14935_s26, %s14935_s26, %s13525_s28  }
  0x8a   : > { %s13526_s11 = smov [#allocation10]   ;;  %s12573_s16 = scalar_lea.hbm %s14990_s3, 112 }
  0x8b   : > { %s996_s15 = sshll.u32 %s13526_s11, 4  ;;  %p12574_p4 = scmp.ne.s32.totalorder %s14990_s3, %s12573_s16  ;;  %s997_s15 = int_to_ptr.vmem [resolvable:$true] %s996_s15 }
  0x8c   : > { %p12579_p7 = scmp.lt.u32.totalorder %s12573_s16, %s14990_s3 }
  0x8d   : > { %p12575_p5 = pnand %p12574_p4, %p12320_p3 }
  0x8f   : > { %p12576_p6 = pneg %p12575_p5 }
  0x91   : > { %p12581_p8 = pnand %p12579_p7, %p12576_p6 }
  0x93   : > { %12584 = shalt.err (!%p12581_p8)
}
  0x94   : > { %s12585_s22 = scalar_lea.vmem %s997_s15, 112  ;;  %s12591_s23 = scalar_lea.vmem %s997_s15, 128 }
  0x95   : > { %p12586_p9 = scmp.ne.s32.totalorder %s997_s15, %s12585_s22  ;;  %p12592_p12 = scmp.lt.s32.totalorder %s997_s15, %s997_s15 }
  0x96   : > { %p12593_p13 = scmp.lt.s32.totalorder %s12591_s23, %s12585_s22 }
  0x97   : > { %p12587_p10 = pnand %p12586_p9, %p12320_p3 }
  0x98   : > { %p12594_p0 = por %p12593_p13, %p12592_p12 }
  0x99   : > { %p12588_p11 = pneg %p12587_p10 }
  0x9b   : > { %p12595_p1 = pnand %p12594_p0, %p12588_p11 }
  0x9d   : > { %12598 = shalt.err (!%p12595_p1)
}
  0x9e   : > { %s14937_s18 = smov 16   ;;  %s13528_s1 = smov 1  }
  0x9f   : > { %12195 = dma.hbm_to_vmem [thread:$0]  (%p12320_p3), %s14990_s3, 112, %s997_s15, [#allocation11], %s14937_s18, %s14937_s18, %s13528_s1  }
  0xa0   : > { %s13529_s2 = smov [#allocation13]   ;;  %s13530_s16 = smov [#allocation16]  }
  0xa1   : > { %s1020_s11 = sshll.u32 %s13529_s2, 4  ;;  %s1044_s26 = sshll.u32 %s13530_s16, 4  ;;  %s1021_s11 = int_to_ptr.vmem [resolvable:$true] %s1020_s11  ;;  %s13823_s26 = int_to_ptr.vmem [resolvable:$true] %s1044_s26 }
  0xa2   : > { %s12599_s22 = scalar_lea.hbm %s14983_s14, 3072 }
  0xa3   : > { %p12600_p4 = scmp.ne.s32.totalorder %s14983_s14, %s12599_s22  ;;  %p12605_p7 = scmp.lt.u32.totalorder %s12599_s22, %s14983_s14 }
  0xa5   : > { %p12601_p5 = pnand %p12600_p4, %p12320_p3 }
  0xa7   : > { %p12602_p6 = pneg %p12601_p5 }
  0xa9   : > { %p12607_p8 = pnand %p12605_p7, %p12602_p6 }
  0xab   : > { %12610 = shalt.err (!%p12607_p8)
}
  0xac   : > { %s12611_s23 = scalar_lea.vmem %s1021_s11, 3072  ;;  %p12618_p12 = scmp.lt.s32.totalorder %s1021_s11, %s1021_s11 }
  0xad   : > { %p12612_p9 = scmp.ne.s32.totalorder %s1021_s11, %s12611_s23  ;;  %p12619_p13 = scmp.lt.s32.totalorder %s12611_s23, %s12611_s23 }
  0xaf   : > { %p12613_p10 = pnand %p12612_p9, %p12320_p3  ;;  %p12620_p0 = por %p12619_p13, %p12618_p12 }
  0xb1   : > { %p12614_p11 = pneg %p12613_p10 }
  0xb3   : > { %p12621_p1 = pnand %p12620_p0, %p12614_p11 }
  0xb5   : > { %12624 = shalt.err (!%p12621_p1)
}
  0xb6   : > { %s14992_s15 = smov 128   ;;  %s12625_s1 = scalar_lea.hbm %s13636_s24, 3072 }
  0xb7   : > { %12199 = dma.hbm_to_vmem [thread:$0]  (%p12320_p3), %s14983_s14, 3072, %s1021_s11, [#allocation14], %s14992_s15, %s14992_s15, %s13525_s28  }
  0xb8   : > { %p12626_p4 = scmp.ne.s32.totalorder %s13636_s24, %s12625_s1  ;;  %p12631_p7 = scmp.lt.u32.totalorder %s12625_s1, %s13636_s24 }
  0xba   : > { %p12627_p5 = pnand %p12626_p4, %p12320_p3 }
  0xbc   : > { %p12628_p6 = pneg %p12627_p5 }
  0xbe   : > { %p12633_p8 = pnand %p12631_p7, %p12628_p6 }
  0xc0   : > { %12636 = shalt.err (!%p12633_p8)
}
  0xc1   : > { %s12637_s2 = scalar_lea.vmem %s13823_s26, 3072  ;;  %p12644_p12 = scmp.lt.s32.totalorder %s13823_s26, %s13823_s26 }
  0xc2   : > { %p12638_p9 = scmp.ne.s32.totalorder %s13823_s26, %s12637_s2  ;;  %p12645_p13 = scmp.lt.s32.totalorder %s12637_s2, %s12637_s2 }
  0xc4   : > { %p12639_p10 = pnand %p12638_p9, %p12320_p3  ;;  %p12646_p0 = por %p12645_p13, %p12644_p12 }
  0xc6   : > { %p12640_p11 = pneg %p12639_p10 }
  0xc8   : > { %p12647_p1 = pnand %p12646_p0, %p12640_p11 }
  0xca   : > { %12650 = shalt.err (!%p12647_p1)
}
  0xcb   : > { %12203 = dma.hbm_to_vmem [thread:$0]  (%p12320_p3), %s13636_s24, 3072, %s13823_s26, [#allocation17], %s14992_s15, %s14992_s15, %s13525_s28  }
  0xcc   : > { %s13531_s11 = smov [#allocation19]   ;;  %s13532_s22 = smov [#allocation22]  }
  0xcd   : > { %s1068_s16 = sshll.u32 %s13531_s11, 4  ;;  %s1092_s23 = sshll.u32 %s13532_s22, 4  ;;  %s1069_s16 = int_to_ptr.vmem [resolvable:$true] %s1068_s16  ;;  %s13856_s23 = int_to_ptr.vmem [resolvable:$true] %s1092_s23 }
  0xce   : > { %s12651_s1 = scalar_lea.hbm %s14987_s6, 3072 }
  0xcf   : > { %p12652_p4 = scmp.ne.s32.totalorder %s14987_s6, %s12651_s1  ;;  %p12657_p7 = scmp.lt.u32.totalorder %s12651_s1, %s14987_s6 }
  0xd1   : > { %p12653_p5 = pnand %p12652_p4, %p12320_p3 }
  0xd3   : > { %p12654_p6 = pneg %p12653_p5 }
  0xd5   : > { %p12659_p8 = pnand %p12657_p7, %p12654_p6 }
  0xd7   : > { %12662 = shalt.err (!%p12659_p8)
}
  0xd8   : > { %s12663_s2 = scalar_lea.vmem %s1069_s16, 3072  ;;  %p12670_p12 = scmp.lt.s32.totalorder %s1069_s16, %s1069_s16 }
  0xd9   : > { %p12664_p9 = scmp.ne.s32.totalorder %s1069_s16, %s12663_s2  ;;  %p12671_p13 = scmp.lt.s32.totalorder %s12663_s2, %s12663_s2 }
  0xdb   : > { %p12665_p10 = pnand %p12664_p9, %p12320_p3  ;;  %p12672_p0 = por %p12671_p13, %p12670_p12 }
  0xdd   : > { %p12666_p11 = pneg %p12665_p10 }
  0xdf   : > { %p12673_p1 = pnand %p12672_p0, %p12666_p11 }
  0xe1   : > { %12676 = shalt.err (!%p12673_p1)
}
  0xe2   : > { %12207 = dma.hbm_to_vmem [thread:$0]  (%p12320_p3), %s14987_s6, 3072, %s1069_s16, [#allocation20], %s14992_s15, %s14992_s15, %s13525_s28  }
  0xe3   : > { %s12677_s26 = scalar_lea.hbm %s13656_s20, 3072 }
  0xe4   : > { %p12678_p4 = scmp.ne.s32.totalorder %s13656_s20, %s12677_s26  ;;  %p12683_p7 = scmp.lt.u32.totalorder %s12677_s26, %s13656_s20 }
  0xe6   : > { %p12679_p5 = pnand %p12678_p4, %p12320_p3 }
  0xe8   : > { %p12680_p6 = pneg %p12679_p5 }
  0xea   : > { %p12685_p8 = pnand %p12683_p7, %p12680_p6 }
  0xec   : > { %12688 = shalt.err (!%p12685_p8)
}
  0xed   : > { %s12689_s11 = scalar_lea.vmem %s13856_s23, 3072  ;;  %p12696_p12 = scmp.lt.s32.totalorder %s13856_s23, %s13856_s23 }
  0xee   : > { %p12690_p9 = scmp.ne.s32.totalorder %s13856_s23, %s12689_s11  ;;  %p12697_p13 = scmp.lt.s32.totalorder %s12689_s11, %s12689_s11 }
  0xf0   : > { %p12691_p10 = pnand %p12690_p9, %p12320_p3  ;;  %p12698_p0 = por %p12697_p13, %p12696_p12 }
  0xf2   : > { %p12692_p11 = pneg %p12691_p10 }
  0xf4   : > { %p12699_p1 = pnand %p12698_p0, %p12692_p11 }
  0xf6   : > { %12702 = shalt.err (!%p12699_p1)
}
  0xf7   : > { %12211 = dma.hbm_to_vmem [thread:$0]  (%p12320_p3), %s13656_s20, 3072, %s13856_s23, [#allocation23], %s14992_s15, %s14992_s15, %s13525_s28  }
  0xf8   : > { %s13533_s16 = smov [#allocation25]   ;;  %s13534_s1 = smov [#allocation28]  }
  0xf9   : > { %s1116_s22 = sshll.u32 %s13533_s16, 4  ;;  %s1140_s2 = sshll.u32 %s13534_s1, 4  ;;  %s1117_s22 = int_to_ptr.vmem [resolvable:$true] %s1116_s22  ;;  %s13889_s2 = int_to_ptr.vmem [resolvable:$true] %s1140_s2 }
  0xfa   : > { %s12703_s26 = scalar_lea.hbm %s14989_s4, 1024 }
  0xfb   : > { %p12704_p4 = scmp.ne.s32.totalorder %s14989_s4, %s12703_s26  ;;  %p12709_p7 = scmp.lt.u32.totalorder %s12703_s26, %s14989_s4 }
  0xfd   : > { %p12705_p5 = pnand %p12704_p4, %p12320_p3 }
  0xff   : > { %p12706_p6 = pneg %p12705_p5 }
 0x101   : > { %p12711_p8 = pnand %p12709_p7, %p12706_p6 }
 0x103   : > { %12714 = shalt.err (!%p12711_p8)
}
 0x104   : > { %s12715_s11 = scalar_lea.vmem %s1117_s22, 1024  ;;  %p12722_p12 = scmp.lt.s32.totalorder %s1117_s22, %s1117_s22 }
 0x105   : > { %p12716_p9 = scmp.ne.s32.totalorder %s1117_s22, %s12715_s11  ;;  %p12723_p13 = scmp.lt.s32.totalorder %s12715_s11, %s12715_s11 }
 0x107   : > { %p12717_p10 = pnand %p12716_p9, %p12320_p3  ;;  %p12724_p0 = por %p12723_p13, %p12722_p12 }
 0x109   : > { %p12718_p11 = pneg %p12717_p10 }
 0x10b   : > { %p12725_p1 = pnand %p12724_p0, %p12718_p11 }
 0x10d   : > { %12728 = shalt.err (!%p12725_p1)
}
 0x10e   : > { %12215 = dma.hbm_to_vmem [thread:$0]  (%p12320_p3), %s14989_s4, 1024, %s1117_s22, [#allocation26], %s14992_s15, %s14992_s15, %s13525_s28  }
 0x10f   : > { %s12729_s23 = scalar_lea.hbm %s14988_s5, 3072 }
 0x110   : > { %p12730_p4 = scmp.ne.s32.totalorder %s14988_s5, %s12729_s23  ;;  %p12735_p7 = scmp.lt.u32.totalorder %s12729_s23, %s14988_s5 }
 0x112   : > { %p12731_p5 = pnand %p12730_p4, %p12320_p3 }
 0x114   : > { %p12732_p6 = pneg %p12731_p5 }
 0x116   : > { %p12737_p8 = pnand %p12735_p7, %p12732_p6 }
 0x118   : > { %12740 = shalt.err (!%p12737_p8)
}
 0x119   : > { %s12741_s16 = scalar_lea.vmem %s13889_s2, 3072  ;;  %p12748_p12 = scmp.lt.s32.totalorder %s13889_s2, %s13889_s2 }
 0x11a   : > { %p12742_p9 = scmp.ne.s32.totalorder %s13889_s2, %s12741_s16  ;;  %p12749_p13 = scmp.lt.s32.totalorder %s12741_s16, %s12741_s16 }
 0x11c   : > { %p12743_p10 = pnand %p12742_p9, %p12320_p3  ;;  %p12750_p0 = por %p12749_p13, %p12748_p12 }
 0x11e   : > { %p12744_p11 = pneg %p12743_p10 }
 0x120   : > { %p12751_p1 = pnand %p12750_p0, %p12744_p11 }
 0x122   : > { %12754 = shalt.err (!%p12751_p1)
}
 0x123   : > { %12219 = dma.hbm_to_vmem [thread:$0]  (%p12320_p3), %s14988_s5, 3072, %s13889_s2, [#allocation29], %s14992_s15, %s14992_s15, %s13525_s28  }
 0x124   : > { %s13535_s22 = smov [#allocation31]   ;;  %s13536_s26 = smov [#allocation34]  }
 0x125   : > { %s1164_s1 = sshll.u32 %s13535_s22, 4  ;;  %s1188_s11 = sshll.u32 %s13536_s26, 4  ;;  %s1165_s1 = int_to_ptr.vmem [resolvable:$true] %s1164_s1  ;;  %s13922_s11 = int_to_ptr.vmem [resolvable:$true] %s1188_s11 }
 0x126   : > { %s12755_s23 = scalar_lea.hbm %s14985_s12, 6144 }
 0x127   : > { %p12756_p4 = scmp.ne.s32.totalorder %s14985_s12, %s12755_s23  ;;  %p12761_p7 = scmp.lt.u32.totalorder %s12755_s23, %s14985_s12 }
 0x129   : > { %p12757_p5 = pnand %p12756_p4, %p12320_p3 }
 0x12b   : > { %p12758_p6 = pneg %p12757_p5 }
 0x12d   : > { %p12763_p8 = pnand %p12761_p7, %p12758_p6 }
 0x12f   : > { %12766 = shalt.err (!%p12763_p8)
}
 0x130   : > { %s12767_s16 = scalar_lea.vmem %s1165_s1, 6144  ;;  %p12774_p12 = scmp.lt.s32.totalorder %s1165_s1, %s1165_s1 }
 0x131   : > { %p12768_p9 = scmp.ne.s32.totalorder %s1165_s1, %s12767_s16  ;;  %p12775_p13 = scmp.lt.s32.totalorder %s12767_s16, %s12767_s16 }
 0x133   : > { %p12769_p10 = pnand %p12768_p9, %p12320_p3  ;;  %p12776_p0 = por %p12775_p13, %p12774_p12 }
 0x135   : > { %p12770_p11 = pneg %p12769_p10 }
 0x137   : > { %p12777_p1 = pnand %p12776_p0, %p12770_p11 }
 0x139   : > { %12780 = shalt.err (!%p12777_p1)
}
 0x13a   : > { %12223 = dma.hbm_to_vmem [thread:$0]  (%p12320_p3), %s14985_s12, 6144, %s1165_s1, [#allocation32], %s14992_s15, %s14992_s15, %s13525_s28  }
 0x13b   : > { %s12781_s2 = scalar_lea.hbm %s13696_s30, 6144 }
 0x13c   : > { %p12782_p4 = scmp.ne.s32.totalorder %s13696_s30, %s12781_s2  ;;  %p12787_p7 = scmp.lt.u32.totalorder %s12781_s2, %s13696_s30 }
 0x13e   : > { %p12783_p5 = pnand %p12782_p4, %p12320_p3 }
 0x140   : > { %p12784_p6 = pneg %p12783_p5 }
 0x142   : > { %p12789_p8 = pnand %p12787_p7, %p12784_p6 }
 0x144   : > { %12792 = shalt.err (!%p12789_p8)
}
 0x145   : > { %s12793_s22 = scalar_lea.vmem %s13922_s11, 6144  ;;  %p12800_p12 = scmp.lt.s32.totalorder %s13922_s11, %s13922_s11 }
 0x146   : > { %p12794_p9 = scmp.ne.s32.totalorder %s13922_s11, %s12793_s22  ;;  %p12801_p13 = scmp.lt.s32.totalorder %s12793_s22, %s12793_s22 }
 0x148   : > { %p12795_p10 = pnand %p12794_p9, %p12320_p3  ;;  %p12802_p0 = por %p12801_p13, %p12800_p12 }
 0x14a   : > { %p12796_p11 = pneg %p12795_p10 }
 0x14c   : > { %p12803_p1 = pnand %p12802_p0, %p12796_p11 }
 0x14e   : > { %12806 = shalt.err (!%p12803_p1)
}
 0x14f   : > { %12227 = dma.hbm_to_vmem [thread:$0]  (%p12320_p3), %s13696_s30, 6144, %s13922_s11, [#allocation35], %s14992_s15, %s14992_s15, %s13525_s28  }
 0x150   : > { %s13537_s1 = smov [#allocation37]   ;;  %s13538_s23 = smov [#allocation40]  }
 0x151   : > { %s1212_s26 = sshll.u32 %s13537_s1, 4  ;;  %s1240_s16 = sshll.u32 %s13538_s23, 4  ;;  %s1213_s26 = int_to_ptr.vmem [resolvable:$true] %s1212_s26  ;;  %s13955_s16 = int_to_ptr.vmem [resolvable:$true] %s1240_s16 }
 0x152   : > { %s12807_s2 = scalar_lea.hbm %s13706_s19, 6144 }
 0x153   : > { %p12808_p4 = scmp.ne.s32.totalorder %s13706_s19, %s12807_s2  ;;  %p12813_p7 = scmp.lt.u32.totalorder %s12807_s2, %s13706_s19 }
 0x155   : > { %p12809_p5 = pnand %p12808_p4, %p12320_p3 }
 0x157   : > { %p12810_p6 = pneg %p12809_p5 }
 0x159   : > { %p12815_p8 = pnand %p12813_p7, %p12810_p6 }
 0x15b   : > { %12818 = shalt.err (!%p12815_p8)
}
 0x15c   : > { %s12819_s22 = scalar_lea.vmem %s1213_s26, 6144  ;;  %p12826_p12 = scmp.lt.s32.totalorder %s1213_s26, %s1213_s26 }
 0x15d   : > { %p12820_p9 = scmp.ne.s32.totalorder %s1213_s26, %s12819_s22  ;;  %p12827_p13 = scmp.lt.s32.totalorder %s12819_s22, %s12819_s22 }
 0x15f   : > { %p12821_p10 = pnand %p12820_p9, %p12320_p3  ;;  %p12828_p0 = por %p12827_p13, %p12826_p12 }
 0x161   : > { %p12822_p11 = pneg %p12821_p10 }
 0x163   : > { %p12829_p1 = pnand %p12828_p0, %p12822_p11 }
 0x165   : > { %12832 = shalt.err (!%p12829_p1)
}
 0x166   : > { %12231 = dma.hbm_to_vmem [thread:$0]  (%p12320_p3), %s13706_s19, 6144, %s1213_s26, [#allocation38], %s14992_s15, %s14992_s15, %s13525_s28  }
 0x167   : > { %s12833_s11 = scalar_lea.hbm %s13721_s27, 32 }
 0x168   : > { %p12834_p4 = scmp.ne.s32.totalorder %s13721_s27, %s12833_s11  ;;  %p12839_p7 = scmp.lt.u32.totalorder %s12833_s11, %s13721_s27 }
 0x16a   : > { %p12835_p5 = pnand %p12834_p4, %p12320_p3 }
 0x16c   : > { %p12836_p6 = pneg %p12835_p5 }
 0x16e   : > { %p12841_p8 = pnand %p12839_p7, %p12836_p6 }
 0x170   : > { %12844 = shalt.err (!%p12841_p8)
}
 0x171   : > { %s12845_s1 = scalar_lea.vmem %s13955_s16, 32  ;;  %p12852_p12 = scmp.lt.s32.totalorder %s13955_s16, %s13955_s16 }
 0x172   : > { %p12846_p9 = scmp.ne.s32.totalorder %s13955_s16, %s12845_s1  ;;  %p12853_p13 = scmp.lt.s32.totalorder %s12845_s1, %s12845_s1 }
 0x174   : > { %p12847_p10 = pnand %p12846_p9, %p12320_p3  ;;  %p12854_p0 = por %p12853_p13, %p12852_p12 }
 0x176   : > { %p12848_p11 = pneg %p12847_p10 }
 0x178   : > { %p12855_p1 = pnand %p12854_p0, %p12848_p11 }
 0x17a   : > { %12858 = shalt.err (!%p12855_p1)
}
 0x17b   : > { %12235 = dma.hbm_to_vmem [thread:$0]  (%p12320_p3), %s13721_s27, 32, %s13955_s16, [#allocation41]  }
 0x17c   : > { %s13539_s26 = smov [#allocation43]   ;;  %s13540_s2 = smov [#allocation46]  }
 0x17d   : > { %s1264_s23 = sshll.u32 %s13539_s26, 4  ;;  %s1288_s22 = sshll.u32 %s13540_s2, 4  ;;  %s1265_s23 = int_to_ptr.vmem [resolvable:$true] %s1264_s23  ;;  %s13985_s22 = int_to_ptr.vmem [resolvable:$true] %s1288_s22 }
 0x17e   : > { %s12859_s11 = scalar_lea.hbm %s14986_s9, 32 }
 0x17f   : > { %p12860_p4 = scmp.ne.s32.totalorder %s14986_s9, %s12859_s11  ;;  %p12865_p7 = scmp.lt.u32.totalorder %s12859_s11, %s14986_s9 }
 0x181   : > { %p12861_p5 = pnand %p12860_p4, %p12320_p3 }
 0x183   : > { %p12862_p6 = pneg %p12861_p5 }
 0x185   : > { %p12867_p8 = pnand %p12865_p7, %p12862_p6 }
 0x187   : > { %12870 = shalt.err (!%p12867_p8)
}
 0x188   : > { %s12871_s1 = scalar_lea.vmem %s1265_s23, 32  ;;  %p12878_p12 = scmp.lt.s32.totalorder %s1265_s23, %s1265_s23 }
 0x189   : > { %p12872_p9 = scmp.ne.s32.totalorder %s1265_s23, %s12871_s1  ;;  %p12879_p13 = scmp.lt.s32.totalorder %s12871_s1, %s12871_s1 }
 0x18b   : > { %p12873_p10 = pnand %p12872_p9, %p12320_p3  ;;  %p12880_p0 = por %p12879_p13, %p12878_p12 }
 0x18d   : > { %p12874_p11 = pneg %p12873_p10 }
 0x18f   : > { %p12881_p1 = pnand %p12880_p0, %p12874_p11 }
 0x191   : > { %12884 = shalt.err (!%p12881_p1)
}
 0x192   : > { %s14993_s16 = sld [smem:[#allocation97_spill]] }
 0x193   : > { %12239 = dma.hbm_to_vmem [thread:$0]  (%p12320_p3), %s14986_s9, 32, %s1265_s23, [#allocation44]  }
 0x198   : > { %s12885_s26 = scalar_lea.hbm %s14993_s16, 32 }
 0x199   : > { %p12886_p4 = scmp.ne.s32.totalorder %s14993_s16, %s12885_s26  ;;  %p12891_p7 = scmp.lt.u32.totalorder %s12885_s26, %s14993_s16 }
 0x19b   : > { %p12887_p5 = pnand %p12886_p4, %p12320_p3 }
 0x19d   : > { %p12888_p6 = pneg %p12887_p5 }
 0x19f   : > { %p12893_p8 = pnand %p12891_p7, %p12888_p6 }
 0x1a1   : > { %12896 = shalt.err (!%p12893_p8)
}
 0x1a2   : > { %s12897_s2 = scalar_lea.vmem %s13985_s22, 32  ;;  %p12904_p12 = scmp.lt.s32.totalorder %s13985_s22, %s13985_s22 }
 0x1a3   : > { %p12898_p9 = scmp.ne.s32.totalorder %s13985_s22, %s12897_s2  ;;  %p12905_p13 = scmp.lt.s32.totalorder %s12897_s2, %s12897_s2 }
 0x1a5   : > { %p12899_p10 = pnand %p12898_p9, %p12320_p3  ;;  %p12906_p0 = por %p12905_p13, %p12904_p12 }
 0x1a7   : > { %p12900_p11 = pneg %p12899_p10 }
 0x1a9   : > { %p12907_p1 = pnand %p12906_p0, %p12900_p11 }
 0x1ab   : > { %12910 = shalt.err (!%p12907_p1)
}
 0x1ac   : > { %12243 = dma.hbm_to_vmem [thread:$0]  (%p12320_p3), %s14993_s16, 32, %s13985_s22, [#allocation47]  }
 0x1ad   : > { %s13541_s23 = smov [#allocation49]   ;;  %s13542_s1 = smov [#allocation2]  }
 0x1ae   : > { %s1312_s11 = sshll.u32 %s13541_s23, 4  ;;  %s931_s26 = sshll.u32 %s13542_s1, 4  ;;  %s1313_s11 = int_to_ptr.vmem [resolvable:$true] %s1312_s11  ;;  %s932_s26 = int_to_ptr.vmem [resolvable:$true] %s931_s26 }
 0x1af   : > { %s12911_s18 = scalar_lea.hbm %s14984_s13, 32 }
 0x1b0   : > { %p12912_p4 = scmp.ne.s32.totalorder %s14984_s13, %s12911_s18  ;;  %p12917_p7 = scmp.lt.u32.totalorder %s12911_s18, %s14984_s13 }
 0x1b2   : > { %p12913_p5 = pnand %p12912_p4, %p12320_p3 }
 0x1b4   : > { %p12914_p6 = pneg %p12913_p5 }
 0x1b6   : > { %p12919_p8 = pnand %p12917_p7, %p12914_p6 }
 0x1b8   : > { %12922 = shalt.err (!%p12919_p8)
}
 0x1b9   : > { %s12923_s2 = scalar_lea.vmem %s1313_s11, 32  ;;  %p12930_p12 = scmp.lt.s32.totalorder %s1313_s11, %s1313_s11 }
 0x1ba   : > { %p12924_p9 = scmp.ne.s32.totalorder %s1313_s11, %s12923_s2  ;;  %p12931_p13 = scmp.lt.s32.totalorder %s12923_s2, %s12923_s2 }
 0x1bc   : > { %p12925_p10 = pnand %p12924_p9, %p12320_p3  ;;  %p12932_p0 = por %p12931_p13, %p12930_p12 }
 0x1be   : > { %p12926_p11 = pneg %p12925_p10 }
 0x1c0   : > { %p12933_p1 = pnand %p12932_p0, %p12926_p11 }
 0x1c2   : > { %12936 = shalt.err (!%p12933_p1)
}
 0x1c3   : > { %s14994_s22 = sld [smem:[#allocation74_spill]] }
 0x1c4   : > { %12247 = dma.hbm_to_vmem [thread:$0]  (%p12320_p3), %s14984_s13, 32, %s1313_s11, [#allocation50]  }
 0x1c9   : > { %s12937_s18 = scalar_lea.hbm %s14994_s22, 1536 }
 0x1ca   : > { %p12938_p4 = scmp.ne.s32.totalorder %s14994_s22, %s12937_s18  ;;  %p12943_p7 = scmp.lt.u32.totalorder %s12937_s18, %s14994_s22 }
 0x1cc   : > { %p12939_p5 = pnand %p12938_p4, %p12320_p3 }
 0x1ce   : > { %p12940_p6 = pneg %p12939_p5 }
 0x1d0   : > { %p12945_p8 = pnand %p12943_p7, %p12940_p6 }
 0x1d2   : > { %12948 = shalt.err (!%p12945_p8)
}
 0x1d3   : > { %s12949_s23 = scalar_lea.vmem %s932_s26, 1536  ;;  %p12956_p12 = scmp.lt.s32.totalorder %s932_s26, %s932_s26 }
 0x1d4   : > { %p12950_p9 = scmp.ne.s32.totalorder %s932_s26, %s12949_s23  ;;  %p12957_p13 = scmp.lt.s32.totalorder %s12949_s23, %s12949_s23 }
 0x1d6   : > { %p12951_p10 = pnand %p12950_p9, %p12320_p3  ;;  %p12958_p0 = por %p12957_p13, %p12956_p12 }
 0x1d8   : > { %p12952_p11 = pneg %p12951_p10 }
 0x1da   : > { %p12959_p1 = pnand %p12958_p0, %p12952_p11 }
 0x1dc   : > { %12962 = shalt.err (!%p12959_p1)
}
 0x1dd   : > { %s14995_s11 = sld [smem:[#allocation75_spill]]  ;;  %s13543_s1 = smov [#allocation6]  }
 0x1de   : > { %12185 = dma.hbm_to_vmem [thread:$0]  (%p12320_p3), %s14994_s22, 1536, %s932_s26, [#allocation3], %s14992_s15, %s14992_s15, %s13525_s28  }
 0x1df   : > { %s957_s2 = sshll.u32 %s13543_s1, 4  ;;  %s13544_s18 = smov [#allocation9]   ;;  %s958_s2 = int_to_ptr.vmem [resolvable:$true] %s957_s2 }
 0x1e0   : > { %s983_s3 = sshll.u32 %s13544_s18, 4  ;;  %s984_s3 = int_to_ptr.vmem [resolvable:$true] %s983_s3 }
 0x1e3   : > { %s12963_s23 = scalar_lea.hbm %s14995_s11, 768 }
 0x1e4   : > { %p12964_p4 = scmp.ne.s32.totalorder %s14995_s11, %s12963_s23  ;;  %p12969_p7 = scmp.lt.u32.totalorder %s12963_s23, %s14995_s11 }
 0x1e6   : > { %p12965_p5 = pnand %p12964_p4, %p12320_p3 }
 0x1e8   : > { %p12966_p6 = pneg %p12965_p5 }
 0x1ea   : > { %p12971_p8 = pnand %p12969_p7, %p12966_p6 }
 0x1ec   : > { %12974 = shalt.err (!%p12971_p8)
}
 0x1ed   : > { %s12975_s4 = scalar_lea.vmem %s958_s2, 768  ;;  %p12982_p12 = scmp.lt.s32.totalorder %s958_s2, %s958_s2 }
 0x1ee   : > { %p12976_p9 = scmp.ne.s32.totalorder %s958_s2, %s12975_s4  ;;  %p12983_p13 = scmp.lt.s32.totalorder %s12975_s4, %s12975_s4 }
 0x1f0   : > { %p12977_p10 = pnand %p12976_p9, %p12320_p3  ;;  %p12984_p0 = por %p12983_p13, %p12982_p12 }
 0x1f2   : > { %p12978_p11 = pneg %p12977_p10 }
 0x1f4   : > { %p12985_p1 = pnand %p12984_p0, %p12978_p11 }
 0x1f6   : > { %12988 = shalt.err (!%p12985_p1)
}
 0x1f7   : > { %s14996_s26 = sld [smem:[#allocation76_spill]] }
 0x1f8   : > { %12189 = dma.hbm_to_vmem [thread:$0]  (%p12320_p3), %s14995_s11, 768, %s958_s2, [#allocation5], %s14992_s15, %s14992_s15, %s13525_s28  }
 0x1fd   : > { %s12989_s1 = scalar_lea.hbm %s14996_s26, 384 }
 0x1fe   : > { %p12990_p4 = scmp.ne.s32.totalorder %s14996_s26, %s12989_s1  ;;  %p12995_p7 = scmp.lt.u32.totalorder %s12989_s1, %s14996_s26 }
 0x200   : > { %p12991_p5 = pnand %p12990_p4, %p12320_p3 }
 0x202   : > { %p12992_p6 = pneg %p12991_p5 }
 0x204   : > { %p12997_p8 = pnand %p12995_p7, %p12992_p6 }
 0x206   : > { %13000 = shalt.err (!%p12997_p8)
}
 0x207   : > { %s13001_s4 = scalar_lea.vmem %s984_s3, 384  ;;  %p13008_p12 = scmp.lt.s32.totalorder %s984_s3, %s984_s3 }
 0x208   : > { %p13002_p9 = scmp.ne.s32.totalorder %s984_s3, %s13001_s4  ;;  %p13009_p13 = scmp.lt.s32.totalorder %s13001_s4, %s13001_s4 }
 0x20a   : > { %p13003_p10 = pnand %p13002_p9, %p12320_p3  ;;  %p13010_p0 = por %p13009_p13, %p13008_p12 }
 0x20c   : > { %p13004_p11 = pneg %p13003_p10 }
 0x20e   : > { %p13011_p1 = pnand %p13010_p0, %p13004_p11 }
 0x210   : > { %13014 = shalt.err (!%p13011_p1)
}
 0x211   : > { %s14997_s2 = sld [smem:[#allocation78_spill]]  ;;  %s13545_s18 = smov [#allocation12]  }
 0x212   : > { %12193 = dma.hbm_to_vmem [thread:$0]  (%p12320_p3), %s14996_s26, 384, %s984_s3, [#allocation8], %s14992_s15, %s14992_s15, %s13525_s28  }
 0x213   : > { %s1010_s23 = sshll.u32 %s13545_s18, 4  ;;  %s13546_s1 = smov [#allocation15]   ;;  %s1011_s23 = int_to_ptr.vmem [resolvable:$true] %s1010_s23 }
 0x214   : > { %s1034_s5 = sshll.u32 %s13546_s1, 4  ;;  %s1035_s5 = int_to_ptr.vmem [resolvable:$true] %s1034_s5 }
 0x217   : > { %s13015_s4 = scalar_lea.hbm %s14997_s2, 16 }
 0x218   : > { %p13016_p4 = scmp.ne.s32.totalorder %s14997_s2, %s13015_s4  ;;  %p13021_p7 = scmp.lt.u32.totalorder %s13015_s4, %s14997_s2 }
 0x21a   : > { %p13017_p5 = pnand %p13016_p4, %p12320_p3 }
 0x21c   : > { %p13018_p6 = pneg %p13017_p5 }
 0x21e   : > { %p13023_p8 = pnand %p13021_p7, %p13018_p6 }
 0x220   : > { %13026 = shalt.err (!%p13023_p8)
}
 0x221   : > { %s13027_s6 = scalar_lea.vmem %s1011_s23, 16  ;;  %s13033_s3 = scalar_lea.vmem %s1011_s23, 32 }
 0x222   : > { %p13028_p9 = scmp.ne.s32.totalorder %s1011_s23, %s13027_s6  ;;  %p13034_p12 = scmp.lt.s32.totalorder %s1011_s23, %s1011_s23 }
 0x223   : > { %p13035_p13 = scmp.lt.s32.totalorder %s13033_s3, %s13027_s6 }
 0x224   : > { %p13029_p10 = pnand %p13028_p9, %p12320_p3 }
 0x225   : > { %p13036_p0 = por %p13035_p13, %p13034_p12 }
 0x226   : > { %p13030_p11 = pneg %p13029_p10 }
 0x228   : > { %p13037_p1 = pnand %p13036_p0, %p13030_p11 }
 0x22a   : > { %13040 = shalt.err (!%p13037_p1)
}
 0x22b   : > { %s14998_s28 = sld [smem:[#allocation80_spill]] }
 0x22c   : > { %12197 = dma.hbm_to_vmem [thread:$0]  (%p12320_p3), %s14997_s2, 16, %s1011_s23, [#allocation11]  }
 0x231   : > { %s13041_s15 = scalar_lea.hbm %s14998_s28, 16 }
 0x232   : > { %p13042_p4 = scmp.ne.s32.totalorder %s14998_s28, %s13041_s15  ;;  %p13047_p7 = scmp.lt.u32.totalorder %s13041_s15, %s14998_s28 }
 0x234   : > { %p13043_p5 = pnand %p13042_p4, %p12320_p3 }
 0x236   : > { %p13044_p6 = pneg %p13043_p5 }
 0x238   : > { %p13049_p8 = pnand %p13047_p7, %p13044_p6 }
 0x23a   : > { %13052 = shalt.err (!%p13049_p8)
}
 0x23b   : > { %s13053_s6 = scalar_lea.vmem %s1035_s5, 16  ;;  %s13059_s18 = scalar_lea.vmem %s1035_s5, 32 }
 0x23c   : > { %p13054_p9 = scmp.ne.s32.totalorder %s1035_s5, %s13053_s6  ;;  %p13060_p12 = scmp.lt.s32.totalorder %s1035_s5, %s1035_s5 }
 0x23d   : > { %p13061_p13 = scmp.lt.s32.totalorder %s13059_s18, %s13053_s6 }
 0x23e   : > { %p13055_p10 = pnand %p13054_p9, %p12320_p3 }
 0x23f   : > { %p13062_p0 = por %p13061_p13, %p13060_p12 }
 0x240   : > { %p13056_p11 = pneg %p13055_p10 }
 0x242   : > { %p13063_p1 = pnand %p13062_p0, %p13056_p11 }
 0x244   : > { %13066 = shalt.err (!%p13063_p1)
}
 0x245   : > { %s14999_s23 = sld [smem:[#allocation81_spill]]  ;;  %s13547_s1 = smov [#allocation18]  }
 0x246   : > { %12201 = dma.hbm_to_vmem [thread:$0]  (%p12320_p3), %s14998_s28, 16, %s1035_s5, [#allocation14]  }
 0x247   : > { %s1058_s4 = sshll.u32 %s13547_s1, 4  ;;  %s13548_s3 = smov [#allocation21]   ;;  %s1059_s4 = int_to_ptr.vmem [resolvable:$true] %s1058_s4 }
 0x248   : > { %s1082_s15 = sshll.u32 %s13548_s3, 4  ;;  %s1083_s15 = int_to_ptr.vmem [resolvable:$true] %s1082_s15 }
 0x24b   : > { %s13067_s2 = scalar_lea.hbm %s14999_s23, 16 }
 0x24c   : > { %p13068_p4 = scmp.ne.s32.totalorder %s14999_s23, %s13067_s2  ;;  %p13073_p7 = scmp.lt.u32.totalorder %s13067_s2, %s14999_s23 }
 0x24e   : > { %p13069_p5 = pnand %p13068_p4, %p12320_p3 }
 0x250   : > { %p13070_p6 = pneg %p13069_p5 }
 0x252   : > { %p13075_p8 = pnand %p13073_p7, %p13070_p6 }
 0x254   : > { %13078 = shalt.err (!%p13075_p8)
}
 0x255   : > { %s13079_s6 = scalar_lea.vmem %s1059_s4, 16  ;;  %s13085_s5 = scalar_lea.vmem %s1059_s4, 32 }
 0x256   : > { %p13080_p9 = scmp.ne.s32.totalorder %s1059_s4, %s13079_s6  ;;  %p13086_p12 = scmp.lt.s32.totalorder %s1059_s4, %s1059_s4 }
 0x257   : > { %p13087_p13 = scmp.lt.s32.totalorder %s13085_s5, %s13079_s6 }
 0x258   : > { %p13081_p10 = pnand %p13080_p9, %p12320_p3 }
 0x259   : > { %p13088_p0 = por %p13087_p13, %p13086_p12 }
 0x25a   : > { %p13082_p11 = pneg %p13081_p10 }
 0x25c   : > { %p13089_p1 = pnand %p13088_p0, %p13082_p11 }
 0x25e   : > { %13092 = shalt.err (!%p13089_p1)
}
 0x25f   : > { %s15000_s18 = sld [smem:[#allocation83_spill]] }
 0x260   : > { %12205 = dma.hbm_to_vmem [thread:$0]  (%p12320_p3), %s14999_s23, 16, %s1059_s4, [#allocation17]  }
 0x265   : > { %s13093_s2 = scalar_lea.hbm %s15000_s18, 16 }
 0x266   : > { %p13094_p4 = scmp.ne.s32.totalorder %s15000_s18, %s13093_s2  ;;  %p13099_p7 = scmp.lt.u32.totalorder %s13093_s2, %s15000_s18 }
 0x268   : > { %p13095_p5 = pnand %p13094_p4, %p12320_p3 }
 0x26a   : > { %p13096_p6 = pneg %p13095_p5 }
 0x26c   : > { %p13101_p8 = pnand %p13099_p7, %p13096_p6 }
 0x26e   : > { %13104 = shalt.err (!%p13101_p8)
}
 0x26f   : > { %s13105_s1 = scalar_lea.vmem %s1083_s15, 16  ;;  %s13111_s3 = scalar_lea.vmem %s1083_s15, 32 }
 0x270   : > { %p13106_p9 = scmp.ne.s32.totalorder %s1083_s15, %s13105_s1  ;;  %p13112_p12 = scmp.lt.s32.totalorder %s1083_s15, %s1083_s15 }
 0x271   : > { %p13113_p13 = scmp.lt.s32.totalorder %s13111_s3, %s13105_s1 }
 0x272   : > { %p13107_p10 = pnand %p13106_p9, %p12320_p3 }
 0x273   : > { %p13114_p0 = por %p13113_p13, %p13112_p12 }
 0x274   : > { %p13108_p11 = pneg %p13107_p10 }
 0x276   : > { %p13115_p1 = pnand %p13114_p0, %p13108_p11 }
 0x278   : > { %13118 = shalt.err (!%p13115_p1)
}
 0x279   : > { %s15001_s4 = sld [smem:[#allocation84_spill]]  ;;  %s13549_s6 = smov [#allocation24]  }
 0x27a   : > { %12209 = dma.hbm_to_vmem [thread:$0]  (%p12320_p3), %s15000_s18, 16, %s1083_s15, [#allocation20]  }
 0x27b   : > { %s1106_s5 = sshll.u32 %s13549_s6, 4  ;;  %s13550_s2 = smov [#allocation27]   ;;  %s1107_s5 = int_to_ptr.vmem [resolvable:$true] %s1106_s5 }
 0x27c   : > { %s1130_s9 = sshll.u32 %s13550_s2, 4  ;;  %s1131_s9 = int_to_ptr.vmem [resolvable:$true] %s1130_s9 }
 0x27f   : > { %s13119_s11 = scalar_lea.hbm %s15001_s4, 16 }
 0x280   : > { %p13120_p4 = scmp.ne.s32.totalorder %s15001_s4, %s13119_s11  ;;  %p13125_p7 = scmp.lt.u32.totalorder %s13119_s11, %s15001_s4 }
 0x282   : > { %p13121_p5 = pnand %p13120_p4, %p12320_p3 }
 0x284   : > { %p13122_p6 = pneg %p13121_p5 }
 0x286   : > { %p13127_p8 = pnand %p13125_p7, %p13122_p6 }
 0x288   : > { %13130 = shalt.err (!%p13127_p8)
}
 0x289   : > { %s13131_s1 = scalar_lea.vmem %s1107_s5, 16  ;;  %s13137_s15 = scalar_lea.vmem %s1107_s5, 32 }
 0x28a   : > { %p13132_p9 = scmp.ne.s32.totalorder %s1107_s5, %s13131_s1  ;;  %p13138_p12 = scmp.lt.s32.totalorder %s1107_s5, %s1107_s5 }
 0x28b   : > { %p13139_p13 = scmp.lt.s32.totalorder %s13137_s15, %s13131_s1 }
 0x28c   : > { %p13133_p10 = pnand %p13132_p9, %p12320_p3 }
 0x28d   : > { %p13140_p0 = por %p13139_p13, %p13138_p12 }
 0x28e   : > { %p13134_p11 = pneg %p13133_p10 }
 0x290   : > { %p13141_p1 = pnand %p13140_p0, %p13134_p11 }
 0x292   : > { %13144 = shalt.err (!%p13141_p1)
}
 0x293   : > { %s15002_s3 = sld [smem:[#allocation86_spill]] }
 0x294   : > { %12213 = dma.hbm_to_vmem [thread:$0]  (%p12320_p3), %s15001_s4, 16, %s1107_s5, [#allocation23]  }
 0x299   : > { %s13145_s11 = scalar_lea.hbm %s15002_s3, 16 }
 0x29a   : > { %p13146_p4 = scmp.ne.s32.totalorder %s15002_s3, %s13145_s11  ;;  %p13151_p7 = scmp.lt.u32.totalorder %s13145_s11, %s15002_s3 }
 0x29c   : > { %p13147_p5 = pnand %p13146_p4, %p12320_p3 }
 0x29e   : > { %p13148_p6 = pneg %p13147_p5 }
 0x2a0   : > { %p13153_p8 = pnand %p13151_p7, %p13148_p6 }
 0x2a2   : > { %13156 = shalt.err (!%p13153_p8)
}
 0x2a3   : > { %s13157_s6 = scalar_lea.vmem %s1131_s9, 16  ;;  %s13163_s2 = scalar_lea.vmem %s1131_s9, 32 }
 0x2a4   : > { %p13158_p9 = scmp.ne.s32.totalorder %s1131_s9, %s13157_s6  ;;  %p13164_p12 = scmp.lt.s32.totalorder %s1131_s9, %s1131_s9 }
 0x2a5   : > { %p13165_p13 = scmp.lt.s32.totalorder %s13163_s2, %s13157_s6 }
 0x2a6   : > { %p13159_p10 = pnand %p13158_p9, %p12320_p3 }
 0x2a7   : > { %p13166_p0 = por %p13165_p13, %p13164_p12 }
 0x2a8   : > { %p13160_p11 = pneg %p13159_p10 }
 0x2aa   : > { %p13167_p1 = pnand %p13166_p0, %p13160_p11 }
 0x2ac   : > { %13170 = shalt.err (!%p13167_p1)
}
 0x2ad   : > { %s15003_s5 = sld [smem:[#allocation88_spill]]  ;;  %s13551_s1 = smov [#allocation30]  }
 0x2ae   : > { %12217 = dma.hbm_to_vmem [thread:$0]  (%p12320_p3), %s15002_s3, 16, %s1131_s9, [#allocation26]  }
 0x2af   : > { %s1154_s15 = sshll.u32 %s13551_s1, 4  ;;  %s13552_s11 = smov [#allocation33]   ;;  %s1155_s15 = int_to_ptr.vmem [resolvable:$true] %s1154_s15 }
 0x2b0   : > { %s1178_s4 = sshll.u32 %s13552_s11, 4  ;;  %s1179_s4 = int_to_ptr.vmem [resolvable:$true] %s1178_s4 }
 0x2b3   : > { %s13171_s12 = scalar_lea.hbm %s15003_s5, 16 }
 0x2b4   : > { %p13172_p4 = scmp.ne.s32.totalorder %s15003_s5, %s13171_s12  ;;  %p13177_p7 = scmp.lt.u32.totalorder %s13171_s12, %s15003_s5 }
 0x2b6   : > { %p13173_p5 = pnand %p13172_p4, %p12320_p3 }
 0x2b8   : > { %p13174_p6 = pneg %p13173_p5 }
 0x2ba   : > { %p13179_p8 = pnand %p13177_p7, %p13174_p6 }
 0x2bc   : > { %13182 = shalt.err (!%p13179_p8)
}
 0x2bd   : > { %s13183_s6 = scalar_lea.vmem %s1155_s15, 16  ;;  %s13189_s9 = scalar_lea.vmem %s1155_s15, 32 }
 0x2be   : > { %p13184_p9 = scmp.ne.s32.totalorder %s1155_s15, %s13183_s6  ;;  %p13190_p12 = scmp.lt.s32.totalorder %s1155_s15, %s1155_s15 }
 0x2bf   : > { %p13191_p13 = scmp.lt.s32.totalorder %s13189_s9, %s13183_s6 }
 0x2c0   : > { %p13185_p10 = pnand %p13184_p9, %p12320_p3 }
 0x2c1   : > { %p13192_p0 = por %p13191_p13, %p13190_p12 }
 0x2c2   : > { %p13186_p11 = pneg %p13185_p10 }
 0x2c4   : > { %p13193_p1 = pnand %p13192_p0, %p13186_p11 }
 0x2c6   : > { %13196 = shalt.err (!%p13193_p1)
}
 0x2c7   : > { %s15004_s2 = sld [smem:[#allocation90_spill]] }
 0x2c8   : > { %12221 = dma.hbm_to_vmem [thread:$0]  (%p12320_p3), %s15003_s5, 16, %s1155_s15, [#allocation29]  }
 0x2cd   : > { %s13197_s12 = scalar_lea.hbm %s15004_s2, 16 }
 0x2ce   : > { %p13198_p4 = scmp.ne.s32.totalorder %s15004_s2, %s13197_s12  ;;  %p13203_p7 = scmp.lt.u32.totalorder %s13197_s12, %s15004_s2 }
 0x2d0   : > { %p13199_p5 = pnand %p13198_p4, %p12320_p3 }
 0x2d2   : > { %p13200_p6 = pneg %p13199_p5 }
 0x2d4   : > { %p13205_p8 = pnand %p13203_p7, %p13200_p6 }
 0x2d6   : > { %13208 = shalt.err (!%p13205_p8)
}
 0x2d7   : > { %s13209_s1 = scalar_lea.vmem %s1179_s4, 16  ;;  %s13215_s11 = scalar_lea.vmem %s1179_s4, 32 }
 0x2d8   : > { %p13210_p9 = scmp.ne.s32.totalorder %s1179_s4, %s13209_s1  ;;  %p13216_p12 = scmp.lt.s32.totalorder %s1179_s4, %s1179_s4 }
 0x2d9   : > { %p13217_p13 = scmp.lt.s32.totalorder %s13215_s11, %s13209_s1 }
 0x2da   : > { %p13211_p10 = pnand %p13210_p9, %p12320_p3 }
 0x2db   : > { %p13218_p0 = por %p13217_p13, %p13216_p12 }
 0x2dc   : > { %p13212_p11 = pneg %p13211_p10 }
 0x2de   : > { %p13219_p1 = pnand %p13218_p0, %p13212_p11 }
 0x2e0   : > { %13222 = shalt.err (!%p13219_p1)
}
 0x2e1   : > { %s15005_s15 = sld [smem:[#allocation91_spill]]  ;;  %s13553_s6 = smov [#allocation36]  }
 0x2e2   : > { %12225 = dma.hbm_to_vmem [thread:$0]  (%p12320_p3), %s15004_s2, 16, %s1179_s4, [#allocation32]  }
 0x2e3   : > { %s1202_s9 = sshll.u32 %s13553_s6, 4  ;;  %s13554_s12 = smov [#allocation39]   ;;  %s1203_s9 = int_to_ptr.vmem [resolvable:$true] %s1202_s9 }
 0x2e4   : > { %s1226_s3 = sshll.u32 %s13554_s12, 4  ;;  %s1227_s3 = int_to_ptr.vmem [resolvable:$true] %s1226_s3 }
 0x2e7   : > { %s13223_s5 = scalar_lea.hbm %s15005_s15, 16 }
 0x2e8   : > { %p13224_p4 = scmp.ne.s32.totalorder %s15005_s15, %s13223_s5  ;;  %p13229_p7 = scmp.lt.u32.totalorder %s13223_s5, %s15005_s15 }
 0x2ea   : > { %p13225_p5 = pnand %p13224_p4, %p12320_p3 }
 0x2ec   : > { %p13226_p6 = pneg %p13225_p5 }
 0x2ee   : > { %p13231_p8 = pnand %p13229_p7, %p13226_p6 }
 0x2f0   : > { %13234 = shalt.err (!%p13231_p8)
}
 0x2f1   : > { %s13235_s1 = scalar_lea.vmem %s1203_s9, 16  ;;  %s13241_s4 = scalar_lea.vmem %s1203_s9, 32 }
 0x2f2   : > { %p13236_p9 = scmp.ne.s32.totalorder %s1203_s9, %s13235_s1  ;;  %p13242_p12 = scmp.lt.s32.totalorder %s1203_s9, %s1203_s9 }
 0x2f3   : > { %p13243_p13 = scmp.lt.s32.totalorder %s13241_s4, %s13235_s1 }
 0x2f4   : > { %p13237_p10 = pnand %p13236_p9, %p12320_p3 }
 0x2f5   : > { %p13244_p0 = por %p13243_p13, %p13242_p12 }
 0x2f6   : > { %p13238_p11 = pneg %p13237_p10 }
 0x2f8   : > { %p13245_p1 = pnand %p13244_p0, %p13238_p11 }
 0x2fa   : > { %13248 = shalt.err (!%p13245_p1)
}
 0x2fb   : > { %s15006_s11 = sld [smem:[#allocation92_spill]] }
 0x2fc   : > { %12229 = dma.hbm_to_vmem [thread:$0]  (%p12320_p3), %s15005_s15, 16, %s1203_s9, [#allocation35]  }
 0x301   : > { %s13249_s5 = scalar_lea.hbm %s15006_s11, 16 }
 0x302   : > { %p13250_p4 = scmp.ne.s32.totalorder %s15006_s11, %s13249_s5  ;;  %p13255_p7 = scmp.lt.u32.totalorder %s13249_s5, %s15006_s11 }
 0x304   : > { %p13251_p5 = pnand %p13250_p4, %p12320_p3 }
 0x306   : > { %p13252_p6 = pneg %p13251_p5 }
 0x308   : > { %p13257_p8 = pnand %p13255_p7, %p13252_p6 }
 0x30a   : > { %13260 = shalt.err (!%p13257_p8)
}
 0x30b   : > { %s13261_s6 = scalar_lea.vmem %s1227_s3, 16  ;;  %s13267_s12 = scalar_lea.vmem %s1227_s3, 32 }
 0x30c   : > { %p13262_p9 = scmp.ne.s32.totalorder %s1227_s3, %s13261_s6  ;;  %p13268_p12 = scmp.lt.s32.totalorder %s1227_s3, %s1227_s3 }
 0x30d   : > { %p13269_p13 = scmp.lt.s32.totalorder %s13267_s12, %s13261_s6 }
 0x30e   : > { %p13263_p10 = pnand %p13262_p9, %p12320_p3 }
 0x30f   : > { %p13270_p0 = por %p13269_p13, %p13268_p12 }
 0x310   : > { %p13264_p11 = pneg %p13263_p10 }
 0x312   : > { %p13271_p1 = pnand %p13270_p0, %p13264_p11 }
 0x314   : > { %13274 = shalt.err (!%p13271_p1)
}
 0x315   : > { %s15007_s9 = sld [smem:[#allocation94_spill]]  ;;  %s13555_s1 = smov [#allocation42]  }
 0x316   : > { %12233 = dma.hbm_to_vmem [thread:$0]  (%p12320_p3), %s15006_s11, 16, %s1227_s3, [#allocation38]  }
 0x317   : > { %s1250_s4 = sshll.u32 %s13555_s1, 4  ;;  %s1251_s4 = int_to_ptr.vmem [resolvable:$true] %s1250_s4 }
 0x31b   : > { %s13275_s5 = scalar_lea.hbm %s15007_s9, 12288 }
 0x31c   : > { %p13276_p4 = scmp.ne.s32.totalorder %s15007_s9, %s13275_s5  ;;  %p13281_p7 = scmp.lt.u32.totalorder %s13275_s5, %s15007_s9 }
 0x31e   : > { %p13277_p5 = pnand %p13276_p4, %p12320_p3 }
 0x320   : > { %p13278_p6 = pneg %p13277_p5 }
 0x322   : > { %p13283_p8 = pnand %p13281_p7, %p13278_p6 }
 0x324   : > { %13286 = shalt.err (!%p13283_p8)
}
 0x325   : > { %s13287_s6 = scalar_lea.vmem %s1251_s4, 12288  ;;  %p13294_p12 = scmp.lt.s32.totalorder %s1251_s4, %s1251_s4 }
 0x326   : > { %p13288_p9 = scmp.ne.s32.totalorder %s1251_s4, %s13287_s6  ;;  %p13295_p13 = scmp.lt.s32.totalorder %s13287_s6, %s13287_s6 }
 0x328   : > { %p13289_p10 = pnand %p13288_p9, %p12320_p3  ;;  %p13296_p0 = por %p13295_p13, %p13294_p12 }
 0x32a   : > { %p13290_p11 = pneg %p13289_p10 }
 0x32c   : > { %p13297_p1 = pnand %p13296_p0, %p13290_p11 }
 0x32e   : > { %13300 = shalt.err (!%p13297_p1)
}
 0x32f   : > { %s13556_s3 = smov 256   ;;  %s15008_s12 = smov 16  }
 0x330   : > { %s15009_s1 = sld [smem:[#allocation96_spill]]  ;;  %s13557_s5 = smov [#allocation45]  }
 0x331   : > { %12237 = dma.hbm_to_vmem [thread:$0]  (%p12320_p3), %s15007_s9, 12288, %s1251_s4, [#allocation41], %s13556_s3, %s13556_s3, %s15008_s12  }
 0x332   : > { %s1274_s2 = sshll.u32 %s13557_s5, 4  ;;  %s13558_s11 = smov [#allocation48]   ;;  %s1275_s2 = int_to_ptr.vmem [resolvable:$true] %s1274_s2 }
 0x333   : > { %s1298_s6 = sshll.u32 %s13558_s11, 4  ;;  %s1299_s6 = int_to_ptr.vmem [resolvable:$true] %s1298_s6 }
 0x336   : > { %s13301_s13 = scalar_lea.hbm %s15009_s1, 24576 }
 0x337   : > { %p13302_p4 = scmp.ne.s32.totalorder %s15009_s1, %s13301_s13  ;;  %p13307_p7 = scmp.lt.u32.totalorder %s13301_s13, %s15009_s1 }
 0x339   : > { %p13303_p5 = pnand %p13302_p4, %p12320_p3 }
 0x33b   : > { %p13304_p6 = pneg %p13303_p5 }
 0x33d   : > { %p13309_p8 = pnand %p13307_p7, %p13304_p6 }
 0x33f   : > { %13312 = shalt.err (!%p13309_p8)
}
 0x340   : > { %s13313_s14 = scalar_lea.vmem %s1275_s2, 24576  ;;  %p13320_p12 = scmp.lt.s32.totalorder %s1275_s2, %s1275_s2 }
 0x341   : > { %p13314_p9 = scmp.ne.s32.totalorder %s1275_s2, %s13313_s14  ;;  %p13321_p13 = scmp.lt.s32.totalorder %s13313_s14, %s13313_s14 }
 0x343   : > { %p13315_p10 = pnand %p13314_p9, %p12320_p3  ;;  %p13322_p0 = por %p13321_p13, %p13320_p12 }
 0x345   : > { %p13316_p11 = pneg %p13315_p10 }
 0x347   : > { %p13323_p1 = pnand %p13322_p0, %p13316_p11 }
 0x349   : > { %13326 = shalt.err (!%p13323_p1)
}
 0x34a   : > { %s15010_s13 = sld [smem:[#allocation98_spill]] }
 0x34b   : > { %12241 = dma.hbm_to_vmem [thread:$0]  (%p12320_p3), %s15009_s1, 24576, %s1275_s2, [#allocation44], %s13556_s3, %s13556_s3, %s15008_s12  }
 0x350   : > { %s13327_s11 = scalar_lea.hbm %s15010_s13, 24576 }
 0x351   : > { %p13328_p4 = scmp.ne.s32.totalorder %s15010_s13, %s13327_s11  ;;  %p13333_p7 = scmp.lt.u32.totalorder %s13327_s11, %s15010_s13 }
 0x353   : > { %p13329_p5 = pnand %p13328_p4, %p12320_p3 }
 0x355   : > { %p13330_p6 = pneg %p13329_p5 }
 0x357   : > { %p13335_p8 = pnand %p13333_p7, %p13330_p6 }
 0x359   : > { %13338 = shalt.err (!%p13335_p8)
}
 0x35a   : > { %s13339_s14 = scalar_lea.vmem %s1299_s6, 24576  ;;  %p13346_p12 = scmp.lt.s32.totalorder %s1299_s6, %s1299_s6 }
 0x35b   : > { %p13340_p9 = scmp.ne.s32.totalorder %s1299_s6, %s13339_s14  ;;  %p13347_p13 = scmp.lt.s32.totalorder %s13339_s14, %s13339_s14 }
 0x35d   : > { %p13341_p10 = pnand %p13340_p9, %p12320_p3  ;;  %p13348_p0 = por %p13347_p13, %p13346_p12 }
 0x35f   : > { %p13342_p11 = pneg %p13341_p10 }
 0x361   : > { %p13349_p1 = pnand %p13348_p0, %p13342_p11 }
 0x363   : > { %13352 = shalt.err (!%p13349_p1)
}
 0x364   : > { %12245 = dma.hbm_to_vmem [thread:$0]  (%p12320_p3), %s15010_s13, 24576, %s1299_s6, [#allocation47], %s13556_s3, %s13556_s3, %s15008_s12  }
 0x365   : > { %s13559_s2 = smov [#allocation51]   ;;  %s13560_s5 = smov [#allocation52]  }
 0x366   : > { %s1322_s4 = sshll.u32 %s13559_s2, 4  ;;  %s1336_s11 = sshll.u32 %s13560_s5, 4  ;;  %s1323_s4 = int_to_ptr.vmem [resolvable:$true] %s1322_s4  ;;  %s1337_s11 = int_to_ptr.vmem [resolvable:$true] %s1336_s11 }
 0x367   : > { %s13353_s14 = scalar_lea.hbm %s13756_s8, 24576 }
 0x368   : > { %p13354_p4 = scmp.ne.s32.totalorder %s13756_s8, %s13353_s14  ;;  %p13359_p7 = scmp.lt.u32.totalorder %s13353_s14, %s13756_s8 }
 0x36a   : > { %p13355_p5 = pnand %p13354_p4, %p12320_p3 }
 0x36c   : > { %p13356_p6 = pneg %p13355_p5 }
 0x36e   : > { %p13361_p8 = pnand %p13359_p7, %p13356_p6 }
 0x370   : > { %13364 = shalt.err (!%p13361_p8)
}
 0x371   : > { %s13365_s1 = scalar_lea.vmem %s1323_s4, 24576  ;;  %p13372_p12 = scmp.lt.s32.totalorder %s1323_s4, %s1323_s4 }
 0x372   : > { %p13366_p9 = scmp.ne.s32.totalorder %s1323_s4, %s13365_s1  ;;  %p13373_p13 = scmp.lt.s32.totalorder %s13365_s1, %s13365_s1 }
 0x374   : > { %p13367_p10 = pnand %p13366_p9, %p12320_p3  ;;  %p13374_p0 = por %p13373_p13, %p13372_p12 }
 0x376   : > { %p13368_p11 = pneg %p13367_p10 }
 0x378   : > { %p13375_p1 = pnand %p13374_p0, %p13368_p11 }
 0x37a   : > { %13378 = shalt.err (!%p13375_p1)
}
 0x37b   : > { %12249 = dma.hbm_to_vmem [thread:$0]  (%p12320_p3), %s13756_s8, 24576, %s1323_s4, [#allocation50], %s13556_s3, %s13556_s3, %s15008_s12  }
 0x37c   : > { %s13379_s6 = scalar_lea.hbm %s13761_s21, 32 }
 0x37d   : > { %p13380_p4 = scmp.ne.s32.totalorder %s13761_s21, %s13379_s6  ;;  %p13385_p7 = scmp.lt.u32.totalorder %s13379_s6, %s13761_s21 }
 0x37f   : > { %p13381_p5 = pnand %p13380_p4, %p12320_p3 }
 0x381   : > { %p13382_p6 = pneg %p13381_p5 }
 0x383   : > { %p13387_p8 = pnand %p13385_p7, %p13382_p6 }
 0x385   : > { %13390 = shalt.err (!%p13387_p8)
}
 0x386   : > { %s13391_s1 = scalar_lea.vmem %s1337_s11, 32  ;;  %p13398_p12 = scmp.lt.s32.totalorder %s1337_s11, %s1337_s11 }
 0x387   : > { %p13392_p9 = scmp.ne.s32.totalorder %s1337_s11, %s13391_s1  ;;  %p13399_p13 = scmp.lt.s32.totalorder %s13391_s1, %s13391_s1 }
 0x389   : > { %p13393_p10 = pnand %p13392_p9, %p12320_p3  ;;  %p13400_p0 = por %p13399_p13, %p13398_p12 }
 0x38b   : > { %p13394_p11 = pneg %p13393_p10 }
 0x38d   : > { %p13401_p1 = pnand %p13400_p0, %p13394_p11 }
 0x38f   : > { %13404 = shalt.err (!%p13401_p1)
}
 0x390   : > { %12251 = dma.hbm_to_vmem [thread:$0]  (%p12320_p3), %s13761_s21, 32, %s1337_s11, [#allocation53]  }
 0x391 PF: > { %1357 = sbr.rel (%p13778_p2) target bundleno = 7746 (0x1e42), region = 168  ;;  %p12354_p4 = scmp.eq.s32.totalorder (!%p13778_p2), %s13774_s7, 0 }
 0x398   : > { %13410 = dma.done.wait (%p12354_p4), [#allocation3], 1536  }
 0x399   : > { %13412 = vsyncadd (%p12354_p4), [#allocation3], 4294965760 }
 0x39a   : > { %13414 = dma.done.wait (%p12354_p4), [#allocation5], 1536  }
 0x39b   : > { %13416 = vsyncadd (%p12354_p4), [#allocation5], 4294965760 }
 0x39c   : > { %13418 = dma.done.wait (%p12354_p4), [#allocation8], 768  }
 0x39d   : > { %13420 = vsyncadd (%p12354_p4), [#allocation8], 4294966528 }
 0x39e   : > { %13422 = dma.done.wait (%p12354_p4), [#allocation11], 128  }
 0x39f   : > { %13424 = vsyncadd (%p12354_p4), [#allocation11], 4294967168 }
 0x3a0   : > { %13426 = dma.done.wait (%p12354_p4), [#allocation14], 3088  }
 0x3a1   : > { %13428 = vsyncadd (%p12354_p4), [#allocation14], 4294964208 }
 0x3a2   : > { %13430 = dma.done.wait (%p12354_p4), [#allocation17], 3088  }
 0x3a3   : > { %13432 = vsyncadd (%p12354_p4), [#allocation17], 4294964208 }
 0x3a4   : > { %13434 = dma.done.wait (%p12354_p4), [#allocation20], 3088  }
 0x3a5   : > { %13436 = vsyncadd (%p12354_p4), [#allocation20], 4294964208 }
 0x3a6   : > { %13438 = dma.done.wait (%p12354_p4), [#allocation23], 3088  }
 0x3a7   : > { %13440 = vsyncadd (%p12354_p4), [#allocation23], 4294964208 }
 0x3a8   : > { %13442 = dma.done.wait (%p12354_p4), [#allocation26], 1040  }
 0x3a9   : > { %13444 = vsyncadd (%p12354_p4), [#allocation26], 4294966256 }
 0x3aa   : > { %13446 = dma.done.wait (%p12354_p4), [#allocation29], 3088  }
 0x3ab   : > { %13448 = vsyncadd (%p12354_p4), [#allocation29], 4294964208 }
 0x3ac   : > { %13450 = dma.done.wait (%p12354_p4), [#allocation32], 6160  }
 0x3ad   : > { %13452 = vsyncadd (%p12354_p4), [#allocation32], 4294961136 }
 0x3ae   : > { %13454 = dma.done.wait (%p12354_p4), [#allocation35], 6160  }
 0x3af   : > { %13456 = vsyncadd (%p12354_p4), [#allocation35], 4294961136 }
 0x3b0   : > { %13458 = dma.done.wait (%p12354_p4), [#allocation38], 6160  }
 0x3b1   : > { %13460 = vsyncadd (%p12354_p4), [#allocation38], 4294961136 }
 0x3b2   : > { %13462 = dma.done.wait (%p12354_p4), [#allocation41], 12320  }
 0x3b3   : > { %13464 = vsyncadd (%p12354_p4), [#allocation41], 4294954976 }
 0x3b4   : > { %13466 = dma.done.wait (%p12354_p4), [#allocation44], 24608  }
 0x3b5   : > { %13468 = vsyncadd (%p12354_p4), [#allocation44], 4294942688 }
 0x3b6   : > { %13470 = dma.done.wait (%p12354_p4), [#allocation47], 24608  }
 0x3b7   : > { %13472 = vsyncadd (%p12354_p4), [#allocation47], 4294942688 }
 0x3b8   : > { %13474 = dma.done.wait (%p12354_p4), [#allocation50], 24608  }
 0x3b9   : > { %13476 = vsyncadd (%p12354_p4), [#allocation50], 4294942688 }
 0x3ba   : > { %13478 = dma.done.wait (%p12354_p4), [#allocation53], 32  }
 0x3bb   : > { %13480 = vsyncadd (%p12354_p4), [#allocation53], 4294967264  ;;  %s15011_s10 = sld [smem:[#allocation72_spill]]  ;;  %p1580_p2 = scmp.lt.s32.totalorder %s13774_s7, 1  ;;  %v13561_v0 = vmov 1   ;;  %v13562_v4 = vmov 2  }
 0x3bc   : > { %12493 = vset.pattern.permute.xlu0 %v13561_v0  ;;  %12484 = vset.pattern.permute.xlu1 %v13561_v0  ;;  %v13563_v7 = vmov 0   ;;  %v13564_v8 = vmov 3   ;;  %v13565_v11 = vmov 4   ;;  %v13566_v12 = vmov 6   ;;  %v14398_v23 = vld [vmem:[#allocation10] ss:$0 sm:$0xff] }
 0x3bd   : > { %s15015_s7 = smov (!%p1580_p2, %s13774_s7), 1  ;;  %v13567_v13 = vmov 5   ;;  %v14400_v25 = vld [vmem:[#allocation10 + $0x1] ss:$0 sm:$0xff]  ;;  %v14408_v32 = vld [vmem:[#allocation10 + $0x2] ss:$0 sm:$0xff] }
 0x3be   : > { %s9310_s3 = sshll.u32 %s15015_s7, 6  ;;  %s15012_s2 = sld [smem:[#allocation73_spill]]  ;;  %vm2015_vm0 = vcmask 506880   ;;  %vm2028_vm1 = vcmask 1045504   ;;  %vm13568_vm2 = vmmov 1   ;;  %vm2227_vm4 = vcmask 261120  }
 0x3bf   : > { %vm10716_vm3 = vmpackc.low %vm2028_vm1, %vm13568_vm2  ;;  %vm2342_vm5 = vcmask 523264   ;;  %vm4915_vm6 = vcmask 130048   ;;  %s15013_s4 = sld [smem:[#allocation93_spill]]  ;;  %vm13570_vm7 = vmmov 0   ;;  %vm6918_vm8 = vcmask 64512   ;;  %s9161_s5 = sshll.u32 %s15015_s7, 1 }
 0x3c0   : > { %s1588_s11 = scalar_lea.vmem %s13766_s29, %s9161_s5 }
 0x3c1   : > { %s14306_s12 = scalar_lea.vmem %s15011_s10, %s9310_s3 }
 0x3c2   : > { %v14309_v1 = vld [vmem:[%s14306_s12 + $0x28] sm:$0xff]  ;;  %v1589_v2 = vld [vmem:[%s14306_s12] sm:$0xff]  ;;  %v1592_v5 = vld [vmem:[%s14306_s12 + $0x18] sm:$0xff] }
 0x3c3   : > { %1675 = vperm.xlu0 %12493, %v14309_v1   ;;  %1655 = vperm.xlu1 %12484, %v1589_v2   ;;  %v14314_v3 = vld [vmem:[%s14306_s12 + $0x8] sm:$0xff]  ;;  %v14322_v6 = vld [vmem:[%s14306_s12 + $0x10] sm:$0xff]  ;;  %v14331_v9 = vld [vmem:[%s14306_s12 + $0x20] sm:$0xff] }
 0x3c4   : > { %v14336_v10 = vld [vmem:[%s14306_s12 + $0x38] sm:$0x3f]  ;;  %v14363_v14 = vld [vmem:[%s14306_s12 + $0x30] sm:$0xff]  ;;  %v2011_v55 = vld [vmem:[%s15012_s2] sm:$0xff] }
 0x3c5   : > { %v9175_v56 = vld [vmem:[%s15012_s2 + $0x20] sm:$0xff]  ;;  %9812 = vmatprep.mubr.msk.f32.mxu0 %vm2015_vm0, %v2011_v55 }
 0x3c6   : > { %9834 = vmatprep.mubr.msk.f32.mxu1 %vm2015_vm0, %v9175_v56 }
 0x3c7   : > { %12494 = vset.pattern.permute.xlu0 %v13562_v4  ;;  %1659 = vperm.xlu1 %12484, %v14314_v3  }
 0x3c8   : > { %1711 = vperm.xlu0 %12494, %v1589_v2  }
 0x3cb   : > { %12485 = vset.pattern.permute.xlu1 %v13562_v4 }
 0x3cc   : > { %1723 = vperm.xlu0 %12494, %v1592_v5   ;;  %1715 = vperm.xlu1 %12485, %v14314_v3  }
 0x3d0   : > { %1731 = vperm.xlu0 %12494, %v14309_v1   ;;  %12486 = vset.pattern.permute.xlu1 %v13563_v7 }
 0x3d1   : > { %1610 = vperm.xlu1 %12486, %v14322_v6  }
 0x3d4   : > { %12498 = vset.pattern.permute.xlu0 %v13563_v7 }
 0x3d5   : > { %1600 = vperm.xlu0 %12498, %v1589_v2   ;;  %12487 = vset.pattern.permute.xlu1 %v13561_v0 }
 0x3d6   : > { %1663 = vperm.xlu1 %12487, %v14322_v6  }
 0x3d9   : > { %1605 = vperm.xlu0 %12498, %v14314_v3  }
 0x3da   : > { %1667 = vperm.xlu1 %12487, %v1592_v5  }
 0x3dd   : > { %1615 = vperm.xlu0 %12498, %v1592_v5  }
 0x3de   : > { %12488 = vset.pattern.permute.xlu1 %v13564_v8 }
 0x3df   : > { %1771 = vperm.xlu1 %12488, %v14314_v3  }
 0x3e1   : > { %1620 = vperm.xlu0 %12498, %v14331_v9  }
 0x3e3   : > { %12489 = vset.pattern.permute.xlu1 %v13562_v4 }
 0x3e4   : > { %1719 = vperm.xlu1 %12489, %v14322_v6  }
 0x3e5   : > { %1635 = vperm.xlu0 %12498, %v14336_v10  }
 0x3e8   : > { %12490 = vset.pattern.permute.xlu1 %v13565_v11 }
 0x3e9   : > { %12502 = vset.pattern.permute.xlu0 %v13564_v8  ;;  %1823 = vperm.xlu1 %12490, %v1589_v2  }
 0x3ea   : > { %1767 = vperm.xlu0 %12502, %v1589_v2  }
 0x3ed   : > { %1827 = vperm.xlu1 %12490, %v14314_v3  }
 0x3ee   : > { %1783 = vperm.xlu0 %12502, %v14331_v9  }
 0x3f1   : > { %12491 = vset.pattern.permute.xlu1 %v13563_v7 }
 0x3f2   : > { %12504 = vset.pattern.permute.xlu0 %v13566_v12  ;;  %1625 = vperm.xlu1 %12491, %v14309_v1  }
 0x3f3   : > { %1935 = vperm.xlu0 %12504, %v1589_v2  }
 0x3f6   : > { %12492 = vset.pattern.permute.xlu1 %v13561_v0 }
 0x3f7   : > { %1947 = vperm.xlu0 %12504, %v1592_v5   ;;  %1671 = vperm.xlu1 %12492, %v14331_v9  }
 0x3fb   : > { %12510 = vset.pattern.permute.xlu0 %v13565_v11  ;;  %12495 = vset.pattern.permute.xlu1 %v13564_v8 }
 0x3fc   : > { %1839 = vperm.xlu0 %12510, %v14331_v9   ;;  %1775 = vperm.xlu1 %12495, %v14322_v6  }
 0x400   : > { %1851 = vperm.xlu0 %12510, %v14336_v10   ;;  %1779 = vperm.xlu1 %12495, %v1592_v5  }
 0x404   : > { %12514 = vset.pattern.permute.xlu0 %v13567_v13  ;;  %12496 = vset.pattern.permute.xlu1 %v13567_v13 }
 0x405   : > { %1879 = vperm.xlu0 %12514, %v1589_v2   ;;  %1883 = vperm.xlu1 %12496, %v14314_v3  }
 0x409   : > { %12497 = vset.pattern.permute.xlu1 %v13562_v4  ;;  %1891 = vperm.xlu0 %12514, %v1592_v5  }
 0x40a   : > { %1727 = vperm.xlu1 %12497, %v14331_v9  }
 0x40d   : > { %1895 = vperm.xlu0 %12514, %v14331_v9  }
 0x40e   : > { %12499 = vset.pattern.permute.xlu1 %v13565_v11 }
 0x40f   : > { %1831 = vperm.xlu1 %12499, %v14322_v6  }
 0x411   : > { %1903 = vperm.xlu0 %12514, %v14363_v14  }
 0x413   : > { %1835 = vperm.xlu1 %12499, %v1592_v5  }
 0x415   : > { %12518 = vset.pattern.permute.xlu0 %v13566_v12 }
 0x416   : > { %1963 = vperm.xlu0 %12518, %v14336_v10  }
 0x417   : > { %12500 = vset.pattern.permute.xlu1 %v13566_v12 }
 0x418   : > { %1939 = vperm.xlu1 %12500, %v14314_v3  }
 0x41c   : > { %12501 = vset.pattern.permute.xlu1 %v13563_v7 }
 0x41d   : > { %1630 = vperm.xlu1 %12501, %v14363_v14  }
 0x421   : > { %12503 = vset.pattern.permute.xlu1 %v13561_v0 }
 0x422   : > { %1679 = vperm.xlu1 %12503, %v14363_v14  }
 0x426   : > { %1683 = vperm.xlu1 %12503, %v14336_v10  }
 0x42a   : > { %12505 = vset.pattern.permute.xlu1 %v13564_v8 }
 0x42b   : > { %1787 = vperm.xlu1 %12505, %v14309_v1  }
 0x42f   : > { %12506 = vset.pattern.permute.xlu1 %v13567_v13 }
 0x430   : > { %1887 = vperm.xlu1 %12506, %v14322_v6  }
 0x434   : > { %12507 = vset.pattern.permute.xlu1 %v13562_v4 }
 0x435   : > { %1735 = vperm.xlu1 %12507, %v14363_v14  }
 0x439   : > { %1739 = vperm.xlu1 %12507, %v14336_v10  }
 0x43d   : > { %12508 = vset.pattern.permute.xlu1 %v13565_v11 }
 0x43e   : > { %1843 = vperm.xlu1 %12508, %v14309_v1  }
 0x442   : > { %12509 = vset.pattern.permute.xlu1 %v13566_v12  ;;  %v14384_v15 = vpop.permute.xlu1 %1655  ;;  %v1676_v16 = vpop.permute.xlu0 %1675 }
 0x443   : > { %1943 = vperm.xlu1 %12509, %v14322_v6   ;;  %v1697_v49 = vmul.f32 %v14400_v25, %v1676_v16  ;;  %v1692_v3 = vmul.f32 %v14400_v25, %v14384_v15  ;;  %v14455_v15 = vld [vmem:[#allocation10 + $0x4] ss:$0 sm:$0xff]  ;;  %v14457_v16 = vld [vmem:[#allocation10 + $0x5] ss:$0 sm:$0xff] }
 0x446   : > { %v14387_v17 = vpop.permute.xlu1 %1659 }
 0x447   : > { %12511 = vset.pattern.permute.xlu1 %v13564_v8  ;;  %v14390_v18 = vpop.permute.xlu0 %1711  ;;  %v14449_v8 = vld [vmem:[#allocation10 + $0x3] ss:$0 sm:$0xff] }
 0x448   : > { %1791 = vperm.xlu1 %12511, %v14363_v14   ;;  %v1748_v6 = vmul.f32 %v14408_v32, %v14390_v18  ;;  %v1693_v18 = vmul.f32 %v14400_v25, %v14387_v17 }
 0x44b   : > { %v14393_v19 = vpop.permute.xlu1 %1715  ;;  %v1724_v20 = vpop.permute.xlu0 %1723 }
 0x44c   : > { %1795 = vperm.xlu1 %12511, %v14336_v10   ;;  %v1751_v34 = vmul.f32 %v14408_v32, %v1724_v20 }
 0x44f   : > { %v1732_v21 = vpop.permute.xlu0 %1731 }
 0x450   : > { %12512 = vset.pattern.permute.xlu1 %v13567_v13  ;;  %v1611_v22 = vpop.permute.xlu1 %1610  ;;  %v1753_v51 = vmul.f32 %v14408_v32, %v1732_v21 }
 0x451   : > { %1899 = vperm.xlu1 %12512, %v14309_v1   ;;  %v1646_v27 = vmul.f32 %v14398_v23, %v1611_v22 }
 0x454   : > { %v1601_v24 = vpop.permute.xlu0 %1600 }
 0x455   : > { %12513 = vset.pattern.permute.xlu1 %v13565_v11  ;;  %v1664_v26 = vpop.permute.xlu1 %1663  ;;  %v1644_v2 = vmul.f32 %v14398_v23, %v1601_v24 }
 0x456   : > { %v1694_v28 = vmul.f32 %v14400_v25, %v1664_v26  ;;  %1847 = vperm.xlu1 %12513, %v14363_v14  }
 0x457   : > { %v1700_v7 = vadd.f32 %v1692_v3, %v1644_v2 }
 0x458   : > { %v1702_v29 = vadd.f32 %v1694_v28, %v1646_v27  ;;  %v1606_v30 = vpop.permute.xlu0 %1605 }
 0x459   : > { %v1668_v31 = vpop.permute.xlu1 %1667  ;;  %v1645_v11 = vmul.f32 %v14398_v23, %v1606_v30 }
 0x45a   : > { %12515 = vset.pattern.permute.xlu1 %v13566_v12  ;;  %v1695_v35 = vmul.f32 %v14400_v25, %v1668_v31  ;;  %v14464_v31 = vld [vmem:[#allocation10 + $0x6] ss:$0 sm:$0xff] }
 0x45b   : > { %1951 = vperm.xlu1 %12515, %v14331_v9   ;;  %v1701_v26 = vadd.f32 %v1693_v18, %v1645_v11 }
 0x45c   : > { %v1616_v33 = vpop.permute.xlu0 %1615 }
 0x45d   : > { %v1647_v36 = vmul.f32 %v14398_v23, %v1616_v33  ;;  %v1749_v33 = vmul.f32 %v14408_v32, %v14393_v19 }
 0x45e   : > { %v14413_v37 = vpop.permute.xlu1 %1771 }
 0x45f   : > { %v1703_v38 = vadd.f32 %v1695_v35, %v1647_v36  ;;  %1955 = vperm.xlu1 %12515, %v14309_v1   ;;  %v1757_v36 = vadd.f32 %v1749_v33, %v1701_v26 }
 0x460   : > { %v1621_v39 = vpop.permute.xlu0 %1620 }
 0x461   : > { %v14416_v40 = vadd.f32 %v1751_v34, %v1703_v38  ;;  %v1648_v57 = vmul.f32 %v14398_v23, %v1621_v39  ;;  %v1805_v34 = vmul.f32 %v14449_v8, %v14413_v37 }
 0x463   : > { %12516 = vset.pattern.permute.xlu1 %v13567_v13  ;;  %v1720_v41 = vpop.permute.xlu1 %1719 }
 0x464   : > { %v1750_v42 = vmul.f32 %v14408_v32, %v1720_v41  ;;  %1907 = vperm.xlu1 %12516, %v14336_v10   ;;  %v14421_v43 = vpop.permute.xlu0 %1635 }
 0x466   : > { %v14423_v44 = vadd.f32 %v1750_v42, %v1702_v29 }
 0x468   : > { %12517 = vset.pattern.permute.xlu1 %v13566_v12  ;;  %v1824_v45 = vpop.permute.xlu1 %1823  ;;  %v1756_v12 = vadd.f32 %v1748_v6, %v1700_v7 }
 0x469   : > { %v1768_v46 = vpop.permute.xlu0 %1767  ;;  %1959 = vperm.xlu1 %12517, %v14363_v14   ;;  %v1860_v27 = vmul.f32 %v14455_v15, %v1824_v45  ;;  %v1813_v45 = vadd.f32 %v1805_v34, %v1757_v36 }
 0x46a   : > { %v1804_v9 = vmul.f32 %v14449_v8, %v1768_v46 }
 0x46c   : > { %v1828_v47 = vpop.permute.xlu1 %1827  ;;  %v1812_v21 = vadd.f32 %v1804_v9, %v1756_v12 }
 0x46d   : > { %v1784_v48 = vpop.permute.xlu0 %1783  ;;  %v1861_v38 = vmul.f32 %v14455_v15, %v1828_v47 }
 0x46e   : > { %v1808_v13 = vmul.f32 %v14449_v8, %v1784_v48  ;;  %v1868_v17 = vadd.f32 %v1860_v27, %v1812_v21 }
 0x46f   : > { %v1869_v48 = vadd.f32 %v1861_v38, %v1813_v45 }
 0x471   : > { %v1626_v50 = vpop.permute.xlu1 %1625 }
 0x472   : > { %v1649_v52 = vmul.f32 %v14398_v23, %v1626_v50  ;;  %v1936_v53 = vpop.permute.xlu0 %1935  ;;  %v14475_v50 = vld [vmem:[#allocation12] ss:$0 sm:$0xff] }
 0x473   : > { %v1972_v39 = vmul.f32 %v14464_v31, %v1936_v53 }
 0x474   : > { %v1705_v54 = vadd.f32 %v1697_v49, %v1649_v52 }
 0x476   : > { %v1672_v58 = vpop.permute.xlu1 %1671  ;;  %v14435_v59 = vadd.f32 %v1753_v51, %v1705_v54  ;;  %v14438_v62 = vpop.permute.xlu0 %1947 }
 0x477   : > { %v1696_v60 = vmul.f32 %v14400_v25, %v1672_v58 }
 0x479   : > { %v1704_v61 = vadd.f32 %v1696_v60, %v1648_v57 }
 0x47b   : > { %v14440_v63 = vpop.permute.xlu1 %1775  ;;  %v1840_v0 = vpop.permute.xlu0 %1839 }
 0x47c   : > { %v1864_v22 = vmul.f32 %v14455_v15, %v1840_v0  ;;  %v1806_v12 = vmul.f32 %v14449_v8, %v14440_v63 }
 0x47e   : > { %v1814_v18 = vadd.f32 %v1806_v12, %v14423_v44 }
 0x47f   : > { %v1780_v1 = vpop.permute.xlu1 %1779  ;;  %v14445_v5 = vpop.permute.xlu0 %1851 }
 0x480   : > { %v1807_v2 = vmul.f32 %v14449_v8, %v1780_v1 }
 0x482   : > { %v1815_v6 = vadd.f32 %v1807_v2, %v14416_v40 }
 0x484   : > { %v1884_v4 = vpop.permute.xlu1 %1883  ;;  %v1880_v20 = vpop.permute.xlu0 %1879 }
 0x485   : > { %v1916_v28 = vmul.f32 %v14457_v16, %v1880_v20  ;;  %v1917_v46 = vmul.f32 %v14457_v16, %v1884_v4 }
 0x487   : > { %v1924_v41 = vadd.f32 %v1916_v28, %v1868_v17  ;;  %v1925_v51 = vadd.f32 %v1917_v46, %v1869_v48 }
 0x488   : > { %v1892_v7 = vpop.permute.xlu0 %1891 }
 0x489   : > { %v1728_v10 = vpop.permute.xlu1 %1727  ;;  %v1980_v49 = vadd.f32 %v1972_v39, %v1924_v41  ;;  %v1867_v41 = vmul.f32 %v14455_v15, %v14445_v5 }
 0x48a   : > { %v1752_v14 = vmul.f32 %v14408_v32, %v1728_v10  ;;  %v1919_v10 = vmul.f32 %v14457_v16, %v1892_v7 }
 0x48b   : > { %v1995_v52 = vadd.f32 %v14475_v50, %v1980_v49 }
 0x48c   : > { %v1760_v24 = vadd.f32 %v1752_v14, %v1704_v61  ;;  %v1896_v49 = vpop.permute.xlu0 %1895 }
 0x48d   : > { %v2003_v53 = vmax.f32 %v1995_v52, 0.0 }
 0x48e   : > { %v1816_v29 = vadd.f32 %v1808_v13, %v1760_v24  ;;  %v1832_v30 = vpop.permute.xlu1 %1831  ;;  %v1975_v13 = vmul.f32 %v14464_v31, %v14438_v62  ;;  %v1651_v62 = vmul.f32 %v14398_v23, %v14421_v43 }
 0x48f   : > { %v1862_v14 = vmul.f32 %v14455_v15, %v1832_v30 }
 0x490   : > { %v14470_v35 = vadd.f32 %v1864_v22, %v1816_v29 }
 0x491   : > { %v1870_v40 = vadd.f32 %v1862_v14, %v1814_v18 }
 0x492   : > { %v1836_v42 = vpop.permute.xlu1 %1835 }
 0x493   : > { %v1863_v4 = vmul.f32 %v14455_v15, %v1836_v42 }
 0x495   : > { %v1871_v11 = vadd.f32 %v1863_v4, %v1815_v6 }
 0x497   : > { %v1940_v19 = vpop.permute.xlu1 %1939  ;;  %v1927_v20 = vadd.f32 %v1919_v10, %v1871_v11 }
 0x498   : > { %v1973_v37 = vmul.f32 %v14464_v31, %v1940_v19 }
 0x499   : > { %v1983_v22 = vadd.f32 %v1975_v13, %v1927_v20 }
 0x49a   : > { %v1981_v54 = vadd.f32 %v1973_v37, %v1925_v51  ;;  %v1920_v51 = vmul.f32 %v14457_v16, %v1896_v49 }
 0x49b   : > { %v1998_v28 = vadd.f32 %v14475_v50, %v1983_v22 }
 0x49c   : > { %v1996_v47 = vadd.f32 %v14475_v50, %v1981_v54  ;;  %v14480_v55 = vpop.permute.xlu1 %1630  ;;  %v1928_v5 = vadd.f32 %v1920_v51, %v14470_v35  ;;  %v2325_v51 = vld [vmem:[#allocation13] sm:$0xff] }
 0x49d   : > { %v2006_v34 = vmax.f32 %v1998_v28, 0.0 }
 0x49e   : > { %v2004_v56 = vmax.f32 %v1996_v47, 0.0 }
 0x4a0   : > { %v10703_v57 = vpack.c.bf16 %v2004_v56, %v2003_v53 }
 0x4a1   : > { %v1680_v58 = vpop.permute.xlu1 %1679 }
 0x4a2   : > { %10704 = vmatprep.subr.bf16.mxu0 %v10703_v57  ;;  %10722 = vmatprep.subr.bf16.mxu1 %v10703_v57  ;;  %v1698_v47 = vmul.f32 %v14400_v25, %v1680_v58 }
 0x4a3   : > { %10706 = vmatpush3.bf16.msra.mxu0 %v10703_v57  ;;  %10724 = vmatpush3.bf16.msra.mxu1 %v10703_v57 }
 0x4a5   : > { %v1684_v60 = vpop.permute.xlu1 %1683 }
 0x4a6   : > { %v1699_v29 = vmul.f32 %v14400_v25, %v1684_v60  ;;  %v1650_v60 = vmul.f32 %v14398_v23, %v14480_v55 }
 0x4a8   : > { %v1707_v36 = vadd.f32 %v1699_v29, %v1651_v62  ;;  %v1706_v7 = vadd.f32 %v1698_v47, %v1650_v60  ;;  %v2327_v47 = vld [vmem:[#allocation13 + $0x10] sm:$0xff] }
 0x4aa   : > { %v1788_v61 = vpop.permute.xlu1 %1787 }
 0x4ab   : > { %v1809_v37 = vmul.f32 %v14449_v8, %v1788_v61  ;;  %v1904_v61 = vpop.permute.xlu0 %1903 }
 0x4ad   : > { %v1817_v53 = vadd.f32 %v1809_v37, %v14435_v59  ;;  %v2326_v37 = vld [vmem:[#allocation13 + $0x8] sm:$0xff] }
 0x4af   : > { %v1888_v0 = vpop.permute.xlu1 %1887  ;;  %v1964_v12 = vpop.permute.xlu0 %1963 }
 0x4b0   : > { %v1918_v21 = vmul.f32 %v14457_v16, %v1888_v0  ;;  %v1979_v13 = vmul.f32 %v14464_v31, %v1964_v12  ;;  %v2331_v12 = vld [vmem:[#allocation13 + $0x30] sm:$0xff] }
 0x4b2   : > { %v1926_v26 = vadd.f32 %v1918_v21, %v1870_v40 }
 0x4b4   : > { %v1736_v3 = vpop.permute.xlu1 %1735 }
 0x4b5   : > { %v1754_v0 = vmul.f32 %v14408_v32, %v1736_v3 }
 0x4b7   : > { %v1762_v59 = vadd.f32 %v1754_v0, %v1706_v7  ;;  %v2329_v7 = vld [vmem:[#allocation13 + $0x20] sm:$0xff] }
 0x4b8   : > { %v1740_v9 = vpop.permute.xlu1 %1739 }
 0x4b9   : > { %v1755_v44 = vmul.f32 %v14408_v32, %v1740_v9 }
 0x4bb   : > { %v1763_v42 = vadd.f32 %v1755_v44, %v1707_v36  ;;  %v2337_v44 = vld [vmem:[#allocation13 + $0x58] sm:$0xff] }
 0x4bc   : > { %v9177_v36 = vld [vmem:[%s15012_s2 + $0x30] sm:$0xff] }
 0x4bd   : > { %v1844_v1 = vpop.permute.xlu1 %1843 }
 0x4be   : > { %v1865_v52 = vmul.f32 %v14455_v15, %v1844_v1 }
 0x4c0   : > { %v1873_v2 = vadd.f32 %v1865_v52, %v1817_v53  ;;  %v10763_v52 = vpack.c.bf16 %v2326_v37, %v2325_v51  ;;  %v2328_v53 = vld [vmem:[#allocation13 + $0x18] sm:$0xff] }
 0x4c2   : > { %v1944_v24 = vpop.permute.xlu1 %1943 }
 0x4c3   : > { %v1974_v27 = vmul.f32 %v14464_v31, %v1944_v24 }
 0x4c5   : > { %v1982_v63 = vadd.f32 %v1974_v27, %v1926_v26 }
 0x4c7   : > { %v1997_v30 = vadd.f32 %v14475_v50, %v1982_v63  ;;  %v1792_v33 = vpop.permute.xlu1 %1791  ;;  %v2335_v63 = vld [vmem:[#allocation13 + $0x48] sm:$0xff] }
 0x4c8   : > { %v1810_v35 = vmul.f32 %v14449_v8, %v1792_v33  ;;  %v2336_v33 = vld [vmem:[#allocation13 + $0x50] sm:$0xff] }
 0x4c9   : > { %v2005_v17 = vmax.f32 %v1997_v30, 0.0 }
 0x4ca   : > { %v1818_v23 = vadd.f32 %v1810_v35, %v1762_v59  ;;  %v2330_v35 = vld [vmem:[#allocation13 + $0x28] sm:$0xff] }
 0x4cb   : > { %v10707_v38 = vpack.c.bf16 %v2006_v34, %v2005_v17  ;;  %v1796_v39 = vpop.permute.xlu1 %1795  ;;  %v9176_v34 = vld [vmem:[%s15012_s2 + $0x28] sm:$0xff]  ;;  %v2013_v17 = vld [vmem:[%s15012_s2 + $0x10] sm:$0xff] }
 0x4cc   : > { %v1811_v45 = vmul.f32 %v14449_v8, %v1796_v39  ;;  %v1922_v8 = vmul.f32 %v14457_v16, %v1904_v61  ;;  %v2338_v39 = vld [vmem:[#allocation13 + $0x60] sm:$0xff] }
 0x4cd   : > { %10708 = vmatprep.subr.bf16.mxu0 %v10707_v38  ;;  %10726 = vmatprep.subr.bf16.mxu1 %v10707_v38 }
 0x4ce   : > { %v1819_v43 = vadd.f32 %v1811_v45, %v1763_v42  ;;  %10710 = vmatpush3.bf16.msra.mxu0 %v10707_v38  ;;  %10728 = vmatpush3.bf16.msra.mxu1 %v10707_v38  ;;  %v10751_v38 = vpack.c.bf16 %v2337_v44, %v2336_v33  ;;  %v2014_v42 = vld [vmem:[%s15012_s2 + $0x18] sm:$0xff] }
 0x4cf   : > { %v9178_v45 = vld [vmem:[%s15012_s2 + $0x38] sm:$0xff] }
 0x4d0   : > { %v1900_v46 = vpop.permute.xlu1 %1899  ;;  %v1875_v48 = vadd.f32 %v1867_v41, %v1819_v43  ;;  %v2339_v41 = vld [vmem:[#allocation13 + $0x68] sm:$0xff] }
 0x4d1   : > { %v1921_v56 = vmul.f32 %v14457_v16, %v1900_v46  ;;  %v10755_v43 = vpack.c.bf16 %v2339_v41, %v2338_v39  ;;  %v2340_v46 = vld [vmem:[#allocation13 + $0x70] sm:$0xff] }
 0x4d3   : > { %v1929_v9 = vadd.f32 %v1921_v56, %v1873_v2  ;;  %v10767_v2 = vpack.c.bf16 %v2328_v53, %v2327_v47 }
 0x4d5   : > { %v1848_v19 = vpop.permute.xlu1 %1847 }
 0x4d6   : > { %v1866_v58 = vmul.f32 %v14455_v15, %v1848_v19  ;;  %v14537_v19 = vld [vmem:[#allocation2] sm:$0xff] }
 0x4d8   : > { %v1874_v14 = vadd.f32 %v1866_v58, %v1818_v23  ;;  %v2332_v23 = vld [vmem:[#allocation13 + $0x38] sm:$0xff] }
 0x4da   : > { %v1952_v54 = vpop.permute.xlu1 %1951  ;;  %v1930_v22 = vadd.f32 %v1922_v8, %v1874_v14  ;;  %v14571_v14 = vld [vmem:[#allocation2 + $0x40] sm:$0xff]  ;;  %v14577_v8 = vld [vmem:[#allocation2 + $0x48] sm:$0xff] }
 0x4db   : > { %v1976_v57 = vmul.f32 %v14464_v31, %v1952_v54 }
 0x4dd   : > { %v1984_v4 = vadd.f32 %v1976_v57, %v1928_v5 }
 0x4de   : > { %v1956_v6 = vpop.permute.xlu1 %1955 }
 0x4df   : > { %v1977_v25 = vmul.f32 %v14464_v31, %v1956_v6  ;;  %v1999_v10 = vadd.f32 %v14475_v50, %v1984_v4 }
 0x4e1   : > { %v1985_v11 = vadd.f32 %v1977_v25, %v1929_v9  ;;  %v2007_v20 = vmax.f32 %v1999_v10, 0.0  ;;  %v10771_v10 = vpack.c.bf16 %v2330_v35, %v2329_v7  ;;  %v2864_v35 = vld [vmem:[#allocation16 + $0x70] sm:$0xff] }
 0x4e3   : > { %v2000_v32 = vadd.f32 %v14475_v50, %v1985_v11  ;;  %v1908_v55 = vpop.permute.xlu1 %1907 }
 0x4e4   : > { %v1923_v3 = vmul.f32 %v14457_v16, %v1908_v55  ;;  %v2334_v16 = vld [vmem:[#allocation13 + $0x40] sm:$0xff]  ;;  %v14563_v55 = vld [vmem:[#allocation2 + $0x10] sm:$0xff] }
 0x4e5   : > { %v2008_v1 = vmax.f32 %v2000_v32, 0.0  ;;  %v10747_v30 = vpack.c.bf16 %v2335_v63, %v2334_v16  ;;  %v14561_v32 = vld [vmem:[#allocation2 + $0x8] sm:$0xff] }
 0x4e6   : > { %v1931_v18 = vadd.f32 %v1923_v3, %v1875_v48  ;;  %v2341_v48 = vld [vmem:[#allocation13 + $0x78] sm:$0xff]  ;;  %v10775_v3 = vpack.c.bf16 %v2332_v23, %v2331_v12  ;;  %v2645_v16 = vld [vmem:[#allocation13 + $0xa8] sm:$0xff] }
 0x4e7   : > { %v10711_v21 = vpack.c.bf16 %v2008_v1, %v2007_v20  ;;  %v10759_v49 = vpack.c.bf16 %v2341_v48, %v2340_v46  ;;  %v14579_v20 = vld [vmem:[#allocation2 + $0x50] sm:$0xff]  ;;  %v14585_v1 = vld [vmem:[#allocation2 + $0x58] sm:$0xff] }
 0x4e8   : > { %v1987_v15 = vadd.f32 %v1979_v13, %v1931_v18  ;;  %v1960_v40 = vpop.permute.xlu1 %1959  ;;  %v14569_v13 = vld [vmem:[#allocation2 + $0x18] sm:$0xff]  ;;  %v2851_v23 = vld [vmem:[#allocation16 + $0x10] sm:$0xff] }
 0x4e9   : > { %v1978_v24 = vmul.f32 %v14464_v31, %v1960_v40  ;;  %10712 = vmatprep.subr.bf16.mxu0 %v10711_v21  ;;  %10730 = vmatprep.subr.bf16.mxu1 %v10711_v21  ;;  %v2640_v18 = vld [vmem:[#allocation13 + $0x80] sm:$0xff]  ;;  %v2642_v40 = vld [vmem:[#allocation13 + $0x90] sm:$0xff] }
 0x4ea   : > { %10714 = vmatpush3.bf16.msra.mxu0 %v10711_v21  ;;  %10732 = vmatpush3.bf16.msra.mxu1 %v10711_v21  ;;  %v2002_v26 = vadd.f32 %v14475_v50, %v1987_v15  ;;  %v2641_v21 = vld [vmem:[#allocation13 + $0x88] sm:$0xff] }
 0x4eb   : > { %v1986_v27 = vadd.f32 %v1978_v24, %v1930_v22  ;;  %v10787_v15 = vpack.c.bf16 %v2641_v21, %v2640_v18  ;;  %v2643_v22 = vld [vmem:[#allocation13 + $0x98] sm:$0xff]  ;;  %v2853_v21 = vld [vmem:[#allocation16 + $0x20] sm:$0xff] }
 0x4ec   : > { %v2010_v62 = vmax.f32 %v2002_v26, 0.0 }
 0x4ed   : > { %v2001_v28 = vadd.f32 %v14475_v50, %v1986_v27  ;;  %v2012_v50 = vld [vmem:[%s15012_s2 + $0x8] sm:$0xff]  ;;  %v10791_v27 = vpack.c.bf16 %v2643_v22, %v2642_v40 }
 0x4ee   : > { %v2855_v22 = vld [vmem:[#allocation16 + $0x30] sm:$0xff] }
 0x4ef   : > { %v2009_v29 = vmax.f32 %v2001_v28, 0.0  ;;  %v2644_v28 = vld [vmem:[#allocation13 + $0xa0] sm:$0xff] }
 0x4f1   : > { %v10715_v31 = vpack.c.bf16 %v2010_v62, %v2009_v29  ;;  %v10795_v29 = vpack.c.bf16 %v2645_v16, %v2644_v28  ;;  %v3147_v28 = vld [vmem:[#allocation16 + $0x88] sm:$0xff] }
 0x4f3   : > { %10717 = vmatprep.subr.msk.bf16.mxu0 %vm10716_vm3, %v10715_v31  ;;  %10735 = vmatprep.subr.msk.bf16.mxu1 %vm10716_vm3, %v10715_v31 }
 0x4f4   : > { %10720 = vmatpush3.bf16.msk.msra.mxu0 %vm10716_vm3, %v10715_v31  ;;  %10738 = vmatpush3.bf16.msk.msra.mxu1 %vm10716_vm3, %v10715_v31  ;;  %v2646_v31 = vld [vmem:[#allocation13 + $0xb0] sm:$0xff] }
 0x4f5   : > { %10748 = vmatprep.subr.bf16.mxu1 %v10747_v30 }
 0x4f7   : > { %9813 = vmatmul.mubr.msk.f32.vlgmr.msra.gmra.mrb[0].mxu0 %vm2015_vm0, %v2012_v50  ;;  %9835 = vmatmul.mubr.msk.f32.vlgmr.msra.gmra.mrb[0].mxu1 %vm2015_vm0, %v9176_v34 }
 0x4f8   : > { %9815 = vmatprep.mubr.msk.f32.mxu0 %vm2015_vm0, %v2013_v17  ;;  %9837 = vmatprep.mubr.msk.f32.mxu1 %vm2015_vm0, %v9177_v36  ;;  %v9204_v36 = vld [vmem:[#allocation15] ss:$0 sm:$0xff] }
 0x4f9   : > { %10750 = vmatpush3.bf16.msra.mxu1 %v10747_v30  ;;  %v2647_v30 = vld [vmem:[#allocation13 + $0xb8] sm:$0xff] }
 0x4fa   : > { %10752 = vmatprep.subr.bf16.mxu1 %v10751_v38  ;;  %v10799_v44 = vpack.c.bf16 %v2647_v30, %v2646_v31 }
 0x4fb   : > { %9816 = vmatmul.mubr.msk.f32.gmra.mrb[2].mxu0 %vm2015_vm0, %v2014_v42  ;;  %9838 = vmatmul.mubr.msk.f32.gmra.mrb[2].mxu1 %vm2015_vm0, %v9178_v45 }
 0x4fc   : > { %9848 = vmatprep.mubr.msk.f32.mxu0 %vm2227_vm4, %v14537_v19 }
 0x4fd   : > { %10754 = vmatpush3.bf16.msra.mxu1 %v10751_v38 }
 0x4fe   : > { %10756 = vmatprep.subr.bf16.mxu1 %v10755_v43 }
 0x501   : > { %10758 = vmatpush3.bf16.msra.mxu1 %v10755_v43 }
 0x502   : > { %10760 = vmatprep.subr.bf16.mxu1 %v10759_v49 }
 0x505   : > { %10762 = vmatpush3.bf16.msra.mxu1 %v10759_v49 }
 0x506   : > { %10764 = vmatprep.subr.bf16.mxu1 %v10763_v52 }
 0x5ca   : > { %v9814_v5 = vpop.f32.mrb[0].mxu0  ;;  %v9836_v54 = vpop.f32.mrb[0].mxu1 }
 0x5cb   : > { %v14541_v56 = vmax.f32 %v9814_v5, %v9836_v54  ;;  %v2098_v57 = vpop.f32.mrb[1].mxu0  ;;  %v2200_v60 = vpop.f32.mrb[1].mxu1  ;;  %v2858_v5 = vld [vmem:[#allocation16 + $0x40] sm:$0xff]  ;;  %v2859_v54 = vld [vmem:[#allocation16 + $0x48] sm:$0xff] }
 0x5cc   : > { %v14543_v0 = vmax.f32 %v2098_v57, %v2200_v60  ;;  %v10811_v57 = vpack.c.bf16 %v2859_v54, %v2858_v5  ;;  %v2860_v60 = vld [vmem:[#allocation16 + $0x50] sm:$0xff] }
 0x5ce   : > { %v10739_v61 = vpack.c.bf16 %v14541_v56, %v14543_v0  ;;  %v9817_v4 = vpop.f32.mrb[2].mxu0  ;;  %v9839_v6 = vpop.f32.mrb[2].mxu1  ;;  %9870 = vmatprep.mubr.msk.f32.mxu1 %vm2342_vm5, %v14543_v0 }
 0x5cf   : > { %v14549_v9 = vmax.f32 %v9817_v4, %v9839_v6  ;;  %v2108_v25 = vpop.f32.mrb[3].mxu0  ;;  %v2210_v59 = vpop.f32.mrb[3].mxu1  ;;  %9871 = vmatmul.mubr.msk.f32.vlgmr.msra.gmra.mrb[4].mxu1 %vm2342_vm5, %v14541_v56  ;;  %v2862_v4 = vld [vmem:[#allocation16 + $0x60] sm:$0xff]  ;;  %v2863_v6 = vld [vmem:[#allocation16 + $0x68] sm:$0xff] }
 0x5d0   : > { %v14553_v58 = vmax.f32 %v2108_v25, %v2210_v59  ;;  %10740 = vmatprep.subr.bf16.mxu0 %v10739_v61  ;;  %10766 = vmatpush3.bf16.msra.mxu1 %v10763_v52  ;;  %v10819_v7 = vpack.c.bf16 %v2863_v6, %v2862_v4  ;;  %v2865_v25 = vld [vmem:[#allocation16 + $0x78] sm:$0xff] }
 0x5d1   : > { %10742 = vmatpush3.bf16.msra.mxu0 %v10739_v61  ;;  %10768 = vmatprep.subr.bf16.mxu1 %v10767_v2  ;;  %v10823_v59 = vpack.c.bf16 %v2865_v25, %v2864_v35  ;;  %v3369_v35 = vld [vmem:[#allocation19 + $0x48] sm:$0xff] }
 0x5d2   : > { %v10743_v11 = vpack.c.bf16 %v14549_v9, %v14553_v58  ;;  %9873 = vmatprep.mubr.msk.f32.mxu1 %vm2342_vm5, %v14553_v58 }
 0x5d3   : > { %9874 = vmatmul.mubr.msk.f32.gmra.mrb[6].mxu1 %vm2342_vm5, %v14549_v9 }
 0x5d4   : > { %10744 = vmatprep.subr.bf16.mxu0 %v10743_v11  ;;  %10770 = vmatpush3.bf16.msra.mxu1 %v10767_v2  ;;  %v2861_v2 = vld [vmem:[#allocation16 + $0x58] sm:$0xff] }
 0x5d5   : > { %10746 = vmatpush3.bf16.msra.mxu0 %v10743_v11  ;;  %10772 = vmatprep.subr.bf16.mxu1 %v10771_v10 }
 0x5d6   : > { %10780 = vmatprep.subr.bf16.mxu0 %v10739_v61 }
 0x5d8   : > { %9849 = vmatmul.mubr.msk.f32.vlgmr.msra.gmra.mrb[4].mxu0 %vm2227_vm4, %v14561_v32  ;;  %10774 = vmatpush3.bf16.msra.mxu1 %v10771_v10  ;;  %v2849_v10 = vld [vmem:[#allocation16] sm:$0xff] }
 0x5d9   : > { %10782 = vmatpush3.bf16.msra.mxu0 %v10739_v61  ;;  %9851 = vmatprep.mubr.msk.f32.mxu0 %vm2227_vm4, %v14563_v55  ;;  %v10815_v61 = vpack.c.bf16 %v2861_v2, %v2860_v60 }
 0x5da   : > { %10784 = vmatprep.subr.bf16.mxu0 %v10743_v11  ;;  %10776 = vmatprep.subr.bf16.mxu1 %v10775_v3 }
 0x5dc   : > { %9852 = vmatmul.mubr.msk.f32.gmra.mrb[6].mxu0 %vm2227_vm4, %v14569_v13  ;;  %10778 = vmatpush3.bf16.msra.mxu1 %v10775_v3  ;;  %v2852_v3 = vld [vmem:[#allocation16 + $0x18] sm:$0xff] }
 0x5dd   : > { %10786 = vmatpush3.bf16.msra.mxu0 %v10743_v11  ;;  %9906 = vmatprep.mubr.msk.f32.mxu0 %vm2227_vm4, %v14571_v14  ;;  %v2850_v11 = vld [vmem:[#allocation16 + $0x8] sm:$0xff]  ;;  %v10831_v18 = vpack.c.bf16 %v2852_v3, %v2851_v23  ;;  %v3374_v3 = vld [vmem:[#allocation19 + $0x70] sm:$0xff] }
 0x5de   : > { %10788 = vmatprep.subr.bf16.mxu1 %v10787_v15  ;;  %v10827_v12 = vpack.c.bf16 %v2850_v11, %v2849_v10  ;;  %v3371_v10 = vld [vmem:[#allocation19 + $0x58] sm:$0xff]  ;;  %v3372_v11 = vld [vmem:[#allocation19 + $0x60] sm:$0xff] }
 0x5e0   : > { %9907 = vmatmul.mubr.msk.f32.vlgmr.msra.gmra.mrb[8].mxu0 %vm2227_vm4, %v14577_v8 }
 0x5e1   : > { %9909 = vmatprep.mubr.msk.f32.mxu0 %vm2227_vm4, %v14579_v20 }
 0x5e4   : > { %9910 = vmatmul.mubr.msk.f32.gmra.mrb[10].mxu0 %vm2227_vm4, %v14585_v1 }
 0x5e5   : > { %9942 = vmatprep.mubr.msk.f32.mxu0 %vm2227_vm4, %v14537_v19 }
 0x6ab   : > { %v9850_v24 = vpop.f32.mrb[4].mxu0 }
 0x6ac   : > { %v2306_v26 = vpop.f32.mrb[5].mxu0 }
 0x6ad   : > { %9892 = vmatprep.mubr.msk.f32.mxu1 %vm2342_vm5, %v2306_v26 }
 0x6ae   : > { %9893 = vmatmul.mubr.msk.f32.vlgmr.msra.gmra.mrb[4].mxu1 %vm2342_vm5, %v9850_v24  ;;  %v2856_v24 = vld [vmem:[#allocation16 + $0x38] sm:$0xff] }
 0x6af   : > { %10790 = vmatpush3.bf16.msra.mxu1 %v10787_v15  ;;  %v9853_v63 = vpop.f32.mrb[6].mxu0  ;;  %v2854_v15 = vld [vmem:[#allocation16 + $0x28] sm:$0xff]  ;;  %v10839_v26 = vpack.c.bf16 %v2856_v24, %v2855_v22  ;;  %v3361_v24 = vld [vmem:[#allocation19 + $0x10] sm:$0xff] }
 0x6b0   : > { %10792 = vmatprep.subr.bf16.mxu1 %v10791_v27  ;;  %v2316_v62 = vpop.f32.mrb[7].mxu0  ;;  %v10835_v40 = vpack.c.bf16 %v2854_v15, %v2853_v21  ;;  %v3359_v15 = vld [vmem:[#allocation19] sm:$0xff] }
 0x6b1   : > { %9895 = vmatprep.mubr.msk.f32.mxu1 %vm2342_vm5, %v2316_v62  ;;  %v3149_v62 = vld [vmem:[#allocation16 + $0x98] sm:$0xff] }
 0x6b2   : > { %9896 = vmatmul.mubr.msk.f32.gmra.mrb[6].mxu1 %vm2342_vm5, %v9853_v63  ;;  %v3148_v63 = vld [vmem:[#allocation16 + $0x90] sm:$0xff] }
 0x6b3   : > { %10794 = vmatpush3.bf16.msra.mxu1 %v10791_v27  ;;  %v9908_v33 = vpop.f32.mrb[8].mxu0  ;;  %v3146_v27 = vld [vmem:[#allocation16 + $0x80] sm:$0xff] }
 0x6b4   : > { %10796 = vmatprep.subr.bf16.mxu1 %v10795_v29  ;;  %v2620_v50 = vpop.f32.mrb[9].mxu0  ;;  %v10851_v16 = vpack.c.bf16 %v3147_v28, %v3146_v27  ;;  %v3363_v28 = vld [vmem:[#allocation19 + $0x20] sm:$0xff] }
 0x6b5   : > { %9928 = vmatprep.mubr.msk.f32.mxu1 %vm2342_vm5, %v2620_v50  ;;  %v3150_v50 = vld [vmem:[#allocation16 + $0xa0] sm:$0xff] }
 0x6b7   : > { %10798 = vmatpush3.bf16.msra.mxu1 %v10795_v29  ;;  %v9911_v34 = vpop.f32.mrb[10].mxu0 }
 0x6b8   : > { %10800 = vmatprep.subr.bf16.mxu1 %v10799_v44  ;;  %v2630_v17 = vpop.f32.mrb[11].mxu0 }
 0x6bb   : > { %10802 = vmatpush3.bf16.msra.mxu1 %v10799_v44 }
 0x6be   : > { %9929 = vmatmul.mubr.msk.f32.vlgmr.msra.gmra.mrb[4].mxu1 %vm2342_vm5, %v9908_v33  ;;  %v10855_v33 = vpack.c.bf16 %v3149_v62, %v3148_v63  ;;  %v3365_v63 = vld [vmem:[#allocation19 + $0x30] sm:$0xff]  ;;  %v3366_v62 = vld [vmem:[#allocation19 + $0x38] sm:$0xff] }
 0x6bf   : > { %9931 = vmatprep.mubr.msk.f32.mxu1 %vm2342_vm5, %v2630_v17 }
 0x6c2   : > { %9932 = vmatmul.mubr.msk.f32.gmra.mrb[6].mxu1 %vm2342_vm5, %v9911_v34  ;;  %v3151_v34 = vld [vmem:[#allocation16 + $0xa8] sm:$0xff] }
 0x6c3   : > { %10000 = vmatprep.mubr.msk.f32.mxu1 %vm2227_vm4, %v14571_v14 }
 0x791   : > { %v9930_v38 = vpop.f32.mrb[4].mxu1 }
 0x792   : > { %v2757_v39 = vadd.f32 %v9930_v38, %v9204_v36  ;;  %v2726_v41 = vpop.f32.mrb[5].mxu1 }
 0x793   : > { %v2756_v42 = vadd.f32 %v9204_v36, %v2726_v41 }
 0x794   : > { %v2761_v45 = vmax.f32 %v2757_v39, 0.0  ;;  %v10859_v39 = vpack.c.bf16 %v3151_v34, %v3150_v50  ;;  %v3659_v50 = vld [vmem:[#allocation19 + $0x98] sm:$0xff] }
 0x795   : > { %v2760_v43 = vmax.f32 %v2756_v42, 0.0  ;;  %v9933_v46 = vpop.f32.mrb[6].mxu1  ;;  %v3152_v42 = vld [vmem:[#allocation16 + $0xb0] sm:$0xff] }
 0x796   : > { %v2759_v48 = vadd.f32 %v9933_v46, %v9204_v36  ;;  %v2736_v49 = vpop.f32.mrb[7].mxu1  ;;  %v9225_v46 = vld [vmem:[#allocation18] ss:$0 sm:$0xff] }
 0x797   : > { %v10803_v51 = vpack.c.bf16 %v2761_v45, %v2760_v43  ;;  %v2758_v37 = vadd.f32 %v9204_v36, %v2736_v49 }
 0x798   : > { %v2763_v52 = vmax.f32 %v2759_v48, 0.0 }
 0x799   : > { %v2762_v47 = vmax.f32 %v2758_v37, 0.0  ;;  %10804 = vmatprep.subr.bf16.mxu0 %v10803_v51  ;;  %10844 = vmatprep.subr.bf16.mxu1 %v10803_v51 }
 0x79a   : > { %10806 = vmatpush3.bf16.msra.mxu0 %v10803_v51  ;;  %10846 = vmatpush3.bf16.msra.mxu1 %v10803_v51 }
 0x79b   : > { %v10807_v53 = vpack.c.bf16 %v2763_v52, %v2762_v47 }
 0x79d   : > { %10808 = vmatprep.subr.bf16.mxu0 %v10807_v53  ;;  %10848 = vmatprep.subr.bf16.mxu1 %v10807_v53 }
 0x79e   : > { %10810 = vmatpush3.bf16.msra.mxu0 %v10807_v53  ;;  %10850 = vmatpush3.bf16.msra.mxu1 %v10807_v53 }
 0x79f   : > { %10812 = vmatprep.subr.bf16.mxu0 %v10811_v57 }
 0x7a1   : > { %9943 = vmatmul.mubr.msk.f32.vlgmr.msra.gmra.mrb[12].mxu0 %vm2227_vm4, %v14561_v32  ;;  %10001 = vmatmul.mubr.msk.f32.vlgmr.msra.gmra.mrb[8].mxu1 %vm2227_vm4, %v14577_v8 }
 0x7a2   : > { %10814 = vmatpush3.bf16.msra.mxu0 %v10811_v57  ;;  %9945 = vmatprep.mubr.msk.f32.mxu0 %vm2227_vm4, %v14563_v55 }
 0x7a3   : > { %10816 = vmatprep.subr.bf16.mxu0 %v10815_v61  ;;  %10003 = vmatprep.mubr.msk.f32.mxu1 %vm2227_vm4, %v14579_v20 }
 0x7a5   : > { %9946 = vmatmul.mubr.msk.f32.gmra.mrb[14].mxu0 %vm2227_vm4, %v14569_v13  ;;  %10004 = vmatmul.mubr.msk.f32.gmra.mrb[10].mxu1 %vm2227_vm4, %v14585_v1 }
 0x7a6   : > { %10818 = vmatpush3.bf16.msra.mxu0 %v10815_v61  ;;  %9964 = vmatprep.mubr.msk.f32.mxu0 %vm2342_vm5, %v2760_v43 }
 0x7a7   : > { %10820 = vmatprep.subr.bf16.mxu0 %v10819_v7  ;;  %10036 = vmatprep.mubr.msk.f32.mxu1 %vm2227_vm4, %v14537_v19 }
 0x7aa   : > { %10822 = vmatpush3.bf16.msra.mxu0 %v10819_v7 }
 0x7ab   : > { %10824 = vmatprep.subr.bf16.mxu0 %v10823_v59 }
 0x7ae   : > { %10826 = vmatpush3.bf16.msra.mxu0 %v10823_v59 }
 0x7af   : > { %10828 = vmatprep.subr.bf16.mxu0 %v10827_v12 }
 0x7b1   : > { %9965 = vmatmul.mubr.msk.f32.vlgmr.msra.gmra.mrb[16].mxu0 %vm2342_vm5, %v2761_v45  ;;  %v3153_v45 = vld [vmem:[#allocation16 + $0xb8] sm:$0xff] }
 0x7b2   : > { %9967 = vmatprep.mubr.msk.f32.mxu0 %vm2342_vm5, %v2762_v47  ;;  %10830 = vmatpush3.bf16.msra.mxu0 %v10827_v12  ;;  %v10863_v43 = vpack.c.bf16 %v3153_v45, %v3152_v42  ;;  %v3373_v12 = vld [vmem:[#allocation19 + $0x68] sm:$0xff] }
 0x7b3   : > { %10832 = vmatprep.subr.bf16.mxu0 %v10831_v18  ;;  %v10883_v23 = vpack.c.bf16 %v3373_v12, %v3372_v11  ;;  %v3661_v42 = vld [vmem:[#allocation19 + $0xa8] sm:$0xff] }
 0x7b5   : > { %9968 = vmatmul.mubr.msk.f32.gmra.mrb[18].mxu0 %vm2342_vm5, %v2763_v52 }
 0x7b6   : > { %10834 = vmatpush3.bf16.msra.mxu0 %v10831_v18  ;;  %v3375_v18 = vld [vmem:[#allocation19 + $0x78] sm:$0xff] }
 0x7b7   : > { %10836 = vmatprep.subr.bf16.mxu0 %v10835_v40  ;;  %v10887_v21 = vpack.c.bf16 %v3375_v18, %v3374_v3  ;;  %v3877_v3 = vld [vmem:[#allocation22 + $0x58] sm:$0xff] }
 0x7ba   : > { %10838 = vmatpush3.bf16.msra.mxu0 %v10835_v40  ;;  %v3360_v40 = vld [vmem:[#allocation19 + $0x8] sm:$0xff] }
 0x7bb   : > { %10840 = vmatprep.subr.bf16.mxu0 %v10839_v26  ;;  %v10891_v22 = vpack.c.bf16 %v3360_v40, %v3359_v15  ;;  %v3879_v15 = vld [vmem:[#allocation22 + $0x68] sm:$0xff] }
 0x7be   : > { %10842 = vmatpush3.bf16.msra.mxu0 %v10839_v26  ;;  %v3362_v26 = vld [vmem:[#allocation19 + $0x18] sm:$0xff] }
 0x7bf   : > { %10852 = vmatprep.subr.bf16.mxu0 %v10851_v16  ;;  %v10895_v27 = vpack.c.bf16 %v3362_v26, %v3361_v24  ;;  %v3881_v24 = vld [vmem:[#allocation22 + $0x78] sm:$0xff] }
 0x874   : > { %v9944_v29 = vpop.f32.mrb[12].mxu0  ;;  %v10002_v31 = vpop.f32.mrb[8].mxu1 }
 0x875   : > { %v2830_v30 = vpop.f32.mrb[13].mxu0  ;;  %v3126_v44 = vpop.f32.mrb[9].mxu1 }
 0x876   : > { %9986 = vmatprep.mubr.msk.f32.mxu0 %vm2342_vm5, %v2830_v30  ;;  %v3657_v30 = vld [vmem:[#allocation19 + $0x88] sm:$0xff] }
 0x877   : > { %9987 = vmatmul.mubr.msk.f32.vlgmr.msra.gmra.mrb[16].mxu0 %vm2342_vm5, %v9944_v29  ;;  %v10903_v29 = vpack.c.bf16 %v3366_v62, %v3365_v63  ;;  %v3872_v63 = vld [vmem:[#allocation22 + $0x38] sm:$0xff] }
 0x878   : > { %10854 = vmatpush3.bf16.msra.mxu0 %v10851_v16  ;;  %v9947_v17 = vpop.f32.mrb[14].mxu0  ;;  %v10005_v36 = vpop.f32.mrb[10].mxu1  ;;  %v3364_v16 = vld [vmem:[#allocation19 + $0x28] sm:$0xff] }
 0x879   : > { %10856 = vmatprep.subr.bf16.mxu0 %v10855_v33  ;;  %v2840_v38 = vpop.f32.mrb[15].mxu0  ;;  %v3136_v41 = vpop.f32.mrb[11].mxu1 }
 0x87a   : > { %9989 = vmatprep.mubr.msk.f32.mxu0 %vm2342_vm5, %v2840_v38 }
 0x87b   : > { %9990 = vmatmul.mubr.msk.f32.gmra.mrb[18].mxu0 %vm2342_vm5, %v9947_v17 }
 0x87c   : > { %10858 = vmatpush3.bf16.msra.mxu0 %v10855_v33  ;;  %10022 = vmatprep.mubr.msk.f32.mxu0 %vm2342_vm5, %v3126_v44  ;;  %v3658_v44 = vld [vmem:[#allocation19 + $0x90] sm:$0xff] }
 0x87d   : > { %10860 = vmatprep.subr.bf16.mxu0 %v10859_v39  ;;  %v10919_v38 = vpack.c.bf16 %v3659_v50, %v3658_v44  ;;  %v4165_v44 = vld [vmem:[#allocation22 + $0x98] sm:$0xff] }
 0x880   : > { %10862 = vmatpush3.bf16.msra.mxu0 %v10859_v39 }
 0x881   : > { %10864 = vmatprep.subr.bf16.mxu0 %v10863_v43 }
 0x884   : > { %10866 = vmatpush3.bf16.msra.mxu0 %v10863_v43 }
 0x887   : > { %10023 = vmatmul.mubr.msk.f32.vlgmr.msra.gmra.mrb[16].mxu0 %vm2342_vm5, %v10002_v31  ;;  %v3656_v31 = vld [vmem:[#allocation19 + $0x80] sm:$0xff] }
 0x888   : > { %10025 = vmatprep.mubr.msk.f32.mxu0 %vm2342_vm5, %v3136_v41  ;;  %v10915_v33 = vpack.c.bf16 %v3657_v30, %v3656_v31  ;;  %v3660_v41 = vld [vmem:[#allocation19 + $0xa0] sm:$0xff]  ;;  %v4163_v31 = vld [vmem:[#allocation22 + $0x88] sm:$0xff] }
 0x88b   : > { %10026 = vmatmul.mubr.msk.f32.gmra.mrb[18].mxu0 %vm2342_vm5, %v10005_v36 }
 0x88c   : > { %10094 = vmatprep.mubr.msk.f32.mxu0 %vm2227_vm4, %v14571_v14 }
 0x95a   : > { %v10024_v48 = vpop.f32.mrb[16].mxu0 }
 0x95b   : > { %v3263_v49 = vadd.f32 %v10024_v48, %v9225_v46  ;;  %v3232_v51 = vpop.f32.mrb[17].mxu0  ;;  %v10923_v48 = vpack.c.bf16 %v3661_v42, %v3660_v41  ;;  %v4167_v41 = vld [vmem:[#allocation22 + $0xa8] sm:$0xff] }
 0x95c   : > { %v3262_v37 = vadd.f32 %v9225_v46, %v3232_v51  ;;  %v3662_v51 = vld [vmem:[#allocation19 + $0xb0] sm:$0xff] }
 0x95d   : > { %v3267_v52 = vadd.f32 %v3263_v49, %v14541_v56  ;;  %v3368_v56 = vld [vmem:[#allocation19 + $0x40] sm:$0xff] }
 0x95e   : > { %v3266_v5 = vadd.f32 %v3262_v37, %v14543_v0  ;;  %v10027_v54 = vpop.f32.mrb[18].mxu0  ;;  %v10875_v59 = vpack.c.bf16 %v3369_v35, %v3368_v56  ;;  %v3663_v37 = vld [vmem:[#allocation19 + $0xb8] sm:$0xff] }
 0x95f   : > { %v14631_v47 = vmax.f32 %v3267_v52, 0.0  ;;  %v3265_v53 = vadd.f32 %v10027_v54, %v9225_v46  ;;  %v3242_v57 = vpop.f32.mrb[19].mxu0  ;;  %v10927_v52 = vpack.c.bf16 %v3663_v37, %v3662_v51  ;;  %v4169_v51 = vld [vmem:[#allocation22 + $0xb8] sm:$0xff] }
 0x960   : > { %v14633_v60 = vmax.f32 %v3266_v5, 0.0  ;;  %v3264_v2 = vadd.f32 %v9225_v46, %v3242_v57  ;;  %v9246_v5 = vld [vmem:[#allocation21] ss:$0 sm:$0xff] }
 0x961   : > { %v3269_v61 = vadd.f32 %v3265_v53, %v14549_v9  ;;  %v3370_v9 = vld [vmem:[#allocation19 + $0x50] sm:$0xff] }
 0x962   : > { %v3268_v4 = vadd.f32 %v3264_v2, %v14553_v58  ;;  %v10867_v6 = vpack.c.bf16 %v14631_v47, %v14633_v60  ;;  %v10879_v58 = vpack.c.bf16 %v3371_v10, %v3370_v9  ;;  %v3874_v10 = vld [vmem:[#allocation22 + $0x40] sm:$0xff] }
 0x963   : > { %v14639_v7 = vmax.f32 %v3269_v61, 0.0 }
 0x964   : > { %v14641_v0 = vmax.f32 %v3268_v4, 0.0  ;;  %10868 = vmatprep.subr.bf16.mxu1 %v10867_v6  ;;  %10908 = vmatprep.subr.bf16.mxu0 %v10867_v6 }
 0x965   : > { %10870 = vmatpush3.bf16.msra.mxu1 %v10867_v6  ;;  %10910 = vmatpush3.bf16.msra.mxu0 %v10867_v6 }
 0x966   : > { %v10871_v25 = vpack.c.bf16 %v14639_v7, %v14641_v0 }
 0x968   : > { %10872 = vmatprep.subr.bf16.mxu1 %v10871_v25  ;;  %10912 = vmatprep.subr.bf16.mxu0 %v10871_v25 }
 0x969   : > { %10874 = vmatpush3.bf16.msra.mxu1 %v10871_v25  ;;  %10914 = vmatpush3.bf16.msra.mxu0 %v10871_v25 }
 0x96a   : > { %10876 = vmatprep.subr.bf16.mxu1 %v10875_v59 }
 0x96c   : > { %10037 = vmatmul.mubr.msk.f32.vlgmr.msra.gmra.mrb[12].mxu1 %vm2227_vm4, %v14561_v32  ;;  %10095 = vmatmul.mubr.msk.f32.vlgmr.msra.gmra.mrb[20].mxu0 %vm2227_vm4, %v14577_v8 }
 0x96d   : > { %10878 = vmatpush3.bf16.msra.mxu1 %v10875_v59  ;;  %10039 = vmatprep.mubr.msk.f32.mxu1 %vm2227_vm4, %v14563_v55 }
 0x96e   : > { %10880 = vmatprep.subr.bf16.mxu1 %v10879_v58  ;;  %10097 = vmatprep.mubr.msk.f32.mxu0 %vm2227_vm4, %v14579_v20 }
 0x970   : > { %10040 = vmatmul.mubr.msk.f32.gmra.mrb[14].mxu1 %vm2227_vm4, %v14569_v13  ;;  %10098 = vmatmul.mubr.msk.f32.gmra.mrb[22].mxu0 %vm2227_vm4, %v14585_v1 }
 0x971   : > { %10882 = vmatpush3.bf16.msra.mxu1 %v10879_v58  ;;  %10058 = vmatprep.mubr.msk.f32.mxu1 %vm2342_vm5, %v14633_v60  ;;  %v3875_v58 = vld [vmem:[#allocation22 + $0x48] sm:$0xff] }
 0x972   : > { %10884 = vmatprep.subr.bf16.mxu1 %v10883_v23  ;;  %10130 = vmatprep.mubr.msk.f32.mxu0 %vm2227_vm4, %v14537_v19  ;;  %v10899_v19 = vpack.c.bf16 %v3364_v16, %v3363_v28  ;;  %v10939_v12 = vpack.c.bf16 %v3875_v58, %v3874_v10  ;;  %v3869_v16 = vld [vmem:[#allocation22 + $0x20] sm:$0xff] }
 0x975   : > { %10886 = vmatpush3.bf16.msra.mxu1 %v10883_v23  ;;  %v3876_v23 = vld [vmem:[#allocation22 + $0x50] sm:$0xff] }
 0x976   : > { %10888 = vmatprep.subr.bf16.mxu1 %v10887_v21  ;;  %v10943_v18 = vpack.c.bf16 %v3877_v3, %v3876_v23  ;;  %v4375_v3 = vld [vmem:[#allocation25 + $0x8] sm:$0xff] }
 0x979   : > { %10890 = vmatpush3.bf16.msra.mxu1 %v10887_v21  ;;  %v3878_v21 = vld [vmem:[#allocation22 + $0x60] sm:$0xff] }
 0x97a   : > { %10892 = vmatprep.subr.bf16.mxu1 %v10891_v22  ;;  %v10947_v40 = vpack.c.bf16 %v3879_v15, %v3878_v21  ;;  %v4563_v21 = vld [vmem:[#allocation28 + $0x48] sm:$0xff] }
 0x97b   : > { %v4376_v15 = vld [vmem:[#allocation25 + $0x10] sm:$0xff] }
 0x97c   : > { %10059 = vmatmul.mubr.msk.f32.vlgmr.msra.gmra.mrb[16].mxu1 %vm2342_vm5, %v14631_v47 }
 0x97d   : > { %10061 = vmatprep.mubr.msk.f32.mxu1 %vm2342_vm5, %v14641_v0  ;;  %10894 = vmatpush3.bf16.msra.mxu1 %v10891_v22  ;;  %v3880_v22 = vld [vmem:[#allocation22 + $0x70] sm:$0xff] }
 0x97e   : > { %10896 = vmatprep.subr.bf16.mxu1 %v10895_v27 }
 0x980   : > { %10062 = vmatmul.mubr.msk.f32.gmra.mrb[18].mxu1 %vm2342_vm5, %v14639_v7 }
 0x981   : > { %10898 = vmatpush3.bf16.msra.mxu1 %v10895_v27  ;;  %v3867_v27 = vld [vmem:[#allocation22 + $0x10] sm:$0xff] }
 0x982   : > { %10900 = vmatprep.subr.bf16.mxu1 %v10899_v19 }
 0x985   : > { %10902 = vmatpush3.bf16.msra.mxu1 %v10899_v19  ;;  %v3871_v19 = vld [vmem:[#allocation22 + $0x30] sm:$0xff] }
 0x986   : > { %10904 = vmatprep.subr.bf16.mxu1 %v10903_v29  ;;  %v10967_v62 = vpack.c.bf16 %v3872_v63, %v3871_v19  ;;  %v4381_v63 = vld [vmem:[#allocation25 + $0x38] sm:$0xff] }
 0x989   : > { %10906 = vmatpush3.bf16.msra.mxu1 %v10903_v29  ;;  %v4162_v29 = vld [vmem:[#allocation22 + $0x80] sm:$0xff] }
 0x98a   : > { %10916 = vmatprep.subr.bf16.mxu1 %v10915_v33  ;;  %v10979_v30 = vpack.c.bf16 %v4163_v31, %v4162_v29  ;;  %v4569_v29 = vld [vmem:[#allocation28 + $0x78] sm:$0xff] }
 0xa3f   : > { %v10038_v34 = vpop.f32.mrb[12].mxu1  ;;  %v10096_v17 = vpop.f32.mrb[20].mxu0 }
 0xa40   : > { %v3340_v36 = vpop.f32.mrb[13].mxu1  ;;  %v3636_v39 = vpop.f32.mrb[21].mxu0 }
 0xa41   : > { %10080 = vmatprep.mubr.msk.f32.mxu1 %vm2342_vm5, %v3340_v36 }
 0xa42   : > { %10081 = vmatmul.mubr.msk.f32.vlgmr.msra.gmra.mrb[16].mxu1 %vm2342_vm5, %v10038_v34 }
 0xa43   : > { %10918 = vmatpush3.bf16.msra.mxu1 %v10915_v33  ;;  %v10041_v45 = vpop.f32.mrb[14].mxu1  ;;  %v10099_v43 = vpop.f32.mrb[22].mxu0  ;;  %v4164_v33 = vld [vmem:[#allocation22 + $0x90] sm:$0xff] }
 0xa44   : > { %10920 = vmatprep.subr.bf16.mxu1 %v10919_v38  ;;  %v3350_v46 = vpop.f32.mrb[15].mxu1  ;;  %v3646_v49 = vpop.f32.mrb[23].mxu0  ;;  %v10983_v36 = vpack.c.bf16 %v4165_v44, %v4164_v33  ;;  %v4553_v33 = vld [vmem:[#allocation28] sm:$0xff]  ;;  %v4554_v44 = vld [vmem:[#allocation28 + $0x8] sm:$0xff] }
 0xa45   : > { %10083 = vmatprep.mubr.msk.f32.mxu1 %vm2342_vm5, %v3350_v46 }
 0xa46   : > { %10084 = vmatmul.mubr.msk.f32.gmra.mrb[18].mxu1 %vm2342_vm5, %v10041_v45 }
 0xa47   : > { %10922 = vmatpush3.bf16.msra.mxu1 %v10919_v38  ;;  %10116 = vmatprep.mubr.msk.f32.mxu1 %vm2342_vm5, %v3636_v39  ;;  %v4166_v39 = vld [vmem:[#allocation22 + $0xa0] sm:$0xff] }
 0xa48   : > { %10924 = vmatprep.subr.bf16.mxu1 %v10923_v48  ;;  %v10987_v46 = vpack.c.bf16 %v4167_v41, %v4166_v39  ;;  %v4727_v41 = vld [vmem:[#allocation4 + $0x20] sm:$0xff] }
 0xa4b   : > { %10926 = vmatpush3.bf16.msra.mxu1 %v10923_v48 }
 0xa4c   : > { %10928 = vmatprep.subr.bf16.mxu1 %v10927_v52 }
 0xa4f   : > { %10930 = vmatpush3.bf16.msra.mxu1 %v10927_v52  ;;  %v4291_v52 = vld [vmem:[#allocation4 + $0x10] sm:$0xff] }
 0xa52   : > { %10117 = vmatmul.mubr.msk.f32.vlgmr.msra.gmra.mrb[16].mxu1 %vm2342_vm5, %v10096_v17 }
 0xa53   : > { %10119 = vmatprep.mubr.msk.f32.mxu1 %vm2342_vm5, %v3646_v49  ;;  %v4168_v49 = vld [vmem:[#allocation22 + $0xb0] sm:$0xff] }
 0xa54   : > { %v10991_v37 = vpack.c.bf16 %v4169_v51, %v4168_v49  ;;  %v4559_v49 = vld [vmem:[#allocation28 + $0x30] sm:$0xff]  ;;  %v4560_v51 = vld [vmem:[#allocation28 + $0x38] sm:$0xff] }
 0xa56   : > { %10120 = vmatmul.mubr.msk.f32.gmra.mrb[18].mxu1 %vm2342_vm5, %v10099_v43 }
 0xa57   : > { %10188 = vmatprep.mubr.msk.f32.mxu1 %vm2227_vm4, %v14571_v14 }
 0xb25   : > { %v10118_v54 = vpop.f32.mrb[16].mxu1 }
 0xb26   : > { %v3773_v53 = vadd.f32 %v10118_v54, %v9246_v5  ;;  %v3742_v57 = vpop.f32.mrb[17].mxu1  ;;  %v9267_v54 = vld [vmem:[#allocation24] ss:$0 sm:$0xff] }
 0xb27   : > { %v3772_v2 = vadd.f32 %v9246_v5, %v3742_v57 }
 0xb28   : > { %v3777_v61 = vmax.f32 %v3773_v53, 0.0 }
 0xb29   : > { %v3776_v4 = vmax.f32 %v3772_v2, 0.0  ;;  %v10121_v6 = vpop.f32.mrb[18].mxu1 }
 0xb2a   : > { %v3775_v56 = vadd.f32 %v10121_v6, %v9246_v5  ;;  %v3752_v35 = vpop.f32.mrb[19].mxu1 }
 0xb2b   : > { %v10931_v25 = vpack.c.bf16 %v3777_v61, %v3776_v4  ;;  %v3774_v59 = vadd.f32 %v9246_v5, %v3752_v35  ;;  %v4470_v5 = vld [vmem:[#allocation4] sm:$0xff] }
 0xb2c   : > { %v3779_v9 = vmax.f32 %v3775_v56, 0.0 }
 0xb2d   : > { %v3778_v11 = vmax.f32 %v3774_v59, 0.0  ;;  %10932 = vmatprep.subr.bf16.mxu0 %v10931_v25  ;;  %10972 = vmatprep.subr.bf16.mxu1 %v10931_v25 }
 0xb2e   : > { %10934 = vmatpush3.bf16.msra.mxu0 %v10931_v25  ;;  %10974 = vmatpush3.bf16.msra.mxu1 %v10931_v25 }
 0xb2f   : > { %v10935_v14 = vpack.c.bf16 %v3779_v9, %v3778_v11 }
 0xb31   : > { %10936 = vmatprep.subr.bf16.mxu0 %v10935_v14  ;;  %10976 = vmatprep.subr.bf16.mxu1 %v10935_v14 }
 0xb32   : > { %10938 = vmatpush3.bf16.msra.mxu0 %v10935_v14  ;;  %10978 = vmatpush3.bf16.msra.mxu1 %v10935_v14 }
 0xb33   : > { %10940 = vmatprep.subr.bf16.mxu0 %v10939_v12 }
 0xb35   : > { %10131 = vmatmul.mubr.msk.f32.vlgmr.msra.gmra.mrb[24].mxu0 %vm2227_vm4, %v14561_v32  ;;  %10189 = vmatmul.mubr.msk.f32.vlgmr.msra.gmra.mrb[20].mxu1 %vm2227_vm4, %v14577_v8  ;;  %v10951_v32 = vpack.c.bf16 %v3881_v24, %v3880_v22  ;;  %v3865_v8 = vld [vmem:[#allocation22] sm:$0xff]  ;;  %v4564_v22 = vld [vmem:[#allocation28 + $0x50] sm:$0xff] }
 0xb36   : > { %10942 = vmatpush3.bf16.msra.mxu0 %v10939_v12  ;;  %10133 = vmatprep.mubr.msk.f32.mxu0 %vm2227_vm4, %v14563_v55  ;;  %v3866_v55 = vld [vmem:[#allocation22 + $0x8] sm:$0xff]  ;;  %v4565_v24 = vld [vmem:[#allocation28 + $0x58] sm:$0xff] }
 0xb37   : > { %10944 = vmatprep.subr.bf16.mxu0 %v10943_v18  ;;  %10191 = vmatprep.mubr.msk.f32.mxu1 %vm2227_vm4, %v14579_v20  ;;  %v10955_v26 = vpack.c.bf16 %v3866_v55, %v3865_v8  ;;  %v3868_v20 = vld [vmem:[#allocation22 + $0x18] sm:$0xff]  ;;  %v4374_v12 = vld [vmem:[#allocation25] sm:$0xff] }
 0xb38   : > { %v10959_v28 = vpack.c.bf16 %v3868_v20, %v3867_v27  ;;  %v4471_v8 = vld [vmem:[#allocation4 + $0x8] sm:$0xff]  ;;  %v11031_v27 = vpack.c.bf16 %v4565_v24, %v4564_v22  ;;  %v5017_v22 = vld [vmem:[#allocation31 + $0x98] sm:$0xff] }
 0xb39   : > { %10134 = vmatmul.mubr.msk.f32.gmra.mrb[26].mxu0 %vm2227_vm4, %v14569_v13  ;;  %10192 = vmatmul.mubr.msk.f32.gmra.mrb[22].mxu1 %vm2227_vm4, %v14585_v1  ;;  %v3870_v13 = vld [vmem:[#allocation22 + $0x28] sm:$0xff]  ;;  %v14746_v24 = vld [vmem:[#allocation6 + $0x8] sm:$0xff] }
 0xb3a   : > { %10946 = vmatpush3.bf16.msra.mxu0 %v10943_v18  ;;  %10152 = vmatprep.mubr.msk.f32.mxu0 %vm2342_vm5, %v3776_v4  ;;  %v10963_v1 = vpack.c.bf16 %v3870_v13, %v3869_v16  ;;  %v4562_v18 = vld [vmem:[#allocation28 + $0x40] sm:$0xff]  ;;  %v4567_v16 = vld [vmem:[#allocation28 + $0x68] sm:$0xff] }
 0xb3b   : > { %10948 = vmatprep.subr.bf16.mxu0 %v10947_v40  ;;  %10224 = vmatprep.mubr.msk.f32.mxu1 %vm2227_vm4, %v4291_v52  ;;  %v4379_v20 = vld [vmem:[#allocation25 + $0x28] sm:$0xff]  ;;  %v11055_v52 = vpack.c.bf16 %v4560_v51, %v4559_v49  ;;  %v5004_v49 = vld [vmem:[#allocation31 + $0x38] sm:$0xff] }
 0xb3e   : > { %10950 = vmatpush3.bf16.msra.mxu0 %v10947_v40  ;;  %v11027_v40 = vpack.c.bf16 %v4563_v21, %v4562_v18 }
 0xb3f   : > { %10952 = vmatprep.subr.bf16.mxu0 %v10951_v32 }
 0xb42   : > { %10954 = vmatpush3.bf16.msra.mxu0 %v10951_v32  ;;  %v4292_v32 = vld [vmem:[#allocation4 + $0x18] sm:$0xff] }
 0xb43   : > { %10956 = vmatprep.subr.bf16.mxu0 %v10955_v26 }
 0xb45   : > { %10153 = vmatmul.mubr.msk.f32.vlgmr.msra.gmra.mrb[28].mxu0 %vm2342_vm5, %v3777_v61 }
 0xb46   : > { %10155 = vmatprep.mubr.msk.f32.mxu0 %vm2342_vm5, %v3778_v11  ;;  %10958 = vmatpush3.bf16.msra.mxu0 %v10955_v26  ;;  %v4378_v26 = vld [vmem:[#allocation25 + $0x20] sm:$0xff] }
 0xb47   : > { %10960 = vmatprep.subr.bf16.mxu0 %v10959_v28  ;;  %v11011_v13 = vpack.c.bf16 %v4379_v20, %v4378_v26  ;;  %v5019_v26 = vld [vmem:[#allocation31 + $0xa8] sm:$0xff]  ;;  %v5020_v20 = vld [vmem:[#allocation31 + $0xb0] sm:$0xff] }
 0xb49   : > { %10156 = vmatmul.mubr.msk.f32.gmra.mrb[30].mxu0 %vm2342_vm5, %v3779_v9 }
 0xb4a   : > { %10962 = vmatpush3.bf16.msra.mxu0 %v10959_v28  ;;  %v4566_v28 = vld [vmem:[#allocation28 + $0x60] sm:$0xff] }
 0xb4b   : > { %10964 = vmatprep.subr.bf16.mxu0 %v10963_v1  ;;  %v11035_v19 = vpack.c.bf16 %v4567_v16, %v4566_v28  ;;  %v5021_v28 = vld [vmem:[#allocation31 + $0xb8] sm:$0xff] }
 0xb4c   : > { %v11099_v16 = vpack.c.bf16 %v5021_v28, %v5020_v20  ;;  %v5277_v28 = vld [vmem:[#allocation31 + $0x160] sm:$0xff] }
 0xb4e   : > { %10966 = vmatpush3.bf16.msra.mxu0 %v10963_v1  ;;  %v4380_v1 = vld [vmem:[#allocation25 + $0x30] sm:$0xff] }
 0xb4f   : > { %10968 = vmatprep.subr.bf16.mxu0 %v10967_v62  ;;  %v11015_v31 = vpack.c.bf16 %v4381_v63, %v4380_v1  ;;  %v5023_v1 = vld [vmem:[#allocation31 + $0xc8] sm:$0xff]  ;;  %v5024_v63 = vld [vmem:[#allocation31 + $0xd0] sm:$0xff] }
 0xb52   : > { %10970 = vmatpush3.bf16.msra.mxu0 %v10967_v62  ;;  %v4568_v62 = vld [vmem:[#allocation28 + $0x70] sm:$0xff] }
 0xb53   : > { %10980 = vmatprep.subr.bf16.mxu0 %v10979_v30 }
 0xc08   : > { %v10132_v50 = vpop.f32.mrb[24].mxu0  ;;  %v10190_v34 = vpop.f32.mrb[20].mxu1 }
 0xc09   : > { %v3846_v17 = vpop.f32.mrb[25].mxu0  ;;  %v4142_v38 = vpop.f32.mrb[21].mxu1 }
 0xc0a   : > { %10174 = vmatprep.mubr.msk.f32.mxu0 %vm2342_vm5, %v3846_v17  ;;  %v4556_v17 = vld [vmem:[#allocation28 + $0x18] sm:$0xff] }
 0xc0b   : > { %10175 = vmatmul.mubr.msk.f32.vlgmr.msra.gmra.mrb[28].mxu0 %vm2342_vm5, %v10132_v50  ;;  %v11043_v50 = vpack.c.bf16 %v4554_v44, %v4553_v33  ;;  %v5028_v44 = vld [vmem:[#allocation31 + $0xf0] sm:$0xff] }
 0xc0c   : > { %10982 = vmatpush3.bf16.msra.mxu0 %v10979_v30  ;;  %v10135_v42 = vpop.f32.mrb[26].mxu0  ;;  %v10193_v45 = vpop.f32.mrb[22].mxu1  ;;  %v11039_v30 = vpack.c.bf16 %v4569_v29, %v4568_v62  ;;  %v5025_v62 = vld [vmem:[#allocation31 + $0xd8] sm:$0xff] }
 0xc0d   : > { %10984 = vmatprep.subr.bf16.mxu0 %v10983_v36  ;;  %v3856_v43 = vpop.f32.mrb[27].mxu0  ;;  %v4152_v48 = vpop.f32.mrb[23].mxu1  ;;  %v11107_v29 = vpack.c.bf16 %v5025_v62, %v5024_v63  ;;  %v9270_v62 = vld [vmem:[#allocation27] ss:$0 sm:$0xff] }
 0xc0e   : > { %10177 = vmatprep.mubr.msk.f32.mxu0 %vm2342_vm5, %v3856_v43  ;;  %v4557_v43 = vld [vmem:[#allocation28 + $0x20] sm:$0xff] }
 0xc0f   : > { %10178 = vmatmul.mubr.msk.f32.gmra.mrb[30].mxu0 %vm2342_vm5, %v10135_v42 }
 0xc10   : > { %10986 = vmatpush3.bf16.msra.mxu0 %v10983_v36  ;;  %10210 = vmatprep.mubr.msk.f32.mxu0 %vm2342_vm5, %v4142_v38 }
 0xc11   : > { %10988 = vmatprep.subr.bf16.mxu0 %v10987_v46 }
 0xc14   : > { %10990 = vmatpush3.bf16.msra.mxu0 %v10987_v46  ;;  %v4558_v46 = vld [vmem:[#allocation28 + $0x28] sm:$0xff] }
 0xc15   : > { %10992 = vmatprep.subr.bf16.mxu0 %v10991_v37 }
 0xc18   : > { %10994 = vmatpush3.bf16.msra.mxu0 %v10991_v37  ;;  %v4728_v37 = vld [vmem:[#allocation4 + $0x28] sm:$0xff] }
 0xc1b   : > { %10211 = vmatmul.mubr.msk.f32.vlgmr.msra.gmra.mrb[28].mxu0 %vm2342_vm5, %v10190_v34  ;;  %v4555_v34 = vld [vmem:[#allocation28 + $0x10] sm:$0xff] }
 0xc1c   : > { %10213 = vmatprep.mubr.msk.f32.mxu0 %vm2342_vm5, %v4152_v48  ;;  %v11051_v48 = vpack.c.bf16 %v4558_v46, %v4557_v43  ;;  %v5002_v43 = vld [vmem:[#allocation31 + $0x28] sm:$0xff] }
 0xc1f   : > { %10214 = vmatmul.mubr.msk.f32.gmra.mrb[30].mxu0 %vm2342_vm5, %v10193_v45  ;;  %v11047_v45 = vpack.c.bf16 %v4556_v17, %v4555_v34  ;;  %v4997_v17 = vld [vmem:[#allocation31] sm:$0xff] }
 0xc20   : > { %10254 = vmatprep.mubr.msk.f32.mxu0 %vm2227_vm4, %v4470_v5  ;;  %v4811_v5 = vld [vmem:[#allocation28 + $0x80] sm:$0xff] }
 0xcee   : > { %v10212_v53 = vpop.f32.mrb[28].mxu0 }
 0xcef   : > { %v4279_v57 = vadd.f32 %v10212_v53, %v9267_v54  ;;  %v4248_v2 = vpop.f32.mrb[29].mxu0 }
 0xcf0   : > { %v4278_v61 = vadd.f32 %v9267_v54, %v4248_v2  ;;  %v4814_v2 = vld [vmem:[#allocation28 + $0x98] sm:$0xff] }
 0xcf1   : > { %v4283_v4 = vadd.f32 %v4279_v57, %v14631_v47  ;;  %v4813_v57 = vld [vmem:[#allocation28 + $0x90] sm:$0xff] }
 0xcf2   : > { %v4282_v6 = vadd.f32 %v4278_v61, %v14633_v60  ;;  %v10215_v56 = vpop.f32.mrb[30].mxu0  ;;  %v11071_v61 = vpack.c.bf16 %v4814_v2, %v4813_v57  ;;  %v5009_v2 = vld [vmem:[#allocation31 + $0x60] sm:$0xff] }
 0xcf3   : > { %v4287_v35 = vmax.f32 %v4283_v4, 0.0  ;;  %v4281_v25 = vadd.f32 %v10215_v56, %v9267_v54  ;;  %v4258_v59 = vpop.f32.mrb[31].mxu0  ;;  %v4815_v4 = vld [vmem:[#allocation28 + $0xa0] sm:$0xff] }
 0xcf4   : > { %v4286_v9 = vmax.f32 %v4282_v6, 0.0  ;;  %v4280_v10 = vadd.f32 %v9267_v54, %v4258_v59  ;;  %v4812_v54 = vld [vmem:[#allocation28 + $0x88] sm:$0xff] }
 0xcf5   : > { %v4285_v58 = vadd.f32 %v4281_v25, %v14639_v7  ;;  %v11003_v7 = vpack.c.bf16 %v4375_v3, %v4374_v12  ;;  %v11067_v53 = vpack.c.bf16 %v4812_v54, %v4811_v5  ;;  %v4816_v6 = vld [vmem:[#allocation28 + $0xa8] sm:$0xff]  ;;  %v4818_v25 = vld [vmem:[#allocation28 + $0xb8] sm:$0xff] }
 0xcf6   : > { %v14706_v11 = vpack.c.bf16 %v4287_v35, %v4286_v9  ;;  %v4284_v14 = vadd.f32 %v4280_v10, %v14641_v0  ;;  %v4377_v0 = vld [vmem:[#allocation25 + $0x18] sm:$0xff]  ;;  %v11075_v56 = vpack.c.bf16 %v4816_v6, %v4815_v4 }
 0xcf7   : > { %v4289_v23 = vmax.f32 %v4285_v58, 0.0  ;;  %v11007_v55 = vpack.c.bf16 %v4377_v0, %v4376_v15  ;;  %v4817_v35 = vld [vmem:[#allocation28 + $0xb0] sm:$0xff] }
 0xcf8   : > { %v4288_v47 = vmax.f32 %v4284_v14, 0.0  ;;  %10996 = vmatprep.subr.bf16.mxu1 %v14706_v11  ;;  %11020 = vmatprep.subr.bf16.mxu0 %v14706_v11  ;;  %v11079_v59 = vpack.c.bf16 %v4818_v25, %v4817_v35  ;;  %v14735_v58 = vld [vmem:[#allocation6] sm:$0xff]  ;;  %v9283_v14 = vld [vmem:[#allocation30] ss:$0 sm:$0xff]  ;;  %v5265_v25 = vld [vmem:[#allocation31 + $0x100] sm:$0xff] }
 0xcf9   : > { %10998 = vmatpush3.bf16.msra.mxu1 %v14706_v11  ;;  %11022 = vmatpush3.bf16.msra.mxu0 %v14706_v11  ;;  %v5016_v0 = vld [vmem:[#allocation31 + $0x90] sm:$0xff] }
 0xcfa   : > { %v14713_v60 = vpack.c.bf16 %v4289_v23, %v4288_v47  ;;  %v5014_v47 = vld [vmem:[#allocation31 + $0x80] sm:$0xff]  ;;  %v5007_v54 = vld [vmem:[#allocation31 + $0x50] sm:$0xff] }
 0xcfb   : > { %v5011_v6 = vld [vmem:[#allocation31 + $0x70] sm:$0xff] }
 0xcfc   : > { %11000 = vmatprep.subr.bf16.mxu1 %v14713_v60  ;;  %11024 = vmatprep.subr.bf16.mxu0 %v14713_v60 }
 0xcfd   : > { %11002 = vmatpush3.bf16.msra.mxu1 %v14713_v60  ;;  %11026 = vmatpush3.bf16.msra.mxu0 %v14713_v60 }
 0xcfe   : > { %11004 = vmatprep.subr.bf16.mxu1 %v11003_v7  ;;  %11028 = vmatprep.subr.bf16.mxu0 %v11027_v40 }
 0xd00   : > { %10225 = vmatmul.mubr.msk.f32.vlgmr.msra.gmra.mrb[24].mxu1 %vm2227_vm4, %v4292_v32  ;;  %10255 = vmatmul.mubr.msk.f32.vlgmr.msra.gmra.mrb[32].mxu0 %vm2227_vm4, %v4471_v8  ;;  %v14748_v32 = vld [vmem:[#allocation6 + $0x28] sm:$0xff]  ;;  %v11091_v8 = vpack.c.bf16 %v5017_v22, %v5016_v0  ;;  %v5273_v22 = vld [vmem:[#allocation31 + $0x140] sm:$0xff] }
 0xd01   : > { %11006 = vmatpush3.bf16.msra.mxu1 %v11003_v7  ;;  %11030 = vmatpush3.bf16.msra.mxu0 %v11027_v40 }
 0xd02   : > { %11008 = vmatprep.subr.bf16.mxu1 %v11007_v55  ;;  %11032 = vmatprep.subr.bf16.mxu0 %v11031_v27 }
 0xd05   : > { %11010 = vmatpush3.bf16.msra.mxu1 %v11007_v55  ;;  %11034 = vmatpush3.bf16.msra.mxu0 %v11031_v27  ;;  %v5018_v55 = vld [vmem:[#allocation31 + $0xa0] sm:$0xff] }
 0xd06   : > { %11012 = vmatprep.subr.bf16.mxu1 %v11011_v13  ;;  %11036 = vmatprep.subr.bf16.mxu0 %v11035_v19  ;;  %v11095_v27 = vpack.c.bf16 %v5019_v26, %v5018_v55  ;;  %v5275_v26 = vld [vmem:[#allocation31 + $0x150] sm:$0xff] }
 0xd09   : > { %11014 = vmatpush3.bf16.msra.mxu1 %v11011_v13  ;;  %11038 = vmatpush3.bf16.msra.mxu0 %v11035_v19  ;;  %v5022_v13 = vld [vmem:[#allocation31 + $0xc0] sm:$0xff] }
 0xd0a   : > { %11016 = vmatprep.subr.bf16.mxu1 %v11015_v31  ;;  %11040 = vmatprep.subr.bf16.mxu0 %v11039_v30  ;;  %v11103_v19 = vpack.c.bf16 %v5023_v1, %v5022_v13  ;;  %v5279_v1 = vld [vmem:[#allocation31 + $0x170] sm:$0xff] }
 0xd0d   : > { %11018 = vmatpush3.bf16.msra.mxu1 %v11015_v31  ;;  %11042 = vmatpush3.bf16.msra.mxu0 %v11039_v30  ;;  %v5026_v31 = vld [vmem:[#allocation31 + $0xe0] sm:$0xff]  ;;  %v5027_v30 = vld [vmem:[#allocation31 + $0xe8] sm:$0xff] }
 0xd0e   : > { %11060 = vmatprep.subr.bf16.mxu1 %v14706_v11  ;;  %11044 = vmatprep.subr.bf16.mxu0 %v11043_v50  ;;  %v11111_v33 = vpack.c.bf16 %v5027_v30, %v5026_v31  ;;  %v9288_v31 = vld [vmem:[#allocation33] ss:$0 sm:$0xff] }
 0xdd3   : > { %v10226_v36 = vpop.f32.mrb[24].mxu1  ;;  %v10256_v38 = vpop.f32.mrb[32].mxu0 }
 0xdd4   : > { %v4365_v39 = vpop.f32.mrb[25].mxu1  ;;  %v4544_v42 = vpop.f32.mrb[33].mxu0 }
 0xdd5   : > { %10243 = vmatprep.mubr.msk.f32.mxu1 %vm2342_vm5, %v4365_v39  ;;  %10273 = vmatprep.mubr.msk.f32.mxu0 %vm2342_vm5, %v4365_v39  ;;  %v4999_v39 = vld [vmem:[#allocation31 + $0x10] sm:$0xff] }
 0xdd6   : > { %10244 = vmatmul.mubr.msk.f32.vlgmr.msra.gmra.mrb[26].mxu1 %vm2342_vm5, %v10226_v36  ;;  %10274 = vmatmul.mubr.msk.f32.vlgmr.msra.gmra.mrb[34].mxu0 %vm2342_vm5, %v10226_v36  ;;  %v4998_v36 = vld [vmem:[#allocation31 + $0x8] sm:$0xff] }
 0xdd7   : > { %11062 = vmatpush3.bf16.msra.mxu1 %v14706_v11  ;;  %10303 = vmatprep.mubr.msk.f32.mxu1 %vm2227_vm4, %v4727_v41  ;;  %v14739_v11 = vld [vmem:[#allocation6 + $0x20] sm:$0xff]  ;;  %v5000_v41 = vld [vmem:[#allocation31 + $0x18] sm:$0xff] }
 0xdd8   : > { %11064 = vmatprep.subr.bf16.mxu1 %v14713_v60  ;;  %11046 = vmatpush3.bf16.msra.mxu0 %v11043_v50  ;;  %v5029_v50 = vld [vmem:[#allocation31 + $0xf8] sm:$0xff] }
 0xdd9   : > { %11048 = vmatprep.subr.bf16.mxu0 %v11047_v45  ;;  %10292 = vmatprep.mubr.msk.f32.mxu0 %vm2342_vm5, %v4544_v42  ;;  %v11115_v34 = vpack.c.bf16 %v5029_v50, %v5028_v44  ;;  %v11123_v42 = vpack.c.bf16 %v5000_v41, %v4999_v39 }
 0xddb   : > { %11066 = vmatpush3.bf16.msra.mxu1 %v14713_v60  ;;  %v5015_v60 = vld [vmem:[#allocation31 + $0x88] sm:$0xff] }
 0xddc   : > { %11050 = vmatpush3.bf16.msra.mxu0 %v11047_v45  ;;  %v11087_v40 = vpack.c.bf16 %v5015_v60, %v5014_v47  ;;  %v5001_v45 = vld [vmem:[#allocation31 + $0x20] sm:$0xff]  ;;  %v5270_v60 = vld [vmem:[#allocation31 + $0x128] sm:$0xff] }
 0xddd   : > { %11052 = vmatprep.subr.bf16.mxu0 %v11051_v48  ;;  %v11127_v46 = vpack.c.bf16 %v5002_v43, %v5001_v45  ;;  %v5269_v47 = vld [vmem:[#allocation31 + $0x120] sm:$0xff]  ;;  %v5465_v45 = vld [vmem:[#allocation34 + $0x90] sm:$0xff] }
 0xdde   : > { %10304 = vmatmul.mubr.msk.f32.vlgmr.msra.gmra.mrb[28].mxu1 %vm2227_vm4, %v4728_v37  ;;  %v5005_v37 = vld [vmem:[#allocation31 + $0x40] sm:$0xff] }
 0xddf   : > { %10329 = vmatprep.mubr.msk.f32.mxu1 %vm4915_vm6, %v14735_v58  ;;  %v5466_v43 = vld [vmem:[#allocation34 + $0x98] sm:$0xff] }
 0xde0   : > { %11054 = vmatpush3.bf16.msra.mxu0 %v11051_v48  ;;  %v5003_v48 = vld [vmem:[#allocation31 + $0x30] sm:$0xff] }
 0xde1   : > { %11056 = vmatprep.subr.bf16.mxu0 %v11055_v52  ;;  %v11131_v51 = vpack.c.bf16 %v5004_v49, %v5003_v48  ;;  %v5467_v48 = vld [vmem:[#allocation34 + $0xa0] sm:$0xff]  ;;  %v5468_v49 = vld [vmem:[#allocation34 + $0xa8] sm:$0xff] }
 0xde4   : > { %11058 = vmatpush3.bf16.msra.mxu0 %v11055_v52  ;;  %v5006_v52 = vld [vmem:[#allocation31 + $0x48] sm:$0xff] }
 0xde5   : > { %11068 = vmatprep.subr.bf16.mxu0 %v11067_v53  ;;  %v11135_v5 = vpack.c.bf16 %v5006_v52, %v5005_v37  ;;  %v5469_v37 = vld [vmem:[#allocation34 + $0xb0] sm:$0xff]  ;;  %v5470_v52 = vld [vmem:[#allocation34 + $0xb8] sm:$0xff] }
 0xde7   : > { %10293 = vmatmul.mubr.msk.f32.vlgmr.msra.gmra.mrb[34].mxu0 %vm2342_vm5, %v10256_v38  ;;  %v11119_v38 = vpack.c.bf16 %v4998_v36, %v4997_v17  ;;  %v5463_v36 = vld [vmem:[#allocation34 + $0x80] sm:$0xff] }
 0xde8   : > { %11070 = vmatpush3.bf16.msra.mxu0 %v11067_v53  ;;  %v5008_v53 = vld [vmem:[#allocation31 + $0x58] sm:$0xff] }
 0xde9   : > { %11072 = vmatprep.subr.bf16.mxu0 %v11071_v61  ;;  %v11139_v57 = vpack.c.bf16 %v5008_v53, %v5007_v54  ;;  %v5471_v54 = vld [vmem:[#allocation34 + $0xc0] sm:$0xff]  ;;  %v5472_v53 = vld [vmem:[#allocation34 + $0xc8] sm:$0xff] }
 0xdec   : > { %11074 = vmatpush3.bf16.msra.mxu0 %v11071_v61  ;;  %v5010_v61 = vld [vmem:[#allocation31 + $0x68] sm:$0xff] }
 0xded   : > { %11076 = vmatprep.subr.bf16.mxu0 %v11075_v56  ;;  %v11143_v4 = vpack.c.bf16 %v5010_v61, %v5009_v2  ;;  %v5473_v2 = vld [vmem:[#allocation34 + $0xd0] sm:$0xff]  ;;  %v5474_v61 = vld [vmem:[#allocation34 + $0xd8] sm:$0xff] }
 0xdf0   : > { %11078 = vmatpush3.bf16.msra.mxu0 %v11075_v56  ;;  %v5012_v56 = vld [vmem:[#allocation31 + $0x78] sm:$0xff] }
 0xdf1   : > { %11080 = vmatprep.subr.bf16.mxu0 %v11079_v59  ;;  %v11147_v35 = vpack.c.bf16 %v5012_v56, %v5011_v6  ;;  %v5475_v6 = vld [vmem:[#allocation34 + $0xe0] sm:$0xff]  ;;  %v5476_v56 = vld [vmem:[#allocation34 + $0xe8] sm:$0xff] }
 0xdf4   : > { %11082 = vmatpush3.bf16.msra.mxu0 %v11079_v59  ;;  %v5266_v59 = vld [vmem:[#allocation31 + $0x108] sm:$0xff] }
 0xeb1   : > { %v10305_v9 = vpop.f32.mrb[28].mxu1 }
 0xeb2   : > { %v4801_v10 = vpop.f32.mrb[29].mxu1 }
 0xeb3   : > { %10322 = vmatprep.mubr.msk.f32.mxu0 %vm2342_vm5, %v4801_v10  ;;  %v5267_v10 = vld [vmem:[#allocation31 + $0x110] sm:$0xff] }
 0xeb4   : > { %10323 = vmatmul.mubr.msk.f32.vlgmr.msra.gmra.mrb[34].mxu0 %vm2342_vm5, %v10305_v9  ;;  %v11155_v9 = vpack.c.bf16 %v5266_v59, %v5265_v25  ;;  %v5478_v25 = vld [vmem:[#allocation34 + $0xf8] sm:$0xff] }
 0xeb5   : > { %10406 = vmatprep.mubr.msk.f32.mxu0 %vm4915_vm6, %v14739_v11 }
 0xf87   : > { %v10324_v12 = vpop.f32.mrb[34].mxu0 }
 0xf88   : > { %v14743_v23 = vadd.f32 %v10324_v12, %v9283_v14  ;;  %v4891_v3 = vpop.f32.mrb[35].mxu0 }
 0xf89   : > { %v4909_v18 = vadd.f32 %v9283_v14, %v4891_v3  ;;  %v5268_v14 = vld [vmem:[#allocation31 + $0x118] sm:$0xff] }
 0xf8a   : > { %v4912_v21 = vmax.f32 %v14743_v23, 0.0 }
 0xf8b   : > { %v4911_v7 = vmax.f32 %v4909_v18, 0.0  ;;  %v11159_v18 = vpack.c.bf16 %v5268_v14, %v5267_v10  ;;  %v5447_v10 = vld [vmem:[#allocation34 + $0x8] sm:$0xff] }
 0xf8d   : > { %v11083_v15 = vpack.c.bf16 %v4912_v21, %v4911_v7 }
 0xf8f   : > { %11084 = vmatprep.subr.bf16.mxu1 %v11083_v15  ;;  %11152 = vmatprep.subr.bf16.mxu0 %v11083_v15 }
 0xf90   : > { %11086 = vmatpush3.bf16.msra.mxu1 %v11083_v15  ;;  %11154 = vmatpush3.bf16.msra.mxu0 %v11083_v15  ;;  %v5271_v15 = vld [vmem:[#allocation31 + $0x130] sm:$0xff] }
 0xf91   : > { %11088 = vmatprep.subr.bf16.mxu1 %v11087_v40 }
 0xf93   : > { %10330 = vmatmul.mubr.msk.f32.vlgmr.msra.gmra.mrb[30].mxu1 %vm4915_vm6, %v14746_v24  ;;  %10407 = vmatmul.mubr.msk.f32.vlgmr.msra.gmra.mrb[36].mxu0 %vm4915_vm6, %v14748_v32 }
 0xf94   : > { %11090 = vmatpush3.bf16.msra.mxu1 %v11087_v40  ;;  %10364 = vmatprep.mubr.f32.mxu1 %v4911_v7  ;;  %v11163_v7 = vpack.c.bf16 %v5270_v60, %v5269_v47  ;;  %v5272_v40 = vld [vmem:[#allocation31 + $0x138] sm:$0xff] }
 0xf95   : > { %11092 = vmatprep.subr.bf16.mxu1 %v11091_v8  ;;  %10448 = vmatprep.mubr.msk.f32.mxu0 %vm4915_vm6, %v14735_v58  ;;  %v11167_v0 = vpack.c.bf16 %v5272_v40, %v5271_v15  ;;  %v5452_v60 = vld [vmem:[#allocation34 + $0x30] sm:$0xff]  ;;  %v5454_v40 = vld [vmem:[#allocation34 + $0x40] sm:$0xff] }
 0xf98   : > { %11094 = vmatpush3.bf16.msra.mxu1 %v11091_v8  ;;  %v5274_v8 = vld [vmem:[#allocation31 + $0x148] sm:$0xff] }
 0xf99   : > { %11096 = vmatprep.subr.bf16.mxu1 %v11095_v27  ;;  %v11171_v55 = vpack.c.bf16 %v5274_v8, %v5273_v22  ;;  %v5456_v8 = vld [vmem:[#allocation34 + $0x50] sm:$0xff] }
 0xf9c   : > { %11098 = vmatpush3.bf16.msra.mxu1 %v11095_v27  ;;  %v5276_v27 = vld [vmem:[#allocation31 + $0x158] sm:$0xff] }
 0xf9d   : > { %11100 = vmatprep.subr.bf16.mxu1 %v11099_v16  ;;  %v11175_v20 = vpack.c.bf16 %v5276_v27, %v5275_v26  ;;  %v5458_v27 = vld [vmem:[#allocation34 + $0x60] sm:$0xff] }
 0xfa0   : > { %11102 = vmatpush3.bf16.msra.mxu1 %v11099_v16  ;;  %v5278_v16 = vld [vmem:[#allocation31 + $0x168] sm:$0xff] }
 0xfa1   : > { %11104 = vmatprep.subr.bf16.mxu1 %v11103_v19  ;;  %v11179_v13 = vpack.c.bf16 %v5278_v16, %v5277_v28  ;;  %v5460_v16 = vld [vmem:[#allocation34 + $0x70] sm:$0xff] }
 0xfa4   : > { %11106 = vmatpush3.bf16.msra.mxu1 %v11103_v19  ;;  %v5280_v19 = vld [vmem:[#allocation31 + $0x178] sm:$0xff] }
 0xfa5   : > { %11108 = vmatprep.subr.bf16.mxu1 %v11107_v29  ;;  %v11183_v63 = vpack.c.bf16 %v5280_v19, %v5279_v1  ;;  %v5705_v19 = vld [vmem:[#allocation34 + $0x100] sm:$0xff] }
 0xfa8   : > { %11110 = vmatpush3.bf16.msra.mxu1 %v11107_v29 }
 0xfa9   : > { %11112 = vmatprep.subr.bf16.mxu1 %v11111_v33 }
 0xfac   : > { %11114 = vmatpush3.bf16.msra.mxu1 %v11111_v33 }
 0xfad   : > { %11116 = vmatprep.subr.bf16.mxu1 %v11115_v34 }
 0xfb0   : > { %11118 = vmatpush3.bf16.msra.mxu1 %v11115_v34 }
 0xfb1   : > { %11120 = vmatprep.subr.bf16.mxu1 %v11119_v38 }
 0xfb3   : > { %10365 = vmatmul.mubr.f32.vlgmr.msra.gmra.mrb[26].mxu1 %v4912_v21 }
 0xfb4   : > { %11122 = vmatpush3.bf16.msra.mxu1 %v11119_v38  ;;  %v5464_v38 = vld [vmem:[#allocation34 + $0x88] sm:$0xff] }
 0xfb5   : > { %11124 = vmatprep.subr.bf16.mxu1 %v11123_v42 }
 0xfb8   : > { %11126 = vmatpush3.bf16.msra.mxu1 %v11123_v42  ;;  %v11191_v42 = vpack.c.bf16 %v5464_v38, %v5463_v36  ;;  %v5709_v36 = vld [vmem:[#allocation34 + $0x120] sm:$0xff]  ;;  %v5710_v38 = vld [vmem:[#allocation34 + $0x128] sm:$0xff] }
 0xfb9   : > { %11128 = vmatprep.subr.bf16.mxu1 %v11127_v46 }
 0xfbc   : > { %11130 = vmatpush3.bf16.msra.mxu1 %v11127_v46  ;;  %v11195_v46 = vpack.c.bf16 %v5466_v43, %v5465_v45  ;;  %v5712_v45 = vld [vmem:[#allocation34 + $0x138] sm:$0xff] }
 0xfbd   : > { %11132 = vmatprep.subr.bf16.mxu1 %v11131_v51 }
 0xfc0   : > { %11134 = vmatpush3.bf16.msra.mxu1 %v11131_v51  ;;  %v11199_v51 = vpack.c.bf16 %v5468_v49, %v5467_v48  ;;  %v5714_v48 = vld [vmem:[#allocation34 + $0x148] sm:$0xff] }
 0xfc1   : > { %11136 = vmatprep.subr.bf16.mxu1 %v11135_v5 }
 0xfc4   : > { %11138 = vmatpush3.bf16.msra.mxu1 %v11135_v5  ;;  %v11203_v5 = vpack.c.bf16 %v5470_v52, %v5469_v37  ;;  %v5716_v37 = vld [vmem:[#allocation34 + $0x158] sm:$0xff] }
 0xfc5   : > { %11140 = vmatprep.subr.bf16.mxu1 %v11139_v57 }
 0xfc8   : > { %11142 = vmatpush3.bf16.msra.mxu1 %v11139_v57  ;;  %v11207_v57 = vpack.c.bf16 %v5472_v53, %v5471_v54  ;;  %v5718_v54 = vld [vmem:[#allocation34 + $0x168] sm:$0xff] }
 0xfc9   : > { %11144 = vmatprep.subr.bf16.mxu1 %v11143_v4 }
 0xfcc   : > { %11146 = vmatpush3.bf16.msra.mxu1 %v11143_v4  ;;  %v11211_v4 = vpack.c.bf16 %v5474_v61, %v5473_v2  ;;  %v5720_v2 = vld [vmem:[#allocation34 + $0x178] sm:$0xff] }
 0xfcd   : > { %11148 = vmatprep.subr.bf16.mxu1 %v11147_v35 }
 0xfd0   : > { %11150 = vmatpush3.bf16.msra.mxu1 %v11147_v35  ;;  %v5477_v35 = vld [vmem:[#allocation34 + $0xf0] sm:$0xff] }
 0xfd1   : > { %11156 = vmatprep.subr.bf16.mxu1 %v11155_v9  ;;  %v11219_v59 = vpack.c.bf16 %v5478_v25, %v5477_v35 }
0x1066   : > { %v10331_v12 = vpop.f32.mrb[30].mxu1  ;;  %v10408_v23 = vpop.f32.mrb[36].mxu0 }
0x1067   : > { %v4988_v3 = vpop.f32.mrb[31].mxu1  ;;  %v5255_v21 = vpop.f32.mrb[37].mxu0 }
0x1068   : > { %10399 = vmatprep.mubr.f32.mxu1 %v4988_v3 }
0x1069   : > { %10400 = vmatmul.mubr.f32.vlgmr.msra.gmra.mrb[26].mxu1 %v10331_v12  ;;  %v5448_v12 = vld [vmem:[#allocation34 + $0x10] sm:$0xff] }
0x106a   : > { %11158 = vmatpush3.bf16.msra.mxu1 %v11155_v9  ;;  %10441 = vmatprep.mubr.f32.mxu1 %v5255_v21  ;;  %v5446_v9 = vld [vmem:[#allocation34] sm:$0xff]  ;;  %v5451_v21 = vld [vmem:[#allocation34 + $0x28] sm:$0xff] }
0x106b   : > { %11160 = vmatprep.subr.bf16.mxu1 %v11159_v18  ;;  %v11223_v14 = vpack.c.bf16 %v5447_v10, %v5446_v9  ;;  %v5902_v9 = vld [vmem:[#allocation37 + $0x88] sm:$0xff] }
0x106e   : > { %11162 = vmatpush3.bf16.msra.mxu1 %v11159_v18  ;;  %v5450_v18 = vld [vmem:[#allocation34 + $0x20] sm:$0xff] }
0x106f   : > { %11164 = vmatprep.subr.bf16.mxu1 %v11163_v7  ;;  %v11231_v47 = vpack.c.bf16 %v5451_v21, %v5450_v18  ;;  %v5906_v21 = vld [vmem:[#allocation37 + $0xa8] sm:$0xff] }
0x1072   : > { %11166 = vmatpush3.bf16.msra.mxu1 %v11163_v7  ;;  %v5453_v7 = vld [vmem:[#allocation34 + $0x38] sm:$0xff] }
0x1073   : > { %11168 = vmatprep.subr.bf16.mxu1 %v11167_v0  ;;  %v11235_v15 = vpack.c.bf16 %v5453_v7, %v5452_v60  ;;  %v5907_v60 = vld [vmem:[#allocation37 + $0xb0] sm:$0xff]  ;;  %v5908_v7 = vld [vmem:[#allocation37 + $0xb8] sm:$0xff] }
0x1076   : > { %11170 = vmatpush3.bf16.msra.mxu1 %v11167_v0  ;;  %v5455_v0 = vld [vmem:[#allocation34 + $0x48] sm:$0xff] }
0x1077   : > { %11172 = vmatprep.subr.bf16.mxu1 %v11171_v55  ;;  %v11239_v22 = vpack.c.bf16 %v5455_v0, %v5454_v40  ;;  %v5909_v40 = vld [vmem:[#allocation37 + $0xc0] sm:$0xff]  ;;  %v5910_v0 = vld [vmem:[#allocation37 + $0xc8] sm:$0xff] }
0x107a   : > { %11174 = vmatpush3.bf16.msra.mxu1 %v11171_v55  ;;  %v5457_v55 = vld [vmem:[#allocation34 + $0x58] sm:$0xff] }
0x107b   : > { %11176 = vmatprep.subr.bf16.mxu1 %v11175_v20  ;;  %v11243_v26 = vpack.c.bf16 %v5457_v55, %v5456_v8  ;;  %v5911_v8 = vld [vmem:[#allocation37 + $0xd0] sm:$0xff]  ;;  %v5912_v55 = vld [vmem:[#allocation37 + $0xd8] sm:$0xff] }
0x107e   : > { %11178 = vmatpush3.bf16.msra.mxu1 %v11175_v20  ;;  %v5459_v20 = vld [vmem:[#allocation34 + $0x68] sm:$0xff] }
0x107f   : > { %11180 = vmatprep.subr.bf16.mxu1 %v11179_v13  ;;  %v11247_v28 = vpack.c.bf16 %v5459_v20, %v5458_v27  ;;  %v5915_v20 = vld [vmem:[#allocation37 + $0xf0] sm:$0xff] }
0x1082   : > { %11182 = vmatpush3.bf16.msra.mxu1 %v11179_v13  ;;  %v5461_v13 = vld [vmem:[#allocation34 + $0x78] sm:$0xff] }
0x1083   : > { %11184 = vmatprep.subr.bf16.mxu1 %v11183_v63  ;;  %v11251_v1 = vpack.c.bf16 %v5461_v13, %v5460_v16  ;;  %v5884_v13 = vld [vmem:[#allocation37] sm:$0xff] }
0x1086   : > { %11186 = vmatpush3.bf16.msra.mxu1 %v11183_v63  ;;  %v5706_v63 = vld [vmem:[#allocation34 + $0x108] sm:$0xff] }
0x1089   : > { %10442 = vmatmul.mubr.f32.vlgmr.msra.gmra.mrb[26].mxu1 %v10408_v23  ;;  %v5449_v23 = vld [vmem:[#allocation34 + $0x18] sm:$0xff] }
0x108a   : > { %10525 = vmatprep.mubr.msk.f32.mxu1 %vm4915_vm6, %v14739_v11  ;;  %v11227_v3 = vpack.c.bf16 %v5449_v23, %v5448_v12  ;;  %v5903_v23 = vld [vmem:[#allocation37 + $0x90] sm:$0xff] }
0x115c   : > { %v10443_v29 = vpop.f32.mrb[26].mxu1 }
0x115d   : > { %v12108_v30 = vadd.f32 %v10443_v29, %v9270_v62  ;;  %v5347_v33 = vpop.f32.mrb[27].mxu1  ;;  %v5707_v29 = vld [vmem:[#allocation34 + $0x110] sm:$0xff] }
0x115e   : > { %v12110_v44 = vadd.f32 %v9270_v62, %v5347_v33  ;;  %v11259_v62 = vpack.c.bf16 %v5706_v63, %v5705_v19  ;;  %v5886_v63 = vld [vmem:[#allocation37 + $0x10] sm:$0xff] }
0x115f   : > { %v12109_v50 = vadd.f32 %v12108_v30, %v9288_v31 }
0x1160   : > { %v12111_v34 = vadd.f32 %v12110_v44, %v9288_v31  ;;  %v5708_v31 = vld [vmem:[#allocation34 + $0x118] sm:$0xff] }
0x1161   : > { %v14758_v17 = vmax.f32 %v12109_v50, 0.0  ;;  %v11263_v50 = vpack.c.bf16 %v5708_v31, %v5707_v29  ;;  %v5888_v31 = vld [vmem:[#allocation37 + $0x20] sm:$0xff] }
0x1162   : > { %v14760_v39 = vmax.f32 %v12111_v34, 0.0 }
0x1164   : > { %v11187_v41 = vpack.c.bf16 %v14758_v17, %v14760_v39 }
0x1166   : > { %11188 = vmatprep.subr.bf16.mxu0 %v11187_v41  ;;  %11256 = vmatprep.subr.bf16.mxu1 %v11187_v41 }
0x1167   : > { %11190 = vmatpush3.bf16.msra.mxu0 %v11187_v41  ;;  %11258 = vmatpush3.bf16.msra.mxu1 %v11187_v41  ;;  %v11267_v41 = vpack.c.bf16 %v5710_v38, %v5709_v36  ;;  %v5892_v36 = vld [vmem:[#allocation37 + $0x40] sm:$0xff]  ;;  %v5893_v38 = vld [vmem:[#allocation37 + $0x48] sm:$0xff] }
0x1168   : > { %11192 = vmatprep.subr.bf16.mxu0 %v11191_v42 }
0x116a   : > { %10449 = vmatmul.mubr.msk.f32.vlgmr.msra.gmra.mrb[38].mxu0 %vm4915_vm6, %v14746_v24  ;;  %10526 = vmatmul.mubr.msk.f32.vlgmr.msra.gmra.mrb[32].mxu1 %vm4915_vm6, %v14748_v32 }
0x116b   : > { %11194 = vmatpush3.bf16.msra.mxu0 %v11191_v42  ;;  %10483 = vmatprep.mubr.f32.mxu0 %v14760_v39  ;;  %v5711_v42 = vld [vmem:[#allocation34 + $0x130] sm:$0xff] }
0x116c   : > { %11196 = vmatprep.subr.bf16.mxu0 %v11195_v46  ;;  %10567 = vmatprep.mubr.msk.f32.mxu1 %vm4915_vm6, %v14735_v58  ;;  %v11215_v58 = vpack.c.bf16 %v5476_v56, %v5475_v6  ;;  %v11271_v43 = vpack.c.bf16 %v5712_v45, %v5711_v42  ;;  %v5894_v42 = vld [vmem:[#allocation37 + $0x50] sm:$0xff]  ;;  %v5895_v45 = vld [vmem:[#allocation37 + $0x58] sm:$0xff] }
0x116f   : > { %11198 = vmatpush3.bf16.msra.mxu0 %v11195_v46  ;;  %v5713_v46 = vld [vmem:[#allocation34 + $0x140] sm:$0xff] }
0x1170   : > { %11200 = vmatprep.subr.bf16.mxu0 %v11199_v51  ;;  %v11275_v49 = vpack.c.bf16 %v5714_v48, %v5713_v46  ;;  %v5896_v46 = vld [vmem:[#allocation37 + $0x60] sm:$0xff]  ;;  %v5897_v48 = vld [vmem:[#allocation37 + $0x68] sm:$0xff] }
0x1173   : > { %11202 = vmatpush3.bf16.msra.mxu0 %v11199_v51  ;;  %v5715_v51 = vld [vmem:[#allocation34 + $0x150] sm:$0xff] }
0x1174   : > { %11204 = vmatprep.subr.bf16.mxu0 %v11203_v5  ;;  %v11279_v52 = vpack.c.bf16 %v5716_v37, %v5715_v51  ;;  %v5898_v51 = vld [vmem:[#allocation37 + $0x70] sm:$0xff]  ;;  %v5899_v37 = vld [vmem:[#allocation37 + $0x78] sm:$0xff] }
0x1177   : > { %11206 = vmatpush3.bf16.msra.mxu0 %v11203_v5  ;;  %v5717_v5 = vld [vmem:[#allocation34 + $0x160] sm:$0xff] }
0x1178   : > { %11208 = vmatprep.subr.bf16.mxu0 %v11207_v57  ;;  %v11283_v53 = vpack.c.bf16 %v5718_v54, %v5717_v5  ;;  %v6143_v5 = vld [vmem:[#allocation37 + $0x100] sm:$0xff]  ;;  %v6144_v54 = vld [vmem:[#allocation37 + $0x108] sm:$0xff] }
0x117b   : > { %11210 = vmatpush3.bf16.msra.mxu0 %v11207_v57  ;;  %v5719_v57 = vld [vmem:[#allocation34 + $0x170] sm:$0xff] }
0x117c   : > { %11212 = vmatprep.subr.bf16.mxu0 %v11211_v4  ;;  %v11287_v61 = vpack.c.bf16 %v5720_v2, %v5719_v57  ;;  %v6145_v57 = vld [vmem:[#allocation37 + $0x110] sm:$0xff]  ;;  %v6146_v2 = vld [vmem:[#allocation37 + $0x118] sm:$0xff] }
0x117f   : > { %11214 = vmatpush3.bf16.msra.mxu0 %v11211_v4  ;;  %v9293_v4 = vld [vmem:[#allocation36] ss:$0 sm:$0xff] }
0x1180   : > { %11216 = vmatprep.subr.bf16.mxu0 %v11215_v58 }
0x1183   : > { %11218 = vmatpush3.bf16.msra.mxu0 %v11215_v58 }
0x1184   : > { %11220 = vmatprep.subr.bf16.mxu0 %v11219_v59 }
0x1187   : > { %11222 = vmatpush3.bf16.msra.mxu0 %v11219_v59  ;;  %v5901_v59 = vld [vmem:[#allocation37 + $0x80] sm:$0xff] }
0x1188   : > { %11224 = vmatprep.subr.bf16.mxu0 %v11223_v14  ;;  %v11295_v12 = vpack.c.bf16 %v5902_v9, %v5901_v59  ;;  %v6149_v9 = vld [vmem:[#allocation37 + $0x130] sm:$0xff] }
0x118a   : > { %10484 = vmatmul.mubr.f32.vlgmr.msra.gmra.mrb[40].mxu0 %v14758_v17 }
0x118b   : > { %11226 = vmatpush3.bf16.msra.mxu0 %v11223_v14 }
0x118c   : > { %11228 = vmatprep.subr.bf16.mxu0 %v11227_v3 }
0x118f   : > { %11230 = vmatpush3.bf16.msra.mxu0 %v11227_v3  ;;  %v5904_v3 = vld [vmem:[#allocation37 + $0x98] sm:$0xff] }
0x1190   : > { %11232 = vmatprep.subr.bf16.mxu0 %v11231_v47  ;;  %v11299_v18 = vpack.c.bf16 %v5904_v3, %v5903_v23  ;;  %v6152_v23 = vld [vmem:[#allocation37 + $0x148] sm:$0xff] }
0x1193   : > { %11234 = vmatpush3.bf16.msra.mxu0 %v11231_v47 }
0x1194   : > { %11236 = vmatprep.subr.bf16.mxu0 %v11235_v15 }
0x1197   : > { %11238 = vmatpush3.bf16.msra.mxu0 %v11235_v15  ;;  %v11307_v15 = vpack.c.bf16 %v5908_v7, %v5907_v60  ;;  %v6156_v60 = vld [vmem:[#allocation37 + $0x168] sm:$0xff] }
0x1198   : > { %11240 = vmatprep.subr.bf16.mxu0 %v11239_v22 }
0x119b   : > { %11242 = vmatpush3.bf16.msra.mxu0 %v11239_v22  ;;  %v11311_v22 = vpack.c.bf16 %v5910_v0, %v5909_v40  ;;  %v6158_v40 = vld [vmem:[#allocation37 + $0x178] sm:$0xff] }
0x119c   : > { %11244 = vmatprep.subr.bf16.mxu0 %v11243_v26 }
0x119f   : > { %11246 = vmatpush3.bf16.msra.mxu0 %v11243_v26  ;;  %v5914_v26 = vld [vmem:[#allocation37 + $0xe8] sm:$0xff] }
0x11a0   : > { %11248 = vmatprep.subr.bf16.mxu0 %v11247_v28 }
0x11a3   : > { %11250 = vmatpush3.bf16.msra.mxu0 %v11247_v28  ;;  %v5916_v28 = vld [vmem:[#allocation37 + $0xf8] sm:$0xff] }
0x11a4   : > { %11252 = vmatprep.subr.bf16.mxu0 %v11251_v1  ;;  %v11323_v16 = vpack.c.bf16 %v5916_v28, %v5915_v20 }
0x11a7   : > { %11254 = vmatpush3.bf16.msra.mxu0 %v11251_v1  ;;  %v5885_v1 = vld [vmem:[#allocation37 + $0x8] sm:$0xff] }
0x11a8   : > { %11260 = vmatprep.subr.bf16.mxu0 %v11259_v62  ;;  %v11327_v19 = vpack.c.bf16 %v5885_v1, %v5884_v13  ;;  %v6327_v13 = vld [vmem:[%s15013_s4 + $0x18] sm:$0xff] }
0x123d   : > { %v10450_v30 = vpop.f32.mrb[38].mxu0  ;;  %v10527_v33 = vpop.f32.mrb[32].mxu1 }
0x123e   : > { %v5437_v44 = vpop.f32.mrb[39].mxu0  ;;  %v5695_v34 = vpop.f32.mrb[33].mxu1 }
0x123f   : > { %10518 = vmatprep.mubr.f32.mxu0 %v5437_v44  ;;  %v5890_v44 = vld [vmem:[#allocation37 + $0x30] sm:$0xff] }
0x1240   : > { %10519 = vmatmul.mubr.f32.vlgmr.msra.gmra.mrb[40].mxu0 %v10450_v30  ;;  %v5889_v30 = vld [vmem:[#allocation37 + $0x28] sm:$0xff] }
0x1241   : > { %11262 = vmatpush3.bf16.msra.mxu0 %v11259_v62  ;;  %10560 = vmatprep.mubr.f32.mxu0 %v5695_v34  ;;  %v5887_v62 = vld [vmem:[#allocation37 + $0x18] sm:$0xff] }
0x1242   : > { %11264 = vmatprep.subr.bf16.mxu0 %v11263_v50  ;;  %v11331_v29 = vpack.c.bf16 %v5887_v62, %v5886_v63  ;;  %v6324_v62 = vld [vmem:[%s15013_s4] sm:$0xff] }
0x1245   : > { %11266 = vmatpush3.bf16.msra.mxu0 %v11263_v50  ;;  %v5891_v50 = vld [vmem:[#allocation37 + $0x38] sm:$0xff] }
0x1246   : > { %11268 = vmatprep.subr.bf16.mxu0 %v11267_v41  ;;  %v11339_v34 = vpack.c.bf16 %v5891_v50, %v5890_v44  ;;  %v6328_v50 = vld [vmem:[%s15013_s4 + $0x20] sm:$0xff] }
0x1249   : > { %11270 = vmatpush3.bf16.msra.mxu0 %v11267_v41  ;;  %v11343_v41 = vpack.c.bf16 %v5893_v38, %v5892_v36  ;;  %v6333_v36 = vld [vmem:[%s15013_s4 + $0x48] sm:$0xff]  ;;  %v6335_v38 = vld [vmem:[%s15013_s4 + $0x58] sm:$0xff] }
0x124a   : > { %11272 = vmatprep.subr.bf16.mxu0 %v11271_v43 }
0x124d   : > { %11274 = vmatpush3.bf16.msra.mxu0 %v11271_v43  ;;  %v11347_v43 = vpack.c.bf16 %v5895_v45, %v5894_v42  ;;  %v11406_v42 = vpack.c.bf16 %v6335_v38, %v6333_v36  ;;  %v6332_v45 = vld [vmem:[%s15013_s4 + $0x40] sm:$0xff]  ;;  %v6563_v38 = vld [vmem:[#allocation42 + $0x188] sm:$0xff] }
0x124e   : > { %11276 = vmatprep.subr.bf16.mxu0 %v11275_v49  ;;  %v6560_v36 = vld [vmem:[#allocation42 + $0x170] sm:$0xff] }
0x1251   : > { %11278 = vmatpush3.bf16.msra.mxu0 %v11275_v49  ;;  %v11351_v49 = vpack.c.bf16 %v5897_v48, %v5896_v46  ;;  %v6337_v46 = vld [vmem:[%s15013_s4 + $0x68] sm:$0xff]  ;;  %v6339_v48 = vld [vmem:[%s15013_s4 + $0x78] sm:$0xff] }
0x1252   : > { %11280 = vmatprep.subr.bf16.mxu0 %v11279_v52 }
0x1255   : > { %11282 = vmatpush3.bf16.msra.mxu0 %v11279_v52  ;;  %v11355_v52 = vpack.c.bf16 %v5899_v37, %v5898_v51  ;;  %v11410_v51 = vpack.c.bf16 %v6339_v48, %v6337_v46  ;;  %v6336_v37 = vld [vmem:[%s15013_s4 + $0x60] sm:$0xff]  ;;  %v6567_v48 = vld [vmem:[#allocation42 + $0x1a8] sm:$0xff] }
0x1256   : > { %11284 = vmatprep.subr.bf16.mxu0 %v11283_v53  ;;  %v6564_v46 = vld [vmem:[#allocation42 + $0x190] sm:$0xff] }
0x1259   : > { %11286 = vmatpush3.bf16.msra.mxu0 %v11283_v53  ;;  %v11363_v53 = vpack.c.bf16 %v6144_v54, %v6143_v5  ;;  %v6341_v5 = vld [vmem:[%s15013_s4 + $0x88] sm:$0xff]  ;;  %v6343_v54 = vld [vmem:[%s15013_s4 + $0x98] sm:$0xff] }
0x125a   : > { %11288 = vmatprep.subr.bf16.mxu0 %v11287_v61 }
0x125d   : > { %11290 = vmatpush3.bf16.msra.mxu0 %v11287_v61 }
0x1260   : > { %10561 = vmatmul.mubr.f32.vlgmr.msra.gmra.mrb[40].mxu0 %v10527_v33  ;;  %v11335_v33 = vpack.c.bf16 %v5889_v30, %v5888_v31  ;;  %v6329_v30 = vld [vmem:[%s15013_s4 + $0x28] sm:$0xff] }
0x1261   : > { %10644 = vmatprep.mubr.msk.f32.mxu0 %vm4915_vm6, %v14739_v11  ;;  %v5905_v11 = vld [vmem:[#allocation37 + $0xa0] sm:$0xff] }
0x1262   : > { %v11303_v47 = vpack.c.bf16 %v5906_v21, %v5905_v11  ;;  %v6154_v11 = vld [vmem:[#allocation37 + $0x158] sm:$0xff] }
0x1333   : > { %v10562_v6 = vpop.f32.mrb[40].mxu0 }
0x1334   : > { %v5806_v56 = vadd.f32 %v10562_v6, %v9293_v4  ;;  %v5787_v58 = vpop.f32.mrb[41].mxu0 }
0x1335   : > { %v5805_v35 = vadd.f32 %v9293_v4, %v5787_v58 }
0x1336   : > { %v5808_v25 = vmax.f32 %v5806_v56, 0.0  ;;  %v11367_v56 = vpack.c.bf16 %v6146_v2, %v6145_v57  ;;  %v11414_v57 = vpack.c.bf16 %v6343_v54, %v6341_v5  ;;  %v6340_v2 = vld [vmem:[%s15013_s4 + $0x80] sm:$0xff]  ;;  %v6571_v54 = vld [vmem:[#allocation42 + $0x1c8] sm:$0xff] }
0x1337   : > { %v5807_v10 = vmax.f32 %v5805_v35, 0.0  ;;  %v6147_v35 = vld [vmem:[#allocation37 + $0x120] sm:$0xff]  ;;  %v6568_v5 = vld [vmem:[#allocation42 + $0x1b0] sm:$0xff] }
0x1339   : > { %v11291_v14 = vpack.c.bf16 %v5808_v25, %v5807_v10 }
0x133b   : > { %11292 = vmatprep.subr.bf16.mxu1 %v11291_v14  ;;  %11360 = vmatprep.subr.bf16.mxu0 %v11291_v14 }
0x133c   : > { %11294 = vmatpush3.bf16.msra.mxu1 %v11291_v14  ;;  %11362 = vmatpush3.bf16.msra.mxu0 %v11291_v14 }
0x133d   : > { %11296 = vmatprep.subr.bf16.mxu1 %v11295_v12 }
0x133f   : > { %10568 = vmatmul.mubr.msk.f32.vlgmr.msra.gmra.mrb[34].mxu1 %vm4915_vm6, %v14746_v24  ;;  %10645 = vmatmul.mubr.msk.f32.vlgmr.msra.gmra.mrb[42].mxu0 %vm4915_vm6, %v14748_v32  ;;  %v11315_v24 = vpack.c.bf16 %v5912_v55, %v5911_v8  ;;  %v5913_v32 = vld [vmem:[#allocation37 + $0xe0] sm:$0xff]  ;;  %v13571_v8 = vmov 0.0  }
0x1340   : > { %11298 = vmatpush3.bf16.msra.mxu1 %v11295_v12  ;;  %10602 = vmatprep.mubr.f32.mxu1 %v5807_v10  ;;  %v11319_v27 = vpack.c.bf16 %v5914_v26, %v5913_v32  ;;  %v6150_v10 = vld [vmem:[#allocation37 + $0x138] sm:$0xff]  ;;  %v6151_v12 = vld [vmem:[#allocation37 + $0x140] sm:$0xff] }
0x1341   : > { %11300 = vmatprep.subr.bf16.mxu1 %v11299_v18  ;;  %v11375_v14 = vpack.c.bf16 %v6150_v10, %v6149_v9  ;;  %v11379_v3 = vpack.c.bf16 %v6152_v23, %v6151_v12  ;;  %10686 = vmatprep.mubr.msk.f32.mxu0 %vm13570_vm7, %v13571_v8  ;;  %v9298_v55 = vld [vmem:[#allocation39] ss:$0 sm:$0xff]  ;;  %v6351_v9 = vld [vmem:[%s15013_s4 + $0xd8] sm:$0xff]  ;;  %v6348_v12 = vld [vmem:[%s15013_s4 + $0xc0] sm:$0xff] }
0x1342   : > { %v6350_v23 = vld [vmem:[%s15013_s4 + $0xd0] sm:$0xff] }
0x1344   : > { %11302 = vmatpush3.bf16.msra.mxu1 %v11299_v18  ;;  %v6153_v18 = vld [vmem:[#allocation37 + $0x150] sm:$0xff] }
0x1345   : > { %11304 = vmatprep.subr.bf16.mxu1 %v11303_v47  ;;  %v11383_v21 = vpack.c.bf16 %v6154_v11, %v6153_v18  ;;  %v6355_v18 = vld [vmem:[%s15013_s4 + $0xf8] sm:$0xff]  ;;  %v11424_v11 = vpack.c.bf16 %v6350_v23, %v6348_v12  ;;  %v6513_v23 = vld [vmem:[#allocation42] sm:$0xff] }
0x1348   : > { %11306 = vmatpush3.bf16.msra.mxu1 %v11303_v47  ;;  %v6155_v47 = vld [vmem:[#allocation37 + $0x160] sm:$0xff] }
0x1349   : > { %11308 = vmatprep.subr.bf16.mxu1 %v11307_v15  ;;  %v11387_v7 = vpack.c.bf16 %v6156_v60, %v6155_v47  ;;  %v6352_v47 = vld [vmem:[%s15013_s4 + $0xe0] sm:$0xff]  ;;  %v6354_v60 = vld [vmem:[%s15013_s4 + $0xf0] sm:$0xff] }
0x134c   : > { %11310 = vmatpush3.bf16.msra.mxu1 %v11307_v15  ;;  %v6157_v15 = vld [vmem:[#allocation37 + $0x170] sm:$0xff] }
0x134d   : > { %11312 = vmatprep.subr.bf16.mxu1 %v11311_v22  ;;  %v11391_v0 = vpack.c.bf16 %v6158_v40, %v6157_v15  ;;  %v6721_v15 = vld [vmem:[#allocation7 + $0x10] sm:$0xff] }
0x134e   : > { %v6547_v40 = vld [vmem:[#allocation42 + $0x108] sm:$0xff] }
0x1350   : > { %11314 = vmatpush3.bf16.msra.mxu1 %v11311_v22  ;;  %v13569_v22 = vmov 0.0|0.0  }
0x1351   : > { %11316 = vmatprep.subr.bf16.mxu1 %v11315_v24  ;;  %11395 = vmatprep.subr.bf16.mxu0 %v13569_v22 }
0x1354   : > { %11318 = vmatpush3.bf16.msra.mxu1 %v11315_v24 }
0x1355   : > { %11320 = vmatprep.subr.bf16.mxu1 %v11319_v27 }
0x1358   : > { %11322 = vmatpush3.bf16.msra.mxu1 %v11319_v27 }
0x1359   : > { %11324 = vmatprep.subr.bf16.mxu1 %v11323_v16 }
0x135c   : > { %11326 = vmatpush3.bf16.msra.mxu1 %v11323_v16  ;;  %v6325_v16 = vld [vmem:[%s15013_s4 + $0x8] sm:$0xff] }
0x135d   : > { %11328 = vmatprep.subr.bf16.mxu1 %v11327_v19  ;;  %v11398_v63 = vpack.c.bf16 %v6327_v13, %v6325_v16 }
0x135f   : > { %10603 = vmatmul.mubr.f32.vlgmr.msra.gmra.mrb[36].mxu1 %v5808_v25  ;;  %v6148_v25 = vld [vmem:[#allocation37 + $0x128] sm:$0xff] }
0x1360   : > { %11330 = vmatpush3.bf16.msra.mxu1 %v11327_v19  ;;  %v11371_v59 = vpack.c.bf16 %v6148_v25, %v6147_v35  ;;  %v6344_v35 = vld [vmem:[%s15013_s4 + $0xa0] sm:$0xff]  ;;  %v6346_v25 = vld [vmem:[%s15013_s4 + $0xb0] sm:$0xff] }
0x1361   : > { %11332 = vmatprep.subr.bf16.mxu1 %v11331_v29  ;;  %v11420_v10 = vpack.c.bf16 %v6346_v25, %v6344_v35  ;;  %v6574_v25 = vld [vmem:[#allocation42 + $0x1e0] sm:$0xff] }
0x1364   : > { %11334 = vmatpush3.bf16.msra.mxu1 %v11331_v29  ;;  %v6326_v29 = vld [vmem:[%s15013_s4 + $0x10] sm:$0xff] }
0x1365   : > { %11336 = vmatprep.subr.bf16.mxu1 %v11335_v33 }
0x1368   : > { %11338 = vmatpush3.bf16.msra.mxu1 %v11335_v33  ;;  %v6331_v33 = vld [vmem:[%s15013_s4 + $0x38] sm:$0xff] }
0x1369   : > { %11340 = vmatprep.subr.bf16.mxu1 %v11339_v34  ;;  %v11402_v44 = vpack.c.bf16 %v6331_v33, %v6329_v30  ;;  %v6556_v33 = vld [vmem:[#allocation42 + $0x150] sm:$0xff] }
0x136c   : > { %11342 = vmatpush3.bf16.msra.mxu1 %v11339_v34  ;;  %v6330_v34 = vld [vmem:[%s15013_s4 + $0x30] sm:$0xff] }
0x136d   : > { %11344 = vmatprep.subr.bf16.mxu1 %v11343_v41 }
0x1370   : > { %11346 = vmatpush3.bf16.msra.mxu1 %v11343_v41  ;;  %v11404_v41 = vpack.c.bf16 %v6330_v34, %v6328_v50  ;;  %v6558_v34 = vld [vmem:[#allocation42 + $0x160] sm:$0xff] }
0x1371   : > { %11348 = vmatprep.subr.bf16.mxu1 %v11347_v43 }
0x1374   : > { %11350 = vmatpush3.bf16.msra.mxu1 %v11347_v43  ;;  %v6334_v43 = vld [vmem:[%s15013_s4 + $0x50] sm:$0xff] }
0x1375   : > { %11352 = vmatprep.subr.bf16.mxu1 %v11351_v49 }
0x1378   : > { %11354 = vmatpush3.bf16.msra.mxu1 %v11351_v49  ;;  %v11408_v49 = vpack.c.bf16 %v6334_v43, %v6332_v45  ;;  %v6562_v43 = vld [vmem:[#allocation42 + $0x180] sm:$0xff] }
0x1379   : > { %11356 = vmatprep.subr.bf16.mxu1 %v11355_v52 }
0x137c   : > { %11358 = vmatpush3.bf16.msra.mxu1 %v11355_v52  ;;  %v6338_v52 = vld [vmem:[%s15013_s4 + $0x70] sm:$0xff] }
0x137d   : > { %11364 = vmatprep.subr.bf16.mxu1 %v11363_v53 }
0x1412   : > { %v10569_v61 = vpop.f32.mrb[34].mxu1  ;;  %v10646_v4 = vpop.f32.mrb[42].mxu0 }
0x1413   : > { %v5875_v6 = vpop.f32.mrb[35].mxu1  ;;  %v6133_v58 = vpop.f32.mrb[43].mxu0 }
0x1414   : > { %10637 = vmatprep.mubr.f32.mxu1 %v5875_v6  ;;  %v6347_v6 = vld [vmem:[%s15013_s4 + $0xb8] sm:$0xff] }
0x1415   : > { %10638 = vmatmul.mubr.f32.vlgmr.msra.gmra.mrb[36].mxu1 %v10569_v61  ;;  %v6342_v61 = vld [vmem:[%s15013_s4 + $0x90] sm:$0xff] }
0x1416   : > { %11366 = vmatpush3.bf16.msra.mxu1 %v11363_v53  ;;  %10679 = vmatprep.mubr.f32.mxu1 %v6133_v58  ;;  %v11412_v53 = vpack.c.bf16 %v6338_v52, %v6336_v37  ;;  %v6566_v52 = vld [vmem:[#allocation42 + $0x1a0] sm:$0xff] }
0x1417   : > { %11368 = vmatprep.subr.bf16.mxu1 %v11367_v56 }
0x141a   : > { %11370 = vmatpush3.bf16.msra.mxu1 %v11367_v56  ;;  %v11416_v56 = vpack.c.bf16 %v6342_v61, %v6340_v2  ;;  %v6570_v61 = vld [vmem:[#allocation42 + $0x1c0] sm:$0xff] }
0x141b   : > { %11372 = vmatprep.subr.bf16.mxu1 %v11371_v59 }
0x141e   : > { %11374 = vmatpush3.bf16.msra.mxu1 %v11371_v59  ;;  %v6349_v59 = vld [vmem:[%s15013_s4 + $0xc8] sm:$0xff] }
0x141f   : > { %11376 = vmatprep.subr.bf16.mxu1 %v11375_v14 }
0x1422   : > { %11378 = vmatpush3.bf16.msra.mxu1 %v11375_v14  ;;  %v11422_v14 = vpack.c.bf16 %v6351_v9, %v6349_v59  ;;  %v6576_v59 = vld [vmem:[#allocation42 + $0x1f0] sm:$0xff]  ;;  %v6514_v9 = vld [vmem:[#allocation42 + $0x8] sm:$0xff] }
0x1423   : > { %11380 = vmatprep.subr.bf16.mxu1 %v11379_v3 }
0x1426   : > { %11382 = vmatpush3.bf16.msra.mxu1 %v11379_v3  ;;  %v6353_v3 = vld [vmem:[%s15013_s4 + $0xe8] sm:$0xff] }
0x1427   : > { %11384 = vmatprep.subr.bf16.mxu1 %v11383_v21 }
0x142a   : > { %11386 = vmatpush3.bf16.msra.mxu1 %v11383_v21  ;;  %v11426_v21 = vpack.c.bf16 %v6355_v18, %v6353_v3  ;;  %v6515_v3 = vld [vmem:[#allocation42 + $0x10] sm:$0xff]  ;;  %v6518_v18 = vld [vmem:[#allocation42 + $0x28] sm:$0xff] }
0x142b   : > { %11388 = vmatprep.subr.bf16.mxu1 %v11387_v7 }
0x142e   : > { %11390 = vmatpush3.bf16.msra.mxu1 %v11387_v7  ;;  %v11428_v7 = vpack.c.bf16 %v6354_v60, %v6352_v47  ;;  %v6517_v60 = vld [vmem:[#allocation42 + $0x20] sm:$0xff] }
0x142f   : > { %11392 = vmatprep.subr.bf16.mxu1 %v11391_v0 }
0x1432   : > { %11394 = vmatpush3.bf16.msra.mxu1 %v11391_v0  ;;  %v6549_v0 = vld [vmem:[#allocation42 + $0x118] sm:$0xff] }
0x1433   : > { %11497 = vmatprep.subr.bf16.mxu1 %v13569_v22 }
0x1435   : > { %10680 = vmatmul.mubr.f32.vlgmr.msra.gmra.mrb[36].mxu1 %v10646_v4  ;;  %v6345_v4 = vld [vmem:[%s15013_s4 + $0xa8] sm:$0xff] }
0x1436   : > { %10700 = vmatprep.mubr.msk.f32.mxu1 %vm13570_vm7, %v13571_v8  ;;  %v11418_v58 = vpack.c.bf16 %v6347_v6, %v6345_v4  ;;  %v6572_v4 = vld [vmem:[#allocation42 + $0x1d0] sm:$0xff]  ;;  %v6575_v6 = vld [vmem:[#allocation42 + $0x1e8] sm:$0xff] }
0x1508   : > { %v10681_v24 = vpop.f32.mrb[36].mxu1 }
0x1509   : > { %v6244_v32 = vadd.f32 %v10681_v24, %v9298_v55  ;;  %v6225_v26 = vpop.f32.mrb[37].mxu1  ;;  %v6546_v24 = vld [vmem:[#allocation42 + $0x100] sm:$0xff] }
0x150a   : > { %v6243_v27 = vadd.f32 %v9298_v55, %v6225_v26  ;;  %v11433_v55 = vpack.c.bf16 %v6549_v0, %v6547_v40  ;;  %v6524_v40 = vld [vmem:[#allocation42 + $0x58] sm:$0xff] }
0x150b   : > { %v6246_v20 = vadd.f32 %v6244_v32, %v14758_v17  ;;  %v6250_v17 = vld [vmem:[#allocation7 + $0x8] sm:$0xff]  ;;  %v6548_v32 = vld [vmem:[#allocation42 + $0x110] sm:$0xff] }
0x150c   : > { %v6245_v28 = vadd.f32 %v6243_v27, %v14760_v39  ;;  %v11400_v39 = vpack.c.bf16 %v6326_v29, %v6324_v62  ;;  %v6551_v27 = vld [vmem:[#allocation42 + $0x128] sm:$0xff]  ;;  %v11435_v16 = vpack.c.bf16 %v6548_v32, %v6546_v24  ;;  %v6557_v62 = vld [vmem:[#allocation42 + $0x158] sm:$0xff]  ;;  %v6521_v24 = vld [vmem:[#allocation42 + $0x40] sm:$0xff] }
0x150d   : > { %v6248_v1 = vmax.f32 %v6246_v20, 0.0  ;;  %v6553_v20 = vld [vmem:[#allocation42 + $0x138] sm:$0xff]  ;;  %v6523_v32 = vld [vmem:[#allocation42 + $0x50] sm:$0xff] }
0x150e   : > { %v6247_v19 = vmax.f32 %v6245_v28, 0.0  ;;  %v11437_v13 = vpack.c.bf16 %v6553_v20, %v6551_v27  ;;  %v6526_v27 = vld [vmem:[#allocation42 + $0x68] sm:$0xff]  ;;  %v6528_v20 = vld [vmem:[#allocation42 + $0x78] sm:$0xff] }
0x1510   : > { %v14790_v31 = vpack.c.bf16 %v6248_v1, %v6247_v19  ;;  %v6550_v1 = vld [vmem:[#allocation42 + $0x120] sm:$0xff]  ;;  %v6552_v19 = vld [vmem:[#allocation42 + $0x130] sm:$0xff] }
0x1511   : > { %v11439_v29 = vpack.c.bf16 %v6552_v19, %v6550_v1  ;;  %v6530_v1 = vld [vmem:[#allocation42 + $0x88] sm:$0xff]  ;;  %v6532_v19 = vld [vmem:[#allocation42 + $0x98] sm:$0xff] }
0x1512   : > { %11397 = vmatpush3.bf16.msra.mxu0 %v14790_v31  ;;  %11499 = vmatpush3.bf16.msra.mxu1 %v14790_v31 }
0x1513   : > { %11399 = vmatprep.subr.bf16.mxu0 %v11398_v63  ;;  %v6555_v63 = vld [vmem:[#allocation42 + $0x148] sm:$0xff] }
0x1514   : > { %v11441_v30 = vpack.c.bf16 %v6557_v62, %v6555_v63  ;;  %v11481_v63 = vpack.c.bf16 %v6532_v19, %v6530_v1  ;;  %v6529_v62 = vld [vmem:[#allocation42 + $0x80] sm:$0xff]  ;;  %v6818_v1 = vld [vmem:[#allocation42 + $0x2b0] sm:$0xff]  ;;  %v6821_v19 = vld [vmem:[#allocation42 + $0x2c8] sm:$0xff] }
0x1515   : > { %10687 = vmatmul.mubr.msk.f32.vlgmr.msra.gmra.mrb[44].mxu0 %vm4915_vm6, %v6250_v17  ;;  %10701 = vmatmul.mubr.msk.f32.vlgmr.msra.gmra.mrb[38].mxu1 %vm4915_vm6, %v6721_v15  ;;  %v6559_v17 = vld [vmem:[#allocation42 + $0x168] sm:$0xff] }
0x1516   : > { %11401 = vmatpush1.bf16.msra.mxu0 %v11400_v39  ;;  %6432 = vmatprep.mubr.f32.mxu0 %v13571_v8  ;;  %v6561_v39 = vld [vmem:[#allocation42 + $0x178] sm:$0xff]  ;;  %v6522_v15 = vld [vmem:[#allocation42 + $0x48] sm:$0xff] }
0x1517   : > { %11403 = vmatprep.subr.bf16.mxu0 %v11402_v44  ;;  %6986 = vmatprep.mubr.f32.mxu1 %v13571_v8  ;;  %v11445_v50 = vpack.c.bf16 %v6561_v39, %v6559_v17  ;;  %v6533_v39 = vld [vmem:[#allocation42 + $0xa0] sm:$0xff] }
0x151a   : > { %11405 = vmatpush1.bf16.msra.mxu0 %v11404_v41  ;;  %v6565_v41 = vld [vmem:[#allocation42 + $0x198] sm:$0xff] }
0x151b   : > { %11407 = vmatprep.subr.bf16.mxu0 %v11406_v42  ;;  %v11447_v42 = vpack.c.bf16 %v6560_v36, %v6558_v34  ;;  %v11449_v45 = vpack.c.bf16 %v6565_v41, %v6563_v38  ;;  %v6540_v34 = vld [vmem:[#allocation42 + $0xd8] sm:$0xff]  ;;  %v6537_v41 = vld [vmem:[#allocation42 + $0xc0] sm:$0xff] }
0x151e   : > { %11409 = vmatpush1.bf16.msra.mxu0 %v11408_v49  ;;  %v6569_v49 = vld [vmem:[#allocation42 + $0x1b8] sm:$0xff] }
0x151f   : > { %11411 = vmatprep.subr.bf16.mxu0 %v11410_v51  ;;  %v11451_v51 = vpack.c.bf16 %v6564_v46, %v6562_v43  ;;  %v11453_v37 = vpack.c.bf16 %v6569_v49, %v6567_v48  ;;  %v6544_v43 = vld [vmem:[#allocation42 + $0xf8] sm:$0xff]  ;;  %v6541_v49 = vld [vmem:[#allocation42 + $0xe0] sm:$0xff] }
0x1522   : > { %11413 = vmatpush1.bf16.msra.mxu0 %v11412_v53  ;;  %v6573_v53 = vld [vmem:[#allocation42 + $0x1d8] sm:$0xff] }
0x1523   : > { %11415 = vmatprep.subr.bf16.mxu0 %v11414_v57  ;;  %v11455_v57 = vpack.c.bf16 %v6568_v5, %v6566_v52  ;;  %v11457_v2 = vpack.c.bf16 %v6573_v53, %v6571_v54  ;;  %v6797_v52 = vld [vmem:[#allocation42 + $0x208] sm:$0xff]  ;;  %v6799_v5 = vld [vmem:[#allocation42 + $0x218] sm:$0xff] }
0x1524   : > { %v11500_v54 = vpack.c.bf16 %v6799_v5, %v6797_v52  ;;  %v7067_v52 = vld [vmem:[#allocation45 + $0x248] sm:$0xff]  ;;  %v7069_v5 = vld [vmem:[#allocation45 + $0x258] sm:$0xff] }
0x1526   : > { %11417 = vmatpush1.bf16.msra.mxu0 %v11416_v56  ;;  %v6577_v56 = vld [vmem:[#allocation42 + $0x1f8] sm:$0xff] }
0x1527   : > { %11419 = vmatprep.subr.bf16.mxu0 %v11418_v58  ;;  %v11459_v58 = vpack.c.bf16 %v6572_v4, %v6570_v61  ;;  %v11461_v35 = vpack.c.bf16 %v6577_v56, %v6575_v6  ;;  %v6798_v61 = vld [vmem:[#allocation42 + $0x210] sm:$0xff]  ;;  %v6801_v4 = vld [vmem:[#allocation42 + $0x228] sm:$0xff]  ;;  %v6803_v6 = vld [vmem:[#allocation42 + $0x238] sm:$0xff] }
0x152a   : > { %11421 = vmatpush1.bf16.msra.mxu0 %v11420_v10  ;;  %v6516_v10 = vld [vmem:[#allocation42 + $0x18] sm:$0xff] }
0x152b   : > { %11423 = vmatprep.subr.bf16.mxu0 %v11422_v14  ;;  %v11463_v14 = vpack.c.bf16 %v6576_v59, %v6574_v25  ;;  %v11465_v12 = vpack.c.bf16 %v6516_v10, %v6514_v9  ;;  %v6802_v25 = vld [vmem:[#allocation42 + $0x230] sm:$0xff]  ;;  %v6805_v9 = vld [vmem:[#allocation42 + $0x248] sm:$0xff]  ;;  %v6807_v10 = vld [vmem:[#allocation42 + $0x258] sm:$0xff] }
0x152e   : > { %11425 = vmatpush1.bf16.msra.mxu0 %v11424_v11  ;;  %v6520_v11 = vld [vmem:[#allocation42 + $0x38] sm:$0xff] }
0x152f   : > { %11427 = vmatprep.subr.bf16.mxu0 %v11426_v21  ;;  %v11467_v21 = vpack.c.bf16 %v6515_v3, %v6513_v23  ;;  %v11469_v47 = vpack.c.bf16 %v6520_v11, %v6518_v18  ;;  %v11508_v23 = vpack.c.bf16 %v6807_v10, %v6805_v9  ;;  %v6804_v3 = vld [vmem:[#allocation42 + $0x240] sm:$0xff]  ;;  %v6806_v18 = vld [vmem:[#allocation42 + $0x250] sm:$0xff]  ;;  %v6809_v11 = vld [vmem:[#allocation42 + $0x268] sm:$0xff] }
0x1530   : > { %v7077_v9 = vld [vmem:[#allocation45 + $0x298] sm:$0xff] }
0x1532   : > { %11429 = vmatpush1.bf16.msra.mxu0 %v11428_v7  ;;  %v6519_v7 = vld [vmem:[#allocation42 + $0x30] sm:$0xff] }
0x1533   : > { %11430 = vmatprep.subr.bf16.mxu0 %v13569_v22  ;;  %v6439_v22 = vld [vmem:[#allocation7] sm:$0xff]  ;;  %v11471_v0 = vpack.c.bf16 %v6519_v7, %v6517_v60  ;;  %v6808_v7 = vld [vmem:[#allocation42 + $0x260] sm:$0xff] }
0x15e8   : > { %v14827_v26 = vpop.f32.mrb[44].mxu0  ;;  %v14837_v53 = vpop.f32.mrb[38].mxu1 }
0x15e9   : > { %v10688_v28 = vpop.f32.mrb[45].mxu0  ;;  %6433 = vmatmul.mubr.f32.vlgmr.msra.gmra.mrb[46].mxu0 %v14827_v26 }
0x15ea   : > { %11432 = vmatpush3.bf16.msra.mxu0 %v14790_v31  ;;  %10693 = vmatprep.mubr.msk.f32.mxu0 %vm13570_vm7, %v13571_v8  ;;  %v6554_v31 = vld [vmem:[#allocation42 + $0x140] sm:$0xff]  ;;  %v11475_v28 = vpack.c.bf16 %v6523_v32, %v6521_v24 }
0x15eb   : > { %11434 = vmatprep.subr.bf16.mxu0 %v11433_v55  ;;  %v11443_v44 = vpack.c.bf16 %v6556_v33, %v6554_v31  ;;  %v11473_v55 = vpack.c.bf16 %v6524_v40, %v6522_v15  ;;  %v6536_v31 = vld [vmem:[#allocation42 + $0xb8] sm:$0xff]  ;;  %v6810_v15 = vld [vmem:[#allocation42 + $0x270] sm:$0xff]  ;;  %v6813_v40 = vld [vmem:[#allocation42 + $0x288] sm:$0xff] }
0x15ec   : > { %v6812_v32 = vld [vmem:[#allocation42 + $0x280] sm:$0xff] }
0x15ed   : > { %10694 = vmatmul.mubr.msk.f32.vlgmr.msra.gmra.mrb[48].mxu0 %vm4915_vm6, %v6439_v22  ;;  %v11477_v22 = vpack.c.bf16 %v6528_v20, %v6526_v27  ;;  %v6814_v27 = vld [vmem:[#allocation42 + $0x290] sm:$0xff]  ;;  %v6817_v20 = vld [vmem:[#allocation42 + $0x2a8] sm:$0xff] }
0x15ee   : > { %11436 = vmatpush1.bf16.msra.mxu0 %v11435_v16  ;;  %6642 = vmatprep.mubr.f32.mxu0 %v13571_v8  ;;  %v6525_v16 = vld [vmem:[#allocation42 + $0x60] sm:$0xff] }
0x15ef   : > { %11438 = vmatprep.subr.bf16.mxu0 %v11437_v13  ;;  %v6527_v13 = vld [vmem:[#allocation42 + $0x70] sm:$0xff] }
0x15f2   : > { %11440 = vmatpush1.bf16.msra.mxu0 %v11439_v29  ;;  %v6531_v29 = vld [vmem:[#allocation42 + $0x90] sm:$0xff] }
0x15f3   : > { %11442 = vmatprep.subr.bf16.mxu0 %v11441_v30  ;;  %v6534_v30 = vld [vmem:[#allocation42 + $0xa8] sm:$0xff]  ;;  %v11483_v33 = vpack.c.bf16 %v6531_v29, %v6529_v62  ;;  %v6820_v29 = vld [vmem:[#allocation42 + $0x2c0] sm:$0xff] }
0x15f4   : > { %v11485_v17 = vpack.c.bf16 %v6536_v31, %v6534_v30  ;;  %v6822_v30 = vld [vmem:[#allocation42 + $0x2d0] sm:$0xff]  ;;  %v6825_v31 = vld [vmem:[#allocation42 + $0x2e8] sm:$0xff] }
0x15f6   : > { %11444 = vmatpush1.bf16.msra.mxu0 %v11443_v44  ;;  %v6535_v44 = vld [vmem:[#allocation42 + $0xb0] sm:$0xff] }
0x15f7   : > { %11446 = vmatprep.subr.bf16.mxu0 %v11445_v50  ;;  %v6538_v50 = vld [vmem:[#allocation42 + $0xc8] sm:$0xff]  ;;  %v11487_v36 = vpack.c.bf16 %v6535_v44, %v6533_v39  ;;  %v6824_v44 = vld [vmem:[#allocation42 + $0x2e0] sm:$0xff] }
0x15f8   : > { %v11489_v38 = vpack.c.bf16 %v6540_v34, %v6538_v50  ;;  %v6826_v50 = vld [vmem:[#allocation42 + $0x2f0] sm:$0xff] }
0x15f9   : > { %v7059_v34 = vld [vmem:[#allocation45 + $0x208] sm:$0xff] }
0x15fa   : > { %11448 = vmatpush1.bf16.msra.mxu0 %v11447_v42  ;;  %v6539_v42 = vld [vmem:[#allocation42 + $0xd0] sm:$0xff] }
0x15fb   : > { %11450 = vmatprep.subr.bf16.mxu0 %v11449_v45  ;;  %v6542_v45 = vld [vmem:[#allocation42 + $0xe8] sm:$0xff]  ;;  %v11491_v46 = vpack.c.bf16 %v6539_v42, %v6537_v41 }
0x15fc   : > { %v11493_v48 = vpack.c.bf16 %v6544_v43, %v6542_v45  ;;  %v7058_v42 = vld [vmem:[#allocation45 + $0x200] sm:$0xff]  ;;  %v7060_v45 = vld [vmem:[#allocation45 + $0x210] sm:$0xff]  ;;  %v7063_v43 = vld [vmem:[#allocation45 + $0x228] sm:$0xff] }
0x15fe   : > { %11452 = vmatpush1.bf16.msra.mxu0 %v11451_v51  ;;  %v6543_v51 = vld [vmem:[#allocation42 + $0xf0] sm:$0xff] }
0x15ff   : > { %11454 = vmatprep.subr.bf16.mxu0 %v11453_v37  ;;  %v11495_v37 = vpack.c.bf16 %v6543_v51, %v6541_v49  ;;  %v7062_v51 = vld [vmem:[#allocation45 + $0x220] sm:$0xff] }
0x1602   : > { %11456 = vmatpush1.bf16.msra.mxu0 %v11455_v57  ;;  %v10702_v57 = vpop.f32.mrb[39].mxu1 }
0x1603   : > { %11458 = vmatprep.subr.bf16.mxu0 %v11457_v2  ;;  %v6796_v2 = vld [vmem:[#allocation42 + $0x200] sm:$0xff]  ;;  %v11540_v57 = vpack.c.bf16 %v7069_v5, %v7067_v52 }
0x1604   : > { %v11502_v56 = vpack.c.bf16 %v6798_v61, %v6796_v2  ;;  %v7066_v2 = vld [vmem:[#allocation45 + $0x240] sm:$0xff]  ;;  %v7068_v61 = vld [vmem:[#allocation45 + $0x250] sm:$0xff] }
0x1605   : > { %v7106_v5 = vld [vmem:[#allocation45 + $0x380] sm:$0xff] }
0x1606   : > { %11460 = vmatpush1.bf16.msra.mxu0 %v11459_v58  ;;  %v11504_v58 = vpack.c.bf16 %v6803_v6, %v6801_v4  ;;  %v7071_v4 = vld [vmem:[#allocation45 + $0x268] sm:$0xff]  ;;  %v7073_v6 = vld [vmem:[#allocation45 + $0x278] sm:$0xff] }
0x1607   : > { %11462 = vmatprep.subr.bf16.mxu0 %v11461_v35  ;;  %v6800_v35 = vld [vmem:[#allocation42 + $0x220] sm:$0xff] }
0x160a   : > { %11464 = vmatpush1.bf16.msra.mxu0 %v11463_v14 }
0x160b   : > { %11466 = vmatprep.subr.bf16.mxu0 %v11465_v12  ;;  %v11506_v12 = vpack.c.bf16 %v6802_v25, %v6800_v35  ;;  %v7070_v35 = vld [vmem:[#allocation45 + $0x260] sm:$0xff]  ;;  %v7072_v25 = vld [vmem:[#allocation45 + $0x270] sm:$0xff] }
0x160c   : > { %v11546_v10 = vpack.c.bf16 %v7072_v25, %v7070_v35  ;;  %v7117_v35 = vld [vmem:[#allocation45 + $0x3d8] sm:$0xff] }
0x160d   : > { %6643 = vmatmul.mubr.f32.vlgmr.msra.gmra.mrb[50].mxu0 %v14827_v26  ;;  %v11479_v26 = vpack.c.bf16 %v6527_v13, %v6525_v16  ;;  %v6816_v13 = vld [vmem:[#allocation42 + $0x2a0] sm:$0xff] }
0x160e   : > { %11468 = vmatpush1.bf16.msra.mxu0 %v11467_v21  ;;  %6713 = vmatprep.mubr.f32.mxu0 %v13571_v8  ;;  %v6811_v21 = vld [vmem:[#allocation42 + $0x278] sm:$0xff] }
0x160f   : > { %11470 = vmatprep.subr.bf16.mxu0 %v11469_v47  ;;  %v11510_v47 = vpack.c.bf16 %v6806_v18, %v6804_v3  ;;  %v11512_v60 = vpack.c.bf16 %v6811_v21, %v6809_v11  ;;  %v7081_v3 = vld [vmem:[#allocation45 + $0x2b8] sm:$0xff]  ;;  %v7078_v21 = vld [vmem:[#allocation45 + $0x2a0] sm:$0xff] }
0x1612   : > { %11472 = vmatpush1.bf16.msra.mxu0 %v11471_v0  ;;  %v6815_v0 = vld [vmem:[#allocation42 + $0x298] sm:$0xff] }
0x1613   : > { %11474 = vmatprep.subr.bf16.mxu0 %v11473_v55  ;;  %v11514_v55 = vpack.c.bf16 %v6810_v15, %v6808_v7  ;;  %v11516_v24 = vpack.c.bf16 %v6815_v0, %v6813_v40  ;;  %v7085_v7 = vld [vmem:[#allocation45 + $0x2d8] sm:$0xff]  ;;  %v7082_v0 = vld [vmem:[#allocation45 + $0x2c0] sm:$0xff] }
0x1616   : > { %11476 = vmatpush1.bf16.msra.mxu0 %v11475_v28  ;;  %v6819_v28 = vld [vmem:[#allocation42 + $0x2b8] sm:$0xff] }
0x1617   : > { %11478 = vmatprep.subr.bf16.mxu0 %v11477_v22  ;;  %v11518_v22 = vpack.c.bf16 %v6814_v27, %v6812_v32  ;;  %v11520_v16 = vpack.c.bf16 %v6819_v28, %v6817_v20  ;;  %v7089_v32 = vld [vmem:[#allocation45 + $0x2f8] sm:$0xff]  ;;  %v7086_v28 = vld [vmem:[#allocation45 + $0x2e0] sm:$0xff] }
0x161a   : > { %11480 = vmatpush1.bf16.msra.mxu0 %v11479_v26  ;;  %v6823_v26 = vld [vmem:[#allocation42 + $0x2d8] sm:$0xff] }
0x161b   : > { %11482 = vmatprep.subr.bf16.mxu0 %v11481_v63  ;;  %v11522_v63 = vpack.c.bf16 %v6818_v1, %v6816_v13  ;;  %v11524_v62 = vpack.c.bf16 %v6823_v26, %v6821_v19  ;;  %v7093_v13 = vld [vmem:[#allocation45 + $0x318] sm:$0xff]  ;;  %v7090_v26 = vld [vmem:[#allocation45 + $0x300] sm:$0xff] }
0x161e   : > { %11484 = vmatpush1.bf16.msra.mxu0 %v11483_v33  ;;  %v6827_v33 = vld [vmem:[#allocation42 + $0x2f8] sm:$0xff] }
0x161f   : > { %11486 = vmatprep.subr.bf16.mxu0 %v11485_v17  ;;  %v11526_v17 = vpack.c.bf16 %v6822_v30, %v6820_v29  ;;  %v11528_v39 = vpack.c.bf16 %v6827_v33, %v6825_v31  ;;  %v7097_v29 = vld [vmem:[#allocation45 + $0x338] sm:$0xff]  ;;  %v7094_v33 = vld [vmem:[#allocation45 + $0x320] sm:$0xff] }
0x1622   : > { %11488 = vmatpush1.bf16.msra.mxu0 %v11487_v36  ;;  %v7061_v36 = vld [vmem:[#allocation45 + $0x218] sm:$0xff] }
0x1623   : > { %11490 = vmatprep.subr.bf16.mxu0 %v11489_v38  ;;  %v11530_v38 = vpack.c.bf16 %v6826_v50, %v6824_v44  ;;  %v11532_v41 = vpack.c.bf16 %v7061_v36, %v7059_v34  ;;  %v7101_v44 = vld [vmem:[#allocation45 + $0x358] sm:$0xff]  ;;  %v7098_v36 = vld [vmem:[#allocation45 + $0x340] sm:$0xff] }
0x1626   : > { %11492 = vmatpush1.bf16.msra.mxu0 %v11491_v46  ;;  %v7065_v46 = vld [vmem:[#allocation45 + $0x238] sm:$0xff] }
0x1627   : > { %11494 = vmatprep.subr.bf16.mxu0 %v11493_v48  ;;  %v11534_v48 = vpack.c.bf16 %v7060_v45, %v7058_v42  ;;  %v11536_v49 = vpack.c.bf16 %v7065_v46, %v7063_v43  ;;  %v7105_v42 = vld [vmem:[#allocation45 + $0x378] sm:$0xff]  ;;  %v7102_v46 = vld [vmem:[#allocation45 + $0x360] sm:$0xff] }
0x162a   : > { %11496 = vmatpush1.bf16.msra.mxu0 %v11495_v37  ;;  %v7064_v37 = vld [vmem:[#allocation45 + $0x230] sm:$0xff] }
0x162b   : > { %11501 = vmatprep.subr.bf16.mxu0 %v11500_v54  ;;  %v11538_v54 = vpack.c.bf16 %v7064_v37, %v7062_v51  ;;  %v7109_v51 = vld [vmem:[#allocation45 + $0x398] sm:$0xff] }
0x16c0   : > { %v6509_v59 = vpop.f32.mrb[48].mxu0 }
0x16c1   : > { %v10695_v14 = vpop.f32.mrb[49].mxu0  ;;  %6714 = vmatmul.mubr.f32.vlgmr.msra.gmra.mrb[50].mxu0 %v6509_v59  ;;  %v7075_v59 = vld [vmem:[#allocation45 + $0x288] sm:$0xff] }
0x16c2   : > { %11503 = vmatpush1.bf16.msra.mxu0 %v11502_v56  ;;  %6892 = vmatprep.mubr.f32.mxu0 %v13571_v8  ;;  %v11542_v56 = vpack.c.bf16 %v7068_v61, %v7066_v2  ;;  %v7074_v14 = vld [vmem:[#allocation45 + $0x280] sm:$0xff]  ;;  %v7113_v2 = vld [vmem:[#allocation45 + $0x3b8] sm:$0xff] }
0x16c3   : > { %11505 = vmatprep.subr.bf16.mxu0 %v11504_v58  ;;  %v11544_v58 = vpack.c.bf16 %v7073_v6, %v7071_v4  ;;  %v7110_v6 = vld [vmem:[#allocation45 + $0x3a0] sm:$0xff] }
0x16c6   : > { %11507 = vmatpush1.bf16.msra.mxu0 %v11506_v12  ;;  %v7076_v12 = vld [vmem:[#allocation45 + $0x290] sm:$0xff] }
0x16c7   : > { %11509 = vmatprep.subr.bf16.mxu0 %v11508_v23  ;;  %v7079_v23 = vld [vmem:[#allocation45 + $0x2a8] sm:$0xff]  ;;  %v11550_v18 = vpack.c.bf16 %v7076_v12, %v7074_v14  ;;  %v7121_v12 = vld [vmem:[#allocation45 + $0x3f8] sm:$0xff] }
0x16c8   : > { %v11552_v11 = vpack.c.bf16 %v7081_v3, %v7079_v23  ;;  %v7119_v14 = vld [vmem:[#allocation45 + $0x3e8] sm:$0xff]  ;;  %v7118_v3 = vld [vmem:[#allocation45 + $0x3e0] sm:$0xff] }
0x16c9   : > { %v11592_v23 = vpack.c.bf16 %v7121_v12, %v7119_v14  ;;  %v7024_v14 = vld [vmem:[#allocation45 + $0xf8] sm:$0xff] }
0x16ca   : > { %11511 = vmatpush1.bf16.msra.mxu0 %v11510_v47  ;;  %v7080_v47 = vld [vmem:[#allocation45 + $0x2b0] sm:$0xff] }
0x16cb   : > { %11513 = vmatprep.subr.bf16.mxu0 %v11512_v60  ;;  %v7083_v60 = vld [vmem:[#allocation45 + $0x2c8] sm:$0xff]  ;;  %v11554_v15 = vpack.c.bf16 %v7080_v47, %v7078_v21  ;;  %v6996_v47 = vld [vmem:[#allocation45 + $0x18] sm:$0xff] }
0x16cc   : > { %v11556_v40 = vpack.c.bf16 %v7085_v7, %v7083_v60  ;;  %v6994_v21 = vld [vmem:[#allocation45 + $0x8] sm:$0xff]  ;;  %v6358_v7 = vlaneseq }
0x16cd   : > { %v11596_v60 = vpack.c.bf16 %v6996_v47, %v6994_v21  ;;  %v7028_v21 = vld [vmem:[#allocation45 + $0x118] sm:$0xff] }
0x16ce   : > { %11515 = vmatpush1.bf16.msra.mxu0 %v11514_v55  ;;  %v7084_v55 = vld [vmem:[#allocation45 + $0x2d0] sm:$0xff]  ;;  %vm8667_vm9 = vcmp.lt.s32.totalorder %v6358_v7, 256 }
0x16cf   : > { %11517 = vmatprep.subr.bf16.mxu0 %v11516_v24  ;;  %v7087_v24 = vld [vmem:[#allocation45 + $0x2e8] sm:$0xff]  ;;  %v11558_v27 = vpack.c.bf16 %v7084_v55, %v7082_v0  ;;  %v6901_v0 = vld [vmem:[#allocation43] sm:$0x3] }
0x16d0   : > { %v11560_v20 = vpack.c.bf16 %v7089_v32, %v7087_v24 }
0x16d2   : > { %11519 = vmatpush1.bf16.msra.mxu0 %v11518_v22  ;;  %v7088_v22 = vld [vmem:[#allocation45 + $0x2f0] sm:$0xff] }
0x16d3   : > { %11521 = vmatprep.subr.bf16.mxu0 %v11520_v16  ;;  %v7091_v16 = vld [vmem:[#allocation45 + $0x308] sm:$0xff]  ;;  %v11562_v1 = vpack.c.bf16 %v7088_v22, %v7086_v28 }
0x16d4   : > { %v11564_v19 = vpack.c.bf16 %v7093_v13, %v7091_v16  ;;  %v6993_v16 = vld [vmem:[#allocation45] sm:$0xff]  ;;  %v6995_v13 = vld [vmem:[#allocation45 + $0x10] sm:$0xff] }
0x16d6   : > { %11523 = vmatpush1.bf16.msra.mxu0 %v11522_v63  ;;  %v7092_v63 = vld [vmem:[#allocation45 + $0x310] sm:$0xff] }
0x16d7   : > { %11525 = vmatprep.subr.bf16.mxu0 %v11524_v62  ;;  %v7095_v62 = vld [vmem:[#allocation45 + $0x328] sm:$0xff]  ;;  %v11566_v30 = vpack.c.bf16 %v7092_v63, %v7090_v26  ;;  %v7000_v26 = vld [vmem:[#allocation45 + $0x38] sm:$0xff] }
0x16d8   : > { %v11568_v31 = vpack.c.bf16 %v7097_v29, %v7095_v62  ;;  %v14852_v62 = vld [vmem:[#allocation9] sm:$0xff]  ;;  %v11598_v29 = vpack.c.bf16 %v6995_v13, %v6993_v16  ;;  %v7031_v16 = vld [vmem:[#allocation45 + $0x130] sm:$0xff] }
0x16d9   : > { %v7034_v13 = vld [vmem:[#allocation45 + $0x148] sm:$0xff] }
0x16da   : > { %11527 = vmatpush1.bf16.msra.mxu0 %v11526_v17  ;;  %v7096_v17 = vld [vmem:[#allocation45 + $0x330] sm:$0xff] }
0x16db   : > { %11529 = vmatprep.subr.bf16.mxu0 %v11528_v39  ;;  %v7099_v39 = vld [vmem:[#allocation45 + $0x348] sm:$0xff]  ;;  %v11570_v50 = vpack.c.bf16 %v7096_v17, %v7094_v33  ;;  %v6999_v33 = vld [vmem:[#allocation45 + $0x30] sm:$0xff] }
0x16dc   : > { %v11572_v34 = vpack.c.bf16 %v7101_v44, %v7099_v39  ;;  %v7002_v17 = vld [vmem:[#allocation45 + $0x48] sm:$0xff]  ;;  %v7004_v39 = vld [vmem:[#allocation45 + $0x58] sm:$0xff] }
0x16dd   : > { %v7265_v44 = vld [vmem:[#allocation9 + $0x10] sm:$0xff] }
0x16de   : > { %11531 = vmatpush1.bf16.msra.mxu0 %v11530_v38  ;;  %v7100_v38 = vld [vmem:[#allocation45 + $0x350] sm:$0xff] }
0x16df   : > { %11533 = vmatprep.subr.bf16.mxu0 %v11532_v41  ;;  %v7103_v41 = vld [vmem:[#allocation45 + $0x368] sm:$0xff]  ;;  %v11574_v45 = vpack.c.bf16 %v7100_v38, %v7098_v36  ;;  %v7001_v36 = vld [vmem:[#allocation45 + $0x40] sm:$0xff]  ;;  %v7003_v38 = vld [vmem:[#allocation45 + $0x50] sm:$0xff] }
0x16e0   : > { %v11576_v43 = vpack.c.bf16 %v7105_v42, %v7103_v41  ;;  %v7006_v41 = vld [vmem:[#allocation45 + $0x68] sm:$0xff]  ;;  %v7008_v42 = vld [vmem:[#allocation45 + $0x78] sm:$0xff] }
0x16e1   : > { %6893 = vmatmul.mubr.f32.vlgmr.msra.gmra.mrb[50].mxu0 %v14837_v53  ;;  %v11548_v53 = vpack.c.bf16 %v7077_v9, %v7075_v59  ;;  %v7114_v9 = vld [vmem:[#allocation45 + $0x3c0] sm:$0xff] }
0x16e2   : > { %11535 = vmatpush1.bf16.msra.mxu0 %v11534_v48  ;;  %v7104_v48 = vld [vmem:[#allocation45 + $0x370] sm:$0xff] }
0x16e3   : > { %11537 = vmatprep.subr.bf16.mxu0 %v11536_v49  ;;  %v7107_v49 = vld [vmem:[#allocation45 + $0x388] sm:$0xff]  ;;  %v11578_v37 = vpack.c.bf16 %v7104_v48, %v7102_v46  ;;  %v7005_v46 = vld [vmem:[#allocation45 + $0x60] sm:$0xff]  ;;  %v7007_v48 = vld [vmem:[#allocation45 + $0x70] sm:$0xff] }
0x16e4   : > { %v11580_v52 = vpack.c.bf16 %v7109_v51, %v7107_v49  ;;  %v7010_v49 = vld [vmem:[#allocation45 + $0x88] sm:$0xff]  ;;  %v7012_v51 = vld [vmem:[#allocation45 + $0x98] sm:$0xff] }
0x16e6   : > { %11539 = vmatpush1.bf16.msra.mxu0 %v11538_v54  ;;  %v7108_v54 = vld [vmem:[#allocation45 + $0x390] sm:$0xff] }
0x16e7   : > { %11541 = vmatprep.subr.bf16.mxu0 %v11540_v57  ;;  %v7111_v57 = vld [vmem:[#allocation45 + $0x3a8] sm:$0xff]  ;;  %v11582_v61 = vpack.c.bf16 %v7108_v54, %v7106_v5  ;;  %v7009_v5 = vld [vmem:[#allocation45 + $0x80] sm:$0xff]  ;;  %v7011_v54 = vld [vmem:[#allocation45 + $0x90] sm:$0xff] }
0x16e8   : > { %v11584_v4 = vpack.c.bf16 %v7113_v2, %v7111_v57  ;;  %v7014_v57 = vld [vmem:[#allocation45 + $0xa8] sm:$0xff]  ;;  %v7016_v2 = vld [vmem:[#allocation45 + $0xb8] sm:$0xff] }
0x16ea   : > { %11543 = vmatpush1.bf16.msra.mxu0 %v11542_v56  ;;  %v7112_v56 = vld [vmem:[#allocation45 + $0x3b0] sm:$0xff] }
0x16eb   : > { %11545 = vmatprep.subr.bf16.mxu0 %v11544_v58  ;;  %v7115_v58 = vld [vmem:[#allocation45 + $0x3c8] sm:$0xff]  ;;  %v11586_v25 = vpack.c.bf16 %v7112_v56, %v7110_v6  ;;  %v7013_v6 = vld [vmem:[#allocation45 + $0xa0] sm:$0xff]  ;;  %v7015_v56 = vld [vmem:[#allocation45 + $0xb0] sm:$0xff] }
0x16ec   : > { %v11588_v59 = vpack.c.bf16 %v7117_v35, %v7115_v58  ;;  %v7018_v58 = vld [vmem:[#allocation45 + $0xc8] sm:$0xff]  ;;  %v7020_v35 = vld [vmem:[#allocation45 + $0xd8] sm:$0xff] }
0x16ee   : > { %11547 = vmatpush1.bf16.msra.mxu0 %v11546_v10  ;;  %v7116_v10 = vld [vmem:[#allocation45 + $0x3d0] sm:$0xff] }
0x16ef   : > { %11549 = vmatprep.subr.bf16.mxu0 %v11548_v53  ;;  %v11590_v53 = vpack.c.bf16 %v7116_v10, %v7114_v9  ;;  %v7017_v9 = vld [vmem:[#allocation45 + $0xc0] sm:$0xff]  ;;  %v7019_v10 = vld [vmem:[#allocation45 + $0xd0] sm:$0xff] }
0x16f0   : > { %v11622_v12 = vpack.c.bf16 %v7019_v10, %v7017_v9  ;;  %v7344_v9 = vld [vmem:[#allocation45 + $0x418] sm:$0xff] }
0x16f2   : > { %11551 = vmatpush1.bf16.msra.mxu0 %v11550_v18  ;;  %v7120_v18 = vld [vmem:[#allocation45 + $0x3f0] sm:$0xff] }
0x16f3   : > { %11553 = vmatprep.subr.bf16.mxu0 %v11552_v11  ;;  %v11594_v11 = vpack.c.bf16 %v7120_v18, %v7118_v3  ;;  %v7021_v3 = vld [vmem:[#allocation45 + $0xe0] sm:$0xff]  ;;  %v7023_v18 = vld [vmem:[#allocation45 + $0xf0] sm:$0xff] }
0x16f4   : > { %v11626_v47 = vpack.c.bf16 %v7023_v18, %v7021_v3 }
0x16f6   : > { %11555 = vmatpush1.bf16.msra.mxu0 %v11554_v15  ;;  %v14842_v15 = vshrl.u32 %v6358_v7, 7 }
0x16f7   : > { %11557 = vmatprep.subr.bf16.mxu0 %v11556_v40 }
0x16f8   : > { %v14845_v40 = vsub.s32 0, %v14842_v15  ;;  %v14848_v55 = vsub.s32 1, %v14842_v15 }
0x16fa   : > { %11559 = vmatpush1.bf16.msra.mxu0 %v11558_v27  ;;  %v6906_v24 = vrot.slane %v6901_v0, %v14845_v40  ;;  %v6910_v32 = vrot.slane %v6901_v0, %v14848_v55  ;;  %v7025_v0 = vld [vmem:[#allocation45 + $0x100] sm:$0xff] }
0x16fb   : > { %11561 = vmatprep.subr.bf16.mxu0 %v11560_v20 }
0x16fe   : > { %11563 = vmatpush1.bf16.msra.mxu0 %v11562_v1 }
0x16ff   : > { %11565 = vmatprep.subr.bf16.mxu0 %v11564_v19  ;;  %v6998_v19 = vld [vmem:[#allocation45 + $0x28] sm:$0xff] }
0x1702   : > { %11567 = vmatpush1.bf16.msra.mxu0 %v11566_v30  ;;  %v11600_v30 = vpack.c.bf16 %v7000_v26, %v6998_v19 }
0x1703   : > { %11569 = vmatprep.subr.bf16.mxu0 %v11568_v31  ;;  %v6997_v31 = vld [vmem:[#allocation45 + $0x20] sm:$0xff] }
0x1706   : > { %11571 = vmatpush1.bf16.msra.mxu0 %v11570_v50  ;;  %v11602_v50 = vpack.c.bf16 %v6999_v33, %v6997_v31  ;;  %v7040_v31 = vld [vmem:[#allocation45 + $0x178] sm:$0xff] }
0x1707   : > { %11573 = vmatprep.subr.bf16.mxu0 %v11572_v34  ;;  %v11604_v34 = vpack.c.bf16 %v7004_v39, %v7002_v17  ;;  %v7037_v39 = vld [vmem:[#allocation45 + $0x160] sm:$0xff] }
0x170a   : > { %11575 = vmatpush1.bf16.msra.mxu0 %v11574_v45  ;;  %v11606_v45 = vpack.c.bf16 %v7003_v38, %v7001_v36 }
0x170b   : > { %11577 = vmatprep.subr.bf16.mxu0 %v11576_v43  ;;  %v11608_v43 = vpack.c.bf16 %v7008_v42, %v7006_v41  ;;  %v7041_v41 = vld [vmem:[#allocation45 + $0x180] sm:$0xff]  ;;  %v7043_v42 = vld [vmem:[#allocation45 + $0x190] sm:$0xff] }
0x170e   : > { %11579 = vmatpush1.bf16.msra.mxu0 %v11578_v37  ;;  %v11610_v37 = vpack.c.bf16 %v7007_v48, %v7005_v46  ;;  %v11646_v46 = vpack.c.bf16 %v7043_v42, %v7041_v41  ;;  %v7361_v41 = vld [vmem:[#allocation45 + $0x4a0] sm:$0xff]  ;;  %v7363_v42 = vld [vmem:[#allocation45 + $0x4b0] sm:$0xff] }
0x170f   : > { %11581 = vmatprep.subr.bf16.mxu0 %v11580_v52  ;;  %v11612_v52 = vpack.c.bf16 %v7012_v51, %v7010_v49  ;;  %v7045_v49 = vld [vmem:[#allocation45 + $0x1a0] sm:$0xff]  ;;  %v7047_v51 = vld [vmem:[#allocation45 + $0x1b0] sm:$0xff] }
0x1712   : > { %11583 = vmatpush1.bf16.msra.mxu0 %v11582_v61  ;;  %v11614_v61 = vpack.c.bf16 %v7011_v54, %v7009_v5  ;;  %v11650_v5 = vpack.c.bf16 %v7047_v51, %v7045_v49  ;;  %v7365_v49 = vld [vmem:[#allocation45 + $0x4c0] sm:$0xff]  ;;  %v7367_v51 = vld [vmem:[#allocation45 + $0x4d0] sm:$0xff] }
0x1713   : > { %11585 = vmatprep.subr.bf16.mxu0 %v11584_v4  ;;  %v11616_v4 = vpack.c.bf16 %v7016_v2, %v7014_v57  ;;  %v7049_v57 = vld [vmem:[#allocation45 + $0x1c0] sm:$0xff]  ;;  %v7051_v2 = vld [vmem:[#allocation45 + $0x1d0] sm:$0xff] }
0x1716   : > { %11587 = vmatpush1.bf16.msra.mxu0 %v11586_v25  ;;  %v11618_v25 = vpack.c.bf16 %v7015_v56, %v7013_v6  ;;  %v11654_v6 = vpack.c.bf16 %v7051_v2, %v7049_v57  ;;  %v7369_v57 = vld [vmem:[#allocation45 + $0x4e0] sm:$0xff]  ;;  %v7371_v2 = vld [vmem:[#allocation45 + $0x4f0] sm:$0xff] }
0x1717   : > { %11589 = vmatprep.subr.bf16.mxu0 %v11588_v59  ;;  %v11620_v59 = vpack.c.bf16 %v7020_v35, %v7018_v58  ;;  %v7053_v58 = vld [vmem:[#allocation45 + $0x1e0] sm:$0xff]  ;;  %v7055_v35 = vld [vmem:[#allocation45 + $0x1f0] sm:$0xff] }
0x171a   : > { %11591 = vmatpush1.bf16.msra.mxu0 %v11590_v53  ;;  %v7022_v53 = vld [vmem:[#allocation45 + $0xe8] sm:$0xff] }
0x171b   : > { %11593 = vmatprep.subr.bf16.mxu0 %v11592_v23  ;;  %v11624_v23 = vpack.c.bf16 %v7024_v14, %v7022_v53  ;;  %v7341_v53 = vld [vmem:[#allocation45 + $0x400] sm:$0xff]  ;;  %v7343_v14 = vld [vmem:[#allocation45 + $0x410] sm:$0xff] }
0x171c   : > { %v11662_v18 = vpack.c.bf16 %v7343_v14, %v7341_v53  ;;  %v7377_v53 = vld [vmem:[#allocation45 + $0x520] sm:$0xff]  ;;  %v7379_v14 = vld [vmem:[#allocation45 + $0x530] sm:$0xff] }
0x171e   : > { %11595 = vmatpush1.bf16.msra.mxu0 %v11594_v11  ;;  %v7026_v11 = vld [vmem:[#allocation45 + $0x108] sm:$0xff] }
0x171f   : > { %11597 = vmatprep.subr.bf16.mxu0 %v11596_v60  ;;  %v11628_v60 = vpack.c.bf16 %v7028_v21, %v7026_v11 }
0x17b4   : > { %v6894_v27 = vpop.f32.mrb[50].mxu0 }
0x17b5   : > { %v6913_v20 = vadd.f32 %v6906_v24, %v6894_v27  ;;  %v6896_v28 = vpop.f32.mrb[51].mxu0  ;;  %v7027_v24 = vld [vmem:[#allocation45 + $0x110] sm:$0xff]  ;;  %v7032_v27 = vld [vmem:[#allocation45 + $0x138] sm:$0xff] }
0x17b6   : > { %v6914_v22 = vadd.f32 %v6910_v32, %v6896_v28  ;;  %v7030_v32 = vld [vmem:[#allocation45 + $0x128] sm:$0xff] }
0x17b7   : > { %v6915_v63 = vmax.f32 %v6913_v20, 0.0  ;;  %v11630_v20 = vpack.c.bf16 %v7027_v24, %v7025_v0  ;;  %v11632_v28 = vpack.c.bf16 %v7032_v27, %v7030_v32  ;;  %v7350_v0 = vld [vmem:[#allocation45 + $0x448] sm:$0xff]  ;;  %v7352_v24 = vld [vmem:[#allocation45 + $0x458] sm:$0xff] }
0x17b8   : > { %v6916_v1 = vmax.f32 %v6914_v22, 0.0  ;;  %v7029_v22 = vld [vmem:[#allocation45 + $0x120] sm:$0xff] }
0x17b9   : > { %v11634_v19 = vpack.c.bf16 %v7031_v16, %v7029_v22  ;;  %v7351_v22 = vld [vmem:[#allocation45 + $0x450] sm:$0xff] }
0x17ba   : > { %6922 = vmatprep.subr.mxu1 %v6916_v1  ;;  %7186 = vmatprep.mubr.f32.mxu0 %v6916_v1 }
0x17bb   : > { %6923 = vmatpush1.msra.mxu1 %v6915_v63  ;;  %7187 = vmatmul.mubr.f32.vlgmr.msra.gmra.mrb[46].mxu0 %v6915_v63 }
0x17bc   : > { %9302 = vmatmul.mubr.msk.f32.vlgmr.msra.gmra.mrb[40].mxu1 %vm6918_vm8, %v14852_v62  ;;  %7269 = vmatprep.subr.mxu1 %v6916_v1  ;;  %v7036_v1 = vld [vmem:[#allocation45 + $0x158] sm:$0xff] }
0x17bd   : > { %7270 = vmatpush1.msra.mxu1 %v6915_v63  ;;  %7333 = vmatprep.mubr.f32.mxu1 %v13571_v8  ;;  %v11636_v26 = vpack.c.bf16 %v7036_v1, %v7034_v13  ;;  %v7033_v63 = vld [vmem:[#allocation45 + $0x140] sm:$0xff]  ;;  %v7354_v13 = vld [vmem:[#allocation45 + $0x468] sm:$0xff]  ;;  %v7356_v1 = vld [vmem:[#allocation45 + $0x478] sm:$0xff] }
0x17be   : > { %11599 = vmatpush1.bf16.msra.mxu0 %v11598_v29  ;;  %v7035_v29 = vld [vmem:[#allocation45 + $0x150] sm:$0xff] }
0x17bf   : > { %11601 = vmatprep.subr.bf16.mxu0 %v11600_v30  ;;  %v7038_v30 = vld [vmem:[#allocation45 + $0x168] sm:$0xff]  ;;  %v11638_v33 = vpack.c.bf16 %v7035_v29, %v7033_v63  ;;  %v7353_v63 = vld [vmem:[#allocation45 + $0x460] sm:$0xff]  ;;  %v7355_v29 = vld [vmem:[#allocation45 + $0x470] sm:$0xff] }
0x17c0   : > { %9303 = vmatmul.mubr.msk.f32.vlgmr.msra.gmra.mrb[42].mxu1 %vm6918_vm8, %v7265_v44  ;;  %v11640_v17 = vpack.c.bf16 %v7040_v31, %v7038_v30  ;;  %v7039_v44 = vld [vmem:[#allocation45 + $0x170] sm:$0xff]  ;;  %v7358_v30 = vld [vmem:[#allocation45 + $0x488] sm:$0xff]  ;;  %v7360_v31 = vld [vmem:[#allocation45 + $0x498] sm:$0xff] }
0x17c1   : > { %7560 = vmatprep.mubr.f32.mxu1 %v13571_v8  ;;  %v11642_v36 = vpack.c.bf16 %v7039_v44, %v7037_v39  ;;  %v7357_v39 = vld [vmem:[#allocation45 + $0x480] sm:$0xff]  ;;  %v7359_v44 = vld [vmem:[#allocation45 + $0x490] sm:$0xff] }
0x17c2   : > { %11603 = vmatpush1.bf16.msra.mxu0 %v11602_v50  ;;  %v7042_v50 = vld [vmem:[#allocation45 + $0x188] sm:$0xff] }
0x17c3   : > { %11605 = vmatprep.subr.bf16.mxu0 %v11604_v34  ;;  %v7044_v34 = vld [vmem:[#allocation45 + $0x198] sm:$0xff] }
0x17c4   : > { %v11644_v38 = vpack.c.bf16 %v7044_v34, %v7042_v50  ;;  %v7362_v50 = vld [vmem:[#allocation45 + $0x4a8] sm:$0xff]  ;;  %v7364_v34 = vld [vmem:[#allocation45 + $0x4b8] sm:$0xff] }
0x17c6   : > { %11607 = vmatpush1.bf16.msra.mxu0 %v11606_v45  ;;  %v7046_v45 = vld [vmem:[#allocation45 + $0x1a8] sm:$0xff] }
0x17c7   : > { %11609 = vmatprep.subr.bf16.mxu0 %v11608_v43  ;;  %v7048_v43 = vld [vmem:[#allocation45 + $0x1b8] sm:$0xff] }
0x17c8   : > { %v11648_v48 = vpack.c.bf16 %v7048_v43, %v7046_v45  ;;  %v7366_v45 = vld [vmem:[#allocation45 + $0x4c8] sm:$0xff]  ;;  %v7368_v43 = vld [vmem:[#allocation45 + $0x4d8] sm:$0xff] }
0x17ca   : > { %11611 = vmatpush1.bf16.msra.mxu0 %v11610_v37  ;;  %v7050_v37 = vld [vmem:[#allocation45 + $0x1c8] sm:$0xff] }
0x17cb   : > { %11613 = vmatprep.subr.bf16.mxu0 %v11612_v52  ;;  %v7052_v52 = vld [vmem:[#allocation45 + $0x1d8] sm:$0xff] }
0x17cc   : > { %v11652_v54 = vpack.c.bf16 %v7052_v52, %v7050_v37  ;;  %v7370_v37 = vld [vmem:[#allocation45 + $0x4e8] sm:$0xff]  ;;  %v7372_v52 = vld [vmem:[#allocation45 + $0x4f8] sm:$0xff] }
0x17ce   : > { %11615 = vmatpush1.bf16.msra.mxu0 %v11614_v61  ;;  %v7054_v61 = vld [vmem:[#allocation45 + $0x1e8] sm:$0xff] }
0x17cf   : > { %11617 = vmatprep.subr.bf16.mxu0 %v11616_v4  ;;  %v7056_v4 = vld [vmem:[#allocation45 + $0x1f8] sm:$0xff] }
0x17d0   : > { %v11656_v56 = vpack.c.bf16 %v7056_v4, %v7054_v61  ;;  %v7374_v61 = vld [vmem:[#allocation45 + $0x508] sm:$0xff]  ;;  %v7376_v4 = vld [vmem:[#allocation45 + $0x518] sm:$0xff] }
0x17d2   : > { %11619 = vmatpush1.bf16.msra.mxu0 %v11618_v25  ;;  %v11658_v25 = vpack.c.bf16 %v7055_v35, %v7053_v58  ;;  %v7373_v58 = vld [vmem:[#allocation45 + $0x500] sm:$0xff]  ;;  %v7375_v35 = vld [vmem:[#allocation45 + $0x510] sm:$0xff] }
0x17d3   : > { %11621 = vmatprep.subr.bf16.mxu0 %v11620_v59  ;;  %v7342_v59 = vld [vmem:[#allocation45 + $0x408] sm:$0xff] }
0x17d4   : > { %v11660_v10 = vpack.c.bf16 %v7344_v9, %v7342_v59  ;;  %v7380_v59 = vld [vmem:[#allocation45 + $0x538] sm:$0xff]  ;;  %v11694_v9 = vpack.c.bf16 %v7375_v35, %v7373_v58 }
0x17d5   : > { %v7643_v58 = vld [vmem:[#allocation48 + $0x258] sm:$0xff] }
0x17d6   : > { %11623 = vmatpush1.bf16.msra.mxu0 %v11622_v12  ;;  %v7346_v12 = vld [vmem:[#allocation45 + $0x428] sm:$0xff] }
0x17d7   : > { %11625 = vmatprep.subr.bf16.mxu0 %v11624_v23  ;;  %v7348_v23 = vld [vmem:[#allocation45 + $0x438] sm:$0xff] }
0x17d8   : > { %v11664_v21 = vpack.c.bf16 %v7348_v23, %v7346_v12  ;;  %v7382_v12 = vld [vmem:[#allocation45 + $0x548] sm:$0xff]  ;;  %v7384_v23 = vld [vmem:[#allocation45 + $0x558] sm:$0xff] }
0x17da   : > { %11627 = vmatpush1.bf16.msra.mxu0 %v11626_v47  ;;  %v7345_v47 = vld [vmem:[#allocation45 + $0x420] sm:$0xff] }
0x17db   : > { %11629 = vmatprep.subr.bf16.mxu0 %v11628_v60  ;;  %v7347_v60 = vld [vmem:[#allocation45 + $0x430] sm:$0xff] }
0x17dc   : > { %v11666_v32 = vpack.c.bf16 %v7347_v60, %v7345_v47  ;;  %v7386_v47 = vld [vmem:[#allocation45 + $0x568] sm:$0xff]  ;;  %v7388_v60 = vld [vmem:[#allocation45 + $0x578] sm:$0xff] }
0x17de   : > { %11631 = vmatpush1.bf16.msra.mxu0 %v11630_v20  ;;  %v11668_v20 = vpack.c.bf16 %v7352_v24, %v7350_v0  ;;  %v11704_v24 = vpack.c.bf16 %v7388_v60, %v7386_v47  ;;  %v7648_v47 = vld [vmem:[#allocation48 + $0x280] sm:$0xff]  ;;  %v7650_v60 = vld [vmem:[#allocation48 + $0x290] sm:$0xff] }
0x17df   : > { %11633 = vmatprep.subr.bf16.mxu0 %v11632_v28  ;;  %v7349_v28 = vld [vmem:[#allocation45 + $0x440] sm:$0xff] }
0x17e2   : > { %11635 = vmatpush1.bf16.msra.mxu0 %v11634_v19  ;;  %v11670_v19 = vpack.c.bf16 %v7351_v22, %v7349_v28  ;;  %v7390_v28 = vld [vmem:[#allocation45 + $0x588] sm:$0xff]  ;;  %v7392_v22 = vld [vmem:[#allocation45 + $0x598] sm:$0xff] }
0x17e3   : > { %11637 = vmatprep.subr.bf16.mxu0 %v11636_v26  ;;  %v11672_v26 = vpack.c.bf16 %v7356_v1, %v7354_v13  ;;  %v11708_v13 = vpack.c.bf16 %v7392_v22, %v7390_v28  ;;  %v7389_v1 = vld [vmem:[#allocation45 + $0x580] sm:$0xff]  ;;  %v7654_v22 = vld [vmem:[#allocation48 + $0x2b0] sm:$0xff] }
0x17e4   : > { %v7652_v28 = vld [vmem:[#allocation48 + $0x2a0] sm:$0xff] }
0x17e6   : > { %11639 = vmatpush1.bf16.msra.mxu0 %v11638_v33  ;;  %v11674_v33 = vpack.c.bf16 %v7355_v29, %v7353_v63  ;;  %v7396_v63 = vld [vmem:[#allocation45 + $0x5b8] sm:$0xff] }
0x17e7   : > { %11641 = vmatprep.subr.bf16.mxu0 %v11640_v17  ;;  %v11676_v17 = vpack.c.bf16 %v7360_v31, %v7358_v30  ;;  %v7393_v31 = vld [vmem:[#allocation45 + $0x5a0] sm:$0xff] }
0x17ea   : > { %11643 = vmatpush1.bf16.msra.mxu0 %v11642_v36  ;;  %v11678_v36 = vpack.c.bf16 %v7359_v44, %v7357_v39  ;;  %v7400_v39 = vld [vmem:[#allocation45 + $0x5d8] sm:$0xff] }
0x17eb   : > { %11645 = vmatprep.subr.bf16.mxu0 %v11644_v38  ;;  %v11680_v38 = vpack.c.bf16 %v7364_v34, %v7362_v50  ;;  %v7397_v34 = vld [vmem:[#allocation45 + $0x5c0] sm:$0xff] }
0x17ee   : > { %11647 = vmatpush1.bf16.msra.mxu0 %v11646_v46  ;;  %v11682_v46 = vpack.c.bf16 %v7363_v42, %v7361_v41  ;;  %v7404_v41 = vld [vmem:[#allocation45 + $0x5f8] sm:$0xff] }
0x17ef   : > { %11649 = vmatprep.subr.bf16.mxu0 %v11648_v48  ;;  %v11684_v48 = vpack.c.bf16 %v7368_v43, %v7366_v45  ;;  %v7401_v43 = vld [vmem:[#allocation45 + $0x5e0] sm:$0xff] }
0x17f2   : > { %11651 = vmatpush1.bf16.msra.mxu0 %v11650_v5  ;;  %v11686_v5 = vpack.c.bf16 %v7367_v51, %v7365_v49  ;;  %v7635_v49 = vld [vmem:[#allocation48 + $0x218] sm:$0xff] }
0x17f3   : > { %11653 = vmatprep.subr.bf16.mxu0 %v11652_v54  ;;  %v11688_v54 = vpack.c.bf16 %v7372_v52, %v7370_v37  ;;  %v7632_v52 = vld [vmem:[#allocation48 + $0x200] sm:$0xff] }
0x17f6   : > { %11655 = vmatpush1.bf16.msra.mxu0 %v11654_v6  ;;  %v11690_v6 = vpack.c.bf16 %v7371_v2, %v7369_v57  ;;  %v7639_v57 = vld [vmem:[#allocation48 + $0x238] sm:$0xff] }
0x17f7   : > { %11657 = vmatprep.subr.bf16.mxu0 %v11656_v56  ;;  %v11692_v56 = vpack.c.bf16 %v7376_v4, %v7374_v61  ;;  %v7636_v4 = vld [vmem:[#allocation48 + $0x220] sm:$0xff] }
0x17fa   : > { %11659 = vmatpush1.bf16.msra.mxu0 %v11658_v25  ;;  %v7378_v25 = vld [vmem:[#allocation45 + $0x528] sm:$0xff] }
0x17fb   : > { %11661 = vmatprep.subr.bf16.mxu0 %v11660_v10  ;;  %v11696_v10 = vpack.c.bf16 %v7380_v59, %v7378_v25  ;;  %v7640_v59 = vld [vmem:[#allocation48 + $0x240] sm:$0xff] }
0x188f   : > { %v6988_v3 = vpop.f32.mrb[40].mxu1 }
0x1890   : > { %v6990_v11 = vpop.f32.mrb[41].mxu1 }
0x1891   : > { %7257 = vmatprep.mubr.f32.mxu0 %v6990_v11  ;;  %v7381_v11 = vld [vmem:[#allocation45 + $0x540] sm:$0xff] }
0x1892   : > { %7258 = vmatmul.mubr.f32.vlgmr.msra.gmra.mrb[46].mxu0 %v6988_v3  ;;  %v11698_v3 = vpack.c.bf16 %v7379_v14, %v7377_v53  ;;  %v7647_v53 = vld [vmem:[#allocation48 + $0x278] sm:$0xff] }
0x1893   : > { %11663 = vmatpush1.bf16.msra.mxu0 %v11662_v18  ;;  %v14859_v27 = vpop.f32.mrb[42].mxu1  ;;  %v11700_v18 = vpack.c.bf16 %v7384_v23, %v7382_v12  ;;  %v7644_v23 = vld [vmem:[#allocation48 + $0x260] sm:$0xff] }
0x1894   : > { %11665 = vmatprep.subr.bf16.mxu0 %v11664_v21  ;;  %v7337_v16 = vpop.f32.mrb[43].mxu1  ;;  %v7383_v21 = vld [vmem:[#allocation45 + $0x550] sm:$0xff] }
0x1895   : > { %7469 = vmatprep.mubr.f32.mxu0 %v7337_v16  ;;  %v11702_v0 = vpack.c.bf16 %v7383_v21, %v7381_v11  ;;  %v7651_v11 = vld [vmem:[#allocation48 + $0x298] sm:$0xff] }
0x1897   : > { %11667 = vmatpush1.bf16.msra.mxu0 %v11666_v32  ;;  %v7385_v32 = vld [vmem:[#allocation45 + $0x560] sm:$0xff] }
0x1898   : > { %11669 = vmatprep.subr.bf16.mxu0 %v11668_v20  ;;  %v7387_v20 = vld [vmem:[#allocation45 + $0x570] sm:$0xff] }
0x1899   : > { %v11706_v16 = vpack.c.bf16 %v7387_v20, %v7385_v32  ;;  %v11742_v32 = vpack.c.bf16 %v7650_v60, %v7648_v47  ;;  %v7691_v47 = vld [vmem:[#allocation48 + $0x3d8] sm:$0xff] }
0x189b   : > { %11671 = vmatpush1.bf16.msra.mxu0 %v11670_v19  ;;  %v7391_v19 = vld [vmem:[#allocation45 + $0x590] sm:$0xff] }
0x189c   : > { %11673 = vmatprep.subr.bf16.mxu0 %v11672_v26  ;;  %v7394_v26 = vld [vmem:[#allocation45 + $0x5a8] sm:$0xff]  ;;  %v11710_v29 = vpack.c.bf16 %v7391_v19, %v7389_v1  ;;  %v11746_v1 = vpack.c.bf16 %v7654_v22, %v7652_v28  ;;  %v7695_v28 = vld [vmem:[#allocation48 + $0x3f8] sm:$0xff] }
0x189d   : > { %v11712_v30 = vpack.c.bf16 %v7396_v63, %v7394_v26  ;;  %v7656_v26 = vld [vmem:[#allocation48 + $0x2c0] sm:$0xff]  ;;  %v7658_v63 = vld [vmem:[#allocation48 + $0x2d0] sm:$0xff] }
0x189f   : > { %11675 = vmatpush1.bf16.msra.mxu0 %v11674_v33  ;;  %v7395_v33 = vld [vmem:[#allocation45 + $0x5b0] sm:$0xff] }
0x18a0   : > { %11677 = vmatprep.subr.bf16.mxu0 %v11676_v17  ;;  %v7398_v17 = vld [vmem:[#allocation45 + $0x5c8] sm:$0xff]  ;;  %v11714_v44 = vpack.c.bf16 %v7395_v33, %v7393_v31  ;;  %v11750_v31 = vpack.c.bf16 %v7658_v63, %v7656_v26  ;;  %v7478_v26 = vld [vmem:[#allocation46] sm:$0x3] }
0x18a1   : > { %v11716_v50 = vpack.c.bf16 %v7400_v39, %v7398_v17  ;;  %v7660_v17 = vld [vmem:[#allocation48 + $0x2e0] sm:$0xff]  ;;  %v7662_v39 = vld [vmem:[#allocation48 + $0x2f0] sm:$0xff] }
0x18a3   : > { %11679 = vmatpush1.bf16.msra.mxu0 %v11678_v36  ;;  %v7399_v36 = vld [vmem:[#allocation45 + $0x5d0] sm:$0xff] }
0x18a4   : > { %11681 = vmatprep.subr.bf16.mxu0 %v11680_v38  ;;  %v7402_v38 = vld [vmem:[#allocation45 + $0x5e8] sm:$0xff]  ;;  %v11718_v42 = vpack.c.bf16 %v7399_v36, %v7397_v34  ;;  %v11754_v34 = vpack.c.bf16 %v7662_v39, %v7660_v17 }
0x18a5   : > { %v11720_v45 = vpack.c.bf16 %v7404_v41, %v7402_v38  ;;  %v7664_v38 = vld [vmem:[#allocation48 + $0x300] sm:$0xff]  ;;  %v7666_v41 = vld [vmem:[#allocation48 + $0x310] sm:$0xff] }
0x18a7   : > { %11683 = vmatpush1.bf16.msra.mxu0 %v11682_v46  ;;  %v7403_v46 = vld [vmem:[#allocation45 + $0x5f0] sm:$0xff] }
0x18a8   : > { %11685 = vmatprep.subr.bf16.mxu0 %v11684_v48  ;;  %v7633_v48 = vld [vmem:[#allocation48 + $0x208] sm:$0xff]  ;;  %v11722_v51 = vpack.c.bf16 %v7403_v46, %v7401_v43  ;;  %v11758_v43 = vpack.c.bf16 %v7666_v41, %v7664_v38  ;;  %v7567_v41 = vld [vmem:[#allocation48] sm:$0xff] }
0x18a9   : > { %v11724_v37 = vpack.c.bf16 %v7635_v49, %v7633_v48  ;;  %v7668_v48 = vld [vmem:[#allocation48 + $0x320] sm:$0xff]  ;;  %v7670_v49 = vld [vmem:[#allocation48 + $0x330] sm:$0xff] }
0x18ab   : > { %11687 = vmatpush1.bf16.msra.mxu0 %v11686_v5  ;;  %v7634_v5 = vld [vmem:[#allocation48 + $0x210] sm:$0xff] }
0x18ac   : > { %11689 = vmatprep.subr.bf16.mxu0 %v11688_v54  ;;  %v7637_v54 = vld [vmem:[#allocation48 + $0x228] sm:$0xff]  ;;  %v11726_v2 = vpack.c.bf16 %v7634_v5, %v7632_v52  ;;  %v11762_v52 = vpack.c.bf16 %v7670_v49, %v7668_v48 }
0x18ad   : > { %v11728_v61 = vpack.c.bf16 %v7639_v57, %v7637_v54  ;;  %v7672_v54 = vld [vmem:[#allocation48 + $0x340] sm:$0xff]  ;;  %v7674_v57 = vld [vmem:[#allocation48 + $0x350] sm:$0xff] }
0x18af   : > { %11691 = vmatpush1.bf16.msra.mxu0 %v11690_v6  ;;  %v7638_v6 = vld [vmem:[#allocation48 + $0x230] sm:$0xff] }
0x18b0   : > { %11693 = vmatprep.subr.bf16.mxu0 %v11692_v56  ;;  %v7641_v56 = vld [vmem:[#allocation48 + $0x248] sm:$0xff]  ;;  %v11730_v35 = vpack.c.bf16 %v7638_v6, %v7636_v4  ;;  %v11766_v4 = vpack.c.bf16 %v7674_v57, %v7672_v54  ;;  %v7578_v57 = vld [vmem:[#allocation48 + $0x58] sm:$0xff] }
0x18b1   : > { %v11732_v25 = vpack.c.bf16 %v7643_v58, %v7641_v56  ;;  %v7676_v56 = vld [vmem:[#allocation48 + $0x360] sm:$0xff]  ;;  %v7678_v58 = vld [vmem:[#allocation48 + $0x370] sm:$0xff]  ;;  %v7576_v54 = vld [vmem:[#allocation48 + $0x48] sm:$0xff] }
0x18b3   : > { %11695 = vmatpush1.bf16.msra.mxu0 %v11694_v9  ;;  %v7642_v9 = vld [vmem:[#allocation48 + $0x250] sm:$0xff] }
0x18b4   : > { %11697 = vmatprep.subr.bf16.mxu0 %v11696_v10  ;;  %v7645_v10 = vld [vmem:[#allocation48 + $0x268] sm:$0xff]  ;;  %v11734_v14 = vpack.c.bf16 %v7642_v9, %v7640_v59  ;;  %v11770_v59 = vpack.c.bf16 %v7678_v58, %v7676_v56  ;;  %v7582_v58 = vld [vmem:[#allocation48 + $0x78] sm:$0xff] }
0x18b5   : > { %v11736_v12 = vpack.c.bf16 %v7647_v53, %v7645_v10  ;;  %v7680_v10 = vld [vmem:[#allocation48 + $0x380] sm:$0xff]  ;;  %v7682_v53 = vld [vmem:[#allocation48 + $0x390] sm:$0xff]  ;;  %v7580_v56 = vld [vmem:[#allocation48 + $0x68] sm:$0xff] }
0x18b7   : > { %11699 = vmatpush1.bf16.msra.mxu0 %v11698_v3  ;;  %v7646_v3 = vld [vmem:[#allocation48 + $0x270] sm:$0xff] }
0x18b8   : > { %11701 = vmatprep.subr.bf16.mxu0 %v11700_v18  ;;  %v7649_v18 = vld [vmem:[#allocation48 + $0x288] sm:$0xff]  ;;  %v11738_v21 = vpack.c.bf16 %v7646_v3, %v7644_v23  ;;  %v11774_v23 = vpack.c.bf16 %v7682_v53, %v7680_v10  ;;  %v7586_v53 = vld [vmem:[#allocation48 + $0x98] sm:$0xff] }
0x18b9   : > { %v7584_v10 = vld [vmem:[#allocation48 + $0x88] sm:$0xff] }
0x18bb   : > { %11703 = vmatpush1.bf16.msra.mxu0 %v11702_v0  ;;  %v7653_v0 = vld [vmem:[#allocation48 + $0x2a8] sm:$0xff] }
0x18bc   : > { %11705 = vmatprep.subr.bf16.mxu0 %v11704_v24  ;;  %v7655_v24 = vld [vmem:[#allocation48 + $0x2b8] sm:$0xff] }
0x18bd   : > { %v11744_v20 = vpack.c.bf16 %v7655_v24, %v7653_v0  ;;  %v7688_v0 = vld [vmem:[#allocation48 + $0x3c0] sm:$0xff]  ;;  %v7690_v24 = vld [vmem:[#allocation48 + $0x3d0] sm:$0xff] }
0x18bf   : > { %11707 = vmatpush1.bf16.msra.mxu0 %v11706_v16  ;;  %v7657_v16 = vld [vmem:[#allocation48 + $0x2c8] sm:$0xff] }
0x18c0   : > { %11709 = vmatprep.subr.bf16.mxu0 %v11708_v13  ;;  %v7659_v13 = vld [vmem:[#allocation48 + $0x2d8] sm:$0xff] }
0x18c1   : > { %v11748_v19 = vpack.c.bf16 %v7659_v13, %v7657_v16  ;;  %v7692_v16 = vld [vmem:[#allocation48 + $0x3e0] sm:$0xff]  ;;  %v7694_v13 = vld [vmem:[#allocation48 + $0x3f0] sm:$0xff] }
0x18c3   : > { %11711 = vmatpush1.bf16.msra.mxu0 %v11710_v29  ;;  %v7661_v29 = vld [vmem:[#allocation48 + $0x2e8] sm:$0xff] }
0x18c4   : > { %11713 = vmatprep.subr.bf16.mxu0 %v11712_v30  ;;  %v7663_v30 = vld [vmem:[#allocation48 + $0x2f8] sm:$0xff] }
0x18c5   : > { %v11752_v33 = vpack.c.bf16 %v7663_v30, %v7661_v29  ;;  %v7483_v30 = vrot.slane %v7478_v26, %v14845_v40 }
0x18c7   : > { %11715 = vmatpush1.bf16.msra.mxu0 %v11714_v44  ;;  %v7665_v44 = vld [vmem:[#allocation48 + $0x308] sm:$0xff] }
0x18c8   : > { %11717 = vmatprep.subr.bf16.mxu0 %v11716_v50  ;;  %v7667_v50 = vld [vmem:[#allocation48 + $0x318] sm:$0xff] }
0x18c9   : > { %v11756_v36 = vpack.c.bf16 %v7667_v50, %v7665_v44 }
0x18cb   : > { %11719 = vmatpush1.bf16.msra.mxu0 %v11718_v42  ;;  %v7669_v42 = vld [vmem:[#allocation48 + $0x328] sm:$0xff] }
0x18cc   : > { %11721 = vmatprep.subr.bf16.mxu0 %v11720_v45  ;;  %v7671_v45 = vld [vmem:[#allocation48 + $0x338] sm:$0xff] }
0x18cd   : > { %v11760_v46 = vpack.c.bf16 %v7671_v45, %v7669_v42  ;;  %v7569_v42 = vld [vmem:[#allocation48 + $0x10] sm:$0xff]  ;;  %v7572_v45 = vld [vmem:[#allocation48 + $0x28] sm:$0xff] }
0x18cf   : > { %11723 = vmatpush1.bf16.msra.mxu0 %v11722_v51  ;;  %v7673_v51 = vld [vmem:[#allocation48 + $0x348] sm:$0xff] }
0x18d0   : > { %11725 = vmatprep.subr.bf16.mxu0 %v11724_v37  ;;  %v7675_v37 = vld [vmem:[#allocation48 + $0x358] sm:$0xff] }
0x18d1   : > { %v11764_v5 = vpack.c.bf16 %v7675_v37, %v7673_v51  ;;  %v11790_v51 = vpack.c.bf16 %v7569_v42, %v7567_v41  ;;  %v7608_v41 = vld [vmem:[#allocation48 + $0x148] sm:$0xff]  ;;  %v7610_v42 = vld [vmem:[#allocation48 + $0x158] sm:$0xff] }
0x18d2   : > { %7470 = vmatmul.mubr.f32.vlgmr.msra.gmra.mrb[46].mxu0 %v14859_v27  ;;  %v11740_v27 = vpack.c.bf16 %v7651_v11, %v7649_v18  ;;  %v7684_v18 = vld [vmem:[#allocation48 + $0x3a0] sm:$0xff]  ;;  %v7686_v11 = vld [vmem:[#allocation48 + $0x3b0] sm:$0xff] }
0x18d3   : > { %11727 = vmatpush1.bf16.msra.mxu0 %v11726_v2  ;;  %v7677_v2 = vld [vmem:[#allocation48 + $0x368] sm:$0xff] }
0x18d4   : > { %11729 = vmatprep.subr.bf16.mxu0 %v11728_v61  ;;  %v7679_v61 = vld [vmem:[#allocation48 + $0x378] sm:$0xff] }
0x18d5   : > { %v11768_v6 = vpack.c.bf16 %v7679_v61, %v7677_v2  ;;  %v11796_v61 = vpack.c.bf16 %v7578_v57, %v7576_v54  ;;  %v7611_v57 = vld [vmem:[#allocation48 + $0x160] sm:$0xff] }
0x18d7   : > { %11731 = vmatpush1.bf16.msra.mxu0 %v11730_v35  ;;  %v7681_v35 = vld [vmem:[#allocation48 + $0x388] sm:$0xff] }
0x18d8   : > { %11733 = vmatprep.subr.bf16.mxu0 %v11732_v25  ;;  %v7683_v25 = vld [vmem:[#allocation48 + $0x398] sm:$0xff] }
0x18d9   : > { %v11772_v9 = vpack.c.bf16 %v7683_v25, %v7681_v35  ;;  %v11800_v25 = vpack.c.bf16 %v7582_v58, %v7580_v56  ;;  %v7615_v58 = vld [vmem:[#allocation48 + $0x180] sm:$0xff] }
0x18db   : > { %11735 = vmatpush1.bf16.msra.mxu0 %v11734_v14  ;;  %v7685_v14 = vld [vmem:[#allocation48 + $0x3a8] sm:$0xff] }
0x18dc   : > { %11737 = vmatprep.subr.bf16.mxu0 %v11736_v12  ;;  %v7687_v12 = vld [vmem:[#allocation48 + $0x3b8] sm:$0xff] }
0x18dd   : > { %v11776_v3 = vpack.c.bf16 %v7687_v12, %v7685_v14  ;;  %v11804_v14 = vpack.c.bf16 %v7586_v53, %v7584_v10  ;;  %v7583_v12 = vld [vmem:[#allocation48 + $0x80] sm:$0xff] }
0x18de   : > { %v7619_v53 = vld [vmem:[#allocation48 + $0x1a0] sm:$0xff] }
0x18df   : > { %11739 = vmatpush1.bf16.msra.mxu0 %v11738_v21  ;;  %v11778_v21 = vpack.c.bf16 %v7686_v11, %v7684_v18  ;;  %v7590_v18 = vld [vmem:[#allocation48 + $0xb8] sm:$0xff] }
0x18e0   : > { %11741 = vmatprep.subr.bf16.mxu0 %v11740_v27  ;;  %v7689_v27 = vld [vmem:[#allocation48 + $0x3c8] sm:$0xff] }
0x18e1   : > { %v11780_v60 = vpack.c.bf16 %v7691_v47, %v7689_v27  ;;  %v7587_v27 = vld [vmem:[#allocation48 + $0xa0] sm:$0xff]  ;;  %v7589_v47 = vld [vmem:[#allocation48 + $0xb0] sm:$0xff] }
0x18e3   : > { %11743 = vmatpush1.bf16.msra.mxu0 %v11742_v32  ;;  %v11782_v32 = vpack.c.bf16 %v7690_v24, %v7688_v0  ;;  %v7594_v0 = vld [vmem:[#allocation48 + $0xd8] sm:$0xff]  ;;  %v11810_v24 = vpack.c.bf16 %v7589_v47, %v7587_v27 }
0x18e4   : > { %11745 = vmatprep.subr.bf16.mxu0 %v11744_v20  ;;  %v7693_v20 = vld [vmem:[#allocation48 + $0x3e8] sm:$0xff]  ;;  %v7630_v27 = vld [vmem:[#allocation48 + $0x1f8] sm:$0xff] }
0x18e5   : > { %v11784_v22 = vpack.c.bf16 %v7695_v28, %v7693_v20  ;;  %v7591_v20 = vld [vmem:[#allocation48 + $0xc0] sm:$0xff]  ;;  %v7593_v28 = vld [vmem:[#allocation48 + $0xd0] sm:$0xff] }
0x18e7   : > { %11747 = vmatpush1.bf16.msra.mxu0 %v11746_v1  ;;  %v11786_v1 = vpack.c.bf16 %v7694_v13, %v7692_v16  ;;  %v7598_v16 = vld [vmem:[#allocation48 + $0xf8] sm:$0xff]  ;;  %v11814_v13 = vpack.c.bf16 %v7593_v28, %v7591_v20  ;;  %v7911_v20 = vld [vmem:[#allocation48 + $0x408] sm:$0xff] }
0x18e8   : > { %11749 = vmatprep.subr.bf16.mxu0 %v11748_v19  ;;  %v6356_v19 = vld [vmem:[#allocation40] sm:$0x3] }
0x18e9   : > { %v6361_v63 = vrot.slane %v6356_v19, %v14845_v40  ;;  %v6365_v29 = vrot.slane %v6356_v19, %v14848_v55  ;;  %v7595_v19 = vld [vmem:[#allocation48 + $0xe0] sm:$0xff]  ;;  %v7913_v28 = vld [vmem:[#allocation48 + $0x418] sm:$0xff] }
0x18eb   : > { %11751 = vmatpush1.bf16.msra.mxu0 %v11750_v31 }
0x18ec   : > { %11753 = vmatprep.subr.bf16.mxu0 %v11752_v33  ;;  %v7487_v33 = vrot.slane %v7478_v26, %v14848_v55  ;;  %v7597_v26 = vld [vmem:[#allocation48 + $0xf0] sm:$0xff] }
0x18ef   : > { %11755 = vmatpush1.bf16.msra.mxu0 %v11754_v34  ;;  %v7568_v34 = vld [vmem:[#allocation48 + $0x8] sm:$0xff] }
0x18f0   : > { %11757 = vmatprep.subr.bf16.mxu0 %v11756_v36  ;;  %v7570_v36 = vld [vmem:[#allocation48 + $0x18] sm:$0xff] }
0x18f1   : > { %v11788_v48 = vpack.c.bf16 %v7570_v36, %v7568_v34  ;;  %v7603_v36 = vld [vmem:[#allocation48 + $0x120] sm:$0xff] }
0x18f3   : > { %11759 = vmatpush1.bf16.msra.mxu0 %v11758_v43  ;;  %v7574_v43 = vld [vmem:[#allocation48 + $0x38] sm:$0xff] }
0x18f4   : > { %11761 = vmatprep.subr.bf16.mxu0 %v11760_v46  ;;  %v11792_v37 = vpack.c.bf16 %v7574_v43, %v7572_v45  ;;  %v11828_v43 = vpack.c.bf16 %v7610_v42, %v7608_v41  ;;  %v7918_v41 = vld [vmem:[#allocation48 + $0x440] sm:$0xff]  ;;  %v7920_v42 = vld [vmem:[#allocation48 + $0x450] sm:$0xff] }
0x18f7   : > { %11763 = vmatpush1.bf16.msra.mxu0 %v11762_v52  ;;  %v7571_v52 = vld [vmem:[#allocation48 + $0x20] sm:$0xff] }
0x18f8   : > { %11765 = vmatprep.subr.bf16.mxu0 %v11764_v5  ;;  %v7573_v5 = vld [vmem:[#allocation48 + $0x30] sm:$0xff] }
0x18f9   : > { %v11794_v2 = vpack.c.bf16 %v7573_v5, %v7571_v52  ;;  %v7614_v52 = vld [vmem:[#allocation48 + $0x178] sm:$0xff] }
0x18fb   : > { %11767 = vmatpush1.bf16.msra.mxu0 %v11766_v4  ;;  %v7575_v4 = vld [vmem:[#allocation48 + $0x40] sm:$0xff] }
0x18fc   : > { %11769 = vmatprep.subr.bf16.mxu0 %v11768_v6  ;;  %v7577_v6 = vld [vmem:[#allocation48 + $0x50] sm:$0xff] }
0x18fd   : > { %v11798_v35 = vpack.c.bf16 %v7577_v6, %v7575_v4  ;;  %v7618_v4 = vld [vmem:[#allocation48 + $0x198] sm:$0xff] }
0x18ff   : > { %11771 = vmatpush1.bf16.msra.mxu0 %v11770_v59  ;;  %v7579_v59 = vld [vmem:[#allocation48 + $0x60] sm:$0xff] }
0x1900   : > { %11773 = vmatprep.subr.bf16.mxu0 %v11772_v9  ;;  %v7581_v9 = vld [vmem:[#allocation48 + $0x70] sm:$0xff] }
0x1903   : > { %11775 = vmatpush1.bf16.msra.mxu0 %v11774_v23  ;;  %v7585_v23 = vld [vmem:[#allocation48 + $0x90] sm:$0xff] }
0x1904   : > { %11777 = vmatprep.subr.bf16.mxu0 %v11776_v3  ;;  %v7588_v3 = vld [vmem:[#allocation48 + $0xa8] sm:$0xff]  ;;  %v11806_v11 = vpack.c.bf16 %v7585_v23, %v7583_v12  ;;  %v7626_v12 = vld [vmem:[#allocation48 + $0x1d8] sm:$0xff] }
0x1907   : > { %11779 = vmatpush1.bf16.msra.mxu0 %v11778_v21  ;;  %v11808_v21 = vpack.c.bf16 %v7590_v18, %v7588_v3  ;;  %v7623_v18 = vld [vmem:[#allocation48 + $0x1c0] sm:$0xff] }
0x1908   : > { %11781 = vmatprep.subr.bf16.mxu0 %v11780_v60  ;;  %v7592_v60 = vld [vmem:[#allocation48 + $0xc8] sm:$0xff] }
0x190b   : > { %11783 = vmatpush1.bf16.msra.mxu0 %v11782_v32  ;;  %v11812_v32 = vpack.c.bf16 %v7594_v0, %v7592_v60  ;;  %v7627_v0 = vld [vmem:[#allocation48 + $0x1e0] sm:$0xff] }
0x190c   : > { %11785 = vmatprep.subr.bf16.mxu0 %v11784_v22  ;;  %v7596_v22 = vld [vmem:[#allocation48 + $0xe8] sm:$0xff] }
0x190f   : > { %11787 = vmatpush1.bf16.msra.mxu0 %v11786_v1  ;;  %v11816_v1 = vpack.c.bf16 %v7598_v16, %v7596_v22 }
0x19a5   : > { %v7471_v31 = vpop.f32.mrb[46].mxu0 }
0x19a6   : > { %v12112_v17 = vadd.f32 %v7471_v31, %v6361_v63  ;;  %v7473_v39 = vpop.f32.mrb[47].mxu0  ;;  %v7600_v63 = vld [vmem:[#allocation48 + $0x108] sm:$0xff] }
0x19a7   : > { %v12114_v44 = vadd.f32 %v7473_v39, %v6365_v29  ;;  %v7602_v29 = vld [vmem:[#allocation48 + $0x118] sm:$0xff]  ;;  %v7604_v39 = vld [vmem:[#allocation48 + $0x128] sm:$0xff] }
0x19a8   : > { %v12113_v50 = vadd.f32 %v12112_v17, %v7483_v30  ;;  %v11818_v30 = vpack.c.bf16 %v7597_v26, %v7595_v19  ;;  %v11820_v31 = vpack.c.bf16 %v7602_v29, %v7600_v63  ;;  %v7601_v17 = vld [vmem:[#allocation48 + $0x110] sm:$0xff]  ;;  %v11852_v19 = vpack.c.bf16 %v7913_v28, %v7911_v20  ;;  %v7910_v26 = vld [vmem:[#allocation48 + $0x400] sm:$0xff]  ;;  %v7915_v29 = vld [vmem:[#allocation48 + $0x428] sm:$0xff] }
0x19a9   : > { %v12115_v38 = vadd.f32 %v12114_v44, %v7487_v33  ;;  %v7599_v33 = vld [vmem:[#allocation48 + $0x100] sm:$0xff]  ;;  %v7606_v44 = vld [vmem:[#allocation48 + $0x138] sm:$0xff]  ;;  %v7912_v63 = vld [vmem:[#allocation48 + $0x410] sm:$0xff] }
0x19aa   : > { %v14868_v49 = vmax.f32 %v12113_v50, 0.0  ;;  %v11822_v50 = vpack.c.bf16 %v7601_v17, %v7599_v33  ;;  %v11824_v34 = vpack.c.bf16 %v7606_v44, %v7604_v39  ;;  %v7914_v17 = vld [vmem:[#allocation48 + $0x420] sm:$0xff]  ;;  %v7916_v39 = vld [vmem:[#allocation48 + $0x430] sm:$0xff]  ;;  %v7919_v44 = vld [vmem:[#allocation48 + $0x448] sm:$0xff] }
0x19ab   : > { %v14866_v46 = vmax.f32 %v12115_v38, 0.0  ;;  %v7605_v38 = vld [vmem:[#allocation48 + $0x130] sm:$0xff]  ;;  %v7947_v28 = vld [vmem:[#allocation48 + $0x528] sm:$0xff] }
0x19ac   : > { %v11826_v45 = vpack.c.bf16 %v7605_v38, %v7603_v36  ;;  %v11858_v36 = vpack.c.bf16 %v7916_v39, %v7914_v17  ;;  %v7944_v20 = vld [vmem:[#allocation48 + $0x510] sm:$0xff]  ;;  %v7950_v17 = vld [vmem:[#allocation48 + $0x540] sm:$0xff] }
0x19ad   : > { %7496 = vmatprep.subr.mxu1 %v14866_v46  ;;  %7760 = vmatprep.mubr.f32.mxu0 %v14866_v46  ;;  %v7952_v39 = vld [vmem:[#allocation48 + $0x550] sm:$0xff] }
0x19ae   : > { %7497 = vmatpush1.msra.mxu1 %v14868_v49  ;;  %7761 = vmatmul.mubr.f32.vlgmr.msra.gmra.mrb[52].mxu0 %v14868_v49 }
0x19af   : > { %9304 = vmatmul.mubr.msk.f32.vlgmr.msra.gmra.mrb[44].mxu1 %vm6918_vm8, %v14852_v62  ;;  %11789 = vmatprep.subr.bf16.mxu1 %v11788_v48  ;;  %v11802_v62 = vpack.c.bf16 %v7581_v9, %v7579_v59  ;;  %v7607_v48 = vld [vmem:[#allocation48 + $0x140] sm:$0xff]  ;;  %v7622_v59 = vld [vmem:[#allocation48 + $0x1b8] sm:$0xff] }
0x19b0   : > { %11791 = vmatpush1.bf16.msra.mxu1 %v11790_v51  ;;  %8469 = vmatprep.mubr.f32.mxu0 %v13571_v8  ;;  %v7609_v51 = vld [vmem:[#allocation48 + $0x150] sm:$0xff] }
0x19b1   : > { %11793 = vmatprep.subr.bf16.mxu1 %v11792_v37  ;;  %v7612_v37 = vld [vmem:[#allocation48 + $0x168] sm:$0xff]  ;;  %v11830_v5 = vpack.c.bf16 %v7609_v51, %v7607_v48  ;;  %v11862_v48 = vpack.c.bf16 %v7920_v42, %v7918_v41  ;;  %v7954_v41 = vld [vmem:[#allocation48 + $0x560] sm:$0xff]  ;;  %v7956_v42 = vld [vmem:[#allocation48 + $0x570] sm:$0xff] }
0x19b2   : > { %v11832_v54 = vpack.c.bf16 %v7614_v52, %v7612_v37  ;;  %v7922_v37 = vld [vmem:[#allocation48 + $0x460] sm:$0xff]  ;;  %v7924_v52 = vld [vmem:[#allocation48 + $0x470] sm:$0xff] }
0x19b4   : > { %11795 = vmatpush1.bf16.msra.mxu1 %v11794_v2  ;;  %v7613_v2 = vld [vmem:[#allocation48 + $0x170] sm:$0xff] }
0x19b5   : > { %11797 = vmatprep.subr.bf16.mxu1 %v11796_v61  ;;  %v7616_v61 = vld [vmem:[#allocation48 + $0x188] sm:$0xff]  ;;  %v11834_v6 = vpack.c.bf16 %v7613_v2, %v7611_v57  ;;  %v11866_v57 = vpack.c.bf16 %v7924_v52, %v7922_v37  ;;  %v7958_v37 = vld [vmem:[#allocation48 + $0x580] sm:$0xff]  ;;  %v7960_v52 = vld [vmem:[#allocation48 + $0x590] sm:$0xff] }
0x19b6   : > { %v11836_v56 = vpack.c.bf16 %v7618_v4, %v7616_v61  ;;  %v7926_v61 = vld [vmem:[#allocation48 + $0x480] sm:$0xff]  ;;  %v7928_v4 = vld [vmem:[#allocation48 + $0x490] sm:$0xff] }
0x19b8   : > { %11799 = vmatpush1.bf16.msra.mxu1 %v11798_v35  ;;  %v7617_v35 = vld [vmem:[#allocation48 + $0x190] sm:$0xff] }
0x19b9   : > { %11801 = vmatprep.subr.bf16.mxu1 %v11800_v25  ;;  %v7620_v25 = vld [vmem:[#allocation48 + $0x1a8] sm:$0xff]  ;;  %v11838_v9 = vpack.c.bf16 %v7617_v35, %v7615_v58  ;;  %v11870_v58 = vpack.c.bf16 %v7928_v4, %v7926_v61  ;;  %v7962_v61 = vld [vmem:[#allocation48 + $0x5a0] sm:$0xff]  ;;  %v7964_v4 = vld [vmem:[#allocation48 + $0x5b0] sm:$0xff] }
0x19ba   : > { %v11840_v10 = vpack.c.bf16 %v7622_v59, %v7620_v25  ;;  %v7930_v25 = vld [vmem:[#allocation48 + $0x4a0] sm:$0xff]  ;;  %v7932_v59 = vld [vmem:[#allocation48 + $0x4b0] sm:$0xff] }
0x19bc   : > { %11803 = vmatpush1.bf16.msra.mxu1 %v11802_v62  ;;  %v7621_v62 = vld [vmem:[#allocation48 + $0x1b0] sm:$0xff] }
0x19bd   : > { %11805 = vmatprep.subr.bf16.mxu1 %v11804_v14  ;;  %v7624_v14 = vld [vmem:[#allocation48 + $0x1c8] sm:$0xff]  ;;  %v11842_v23 = vpack.c.bf16 %v7621_v62, %v7619_v53  ;;  %v11874_v53 = vpack.c.bf16 %v7932_v59, %v7930_v25  ;;  %v7966_v25 = vld [vmem:[#allocation48 + $0x5c0] sm:$0xff]  ;;  %v7968_v59 = vld [vmem:[#allocation48 + $0x5d0] sm:$0xff] }
0x19be   : > { %v11844_v3 = vpack.c.bf16 %v7626_v12, %v7624_v14  ;;  %v7934_v14 = vld [vmem:[#allocation48 + $0x4c0] sm:$0xff]  ;;  %v7936_v12 = vld [vmem:[#allocation48 + $0x4d0] sm:$0xff] }
0x19c0   : > { %11807 = vmatpush1.bf16.msra.mxu1 %v11806_v11  ;;  %v7625_v11 = vld [vmem:[#allocation48 + $0x1d0] sm:$0xff] }
0x19c1   : > { %11809 = vmatprep.subr.bf16.mxu1 %v11808_v21  ;;  %v7628_v21 = vld [vmem:[#allocation48 + $0x1e8] sm:$0xff]  ;;  %v11846_v47 = vpack.c.bf16 %v7625_v11, %v7623_v18  ;;  %v11878_v18 = vpack.c.bf16 %v7936_v12, %v7934_v14  ;;  %v7970_v14 = vld [vmem:[#allocation48 + $0x5e0] sm:$0xff]  ;;  %v7972_v12 = vld [vmem:[#allocation48 + $0x5f0] sm:$0xff] }
0x19c2   : > { %v11848_v60 = vpack.c.bf16 %v7630_v27, %v7628_v21  ;;  %v7938_v21 = vld [vmem:[#allocation48 + $0x4e0] sm:$0xff]  ;;  %v7940_v27 = vld [vmem:[#allocation48 + $0x4f0] sm:$0xff] }
0x19c4   : > { %11811 = vmatpush1.bf16.msra.mxu1 %v11810_v24  ;;  %v7629_v24 = vld [vmem:[#allocation48 + $0x1f0] sm:$0xff] }
0x19c5   : > { %11813 = vmatprep.subr.bf16.mxu1 %v11812_v32  ;;  %v11850_v32 = vpack.c.bf16 %v7629_v24, %v7627_v0  ;;  %v11882_v0 = vpack.c.bf16 %v7940_v27, %v7938_v21 }
0x19c8   : > { %11815 = vmatpush1.bf16.msra.mxu1 %v11814_v13 }
0x19c9   : > { %11817 = vmatprep.subr.bf16.mxu1 %v11816_v1 }
0x19cc   : > { %11819 = vmatpush1.bf16.msra.mxu1 %v11818_v30  ;;  %v7917_v30 = vld [vmem:[#allocation48 + $0x438] sm:$0xff] }
0x19cd   : > { %11821 = vmatprep.subr.bf16.mxu1 %v11820_v31  ;;  %v11854_v31 = vpack.c.bf16 %v7912_v63, %v7910_v26  ;;  %v11856_v33 = vpack.c.bf16 %v7917_v30, %v7915_v29  ;;  %v7946_v26 = vld [vmem:[#allocation48 + $0x520] sm:$0xff]  ;;  %v7948_v63 = vld [vmem:[#allocation48 + $0x530] sm:$0xff]  ;;  %v7951_v29 = vld [vmem:[#allocation48 + $0x548] sm:$0xff] }
0x19ce   : > { %v7953_v30 = vld [vmem:[#allocation48 + $0x558] sm:$0xff] }
0x19d0   : > { %11823 = vmatpush1.bf16.msra.mxu1 %v11822_v50  ;;  %v7921_v50 = vld [vmem:[#allocation48 + $0x458] sm:$0xff] }
0x19d1   : > { %11825 = vmatprep.subr.bf16.mxu1 %v11824_v34  ;;  %v14884_v34 = vld [vmem:[#allocation9 + $0x10] sm:$0xff]  ;;  %v11860_v38 = vpack.c.bf16 %v7921_v50, %v7919_v44  ;;  %v7955_v44 = vld [vmem:[#allocation48 + $0x568] sm:$0xff] }
0x19d2   : > { %v7957_v50 = vld [vmem:[#allocation48 + $0x578] sm:$0xff] }
0x19d4   : > { %11827 = vmatpush1.bf16.msra.mxu1 %v11826_v45  ;;  %v7923_v45 = vld [vmem:[#allocation48 + $0x468] sm:$0xff] }
0x19d5   : > { %11829 = vmatprep.subr.bf16.mxu1 %v11828_v43  ;;  %v7925_v43 = vld [vmem:[#allocation48 + $0x478] sm:$0xff] }
0x19d6   : > { %v11864_v51 = vpack.c.bf16 %v7925_v43, %v7923_v45  ;;  %v7959_v45 = vld [vmem:[#allocation48 + $0x588] sm:$0xff]  ;;  %v7961_v43 = vld [vmem:[#allocation48 + $0x598] sm:$0xff] }
0x19d8   : > { %11831 = vmatpush1.bf16.msra.mxu1 %v11830_v5  ;;  %v7927_v5 = vld [vmem:[#allocation48 + $0x488] sm:$0xff] }
0x19d9   : > { %11833 = vmatprep.subr.bf16.mxu1 %v11832_v54  ;;  %v7929_v54 = vld [vmem:[#allocation48 + $0x498] sm:$0xff] }
0x19da   : > { %v11868_v2 = vpack.c.bf16 %v7929_v54, %v7927_v5  ;;  %v7963_v5 = vld [vmem:[#allocation48 + $0x5a8] sm:$0xff]  ;;  %v7965_v54 = vld [vmem:[#allocation48 + $0x5b8] sm:$0xff] }
0x19dc   : > { %11835 = vmatpush1.bf16.msra.mxu1 %v11834_v6  ;;  %v7931_v6 = vld [vmem:[#allocation48 + $0x4a8] sm:$0xff] }
0x19dd   : > { %11837 = vmatprep.subr.bf16.mxu1 %v11836_v56  ;;  %v7933_v56 = vld [vmem:[#allocation48 + $0x4b8] sm:$0xff] }
0x19de   : > { %v11872_v35 = vpack.c.bf16 %v7933_v56, %v7931_v6  ;;  %v7967_v6 = vld [vmem:[#allocation48 + $0x5c8] sm:$0xff]  ;;  %v7969_v56 = vld [vmem:[#allocation48 + $0x5d8] sm:$0xff] }
0x19e0   : > { %11839 = vmatpush1.bf16.msra.mxu1 %v11838_v9  ;;  %v7935_v9 = vld [vmem:[#allocation48 + $0x4c8] sm:$0xff] }
0x19e1   : > { %11841 = vmatprep.subr.bf16.mxu1 %v11840_v10  ;;  %v7937_v10 = vld [vmem:[#allocation48 + $0x4d8] sm:$0xff] }
0x19e2   : > { %v11876_v62 = vpack.c.bf16 %v7937_v10, %v7935_v9  ;;  %v7971_v9 = vld [vmem:[#allocation48 + $0x5e8] sm:$0xff]  ;;  %v7973_v10 = vld [vmem:[#allocation48 + $0x5f8] sm:$0xff] }
0x19e4   : > { %11843 = vmatpush1.bf16.msra.mxu1 %v11842_v23  ;;  %v7939_v23 = vld [vmem:[#allocation48 + $0x4e8] sm:$0xff] }
0x19e5   : > { %11845 = vmatprep.subr.bf16.mxu1 %v11844_v3  ;;  %v7941_v3 = vld [vmem:[#allocation48 + $0x4f8] sm:$0xff] }
0x19e6   : > { %v11880_v11 = vpack.c.bf16 %v7941_v3, %v7939_v23  ;;  %v11914_v23 = vpack.c.bf16 %v7972_v12, %v7970_v14  ;;  %v8228_v14 = vld [vmem:[#allocation51 + $0x2e8] sm:$0xff]  ;;  %v8230_v12 = vld [vmem:[#allocation51 + $0x2f8] sm:$0xff] }
0x19e8   : > { %11847 = vmatpush1.bf16.msra.mxu1 %v11846_v47  ;;  %v7943_v47 = vld [vmem:[#allocation48 + $0x508] sm:$0xff] }
0x19e9   : > { %11849 = vmatprep.subr.bf16.mxu1 %v11848_v60  ;;  %v7945_v60 = vld [vmem:[#allocation48 + $0x518] sm:$0xff] }
0x19ea   : > { %v11884_v24 = vpack.c.bf16 %v7945_v60, %v7943_v47 }
0x19ec   : > { %11851 = vmatpush1.bf16.msra.mxu1 %v11850_v32  ;;  %v7942_v32 = vld [vmem:[#allocation48 + $0x500] sm:$0xff] }
0x19ed   : > { %7838 = vmatprep.subr.mxu1 %v14866_v46 }
0x1a81   : > { %v14878_v22 = vpop.f32.mrb[52].mxu0 }
0x1a82   : > { %v7562_v16 = vpop.f32.mrb[44].mxu1  ;;  %v14880_v13 = vpop.f32.mrb[53].mxu0 }
0x1a83   : > { %v7564_v1 = vpop.f32.mrb[45].mxu1 }
0x1a84   : > { %7831 = vmatprep.mubr.f32.mxu1 %v7564_v1  ;;  %v11886_v1 = vpack.c.bf16 %v7944_v20, %v7942_v32  ;;  %v8200_v20 = vld [vmem:[#allocation51 + $0x208] sm:$0xff] }
0x1a85   : > { %7832 = vmatmul.mubr.f32.vlgmr.msra.gmra.mrb[46].mxu1 %v7562_v16  ;;  %v7949_v16 = vld [vmem:[#allocation48 + $0x538] sm:$0xff] }
0x1a86   : > { %7839 = vmatpush1.msra.mxu1 %v14868_v49  ;;  %7902 = vmatprep.mubr.f32.mxu1 %v13571_v8 }
0x1a87   : > { %11853 = vmatprep.subr.bf16.mxu1 %v11852_v19  ;;  %v11888_v19 = vpack.c.bf16 %v7949_v16, %v7947_v28  ;;  %v8202_v28 = vld [vmem:[#allocation51 + $0x218] sm:$0xff] }
0x1a89   : > { %9305 = vmatmul.mubr.msk.f32.vlgmr.msra.gmra.mrb[48].mxu1 %vm6918_vm8, %v14884_v34 }
0x1a8a   : > { %11855 = vmatpush1.bf16.msra.mxu1 %v11854_v31  ;;  %v11890_v31 = vpack.c.bf16 %v7948_v63, %v7946_v26  ;;  %v8204_v26 = vld [vmem:[#allocation51 + $0x228] sm:$0xff]  ;;  %v8206_v63 = vld [vmem:[#allocation51 + $0x238] sm:$0xff] }
0x1a8b   : > { %11857 = vmatprep.subr.bf16.mxu1 %v11856_v33  ;;  %v11892_v33 = vpack.c.bf16 %v7953_v30, %v7951_v29  ;;  %v11916_v29 = vpack.c.bf16 %v8202_v28, %v8200_v20  ;;  %v8238_v20 = vld [vmem:[#allocation51 + $0x338] sm:$0xff] }
0x1a8e   : > { %11859 = vmatpush1.bf16.msra.mxu1 %v11858_v36  ;;  %v11894_v36 = vpack.c.bf16 %v7952_v39, %v7950_v17  ;;  %v8205_v17 = vld [vmem:[#allocation51 + $0x230] sm:$0xff]  ;;  %v8210_v39 = vld [vmem:[#allocation51 + $0x258] sm:$0xff] }
0x1a8f   : > { %11861 = vmatprep.subr.bf16.mxu1 %v11860_v38  ;;  %v11896_v38 = vpack.c.bf16 %v7957_v50, %v7955_v44  ;;  %v12520_v44 = vld [vmem:[#allocation9] sm:$0xff] }
0x1a92   : > { %11863 = vmatpush1.bf16.msra.mxu1 %v11862_v48  ;;  %v11898_v48 = vpack.c.bf16 %v7956_v42, %v7954_v41  ;;  %v8209_v41 = vld [vmem:[#allocation51 + $0x250] sm:$0xff]  ;;  %v8212_v42 = vld [vmem:[#allocation51 + $0x268] sm:$0xff] }
0x1a93   : > { %11865 = vmatprep.subr.bf16.mxu1 %v11864_v51  ;;  %v11900_v51 = vpack.c.bf16 %v7961_v43, %v7959_v45  ;;  %v8214_v45 = vld [vmem:[#allocation51 + $0x278] sm:$0xff] }
0x1a96   : > { %11867 = vmatpush1.bf16.msra.mxu1 %v11866_v57  ;;  %v11902_v57 = vpack.c.bf16 %v7960_v52, %v7958_v37  ;;  %v8213_v37 = vld [vmem:[#allocation51 + $0x270] sm:$0xff]  ;;  %v8216_v52 = vld [vmem:[#allocation51 + $0x288] sm:$0xff] }
0x1a97   : > { %11869 = vmatprep.subr.bf16.mxu1 %v11868_v2  ;;  %v11904_v2 = vpack.c.bf16 %v7965_v54, %v7963_v5  ;;  %v8218_v5 = vld [vmem:[#allocation51 + $0x298] sm:$0xff] }
0x1a9a   : > { %11871 = vmatpush1.bf16.msra.mxu1 %v11870_v58  ;;  %v11906_v58 = vpack.c.bf16 %v7964_v4, %v7962_v61  ;;  %v8217_v61 = vld [vmem:[#allocation51 + $0x290] sm:$0xff]  ;;  %v8220_v4 = vld [vmem:[#allocation51 + $0x2a8] sm:$0xff] }
0x1a9b   : > { %11873 = vmatprep.subr.bf16.mxu1 %v11872_v35  ;;  %v11908_v35 = vpack.c.bf16 %v7969_v56, %v7967_v6  ;;  %v8222_v6 = vld [vmem:[#allocation51 + $0x2b8] sm:$0xff] }
0x1a9c   : > { %v11936_v56 = vpack.c.bf16 %v8222_v6, %v8220_v4  ;;  %v8255_v6 = vld [vmem:[#allocation51 + $0x3c0] sm:$0xff] }
0x1a9e   : > { %11875 = vmatpush1.bf16.msra.mxu1 %v11874_v53  ;;  %v11910_v53 = vpack.c.bf16 %v7968_v59, %v7966_v25  ;;  %v8224_v25 = vld [vmem:[#allocation51 + $0x2c8] sm:$0xff]  ;;  %v8226_v59 = vld [vmem:[#allocation51 + $0x2d8] sm:$0xff] }
0x1a9f   : > { %11877 = vmatprep.subr.bf16.mxu1 %v11876_v62  ;;  %v11912_v62 = vpack.c.bf16 %v7973_v10, %v7971_v9  ;;  %v11940_v10 = vpack.c.bf16 %v8226_v59, %v8224_v25  ;;  %v8259_v59 = vld [vmem:[#allocation51 + $0x3e0] sm:$0xff] }
0x1aa2   : > { %11879 = vmatpush1.bf16.msra.mxu1 %v11878_v18 }
0x1aa3   : > { %11881 = vmatprep.subr.bf16.mxu1 %v11880_v11  ;;  %v8047_v11 = vld [vmem:[#allocation49] sm:$0x3] }
0x1aa4   : > { %v8052_v21 = vrot.slane %v8047_v11, %v14845_v40  ;;  %v8056_v47 = vrot.slane %v8047_v11, %v14848_v55  ;;  %v8229_v11 = vld [vmem:[#allocation51 + $0x2f0] sm:$0xff] }
0x1aa6   : > { %11883 = vmatpush1.bf16.msra.mxu1 %v11882_v0 }
0x1aa7   : > { %11885 = vmatprep.subr.bf16.mxu1 %v11884_v24 }
0x1aaa   : > { %11887 = vmatpush1.bf16.msra.mxu1 %v11886_v1  ;;  %v8199_v1 = vld [vmem:[#allocation51 + $0x200] sm:$0xff] }
0x1aab   : > { %11889 = vmatprep.subr.bf16.mxu1 %v11888_v19  ;;  %v8201_v19 = vld [vmem:[#allocation51 + $0x210] sm:$0xff] }
0x1aae   : > { %11891 = vmatpush1.bf16.msra.mxu1 %v11890_v31  ;;  %v11918_v31 = vpack.c.bf16 %v8201_v19, %v8199_v1  ;;  %v8235_v1 = vld [vmem:[#allocation51 + $0x320] sm:$0xff]  ;;  %v8237_v19 = vld [vmem:[#allocation51 + $0x330] sm:$0xff] }
0x1aaf   : > { %11893 = vmatprep.subr.bf16.mxu1 %v11892_v33  ;;  %v11920_v33 = vpack.c.bf16 %v8206_v63, %v8204_v26  ;;  %v8240_v26 = vld [vmem:[#allocation51 + $0x348] sm:$0xff]  ;;  %v8242_v63 = vld [vmem:[#allocation51 + $0x358] sm:$0xff] }
0x1ab2   : > { %11895 = vmatpush1.bf16.msra.mxu1 %v11894_v36 }
0x1ab3   : > { %11897 = vmatprep.subr.bf16.mxu1 %v11896_v38  ;;  %v8207_v38 = vld [vmem:[#allocation51 + $0x240] sm:$0xff] }
0x1ab4   : > { %v11926_v43 = vpack.c.bf16 %v8209_v41, %v8207_v38  ;;  %v8250_v38 = vld [vmem:[#allocation51 + $0x398] sm:$0xff] }
0x1ab6   : > { %11899 = vmatpush1.bf16.msra.mxu1 %v11898_v48  ;;  %v11928_v48 = vpack.c.bf16 %v8214_v45, %v8212_v42  ;;  %v8247_v45 = vld [vmem:[#allocation51 + $0x380] sm:$0xff] }
0x1ab7   : > { %11901 = vmatprep.subr.bf16.mxu1 %v11900_v51  ;;  %v8211_v51 = vld [vmem:[#allocation51 + $0x260] sm:$0xff] }
0x1ab8   : > { %v11930_v54 = vpack.c.bf16 %v8213_v37, %v8211_v51  ;;  %v8254_v51 = vld [vmem:[#allocation51 + $0x3b8] sm:$0xff] }
0x1aba   : > { %11903 = vmatpush1.bf16.msra.mxu1 %v11902_v57  ;;  %v11932_v57 = vpack.c.bf16 %v8218_v5, %v8216_v52  ;;  %v8251_v5 = vld [vmem:[#allocation51 + $0x3a0] sm:$0xff] }
0x1abb   : > { %11905 = vmatprep.subr.bf16.mxu1 %v11904_v2  ;;  %v8215_v2 = vld [vmem:[#allocation51 + $0x280] sm:$0xff] }
0x1abe   : > { %11907 = vmatpush1.bf16.msra.mxu1 %v11906_v58  ;;  %v8219_v58 = vld [vmem:[#allocation51 + $0x2a0] sm:$0xff] }
0x1abf   : > { %11909 = vmatprep.subr.bf16.mxu1 %v11908_v35  ;;  %v8221_v35 = vld [vmem:[#allocation51 + $0x2b0] sm:$0xff] }
0x1ac0   : > { %v11938_v9 = vpack.c.bf16 %v8221_v35, %v8219_v58  ;;  %v8262_v58 = vld [vmem:[#allocation51 + $0x3f8] sm:$0xff] }
0x1ac2   : > { %11911 = vmatpush1.bf16.msra.mxu1 %v11910_v53  ;;  %v8223_v53 = vld [vmem:[#allocation51 + $0x2c0] sm:$0xff] }
0x1ac3   : > { %11913 = vmatprep.subr.bf16.mxu1 %v11912_v62  ;;  %v8225_v62 = vld [vmem:[#allocation51 + $0x2d0] sm:$0xff] }
0x1ac6   : > { %11915 = vmatpush1.bf16.msra.mxu1 %v11914_v23  ;;  %v11942_v23 = vpack.c.bf16 %v8225_v62, %v8223_v53  ;;  %v8137_v53 = vld [vmem:[#allocation51 + $0x18] sm:$0xff] }
0x1b5c   : > { %v7904_v3 = vpop.f32.mrb[48].mxu1 }
0x1b5d   : > { %v7906_v18 = vpop.f32.mrb[49].mxu1 }
0x1b5e   : > { %8038 = vmatprep.mubr.f32.mxu1 %v7906_v18  ;;  %v8227_v18 = vld [vmem:[#allocation51 + $0x2e0] sm:$0xff] }
0x1b5f   : > { %8039 = vmatmul.mubr.f32.vlgmr.msra.gmra.mrb[46].mxu1 %v7904_v3  ;;  %v11944_v3 = vpack.c.bf16 %v8230_v12, %v8228_v14  ;;  %v8134_v12 = vld [vmem:[#allocation51] sm:$0xff] }
0x1b60   : > { %8127 = vmatprep.mubr.f32.mxu1 %v13571_v8 }
0x1c32   : > { %v8040_v27 = vpop.f32.mrb[46].mxu1 }
0x1c33   : > { %v12116_v60 = vadd.f32 %v8040_v27, %v14878_v22  ;;  %v8042_v0 = vpop.f32.mrb[47].mxu1  ;;  %v8203_v22 = vld [vmem:[#allocation51 + $0x220] sm:$0xff]  ;;  %v8234_v27 = vld [vmem:[#allocation51 + $0x318] sm:$0xff] }
0x1c34   : > { %v12117_v24 = vadd.f32 %v8042_v0, %v14880_v13  ;;  %v8208_v13 = vld [vmem:[#allocation51 + $0x248] sm:$0xff]  ;;  %v11922_v50 = vpack.c.bf16 %v8205_v17, %v8203_v22  ;;  %v8231_v0 = vld [vmem:[#allocation51 + $0x300] sm:$0xff]  ;;  %v8246_v17 = vld [vmem:[#allocation51 + $0x378] sm:$0xff] }
0x1c35   : > { %v8059_v32 = vadd.f32 %v12116_v60, %v8052_v21  ;;  %v11924_v36 = vpack.c.bf16 %v8210_v39, %v8208_v13  ;;  %v8232_v21 = vld [vmem:[#allocation51 + $0x308] sm:$0xff] }
0x1c36   : > { %v8060_v16 = vadd.f32 %v12117_v24, %v8056_v47  ;;  %v11946_v47 = vpack.c.bf16 %v8229_v11, %v8227_v18  ;;  %v11948_v60 = vpack.c.bf16 %v8234_v27, %v8232_v21  ;;  %v8233_v24 = vld [vmem:[#allocation51 + $0x310] sm:$0xff]  ;;  %v8244_v22 = vld [vmem:[#allocation51 + $0x368] sm:$0xff]  ;;  %v8141_v18 = vld [vmem:[#allocation51 + $0x38] sm:$0xff] }
0x1c37   : > { %v14893_v30 = vmax.f32 %v8059_v32, 0.0  ;;  %v8236_v32 = vld [vmem:[#allocation51 + $0x328] sm:$0xff]  ;;  %v11950_v28 = vpack.c.bf16 %v8233_v24, %v8231_v0  ;;  %v11960_v39 = vpack.c.bf16 %v8246_v17, %v8244_v22  ;;  %v8138_v27 = vld [vmem:[#allocation51 + $0x20] sm:$0xff]  ;;  %v8145_v0 = vld [vmem:[#allocation51 + $0x58] sm:$0xff] }
0x1c38   : > { %v8062_v8 = vmax.f32 %v8060_v16, 0.0  ;;  %v11952_v16 = vpack.c.bf16 %v8238_v20, %v8236_v32  ;;  %v8142_v20 = vld [vmem:[#allocation51 + $0x40] sm:$0xff]  ;;  %v8152_v17 = vld [vmem:[#allocation51 + $0x90] sm:$0xff] }
0x1c39   : > { %v8150_v22 = vld [vmem:[#allocation51 + $0x80] sm:$0xff] }
0x1c3a   : > { %8063 = vmatprep.subr.mxu1 %v8062_v8  ;;  %8405 = vmatprep.subr.mxu0 %v8062_v8 }
0x1c3b   : > { %8064 = vmatpush1.msra.mxu1 %v14893_v30  ;;  %8406 = vmatpush1.msra.mxu0 %v14893_v30 }
0x1c3c   : > { %9306 = vmatmul.mubr.msk.f32.vlgmr.msra.gmra.mrb[50].mxu1 %vm6918_vm8, %v12520_v44  ;;  %11917 = vmatprep.subr.bf16.mxu1 %v11916_v29  ;;  %v11956_v29 = vpack.c.bf16 %v8242_v63, %v8240_v26  ;;  %v8243_v44 = vld [vmem:[#allocation51 + $0x360] sm:$0xff] }
0x1c3d   : > { %11919 = vmatpush1.bf16.msra.mxu1 %v11918_v31  ;;  %8327 = vmatprep.mubr.f32.mxu1 %v8062_v8  ;;  %v11954_v8 = vpack.c.bf16 %v8237_v19, %v8235_v1  ;;  %v8239_v31 = vld [vmem:[#allocation51 + $0x340] sm:$0xff]  ;;  %v8149_v1 = vld [vmem:[#allocation51 + $0x78] sm:$0xff] }
0x1c3e   : > { %11921 = vmatprep.subr.bf16.mxu1 %v11920_v33  ;;  %9307 = vmatmul.mubr.msk.f32.vlgmr.msra.gmra.mrb[54].mxu0 %vm6918_vm8, %v14884_v34  ;;  %v11934_v34 = vpack.c.bf16 %v8217_v61, %v8215_v2  ;;  %v8241_v33 = vld [vmem:[#allocation51 + $0x350] sm:$0xff]  ;;  %v8258_v2 = vld [vmem:[#allocation51 + $0x3d8] sm:$0xff]  ;;  %v8146_v63 = vld [vmem:[#allocation51 + $0x60] sm:$0xff] }
0x1c3f   : > { %v11958_v13 = vpack.c.bf16 %v8241_v33, %v8239_v31  ;;  %v8153_v31 = vld [vmem:[#allocation51 + $0x98] sm:$0xff] }
0x1c41   : > { %11923 = vmatpush1.bf16.msra.mxu1 %v11922_v50  ;;  %v8245_v50 = vld [vmem:[#allocation51 + $0x370] sm:$0xff] }
0x1c42   : > { %11925 = vmatprep.subr.bf16.mxu1 %v11924_v36  ;;  %v8248_v36 = vld [vmem:[#allocation51 + $0x388] sm:$0xff]  ;;  %v11962_v41 = vpack.c.bf16 %v8245_v50, %v8243_v44  ;;  %v11998_v44 = vpack.c.bf16 %v8152_v17, %v8150_v22 }
0x1c43   : > { %v11964_v42 = vpack.c.bf16 %v8250_v38, %v8248_v36  ;;  %v8154_v36 = vld [vmem:[#allocation51 + $0xa0] sm:$0xff]  ;;  %v8156_v38 = vld [vmem:[#allocation51 + $0xb0] sm:$0xff] }
0x1c45   : > { %11927 = vmatpush1.bf16.msra.mxu1 %v11926_v43  ;;  %v8249_v43 = vld [vmem:[#allocation51 + $0x390] sm:$0xff] }
0x1c46   : > { %11929 = vmatprep.subr.bf16.mxu1 %v11928_v48  ;;  %v8252_v48 = vld [vmem:[#allocation51 + $0x3a8] sm:$0xff]  ;;  %v11966_v37 = vpack.c.bf16 %v8249_v43, %v8247_v45  ;;  %v12002_v45 = vpack.c.bf16 %v8156_v38, %v8154_v36 }
0x1c47   : > { %v11968_v52 = vpack.c.bf16 %v8254_v51, %v8252_v48  ;;  %v8158_v48 = vld [vmem:[#allocation51 + $0xc0] sm:$0xff]  ;;  %v8160_v51 = vld [vmem:[#allocation51 + $0xd0] sm:$0xff] }
0x1c49   : > { %11931 = vmatpush1.bf16.msra.mxu1 %v11930_v54  ;;  %v8253_v54 = vld [vmem:[#allocation51 + $0x3b0] sm:$0xff] }
0x1c4a   : > { %11933 = vmatprep.subr.bf16.mxu1 %v11932_v57  ;;  %v8256_v57 = vld [vmem:[#allocation51 + $0x3c8] sm:$0xff]  ;;  %v11970_v61 = vpack.c.bf16 %v8253_v54, %v8251_v5  ;;  %v12006_v5 = vpack.c.bf16 %v8160_v51, %v8158_v48 }
0x1c4b   : > { %v11972_v4 = vpack.c.bf16 %v8258_v2, %v8256_v57  ;;  %v8162_v57 = vld [vmem:[#allocation51 + $0xe0] sm:$0xff]  ;;  %v8164_v2 = vld [vmem:[#allocation51 + $0xf0] sm:$0xff] }
0x1c4d   : > { %11935 = vmatpush1.bf16.msra.mxu1 %v11934_v34  ;;  %v8257_v34 = vld [vmem:[#allocation51 + $0x3d0] sm:$0xff] }
0x1c4e   : > { %11937 = vmatprep.subr.bf16.mxu1 %v11936_v56  ;;  %v8260_v56 = vld [vmem:[#allocation51 + $0x3e8] sm:$0xff]  ;;  %v11974_v35 = vpack.c.bf16 %v8257_v34, %v8255_v6  ;;  %v12010_v6 = vpack.c.bf16 %v8164_v2, %v8162_v57 }
0x1c4f   : > { %v11976_v25 = vpack.c.bf16 %v8262_v58, %v8260_v56  ;;  %v8166_v56 = vld [vmem:[#allocation51 + $0x100] sm:$0xff]  ;;  %v8168_v58 = vld [vmem:[#allocation51 + $0x110] sm:$0xff] }
0x1c51   : > { %11939 = vmatpush1.bf16.msra.mxu1 %v11938_v9  ;;  %v8261_v9 = vld [vmem:[#allocation51 + $0x3f0] sm:$0xff] }
0x1c52   : > { %11941 = vmatprep.subr.bf16.mxu1 %v11940_v10  ;;  %v8135_v10 = vld [vmem:[#allocation51 + $0x8] sm:$0xff]  ;;  %v11978_v62 = vpack.c.bf16 %v8261_v9, %v8259_v59  ;;  %v12014_v59 = vpack.c.bf16 %v8168_v58, %v8166_v56  ;;  %v8488_v58 = vld [vmem:[#allocation51 + $0x458] sm:$0xff] }
0x1c53   : > { %v11980_v14 = vpack.c.bf16 %v8137_v53, %v8135_v10  ;;  %v8170_v10 = vld [vmem:[#allocation51 + $0x120] sm:$0xff]  ;;  %v8172_v53 = vld [vmem:[#allocation51 + $0x130] sm:$0xff]  ;;  %v8486_v56 = vld [vmem:[#allocation51 + $0x448] sm:$0xff] }
0x1c55   : > { %11943 = vmatpush1.bf16.msra.mxu1 %v11942_v23  ;;  %v8136_v23 = vld [vmem:[#allocation51 + $0x10] sm:$0xff] }
0x1c56   : > { %11945 = vmatprep.subr.bf16.mxu1 %v11944_v3  ;;  %v8139_v3 = vld [vmem:[#allocation51 + $0x28] sm:$0xff]  ;;  %v11982_v11 = vpack.c.bf16 %v8136_v23, %v8134_v12  ;;  %v12018_v12 = vpack.c.bf16 %v8172_v53, %v8170_v10  ;;  %v8485_v10 = vld [vmem:[#allocation51 + $0x440] sm:$0xff]  ;;  %v8487_v53 = vld [vmem:[#allocation51 + $0x450] sm:$0xff] }
0x1c57   : > { %v11984_v21 = vpack.c.bf16 %v8141_v18, %v8139_v3  ;;  %v8174_v3 = vld [vmem:[#allocation51 + $0x140] sm:$0xff]  ;;  %v8176_v18 = vld [vmem:[#allocation51 + $0x150] sm:$0xff] }
0x1c59   : > { %11947 = vmatpush1.bf16.msra.mxu1 %v11946_v47  ;;  %v8140_v47 = vld [vmem:[#allocation51 + $0x30] sm:$0xff] }
0x1c5a   : > { %11949 = vmatprep.subr.bf16.mxu1 %v11948_v60  ;;  %v8143_v60 = vld [vmem:[#allocation51 + $0x48] sm:$0xff]  ;;  %v11986_v24 = vpack.c.bf16 %v8140_v47, %v8138_v27  ;;  %v12022_v27 = vpack.c.bf16 %v8176_v18, %v8174_v3  ;;  %v8489_v3 = vld [vmem:[#allocation51 + $0x460] sm:$0xff]  ;;  %v8491_v18 = vld [vmem:[#allocation51 + $0x470] sm:$0xff] }
0x1c5b   : > { %v11988_v32 = vpack.c.bf16 %v8145_v0, %v8143_v60  ;;  %v8178_v60 = vld [vmem:[#allocation51 + $0x160] sm:$0xff]  ;;  %v8180_v0 = vld [vmem:[#allocation51 + $0x170] sm:$0xff] }
0x1c5d   : > { %11951 = vmatpush1.bf16.msra.mxu1 %v11950_v28  ;;  %v8144_v28 = vld [vmem:[#allocation51 + $0x50] sm:$0xff] }
0x1c5e   : > { %11953 = vmatprep.subr.bf16.mxu1 %v11952_v16  ;;  %v8147_v16 = vld [vmem:[#allocation51 + $0x68] sm:$0xff]  ;;  %v11990_v19 = vpack.c.bf16 %v8144_v28, %v8142_v20  ;;  %v12026_v20 = vpack.c.bf16 %v8180_v0, %v8178_v60  ;;  %v8493_v60 = vld [vmem:[#allocation51 + $0x480] sm:$0xff]  ;;  %v8495_v0 = vld [vmem:[#allocation51 + $0x490] sm:$0xff] }
0x1c5f   : > { %v11992_v26 = vpack.c.bf16 %v8149_v1, %v8147_v16  ;;  %v8182_v16 = vld [vmem:[#allocation51 + $0x180] sm:$0xff]  ;;  %v8184_v1 = vld [vmem:[#allocation51 + $0x190] sm:$0xff] }
0x1c61   : > { %11955 = vmatpush1.bf16.msra.mxu1 %v11954_v8  ;;  %v8148_v8 = vld [vmem:[#allocation51 + $0x70] sm:$0xff] }
0x1c62   : > { %11957 = vmatprep.subr.bf16.mxu1 %v11956_v29  ;;  %v8151_v29 = vld [vmem:[#allocation51 + $0x88] sm:$0xff]  ;;  %v11994_v33 = vpack.c.bf16 %v8148_v8, %v8146_v63  ;;  %v12030_v63 = vpack.c.bf16 %v8184_v1, %v8182_v16  ;;  %v8497_v16 = vld [vmem:[#allocation51 + $0x4a0] sm:$0xff]  ;;  %v8499_v1 = vld [vmem:[#allocation51 + $0x4b0] sm:$0xff] }
0x1c65   : > { %11959 = vmatpush1.bf16.msra.mxu1 %v11958_v13  ;;  %v8155_v13 = vld [vmem:[#allocation51 + $0xa8] sm:$0xff] }
0x1c66   : > { %11961 = vmatprep.subr.bf16.mxu1 %v11960_v39  ;;  %v8157_v39 = vld [vmem:[#allocation51 + $0xb8] sm:$0xff] }
0x1c67   : > { %v12000_v50 = vpack.c.bf16 %v8157_v39, %v8155_v13  ;;  %v8190_v13 = vld [vmem:[#allocation51 + $0x1c0] sm:$0xff]  ;;  %v8192_v39 = vld [vmem:[#allocation51 + $0x1d0] sm:$0xff] }
0x1c68   : > { %v12038_v36 = vpack.c.bf16 %v8192_v39, %v8190_v13  ;;  %v8505_v13 = vld [vmem:[#allocation51 + $0x4e0] sm:$0xff]  ;;  %v8507_v39 = vld [vmem:[#allocation51 + $0x4f0] sm:$0xff] }
0x1c69   : > { %11963 = vmatpush1.bf16.msra.mxu1 %v11962_v41  ;;  %v8159_v41 = vld [vmem:[#allocation51 + $0xc8] sm:$0xff] }
0x1c6a   : > { %11965 = vmatprep.subr.bf16.mxu1 %v11964_v42  ;;  %v8161_v42 = vld [vmem:[#allocation51 + $0xd8] sm:$0xff] }
0x1c6b   : > { %v12004_v43 = vpack.c.bf16 %v8161_v42, %v8159_v41  ;;  %v8194_v41 = vld [vmem:[#allocation51 + $0x1e0] sm:$0xff]  ;;  %v8196_v42 = vld [vmem:[#allocation51 + $0x1f0] sm:$0xff] }
0x1c6c   : > { %v12042_v48 = vpack.c.bf16 %v8196_v42, %v8194_v41  ;;  %v8509_v41 = vld [vmem:[#allocation51 + $0x500] sm:$0xff]  ;;  %v8511_v42 = vld [vmem:[#allocation51 + $0x510] sm:$0xff] }
0x1c6d   : > { %11967 = vmatpush1.bf16.msra.mxu1 %v11966_v37  ;;  %v8163_v37 = vld [vmem:[#allocation51 + $0xe8] sm:$0xff] }
0x1c6e   : > { %11969 = vmatprep.subr.bf16.mxu1 %v11968_v52  ;;  %v8165_v52 = vld [vmem:[#allocation51 + $0xf8] sm:$0xff] }
0x1c6f   : > { %v12008_v54 = vpack.c.bf16 %v8165_v52, %v8163_v37  ;;  %v8477_v37 = vld [vmem:[#allocation51 + $0x400] sm:$0xff]  ;;  %v8479_v52 = vld [vmem:[#allocation51 + $0x410] sm:$0xff] }
0x1c70   : > { %v12046_v2 = vpack.c.bf16 %v8479_v52, %v8477_v37  ;;  %v8513_v37 = vld [vmem:[#allocation51 + $0x520] sm:$0xff]  ;;  %v8515_v52 = vld [vmem:[#allocation51 + $0x530] sm:$0xff] }
0x1c71   : > { %11971 = vmatpush1.bf16.msra.mxu1 %v11970_v61  ;;  %v8167_v61 = vld [vmem:[#allocation51 + $0x108] sm:$0xff] }
0x1c72   : > { %11973 = vmatprep.subr.bf16.mxu1 %v11972_v4  ;;  %v8169_v4 = vld [vmem:[#allocation51 + $0x118] sm:$0xff] }
0x1c73   : > { %v12012_v34 = vpack.c.bf16 %v8169_v4, %v8167_v61 }
0x1c75   : > { %11975 = vmatpush1.bf16.msra.mxu1 %v11974_v35  ;;  %v8171_v35 = vld [vmem:[#allocation51 + $0x128] sm:$0xff] }
0x1c76   : > { %11977 = vmatprep.subr.bf16.mxu1 %v11976_v25  ;;  %v8173_v25 = vld [vmem:[#allocation51 + $0x138] sm:$0xff] }
0x1c77   : > { %v12016_v9 = vpack.c.bf16 %v8173_v25, %v8171_v35 }
0x1c79   : > { %11979 = vmatpush1.bf16.msra.mxu1 %v11978_v62  ;;  %v8175_v62 = vld [vmem:[#allocation51 + $0x148] sm:$0xff] }
0x1c7a   : > { %11981 = vmatprep.subr.bf16.mxu1 %v11980_v14  ;;  %v8177_v14 = vld [vmem:[#allocation51 + $0x158] sm:$0xff] }
0x1c7b   : > { %v12020_v23 = vpack.c.bf16 %v8177_v14, %v8175_v62  ;;  %v8490_v62 = vld [vmem:[#allocation51 + $0x468] sm:$0xff]  ;;  %v8492_v14 = vld [vmem:[#allocation51 + $0x478] sm:$0xff] }
0x1c7c   : > { %8328 = vmatmul.mubr.f32.vlgmr.msra.gmra.mrb[52].mxu1 %v14893_v30  ;;  %v11996_v30 = vpack.c.bf16 %v8153_v31, %v8151_v29  ;;  %v8186_v29 = vld [vmem:[#allocation51 + $0x1a0] sm:$0xff]  ;;  %v8188_v31 = vld [vmem:[#allocation51 + $0x1b0] sm:$0xff] }
0x1c7d   : > { %11983 = vmatpush1.bf16.msra.mxu1 %v11982_v11  ;;  %v8179_v11 = vld [vmem:[#allocation51 + $0x168] sm:$0xff]  ;;  %v12034_v22 = vpack.c.bf16 %v8188_v31, %v8186_v29  ;;  %v8501_v29 = vld [vmem:[#allocation51 + $0x4c0] sm:$0xff]  ;;  %v8503_v31 = vld [vmem:[#allocation51 + $0x4d0] sm:$0xff] }
0x1c7e   : > { %11985 = vmatprep.subr.bf16.mxu1 %v11984_v21  ;;  %v8181_v21 = vld [vmem:[#allocation51 + $0x178] sm:$0xff] }
0x1c7f   : > { %v12024_v47 = vpack.c.bf16 %v8181_v21, %v8179_v11  ;;  %v8494_v11 = vld [vmem:[#allocation51 + $0x488] sm:$0xff]  ;;  %v8496_v21 = vld [vmem:[#allocation51 + $0x498] sm:$0xff] }
0x1c81   : > { %11987 = vmatpush1.bf16.msra.mxu1 %v11986_v24  ;;  %v8183_v24 = vld [vmem:[#allocation51 + $0x188] sm:$0xff] }
0x1c82   : > { %11989 = vmatprep.subr.bf16.mxu1 %v11988_v32  ;;  %v8185_v32 = vld [vmem:[#allocation51 + $0x198] sm:$0xff] }
0x1c83   : > { %v12028_v28 = vpack.c.bf16 %v8185_v32, %v8183_v24  ;;  %v8498_v24 = vld [vmem:[#allocation51 + $0x4a8] sm:$0xff]  ;;  %v8500_v32 = vld [vmem:[#allocation51 + $0x4b8] sm:$0xff] }
0x1c85   : > { %11991 = vmatpush1.bf16.msra.mxu1 %v11990_v19  ;;  %v8187_v19 = vld [vmem:[#allocation51 + $0x1a8] sm:$0xff] }
0x1c86   : > { %11993 = vmatprep.subr.bf16.mxu1 %v11992_v26  ;;  %v8189_v26 = vld [vmem:[#allocation51 + $0x1b8] sm:$0xff] }
0x1c87   : > { %v12032_v8 = vpack.c.bf16 %v8189_v26, %v8187_v19  ;;  %v8502_v19 = vld [vmem:[#allocation51 + $0x4c8] sm:$0xff]  ;;  %v8504_v26 = vld [vmem:[#allocation51 + $0x4d8] sm:$0xff] }
0x1c89   : > { %11995 = vmatpush1.bf16.msra.mxu1 %v11994_v33  ;;  %v8191_v33 = vld [vmem:[#allocation51 + $0x1c8] sm:$0xff] }
0x1c8a   : > { %11997 = vmatprep.subr.bf16.mxu1 %v11996_v30  ;;  %v8193_v30 = vld [vmem:[#allocation51 + $0x1d8] sm:$0xff] }
0x1c8b   : > { %v12036_v17 = vpack.c.bf16 %v8193_v30, %v8191_v33  ;;  %v8506_v33 = vld [vmem:[#allocation51 + $0x4e8] sm:$0xff]  ;;  %v8508_v30 = vld [vmem:[#allocation51 + $0x4f8] sm:$0xff] }
0x1c8d   : > { %11999 = vmatpush1.bf16.msra.mxu1 %v11998_v44  ;;  %v8195_v44 = vld [vmem:[#allocation51 + $0x1e8] sm:$0xff] }
0x1c8e   : > { %12001 = vmatprep.subr.bf16.mxu1 %v12000_v50  ;;  %v8197_v50 = vld [vmem:[#allocation51 + $0x1f8] sm:$0xff] }
0x1c8f   : > { %v12040_v38 = vpack.c.bf16 %v8197_v50, %v8195_v44  ;;  %v8510_v44 = vld [vmem:[#allocation51 + $0x508] sm:$0xff]  ;;  %v8512_v50 = vld [vmem:[#allocation51 + $0x518] sm:$0xff] }
0x1c91   : > { %12003 = vmatpush1.bf16.msra.mxu1 %v12002_v45  ;;  %v8478_v45 = vld [vmem:[#allocation51 + $0x408] sm:$0xff] }
0x1c92   : > { %12005 = vmatprep.subr.bf16.mxu1 %v12004_v43  ;;  %v8480_v43 = vld [vmem:[#allocation51 + $0x418] sm:$0xff] }
0x1c93   : > { %v12044_v51 = vpack.c.bf16 %v8480_v43, %v8478_v45  ;;  %v8514_v45 = vld [vmem:[#allocation51 + $0x528] sm:$0xff]  ;;  %v8516_v43 = vld [vmem:[#allocation51 + $0x538] sm:$0xff] }
0x1c95   : > { %12007 = vmatpush1.bf16.msra.mxu1 %v12006_v5  ;;  %v8482_v5 = vld [vmem:[#allocation51 + $0x428] sm:$0xff] }
0x1c96   : > { %12009 = vmatprep.subr.bf16.mxu1 %v12008_v54  ;;  %v8484_v54 = vld [vmem:[#allocation51 + $0x438] sm:$0xff] }
0x1c97   : > { %v12048_v4 = vpack.c.bf16 %v8484_v54, %v8482_v5  ;;  %v8518_v5 = vld [vmem:[#allocation51 + $0x548] sm:$0xff]  ;;  %v8520_v54 = vld [vmem:[#allocation51 + $0x558] sm:$0xff] }
0x1c99   : > { %12011 = vmatpush1.bf16.msra.mxu1 %v12010_v6  ;;  %v8481_v6 = vld [vmem:[#allocation51 + $0x420] sm:$0xff] }
0x1c9a   : > { %12013 = vmatprep.subr.bf16.mxu1 %v12012_v34  ;;  %v8483_v34 = vld [vmem:[#allocation51 + $0x430] sm:$0xff] }
0x1c9d   : > { %12015 = vmatpush1.bf16.msra.mxu1 %v12014_v59  ;;  %v12050_v59 = vpack.c.bf16 %v8483_v34, %v8481_v6  ;;  %v8522_v6 = vld [vmem:[#allocation51 + $0x568] sm:$0xff]  ;;  %v8524_v34 = vld [vmem:[#allocation51 + $0x578] sm:$0xff] }
0x1c9e   : > { %12017 = vmatprep.subr.bf16.mxu1 %v12016_v9  ;;  %v12052_v9 = vpack.c.bf16 %v8488_v58, %v8486_v56  ;;  %v12088_v58 = vpack.c.bf16 %v8524_v34, %v8522_v6 }
0x1ca1   : > { %12019 = vmatpush1.bf16.msra.mxu1 %v12018_v12  ;;  %v12054_v12 = vpack.c.bf16 %v8487_v53, %v8485_v10  ;;  %v8528_v10 = vld [vmem:[#allocation51 + $0x598] sm:$0xff] }
0x1ca2   : > { %12021 = vmatprep.subr.bf16.mxu1 %v12020_v23  ;;  %v12056_v23 = vpack.c.bf16 %v8492_v14, %v8490_v62  ;;  %v8525_v14 = vld [vmem:[#allocation51 + $0x580] sm:$0xff] }
0x1ca5   : > { %12023 = vmatpush1.bf16.msra.mxu1 %v12022_v27  ;;  %v12058_v27 = vpack.c.bf16 %v8491_v18, %v8489_v3  ;;  %v8532_v3 = vld [vmem:[#allocation51 + $0x5b8] sm:$0xff] }
0x1ca6   : > { %12025 = vmatprep.subr.bf16.mxu1 %v12024_v47  ;;  %v12060_v47 = vpack.c.bf16 %v8496_v21, %v8494_v11  ;;  %v8529_v21 = vld [vmem:[#allocation51 + $0x5a0] sm:$0xff] }
0x1ca9   : > { %12027 = vmatpush1.bf16.msra.mxu1 %v12026_v20  ;;  %v12062_v20 = vpack.c.bf16 %v8495_v0, %v8493_v60  ;;  %v8536_v60 = vld [vmem:[#allocation51 + $0x5d8] sm:$0xff] }
0x1caa   : > { %12029 = vmatprep.subr.bf16.mxu1 %v12028_v28  ;;  %v12064_v28 = vpack.c.bf16 %v8500_v32, %v8498_v24  ;;  %v8533_v32 = vld [vmem:[#allocation51 + $0x5c0] sm:$0xff] }
0x1cad   : > { %12031 = vmatpush1.bf16.msra.mxu1 %v12030_v63  ;;  %v12066_v63 = vpack.c.bf16 %v8499_v1, %v8497_v16  ;;  %v8540_v16 = vld [vmem:[#allocation51 + $0x5f8] sm:$0xff] }
0x1cae   : > { %12033 = vmatprep.subr.bf16.mxu1 %v12032_v8  ;;  %v12068_v8 = vpack.c.bf16 %v8504_v26, %v8502_v19  ;;  %v8537_v26 = vld [vmem:[#allocation51 + $0x5e0] sm:$0xff] }
0x1cb1   : > { %12035 = vmatpush1.bf16.msra.mxu1 %v12034_v22  ;;  %v12070_v22 = vpack.c.bf16 %v8503_v31, %v8501_v29  ;;  %v8614_v29 = vld [vmem:[#allocation52] sm:$0x3] }
0x1cb2   : > { %12037 = vmatprep.subr.bf16.mxu1 %v12036_v17  ;;  %v12072_v17 = vpack.c.bf16 %v8508_v30, %v8506_v33  ;;  %v8619_v31 = vrot.slane %v8614_v29, %v14845_v40  ;;  %v8623_v33 = vrot.slane %v8614_v29, %v14848_v55  ;;  %v13572_v40 = vmov 1966171168  }
0x1cb3   : > { %v8651_v55 = vunpack.c.l.s4 %v13572_v40 }
0x1cb5   : > { %12039 = vmatpush1.bf16.msra.mxu1 %v12038_v36  ;;  %v12074_v36 = vpack.c.bf16 %v8507_v39, %v8505_v13 }
0x1cb6   : > { %12041 = vmatprep.subr.bf16.mxu1 %v12040_v38  ;;  %v12076_v38 = vpack.c.bf16 %v8512_v50, %v8510_v44 }
0x1cb9   : > { %12043 = vmatpush1.bf16.msra.mxu1 %v12042_v48  ;;  %v12078_v48 = vpack.c.bf16 %v8511_v42, %v8509_v41 }
0x1cba   : > { %12045 = vmatprep.subr.bf16.mxu1 %v12044_v51  ;;  %v12080_v51 = vpack.c.bf16 %v8516_v43, %v8514_v45 }
0x1d0f   : > { %v8129_v57 = vpop.f32.mrb[50].mxu1 }
0x1d10   : > { %v8131_v61 = vpop.f32.mrb[51].mxu1 }
0x1d11   : > { %8398 = vmatprep.mubr.f32.mxu1 %v8131_v61  ;;  %v14901_v35 = vpop.f32.mrb[54].mxu0  ;;  %v8517_v61 = vld [vmem:[#allocation51 + $0x540] sm:$0xff] }
0x1d12   : > { %8399 = vmatmul.mubr.f32.vlgmr.msra.gmra.mrb[52].mxu1 %v8129_v57  ;;  %v8473_v25 = vpop.f32.mrb[55].mxu0  ;;  %v12082_v57 = vpack.c.bf16 %v8515_v52, %v8513_v37 }
0x1d13   : > { %12047 = vmatpush1.bf16.msra.mxu1 %v12046_v2  ;;  %8605 = vmatprep.mubr.f32.mxu1 %v8473_v25  ;;  %v12084_v2 = vpack.c.bf16 %v8520_v54, %v8518_v5  ;;  %v8521_v25 = vld [vmem:[#allocation51 + $0x560] sm:$0xff]  ;;  %v8652_v5 = vunpack.c.0.s8 %v8651_v55 }
0x1d14   : > { %12049 = vmatprep.subr.bf16.mxu1 %v12048_v4  ;;  %v8519_v4 = vld [vmem:[#allocation51 + $0x550] sm:$0xff] }
0x1d15   : > { %v12086_v56 = vpack.c.bf16 %v8519_v4, %v8517_v61 }
0x1d17   : > { %12051 = vmatpush1.bf16.msra.mxu1 %v12050_v59  ;;  %v8523_v59 = vld [vmem:[#allocation51 + $0x570] sm:$0xff] }
0x1d18   : > { %12053 = vmatprep.subr.bf16.mxu1 %v12052_v9  ;;  %v8526_v9 = vld [vmem:[#allocation51 + $0x588] sm:$0xff]  ;;  %v12090_v53 = vpack.c.bf16 %v8523_v59, %v8521_v25 }
0x1d19   : > { %v12092_v62 = vpack.c.bf16 %v8528_v10, %v8526_v9 }
0x1d1b   : > { %12055 = vmatpush1.bf16.msra.mxu1 %v12054_v12  ;;  %v8527_v12 = vld [vmem:[#allocation51 + $0x590] sm:$0xff] }
0x1d1c   : > { %12057 = vmatprep.subr.bf16.mxu1 %v12056_v23  ;;  %v8530_v23 = vld [vmem:[#allocation51 + $0x5a8] sm:$0xff]  ;;  %v12094_v18 = vpack.c.bf16 %v8527_v12, %v8525_v14 }
0x1d1d   : > { %v12096_v11 = vpack.c.bf16 %v8532_v3, %v8530_v23 }
0x1d1f   : > { %12059 = vmatpush1.bf16.msra.mxu1 %v12058_v27  ;;  %v8531_v27 = vld [vmem:[#allocation51 + $0x5b0] sm:$0xff] }
0x1d20   : > { %12061 = vmatprep.subr.bf16.mxu1 %v12060_v47  ;;  %v8534_v47 = vld [vmem:[#allocation51 + $0x5c8] sm:$0xff]  ;;  %v12098_v0 = vpack.c.bf16 %v8531_v27, %v8529_v21 }
0x1d21   : > { %v12100_v24 = vpack.c.bf16 %v8536_v60, %v8534_v47 }
0x1d23   : > { %12063 = vmatpush1.bf16.msra.mxu1 %v12062_v20  ;;  %v8535_v20 = vld [vmem:[#allocation51 + $0x5d0] sm:$0xff] }
0x1d24   : > { %12065 = vmatprep.subr.bf16.mxu1 %v12064_v28  ;;  %v8538_v28 = vld [vmem:[#allocation51 + $0x5e8] sm:$0xff]  ;;  %v12102_v1 = vpack.c.bf16 %v8535_v20, %v8533_v32 }
0x1d25   : > { %v12104_v19 = vpack.c.bf16 %v8540_v16, %v8538_v28 }
0x1d27   : > { %12067 = vmatpush1.bf16.msra.mxu1 %v12066_v63  ;;  %v8539_v63 = vld [vmem:[#allocation51 + $0x5f0] sm:$0xff] }
0x1d28   : > { %12069 = vmatprep.subr.bf16.mxu1 %v12068_v8  ;;  %v12106_v8 = vpack.c.bf16 %v8539_v63, %v8537_v26 }
0x1d2b   : > { %12071 = vmatpush1.bf16.msra.mxu1 %v12070_v22 }
0x1d2c   : > { %12073 = vmatprep.subr.bf16.mxu1 %v12072_v17 }
0x1d2f   : > { %12075 = vmatpush1.bf16.msra.mxu1 %v12074_v36 }
0x1d30   : > { %12077 = vmatprep.subr.bf16.mxu1 %v12076_v38 }
0x1d33   : > { %12079 = vmatpush1.bf16.msra.mxu1 %v12078_v48 }
0x1d34   : > { %12081 = vmatprep.subr.bf16.mxu1 %v12080_v51 }
0x1d37   : > { %12083 = vmatpush1.bf16.msra.mxu1 %v12082_v57 }
0x1d38   : > { %12085 = vmatprep.subr.bf16.mxu1 %v12084_v2  ;;  %v8655_v2 = vsub.s32 %v8652_v5, %v14842_v15 }
0x1d3b   : > { %12087 = vmatpush1.bf16.msra.mxu1 %v12086_v56 }
0x1d3c   : > { %12089 = vmatprep.subr.bf16.mxu1 %v12088_v58 }
0x1d3f   : > { %12091 = vmatpush1.bf16.msra.mxu1 %v12090_v53 }
0x1d40   : > { %12093 = vmatprep.subr.bf16.mxu1 %v12092_v62 }
0x1d43   : > { %12095 = vmatpush1.bf16.msra.mxu1 %v12094_v18 }
0x1d44   : > { %12097 = vmatprep.subr.bf16.mxu1 %v12096_v11 }
0x1d47   : > { %12099 = vmatpush1.bf16.msra.mxu1 %v12098_v0 }
0x1d48   : > { %12101 = vmatprep.subr.bf16.mxu1 %v12100_v24 }
0x1d4b   : > { %12103 = vmatpush1.bf16.msra.mxu1 %v12102_v1 }
0x1d4c   : > { %12105 = vmatprep.subr.bf16.mxu1 %v12104_v19 }
0x1d4f   : > { %12107 = vmatpush1.bf16.msra.mxu1 %v12106_v8 }
0x1d52   : > { %8606 = vmatmul.mubr.f32.vlgmr.msra.gmra.mrb[52].mxu1 %v14901_v35 }
0x1e25   : > { %v8607_v30 = vpop.f32.mrb[52].mxu1 }
0x1e26   : > { %v8626_v22 = vadd.f32 %v8619_v31, %v8607_v30  ;;  %v8609_v17 = vpop.f32.mrb[53].mxu1 }
0x1e27   : > { %v8627_v13 = vadd.f32 %v8623_v33, %v8609_v17 }
0x1e28   : > { %v8628_v39 = vadd.f32 %v8626_v22, %v14868_v49 }
0x1e29   : > { %v8629_v44 = vadd.f32 %v8627_v13, %v14866_v46 }
0x1e2a   : > { %v8630_v50 = vmax.f32 %v8628_v39, 0.0 }
0x1e2b   : > { %v8631_v36 = vmax.f32 %v8629_v44, 0.0 }
0x1e2c   : > { %v8632_v38 = vrot.slane %v8630_v50, 4 }
0x1e2d   : > { %v8638_v41 = vrot.slane %v8631_v36, 4 }
0x1e2e   : > { %v8633_v42 = vadd.f32 %v8632_v38, %v8630_v50 }
0x1e2f   : > { %v8639_v35 = vadd.f32 %v8638_v41, %v8631_v36 }
0x1e30   : > { %v8634_v45 = vrot.slane %v8633_v42, 2 }
0x1e31   : > { %v8640_v43 = vrot.slane %v8639_v35, 2 }
0x1e32   : > { %v8635_v48 = vadd.f32 %v8634_v45, %v8633_v42 }
0x1e33   : > { %v8641_v51 = vadd.f32 %v8640_v43, %v8639_v35 }
0x1e34   : > { %v8636_v37 = vrot.slane %v8635_v48, 1 }
0x1e35   : > { %v8642_v52 = vrot.slane %v8641_v51, 1 }
0x1e36   : > { %v8637_v49 = vadd.f32 %v8636_v37, %v8635_v48 }
0x1e37   : > { %v8643_v54 = vadd.f32 %v8642_v52, %v8641_v51 }
0x1e38   : > { %v8645_v46 = vmul.f32 0.125, %v8637_v49 }
0x1e39   : > { %v8646_v57 = vmul.f32 0.125, %v8643_v54 }
0x1e3b   : > { %v8649_v61 = vcombine.low %v8645_v46, %v8646_v57 }
0x1e3d   : > { %v8656_v4 = vrot.slane %v8649_v61, %v8655_v2 }
0x1e3f   : > { %v8663_v6 = vrot.slane %v8656_v4, %v8655_v2 }
0x1e41   : > { %8669 = vst.msk [vmem:[%s1588_s11] sm:$0x3] %vm8667_vm9, %v8663_v6 }
0x1e42 PF: > { %s103_s0 = sadd.s32 1, %s13483_s0  }
0x1e43   : > { %p100_p3 = scmp.ge.s32.totalorder %s103_s0, 4  }
0x1e45   :  { %102 = sbr.rel (!%p100_p3) target bundleno = 85 (0x55), region = 410 }
0x1e4c   :  { %8689 = vsyncpa [#allocation3], 1 }
0x1e4d   :  { %8691 = vsyncpa [#allocation3 + $0x1], 1 }
0x1e4e   :  { %8692 = vsyncpa [#allocation5], 1 }
0x1e4f   :  { %8693 = vsyncpa [#allocation8], 1 }
0x1e50   :  { %8694 = vsyncpa [#allocation11], 1 }
0x1e51   :  { %8695 = vsyncpa [#allocation14], 1 }
0x1e52   :  { %8696 = vsyncpa [#allocation17], 1 }
0x1e53   :  { %8697 = vsyncpa [#allocation20], 1 }
0x1e54   :  { %8698 = vsyncpa [#allocation23], 1 }
0x1e55   :  { %8699 = vsyncpa [#allocation26], 1 }
0x1e56   :  { %8700 = vsyncpa [#allocation29], 1 }
0x1e57   :  { %8701 = vsyncpa [#allocation32], 1 }
0x1e58   :  { %8702 = vsyncpa [#allocation35], 1 }
0x1e59   :  { %8703 = vsyncpa [#allocation38], 1 }
0x1e5a   :  { %8704 = vsyncpa [#allocation41], 1 }
0x1e5b   :  { %8705 = vsyncpa [#allocation44], 1 }
0x1e5c   :  { %8706 = vsyncpa [#allocation47], 1 }
0x1e5d   :  { %8707 = vsyncpa [#allocation50], 1 }
0x1e5e   :  { %8708 = vsyncpa [#allocation53], 1 }

</bundles_post_ra>
